<compile_context>
chip_gen: v5e
topology: v5e:2x2
jax: 0.10.0
libtpu: 0.0.40
codegen_flags: <defaults>
</compile_context>

<pallas_src>
import jax
import jax.numpy as jnp
from jax.experimental import pallas as pl
from jax.experimental.pallas import tpu as pltpu

K1_PAD = 32                           # conv1_1 im2col contraction: 9 taps * 3 ch = 27 -> 32
VMEM_LIMIT_BYTES = 48 * 1024 * 1024   # > 16/32 MiB scoped defaults (v5e/v6e), < v7x 64 MiB physical


# -----------------------------------------------------------------------------
# In-kernel helpers
# -----------------------------------------------------------------------------
def _build_padded_strip(pad_ref, main, top, bot, strip_idx, n_strips):
    # pad_ref: VMEM (1, S+2, W+2, C). Writes interior strip + 1-row halos + zero borders.
    # Only the 1-pixel border is zeroed (tiny); the interior is fully rewritten every step,
    # so no stale data survives and no first-step-only init is needed (megacore safe).
    _, sp2, wp2, c = pad_ref.shape
    s, w = sp2 - 2, wp2 - 2
    zcol = jnp.zeros((1, sp2, 1, c), pad_ref.dtype)
    zrow = jnp.zeros((1, 1, w, c), pad_ref.dtype)

    pad_ref[:, :, 0:1, :] = zcol                   # left border column
    pad_ref[:, :, w + 1:w + 2, :] = zcol           # right border column
    pad_ref[:, 1:s + 1, 1:w + 1, :] = main         # interior strip

    @pl.when(strip_idx == 0)                       # top halo row: zero at the image border...
    def _():
        pad_ref[:, 0:1, 1:w + 1, :] = zrow

    @pl.when(strip_idx > 0)                        # ...otherwise the real neighbour row
    def _():
        pad_ref[:, 0:1, 1:w + 1, :] = top

    @pl.when(strip_idx == n_strips - 1)            # bottom halo row
    def _():
        pad_ref[:, s + 1:s + 2, 1:w + 1, :] = zrow

    @pl.when(strip_idx < n_strips - 1)
    def _():
        pad_ref[:, s + 1:s + 2, 1:w + 1, :] = bot


def _im2col_into(col_ref, pad_ref):
    # Pack all 9 taps along K (lane dim) -> one MXU dot with K = 9*Cin instead of 9 small dots.
    _, sp2, wp2, c = pad_ref.shape
    s, w = sp2 - 2, wp2 - 2
    m = s * w
    for ky in range(3):
        for kx in range(3):
            t = ky * 3 + kx
            col_ref[:, t * c:(t + 1) * c] = (
                pad_ref[:, ky:ky + s, kx:kx + w, :].reshape(m, c))


def _maxpool2x2(y):
    # y: (1, S, W, C) f32 -> (1, S//2, W//2, C).  Assumes S and W even (asserted in wrapper);
    # odd sizes would need PyTorch MaxPool2d floor semantics.
    _, s, w, c = y.shape
    y = y.reshape(1, s, w // 2, 2, c)
    y = jnp.maximum(y[:, :, :, 0], y[:, :, :, 1])
    y = y.reshape(1, s // 2, 2, w // 2, c)
    return jnp.maximum(y[:, :, 0], y[:, :, 1])


# -----------------------------------------------------------------------------
# Pallas kernels
# -----------------------------------------------------------------------------
def conv1_fused_kernel(x_ref, top_ref, bot_ref, w11_ref, b11_ref, w12_ref, b12_ref,
                       o_ref, pad_ref, col_ref):
    # Fused conv1_1 + ReLU + conv1_2 + ReLU + 2x2 maxpool on one row strip.
    # x_ref/top_ref/bot_ref: im2col'ed RGB rows (1,S,W,32)/(1,1,W,32) bf16 (halo rows clamped).
    # w11: (32,64) ; w12: (576,64) lane-packed (ky,kx,cin) ; biases (1,64) f32.
    i = pl.program_id(1)
    ns = pl.num_programs(1)
    _, s, w, k1 = x_ref.shape
    c1 = w11_ref.shape[1]

    def conv11(rows2d):  # (m,32) bf16 -> (m,64) f32, relu1_1
        a = jnp.dot(rows2d, w11_ref[...], preferred_element_type=jnp.float32)
        return jnp.maximum(a + b11_ref[...], 0.0)

    main11 = conv11(x_ref[...].reshape(s * w, k1)).reshape(1, s, w, c1).astype(pad_ref.dtype)
    top11 = conv11(top_ref[...].reshape(w, k1)).reshape(1, 1, w, c1).astype(pad_ref.dtype)
    bot11 = conv11(bot_ref[...].reshape(w, k1)).reshape(1, 1, w, c1).astype(pad_ref.dtype)

    # conv1_2's zero padding applies to relu1_1: halo rows outside the image must be zero,
    # not relu(bias) -- handled inside _build_padded_strip via the strip index.
    _build_padded_strip(pad_ref, main11, top11, bot11, i, ns)
    _im2col_into(col_ref, pad_ref)

    acc = jnp.dot(col_ref[...], w12_ref[...], preferred_element_type=jnp.float32)
    y = jnp.maximum(acc + b12_ref[...], 0.0).reshape(1, s, w, c1)
    o_ref[...] = _maxpool2x2(y).astype(o_ref.dtype)


def conv3x3_relu_kernel(x_ref, top_ref, bot_ref, w_ref, b_ref, o_ref, pad_ref, col_ref):
    # Generic 3x3 conv + ReLU on one row strip (used for conv2_1, conv2_2).
    i = pl.program_id(1)
    ns = pl.num_programs(1)
    _, s, w, cin = x_ref.shape
    cout = o_ref.shape[-1]

    _build_padded_strip(pad_ref, x_ref[...], top_ref[...], bot_ref[...], i, ns)
    _im2col_into(col_ref, pad_ref)

    acc = jnp.dot(col_ref[...], w_ref[...], preferred_element_type=jnp.float32)
    y = jnp.maximum(acc + b_ref[...], 0.0)
    o_ref[...] = y.reshape(1, s, w, cout).astype(o_ref.dtype)


# -----------------------------------------------------------------------------
# pallas_call wrappers (row-tiled grids with 1-row halo BlockSpecs)
# -----------------------------------------------------------------------------
def _pick_strip(h, target, multiple=1):
    # largest s <= target with h % s == 0 (and s % multiple == 0)
    s = min(target, h)
    while s > 1:
        if h % s == 0 and s % multiple == 0:
            return s
        s -= 1
    return h


def conv1_block(x_col, w11, b11, w12, b12, *, strip=16, out_dtype=jnp.bfloat16):
    # x_col: (N, H, W, 32) bf16 im2col'ed RGB input. Returns pooled relu1_2: (N, H/2, W/2, 64).
    n, h, wd, k1 = x_col.shape
    c1 = w11.shape[1]
    assert h % 2 == 0 and wd % 2 == 0, "fused 2x2 max-pool assumes even H/W"
    s = _pick_strip(h, strip, multiple=2)
    ns = h // s
    return pl.pallas_call(
        conv1_fused_kernel,
        out_shape=jax.ShapeDtypeStruct((n, h // 2, wd // 2, c1), out_dtype),
        grid_spec=pltpu.PrefetchScalarGridSpec(
            num_scalar_prefetch=0,
            grid=(n, ns),
            in_specs=[
                pl.BlockSpec((1, s, wd, k1), lambda b, i: (b, i, 0, 0)),
                pl.BlockSpec((1, 1, wd, k1),
                             lambda b, i: (b, jnp.maximum(i * s - 1, 0), 0, 0)),
                pl.BlockSpec((1, 1, wd, k1),
                             lambda b, i: (b, jnp.minimum(i * s + s, h - 1), 0, 0)),
                pl.BlockSpec((k1, c1), lambda b, i: (0, 0)),
                pl.BlockSpec((1, c1), lambda b, i: (0, 0)),
                pl.BlockSpec((9 * c1, c1), lambda b, i: (0, 0)),
                pl.BlockSpec((1, c1), lambda b, i: (0, 0)),
            ],
            out_specs=pl.BlockSpec((1, s // 2, wd // 2, c1), lambda b, i: (b, i, 0, 0)),
            scratch_shapes=[
                pltpu.VMEM((1, s + 2, wd + 2, c1), jnp.bfloat16),   # relu1_1 padded strip
                pltpu.VMEM((s * wd, 9 * c1), jnp.bfloat16),          # im2col staging (K=576)
            ],
        ),
        compiler_params=pltpu.CompilerParams(
            dimension_semantics=("parallel", "parallel"),
            vmem_limit_bytes=VMEM_LIMIT_BYTES),
    )(x_col, x_col, x_col, w11, b11, w12, b12)


def conv3x3_relu(x, wcol, b, *, strip=16, out_dtype=jnp.bfloat16):
    # x: (N, H, W, Cin) bf16 ; wcol: (9*Cin, Cout) bf16 ; b: (1, Cout) f32
    n, h, wd, cin = x.shape
    cout = wcol.shape[1]
    s = _pick_strip(h, strip)
    ns = h // s
    return pl.pallas_call(
        conv3x3_relu_kernel,
        out_shape=jax.ShapeDtypeStruct((n, h, wd, cout), out_dtype),
        grid_spec=pltpu.PrefetchScalarGridSpec(
            num_scalar_prefetch=0,
            grid=(n, ns),
            in_specs=[
                pl.BlockSpec((1, s, wd, cin), lambda b, i: (b, i, 0, 0)),
                pl.BlockSpec((1, 1, wd, cin),
                             lambda b, i: (b, jnp.maximum(i * s - 1, 0), 0, 0)),
                pl.BlockSpec((1, 1, wd, cin),
                             lambda b, i: (b, jnp.minimum(i * s + s, h - 1), 0, 0)),
                pl.BlockSpec((9 * cin, cout), lambda b, i: (0, 0)),
                pl.BlockSpec((1, cout), lambda b, i: (0, 0)),
            ],
            out_specs=pl.BlockSpec((1, s, wd, cout), lambda b, i: (b, i, 0, 0)),
            scratch_shapes=[
                pltpu.VMEM((1, s + 2, wd + 2, cin), jnp.bfloat16),   # padded input strip
                pltpu.VMEM((s * wd, 9 * cin), jnp.bfloat16),          # im2col staging
            ],
        ),
        compiler_params=pltpu.CompilerParams(
            dimension_semantics=("parallel", "parallel"),
            vmem_limit_bytes=VMEM_LIMIT_BYTES),
    )(x, x, x, wcol, b)


# -----------------------------------------------------------------------------
# Parameter setup / packing (deterministic synthetic init; no checkpoint loading)
# -----------------------------------------------------------------------------
def make_conv_params(key, cin, cout, scale=0.05):
    kw, kb = jax.random.split(key)
    w = jax.random.normal(kw, (cout, cin, 3, 3), jnp.float32) * scale  # OIHW (PyTorch)
    b = jax.random.normal(kb, (cout,), jnp.float32) * scale
    return w, b


def pack_im2col_weight(w_oihw, b, kpad):
    # -> ((kpad, Cout) bf16, (1, Cout) f32); row order (ky, kx, cin) matches im2col_3x3.
    cout, cin, kh, kw = w_oihw.shape
    w = jnp.transpose(w_oihw, (2, 3, 1, 0)).reshape(kh * kw * cin, cout)
    w = jnp.pad(w, ((0, kpad - kh * kw * cin), (0, 0)))
    return w.astype(jnp.bfloat16), b.astype(jnp.float32).reshape(1, cout)


def pack_col_weight(w_oihw, b):
    # -> ((9*Cin, Cout) bf16, (1, Cout) f32); row order (ky, kx, cin) matches _im2col_into.
    cout, cin, kh, kw = w_oihw.shape
    w = jnp.transpose(w_oihw, (2, 3, 1, 0)).reshape(kh * kw * cin, cout)
    return w.astype(jnp.bfloat16), b.astype(jnp.float32).reshape(1, cout)


def im2col_3x3(x_nhwc, kpad):
    # conv1_1 im2col in the XLA wrapper (input has only 3 channels so this is tiny); it turns
    # conv1_1 into a halo-free 1x1 matmul that the conv1 kernel fuses with conv1_2 + pool.
    n, h, w, c = x_nhwc.shape
    xp = jnp.pad(x_nhwc, ((0, 0), (1, 1), (1, 1), (0, 0)))
    taps = [xp[:, ky:ky + h, kx:kx + w, :] for ky in range(3) for kx in range(3)]
    col = jnp.concatenate(taps, axis=-1)                              # (N, H, W, 27)
    col = jnp.pad(col, ((0, 0), (0, 0), (0, 0), (0, kpad - 9 * c)))   # K -> 32
    return col


# -----------------------------------------------------------------------------
# Forward pass == VGG16 features[0:9] (relu2_2 output)
# -----------------------------------------------------------------------------
def vgg_perceptual_forward(x_nchw, packed_params, row_strip=8):
    # row_strip=8 keeps the smoke test multi-strip; use 16-32 at realistic (224^2) resolutions.
    (w11, b11), (w12, b12), (w21, b21), (w22, b22) = packed_params
    x = jnp.transpose(x_nchw, (0, 2, 3, 1))                            # NCHW -> NHWC (f32)
    xcol = im2col_3x3(x, K1_PAD).astype(jnp.bfloat16)                  # (N,H,W,32) bf16
    x = conv1_block(xcol, w11, b11, w12, b12, strip=row_strip)         # conv1_1+conv1_2+pool
    x = conv3x3_relu(x, w21, b21, strip=row_strip)                     # conv2_1 + ReLU (64->128)
    x = conv3x3_relu(x, w22, b22, strip=row_strip)                     # conv2_2 + ReLU (relu2_2), bf16
    return jnp.transpose(x, (0, 3, 1, 2))                              # NHWC -> NCHW (bf16)


# Pure-JAX f32 reference for correctness checking
def reference_forward(x_nchw, raw_params):
    def conv(x, w, b):
        y = jax.lax.conv_general_dilated(
            x, w, window_strides=(1, 1), padding=((1, 1), (1, 1)),
            dimension_numbers=("NCHW", "OIHW", "NCHW"))
        return jax.nn.relu(y + b[None, :, None, None])

    x = conv(x_nchw, *raw_params[0])
    x = conv(x, *raw_params[1])
    x = jax.lax.reduce_window(x, -jnp.inf, jax.lax.max,
                              (1, 1, 2, 2), (1, 1, 2, 2), "VALID")
    x = conv(x, *raw_params[2])
    x = conv(x, *raw_params[3])
    return x


if __name__ == "__main__":
    key = jax.random.PRNGKey(0)
    kx, k1, k2, k3, k4 = jax.random.split(key, 5)

    # small NCHW RGB batch; 32x32 so both row-tiled kernels run with >1 strip per image
    x = jax.random.normal(kx, (2, 3, 32, 32), jnp.float32)

    # TODO(synk): pretrained torchvision VGG16 (IMAGENET1K_V1) weights cannot be loaded here
    # (no files / network); deterministic synthetic weights of identical shapes instead.
    raw_params = [
        make_conv_params(k1, 3, 64),     # conv1_1
        make_conv_params(k2, 64, 64),    # conv1_2
        make_conv_params(k3, 64, 128),   # conv2_1
        make_conv_params(k4, 128, 128),  # conv2_2
    ]
    packed_params = [
        pack_im2col_weight(*raw_params[0], kpad=K1_PAD),
        pack_col_weight(*raw_params[1]),
        pack_col_weight(*raw_params[2]),
        pack_col_weight(*raw_params[3]),
    ]

    out = jax.block_until_ready(vgg_perceptual_forward(x, packed_params))

    ref = reference_forward(x, raw_params)
    assert out.shape == ref.shape == (2, 128, 16, 16), (out.shape, ref.shape)
    max_err = float(jnp.max(jnp.abs(out.astype(jnp.float32) - ref)))
    max_ref = float(jnp.max(jnp.abs(ref)))
    # bf16 activations/weights with f32 MXU accumulation -> loose tolerance vs f32 reference
    assert max_err <= 5e-2 * max(max_ref, 1.0), (max_err, max_ref)

    print("KERNEL_OK")
</pallas_src>

<mosaic_0001>
module attributes {stable_mosaic.version = 11 : i64} {
  func.func @conv1_fused_kernel(%arg0: i32, %arg1: i32, %arg2: memref<1x8x32x32xbf16, #tpu.memory_space<vmem>>, %arg3: memref<1x1x32x32xbf16, #tpu.memory_space<vmem>>, %arg4: memref<1x1x32x32xbf16, #tpu.memory_space<vmem>>, %arg5: memref<32x64xbf16, #tpu.memory_space<vmem>>, %arg6: memref<1x64xf32, #tpu.memory_space<vmem>>, %arg7: memref<576x64xbf16, #tpu.memory_space<vmem>>, %arg8: memref<1x64xf32, #tpu.memory_space<vmem>>, %arg9: memref<1x4x16x64xbf16, #tpu.memory_space<vmem>>, %arg10: memref<1x10x34x64xbf16, #tpu.memory_space<vmem>>, %arg11: memref<256x576xbf16, #tpu.memory_space<vmem>>) attributes {dimension_semantics = [#tpu.dimension_semantics<parallel>, #tpu.dimension_semantics<parallel>], iteration_bounds = array<i64: 2, 4>, scalar_prefetch = 0 : i64, scratch_operands = 2 : i64, tpu.core_type = #tpu.core_type<tc>, window_params = [{transform_indices = @transform_0, window_bounds = array<i64: 1, 8, 32, 32>}, {transform_indices = @transform_1, window_bounds = array<i64: 1, 1, 32, 32>}, {transform_indices = @transform_2, window_bounds = array<i64: 1, 1, 32, 32>}, {pipeline_mode = #tpu.pipeline_mode<synchronous>, transform_indices = @transform_3, window_bounds = array<i64: 32, 64>}, {pipeline_mode = #tpu.pipeline_mode<synchronous>, transform_indices = @transform_4, window_bounds = array<i64: 1, 64>}, {pipeline_mode = #tpu.pipeline_mode<synchronous>, transform_indices = @transform_5, window_bounds = array<i64: 576, 64>}, {pipeline_mode = #tpu.pipeline_mode<synchronous>, transform_indices = @transform_6, window_bounds = array<i64: 1, 64>}, {transform_indices = @transform_7, window_bounds = array<i64: 1, 4, 16, 64>}]} {
    %c0 = arith.constant 0 : index
    %c0_0 = arith.constant 0 : index
    %c0_1 = arith.constant 0 : index
    %c0_2 = arith.constant 0 : index
    %0 = vector.load %arg2[%c0, %c0_0, %c0_1, %c0_2] : memref<1x8x32x32xbf16, #tpu.memory_space<vmem>>, vector<1x8x32x32xbf16>
    %1 = vector.shape_cast %0 : vector<1x8x32x32xbf16> to vector<256x32xbf16>
    %c0_3 = arith.constant 0 : index
    %c0_4 = arith.constant 0 : index
    %2 = vector.load %arg5[%c0_3, %c0_4] : memref<32x64xbf16, #tpu.memory_space<vmem>>, vector<32x64xbf16>
    %cst = arith.constant dense<0.000000e+00> : vector<256x64xf32>
    %3 = tpu.matmul %1, %2, %cst {dimension_numbers = #tpu.dot_dimension_numbers<[1], [0], [0], [1], [0, 0, 1, 1], [], []>} : vector<256x32xbf16>, vector<32x64xbf16>, vector<256x64xf32> -> vector<256x64xf32>
    %c0_5 = arith.constant 0 : index
    %c0_6 = arith.constant 0 : index
    %4 = vector.load %arg6[%c0_5, %c0_6] : memref<1x64xf32, #tpu.memory_space<vmem>>, vector<1x64xf32>
    %5 = vector.broadcast %4 : vector<1x64xf32> to vector<256x64xf32>
    %6 = arith.addf %3, %5 : vector<256x64xf32>
    %cst_7 = arith.constant 0.000000e+00 : f32
    %7 = vector.broadcast %cst_7 : f32 to vector<256x64xf32>
    %8 = arith.maximumf %6, %7 : vector<256x64xf32>
    %9 = vector.shape_cast %8 : vector<256x64xf32> to vector<1x8x32x64xf32>
    %10 = arith.truncf %9 : vector<1x8x32x64xf32> to vector<1x8x32x64xbf16>
    %c0_8 = arith.constant 0 : index
    %c0_9 = arith.constant 0 : index
    %c0_10 = arith.constant 0 : index
    %c0_11 = arith.constant 0 : index
    %11 = vector.load %arg3[%c0_8, %c0_9, %c0_10, %c0_11] : memref<1x1x32x32xbf16, #tpu.memory_space<vmem>>, vector<1x1x32x32xbf16>
    %12 = vector.shape_cast %11 : vector<1x1x32x32xbf16> to vector<32x32xbf16>
    %c0_12 = arith.constant 0 : index
    %c0_13 = arith.constant 0 : index
    %13 = vector.load %arg5[%c0_12, %c0_13] : memref<32x64xbf16, #tpu.memory_space<vmem>>, vector<32x64xbf16>
    %cst_14 = arith.constant dense<0.000000e+00> : vector<32x64xf32>
    %14 = tpu.matmul %12, %13, %cst_14 {dimension_numbers = #tpu.dot_dimension_numbers<[1], [0], [0], [1], [0, 0, 1, 1], [], []>} : vector<32x32xbf16>, vector<32x64xbf16>, vector<32x64xf32> -> vector<32x64xf32>
    %c0_15 = arith.constant 0 : index
    %c0_16 = arith.constant 0 : index
    %15 = vector.load %arg6[%c0_15, %c0_16] : memref<1x64xf32, #tpu.memory_space<vmem>>, vector<1x64xf32>
    %16 = vector.broadcast %15 : vector<1x64xf32> to vector<32x64xf32>
    %17 = arith.addf %14, %16 : vector<32x64xf32>
    %cst_17 = arith.constant 0.000000e+00 : f32
    %18 = vector.broadcast %cst_17 : f32 to vector<32x64xf32>
    %19 = arith.maximumf %17, %18 : vector<32x64xf32>
    %20 = vector.shape_cast %19 : vector<32x64xf32> to vector<1x1x32x64xf32>
    %21 = arith.truncf %20 : vector<1x1x32x64xf32> to vector<1x1x32x64xbf16>
    %c0_18 = arith.constant 0 : index
    %c0_19 = arith.constant 0 : index
    %c0_20 = arith.constant 0 : index
    %c0_21 = arith.constant 0 : index
    %22 = vector.load %arg4[%c0_18, %c0_19, %c0_20, %c0_21] : memref<1x1x32x32xbf16, #tpu.memory_space<vmem>>, vector<1x1x32x32xbf16>
    %23 = vector.shape_cast %22 : vector<1x1x32x32xbf16> to vector<32x32xbf16>
    %c0_22 = arith.constant 0 : index
    %c0_23 = arith.constant 0 : index
    %24 = vector.load %arg5[%c0_22, %c0_23] : memref<32x64xbf16, #tpu.memory_space<vmem>>, vector<32x64xbf16>
    %cst_24 = arith.constant dense<0.000000e+00> : vector<32x64xf32>
    %25 = tpu.matmul %23, %24, %cst_24 {dimension_numbers = #tpu.dot_dimension_numbers<[1], [0], [0], [1], [0, 0, 1, 1], [], []>} : vector<32x32xbf16>, vector<32x64xbf16>, vector<32x64xf32> -> vector<32x64xf32>
    %c0_25 = arith.constant 0 : index
    %c0_26 = arith.constant 0 : index
    %26 = vector.load %arg6[%c0_25, %c0_26] : memref<1x64xf32, #tpu.memory_space<vmem>>, vector<1x64xf32>
    %27 = vector.broadcast %26 : vector<1x64xf32> to vector<32x64xf32>
    %28 = arith.addf %25, %27 : vector<32x64xf32>
    %cst_27 = arith.constant 0.000000e+00 : f32
    %29 = vector.broadcast %cst_27 : f32 to vector<32x64xf32>
    %30 = arith.maximumf %28, %29 : vector<32x64xf32>
    %31 = vector.shape_cast %30 : vector<32x64xf32> to vector<1x1x32x64xf32>
    %32 = arith.truncf %31 : vector<1x1x32x64xf32> to vector<1x1x32x64xbf16>
    %cst_28 = arith.constant 0.000000e+00 : bf16
    %33 = vector.broadcast %cst_28 : bf16 to vector<1x10x1x64xbf16>
    %cst_29 = arith.constant 0.000000e+00 : bf16
    %34 = vector.broadcast %cst_29 : bf16 to vector<1x1x32x64xbf16>
    %c0_30 = arith.constant 0 : index
    %c0_31 = arith.constant 0 : index
    %c0_32 = arith.constant 0 : index
    %c0_33 = arith.constant 0 : index
    %35 = vector.load %arg10[%c0_30, %c0_31, %c0_32, %c0_33] : memref<1x10x34x64xbf16, #tpu.memory_space<vmem>>, vector<1x10x1x64xbf16>
    tpu.vector_store %arg10[%c0_30, %c0_31, %c0_32, %c0_33], %33 {strides = array<i32>} : memref<1x10x34x64xbf16, #tpu.memory_space<vmem>>, vector<1x10x1x64xbf16>,
    %c0_34 = arith.constant 0 : index
    %c0_35 = arith.constant 0 : index
    %c33 = arith.constant 33 : index
    %c0_36 = arith.constant 0 : index
    %36 = vector.load %arg10[%c0_34, %c0_35, %c33, %c0_36] : memref<1x10x34x64xbf16, #tpu.memory_space<vmem>>, vector<1x10x1x64xbf16>
    tpu.vector_store %arg10[%c0_34, %c0_35, %c33, %c0_36], %33 {strides = array<i32>} : memref<1x10x34x64xbf16, #tpu.memory_space<vmem>>, vector<1x10x1x64xbf16>,
    %c0_37 = arith.constant 0 : index
    %c1 = arith.constant 1 : index
    %c1_38 = arith.constant 1 : index
    %c0_39 = arith.constant 0 : index
    %37 = vector.load %arg10[%c0_37, %c1, %c1_38, %c0_39] : memref<1x10x34x64xbf16, #tpu.memory_space<vmem>>, vector<1x8x32x64xbf16>
    tpu.vector_store %arg10[%c0_37, %c1, %c1_38, %c0_39], %10 {strides = array<i32>} : memref<1x10x34x64xbf16, #tpu.memory_space<vmem>>, vector<1x8x32x64xbf16>,
    %c0_i32 = arith.constant 0 : i32
    %38 = arith.cmpi eq, %arg1, %c0_i32 : i32
    %39 = arith.extui %38 : i1 to i32
    %c0_i32_40 = arith.constant 0 : i32
    %40 = arith.cmpi ne, %39, %c0_i32_40 : i32
    scf.if %40 {
      %c0_103 = arith.constant 0 : index
      %c0_104 = arith.constant 0 : index
      %c1_105 = arith.constant 1 : index
      %c0_106 = arith.constant 0 : index
      %100 = vector.load %arg10[%c0_103, %c0_104, %c1_105, %c0_106] : memref<1x10x34x64xbf16, #tpu.memory_space<vmem>>, vector<1x1x32x64xbf16>
      tpu.vector_store %arg10[%c0_103, %c0_104, %c1_105, %c0_106], %34 {strides = array<i32>} : memref<1x10x34x64xbf16, #tpu.memory_space<vmem>>, vector<1x1x32x64xbf16>,
    } else {
    }
    %c0_i32_41 = arith.constant 0 : i32
    %41 = arith.cmpi sgt, %arg1, %c0_i32_41 : i32
    %42 = arith.extui %41 : i1 to i32
    %c0_i32_42 = arith.constant 0 : i32
    %43 = arith.cmpi ne, %42, %c0_i32_42 : i32
    scf.if %43 {
      %c0_103 = arith.constant 0 : index
      %c0_104 = arith.constant 0 : index
      %c1_105 = arith.constant 1 : index
      %c0_106 = arith.constant 0 : index
      %100 = vector.load %arg10[%c0_103, %c0_104, %c1_105, %c0_106] : memref<1x10x34x64xbf16, #tpu.memory_space<vmem>>, vector<1x1x32x64xbf16>
      tpu.vector_store %arg10[%c0_103, %c0_104, %c1_105, %c0_106], %21 {strides = array<i32>} : memref<1x10x34x64xbf16, #tpu.memory_space<vmem>>, vector<1x1x32x64xbf16>,
    } else {
    }
    %c3_i32 = arith.constant 3 : i32
    %44 = arith.cmpi eq, %arg1, %c3_i32 : i32
    %45 = arith.extui %44 : i1 to i32
    %c0_i32_43 = arith.constant 0 : i32
    %46 = arith.cmpi ne, %45, %c0_i32_43 : i32
    scf.if %46 {
      %c0_103 = arith.constant 0 : index
      %c9 = arith.constant 9 : index
      %c1_104 = arith.constant 1 : index
      %c0_105 = arith.constant 0 : index
      %100 = vector.load %arg10[%c0_103, %c9, %c1_104, %c0_105] : memref<1x10x34x64xbf16, #tpu.memory_space<vmem>>, vector<1x1x32x64xbf16>
      tpu.vector_store %arg10[%c0_103, %c9, %c1_104, %c0_105], %34 {strides = array<i32>} : memref<1x10x34x64xbf16, #tpu.memory_space<vmem>>, vector<1x1x32x64xbf16>,
    } else {
    }
    %c3_i32_44 = arith.constant 3 : i32
    %47 = arith.cmpi slt, %arg1, %c3_i32_44 : i32
    %48 = arith.extui %47 : i1 to i32
    %c0_i32_45 = arith.constant 0 : i32
    %49 = arith.cmpi ne, %48, %c0_i32_45 : i32
    scf.if %49 {
      %c0_103 = arith.constant 0 : index
      %c9 = arith.constant 9 : index
      %c1_104 = arith.constant 1 : index
      %c0_105 = arith.constant 0 : index
      %100 = vector.load %arg10[%c0_103, %c9, %c1_104, %c0_105] : memref<1x10x34x64xbf16, #tpu.memory_space<vmem>>, vector<1x1x32x64xbf16>
      tpu.vector_store %arg10[%c0_103, %c9, %c1_104, %c0_105], %32 {strides = array<i32>} : memref<1x10x34x64xbf16, #tpu.memory_space<vmem>>, vector<1x1x32x64xbf16>,
    } else {
    }
    %c0_46 = arith.constant 0 : index
    %c0_47 = arith.constant 0 : index
    %c0_48 = arith.constant 0 : index
    %c0_49 = arith.constant 0 : index
    %50 = vector.load %arg10[%c0_46, %c0_47, %c0_48, %c0_49] : memref<1x10x34x64xbf16, #tpu.memory_space<vmem>>, vector<1x8x32x64xbf16>
    %51 = vector.shape_cast %50 : vector<1x8x32x64xbf16> to vector<256x64xbf16>
    %c0_50 = arith.constant 0 : index
    %c0_51 = arith.constant 0 : index
    %52 = vector.load %arg11[%c0_50, %c0_51] : memref<256x576xbf16, #tpu.memory_space<vmem>>, vector<256x64xbf16>
    tpu.vector_store %arg11[%c0_50, %c0_51], %51 {strides = array<i32>} : memref<256x576xbf16, #tpu.memory_space<vmem>>, vector<256x64xbf16>,
    %c0_52 = arith.constant 0 : index
    %c0_53 = arith.constant 0 : index
    %c1_54 = arith.constant 1 : index
    %c0_55 = arith.constant 0 : index
    %53 = vector.load %arg10[%c0_52, %c0_53, %c1_54, %c0_55] : memref<1x10x34x64xbf16, #tpu.memory_space<vmem>>, vector<1x8x32x64xbf16>
    %54 = vector.shape_cast %53 : vector<1x8x32x64xbf16> to vector<256x64xbf16>
    %c0_56 = arith.constant 0 : index
    %c64 = arith.constant 64 : index
    %55 = vector.load %arg11[%c0_56, %c64] : memref<256x576xbf16, #tpu.memory_space<vmem>>, vector<256x64xbf16>
    tpu.vector_store %arg11[%c0_56, %c64], %54 {strides = array<i32>} : memref<256x576xbf16, #tpu.memory_space<vmem>>, vector<256x64xbf16>,
    %c0_57 = arith.constant 0 : index
    %c0_58 = arith.constant 0 : index
    %c2 = arith.constant 2 : index
    %c0_59 = arith.constant 0 : index
    %56 = vector.load %arg10[%c0_57, %c0_58, %c2, %c0_59] : memref<1x10x34x64xbf16, #tpu.memory_space<vmem>>, vector<1x8x32x64xbf16>
    %57 = vector.shape_cast %56 : vector<1x8x32x64xbf16> to vector<256x64xbf16>
    %c0_60 = arith.constant 0 : index
    %c128 = arith.constant 128 : index
    %58 = vector.load %arg11[%c0_60, %c128] : memref<256x576xbf16, #tpu.memory_space<vmem>>, vector<256x64xbf16>
    tpu.vector_store %arg11[%c0_60, %c128], %57 {strides = array<i32>} : memref<256x576xbf16, #tpu.memory_space<vmem>>, vector<256x64xbf16>,
    %c0_61 = arith.constant 0 : index
    %c1_62 = arith.constant 1 : index
    %c0_63 = arith.constant 0 : index
    %c0_64 = arith.constant 0 : index
    %59 = vector.load %arg10[%c0_61, %c1_62, %c0_63, %c0_64] : memref<1x10x34x64xbf16, #tpu.memory_space<vmem>>, vector<1x8x32x64xbf16>
    %60 = vector.shape_cast %59 : vector<1x8x32x64xbf16> to vector<256x64xbf16>
    %c0_65 = arith.constant 0 : index
    %c192 = arith.constant 192 : index
    %61 = vector.load %arg11[%c0_65, %c192] : memref<256x576xbf16, #tpu.memory_space<vmem>>, vector<256x64xbf16>
    tpu.vector_store %arg11[%c0_65, %c192], %60 {strides = array<i32>} : memref<256x576xbf16, #tpu.memory_space<vmem>>, vector<256x64xbf16>,
    %c0_66 = arith.constant 0 : index
    %c1_67 = arith.constant 1 : index
    %c1_68 = arith.constant 1 : index
    %c0_69 = arith.constant 0 : index
    %62 = vector.load %arg10[%c0_66, %c1_67, %c1_68, %c0_69] : memref<1x10x34x64xbf16, #tpu.memory_space<vmem>>, vector<1x8x32x64xbf16>
    %63 = vector.shape_cast %62 : vector<1x8x32x64xbf16> to vector<256x64xbf16>
    %c0_70 = arith.constant 0 : index
    %c256 = arith.constant 256 : index
    %64 = vector.load %arg11[%c0_70, %c256] : memref<256x576xbf16, #tpu.memory_space<vmem>>, vector<256x64xbf16>
    tpu.vector_store %arg11[%c0_70, %c256], %63 {strides = array<i32>} : memref<256x576xbf16, #tpu.memory_space<vmem>>, vector<256x64xbf16>,
    %c0_71 = arith.constant 0 : index
    %c1_72 = arith.constant 1 : index
    %c2_73 = arith.constant 2 : index
    %c0_74 = arith.constant 0 : index
    %65 = vector.load %arg10[%c0_71, %c1_72, %c2_73, %c0_74] : memref<1x10x34x64xbf16, #tpu.memory_space<vmem>>, vector<1x8x32x64xbf16>
    %66 = vector.shape_cast %65 : vector<1x8x32x64xbf16> to vector<256x64xbf16>
    %c0_75 = arith.constant 0 : index
    %c320 = arith.constant 320 : index
    %67 = vector.load %arg11[%c0_75, %c320] : memref<256x576xbf16, #tpu.memory_space<vmem>>, vector<256x64xbf16>
    tpu.vector_store %arg11[%c0_75, %c320], %66 {strides = array<i32>} : memref<256x576xbf16, #tpu.memory_space<vmem>>, vector<256x64xbf16>,
    %c0_76 = arith.constant 0 : index
    %c2_77 = arith.constant 2 : index
    %c0_78 = arith.constant 0 : index
    %c0_79 = arith.constant 0 : index
    %68 = vector.load %arg10[%c0_76, %c2_77, %c0_78, %c0_79] : memref<1x10x34x64xbf16, #tpu.memory_space<vmem>>, vector<1x8x32x64xbf16>
    %69 = vector.shape_cast %68 : vector<1x8x32x64xbf16> to vector<256x64xbf16>
    %c0_80 = arith.constant 0 : index
    %c384 = arith.constant 384 : index
    %70 = vector.load %arg11[%c0_80, %c384] : memref<256x576xbf16, #tpu.memory_space<vmem>>, vector<256x64xbf16>
    tpu.vector_store %arg11[%c0_80, %c384], %69 {strides = array<i32>} : memref<256x576xbf16, #tpu.memory_space<vmem>>, vector<256x64xbf16>,
    %c0_81 = arith.constant 0 : index
    %c2_82 = arith.constant 2 : index
    %c1_83 = arith.constant 1 : index
    %c0_84 = arith.constant 0 : index
    %71 = vector.load %arg10[%c0_81, %c2_82, %c1_83, %c0_84] : memref<1x10x34x64xbf16, #tpu.memory_space<vmem>>, vector<1x8x32x64xbf16>
    %72 = vector.shape_cast %71 : vector<1x8x32x64xbf16> to vector<256x64xbf16>
    %c0_85 = arith.constant 0 : index
    %c448 = arith.constant 448 : index
    %73 = vector.load %arg11[%c0_85, %c448] : memref<256x576xbf16, #tpu.memory_space<vmem>>, vector<256x64xbf16>
    tpu.vector_store %arg11[%c0_85, %c448], %72 {strides = array<i32>} : memref<256x576xbf16, #tpu.memory_space<vmem>>, vector<256x64xbf16>,
    %c0_86 = arith.constant 0 : index
    %c2_87 = arith.constant 2 : index
    %c2_88 = arith.constant 2 : index
    %c0_89 = arith.constant 0 : index
    %74 = vector.load %arg10[%c0_86, %c2_87, %c2_88, %c0_89] : memref<1x10x34x64xbf16, #tpu.memory_space<vmem>>, vector<1x8x32x64xbf16>
    %75 = vector.shape_cast %74 : vector<1x8x32x64xbf16> to vector<256x64xbf16>
    %c0_90 = arith.constant 0 : index
    %c512 = arith.constant 512 : index
    %76 = vector.load %arg11[%c0_90, %c512] : memref<256x576xbf16, #tpu.memory_space<vmem>>, vector<256x64xbf16>
    tpu.vector_store %arg11[%c0_90, %c512], %75 {strides = array<i32>} : memref<256x576xbf16, #tpu.memory_space<vmem>>, vector<256x64xbf16>,
    %c0_91 = arith.constant 0 : index
    %c0_92 = arith.constant 0 : index
    %77 = vector.load %arg11[%c0_91, %c0_92] : memref<256x576xbf16, #tpu.memory_space<vmem>>, vector<256x576xbf16>
    %c0_93 = arith.constant 0 : index
    %c0_94 = arith.constant 0 : index
    %78 = vector.load %arg7[%c0_93, %c0_94] : memref<576x64xbf16, #tpu.memory_space<vmem>>, vector<576x64xbf16>
    %cst_95 = arith.constant dense<0.000000e+00> : vector<256x64xf32>
    %79 = tpu.matmul %77, %78, %cst_95 {dimension_numbers = #tpu.dot_dimension_numbers<[1], [0], [0], [1], [0, 0, 1, 1], [], []>} : vector<256x576xbf16>, vector<576x64xbf16>, vector<256x64xf32> -> vector<256x64xf32>
    %c0_96 = arith.constant 0 : index
    %c0_97 = arith.constant 0 : index
    %80 = vector.load %arg8[%c0_96, %c0_97] : memref<1x64xf32, #tpu.memory_space<vmem>>, vector<1x64xf32>
    %81 = vector.broadcast %80 : vector<1x64xf32> to vector<256x64xf32>
    %82 = arith.addf %79, %81 : vector<256x64xf32>
    %cst_98 = arith.constant 0.000000e+00 : f32
    %83 = vector.broadcast %cst_98 : f32 to vector<256x64xf32>
    %84 = arith.maximumf %82, %83 : vector<256x64xf32>
    %85 = vector.shape_cast %84 : vector<256x64xf32> to vector<1x8x32x64xf32>
    %86 = vector.shape_cast %85 : vector<1x8x32x64xf32> to vector<1x8x16x2x64xf32>
    %87 = vector.extract_strided_slice %86 {offsets = [0, 0, 0, 0, 0], sizes = [1, 8, 16, 1, 64], strides = [1, 1, 1, 1, 1]} : vector<1x8x16x2x64xf32> to vector<1x8x16x1x64xf32>
    %88 = vector.shape_cast %87 : vector<1x8x16x1x64xf32> to vector<1x8x16x64xf32>
    %89 = vector.extract_strided_slice %86 {offsets = [0, 0, 0, 1, 0], sizes = [1, 8, 16, 1, 64], strides = [1, 1, 1, 1, 1]} : vector<1x8x16x2x64xf32> to vector<1x8x16x1x64xf32>
    %90 = vector.shape_cast %89 : vector<1x8x16x1x64xf32> to vector<1x8x16x64xf32>
    %91 = arith.maximumf %88, %90 : vector<1x8x16x64xf32>
    %92 = vector.shape_cast %91 : vector<1x8x16x64xf32> to vector<1x4x2x16x64xf32>
    %93 = vector.extract_strided_slice %92 {offsets = [0, 0, 0, 0, 0], sizes = [1, 4, 1, 16, 64], strides = [1, 1, 1, 1, 1]} : vector<1x4x2x16x64xf32> to vector<1x4x1x16x64xf32>
    %94 = vector.shape_cast %93 : vector<1x4x1x16x64xf32> to vector<1x4x16x64xf32>
    %95 = vector.extract_strided_slice %92 {offsets = [0, 0, 1, 0, 0], sizes = [1, 4, 1, 16, 64], strides = [1, 1, 1, 1, 1]} : vector<1x4x2x16x64xf32> to vector<1x4x1x16x64xf32>
    %96 = vector.shape_cast %95 : vector<1x4x1x16x64xf32> to vector<1x4x16x64xf32>
    %97 = arith.maximumf %94, %96 : vector<1x4x16x64xf32>
    %98 = arith.truncf %97 : vector<1x4x16x64xf32> to vector<1x4x16x64xbf16>
    %c0_99 = arith.constant 0 : index
    %c0_100 = arith.constant 0 : index
    %c0_101 = arith.constant 0 : index
    %c0_102 = arith.constant 0 : index
    %99 = vector.load %arg9[%c0_99, %c0_100, %c0_101, %c0_102] : memref<1x4x16x64xbf16, #tpu.memory_space<vmem>>, vector<1x4x16x64xbf16>
    tpu.vector_store %arg9[%c0_99, %c0_100, %c0_101, %c0_102], %98 {strides = array<i32>} : memref<1x4x16x64xbf16, #tpu.memory_space<vmem>>, vector<1x4x16x64xbf16>,
    return
  }
  func.func @transform_0(%arg0: i32, %arg1: i32) -> (i32, i32, i32, i32) {
    %c0_i32 = arith.constant 0 : i32
    %c0_i32_0 = arith.constant 0 : i32
    %c0_i32_1 = arith.constant 0 : i32
    return %arg0, %arg1, %c0_i32, %c0_i32_0 : i32, i32, i32, i32
  }
  func.func @transform_1(%arg0: i32, %arg1: i32) -> (i32, i32, i32, i32) {
    %c8_i32 = arith.constant 8 : i32
    %0 = arith.muli %arg1, %c8_i32 : i32
    %c1_i32 = arith.constant 1 : i32
    %1 = arith.subi %0, %c1_i32 : i32
    %c0_i32 = arith.constant 0 : i32
    %2 = arith.maxsi %1, %c0_i32 : i32
    %c0_i32_0 = arith.constant 0 : i32
    %c0_i32_1 = arith.constant 0 : i32
    %c0_i32_2 = arith.constant 0 : i32
    return %arg0, %2, %c0_i32_0, %c0_i32_1 : i32, i32, i32, i32
  }
  func.func @transform_2(%arg0: i32, %arg1: i32) -> (i32, i32, i32, i32) {
    %c8_i32 = arith.constant 8 : i32
    %0 = arith.muli %arg1, %c8_i32 : i32
    %c8_i32_0 = arith.constant 8 : i32
    %1 = arith.addi %0, %c8_i32_0 : i32
    %c31_i32 = arith.constant 31 : i32
    %2 = arith.minsi %1, %c31_i32 : i32
    %c0_i32 = arith.constant 0 : i32
    %c0_i32_1 = arith.constant 0 : i32
    %c0_i32_2 = arith.constant 0 : i32
    return %arg0, %2, %c0_i32, %c0_i32_1 : i32, i32, i32, i32
  }
  func.func @transform_3(%arg0: i32, %arg1: i32) -> (i32, i32) {
    %c0_i32 = arith.constant 0 : i32
    %c0_i32_0 = arith.constant 0 : i32
    %c0_i32_1 = arith.constant 0 : i32
    return %c0_i32, %c0_i32_0 : i32, i32
  }
  func.func @transform_4(%arg0: i32, %arg1: i32) -> (i32, i32) {
    %c0_i32 = arith.constant 0 : i32
    %c0_i32_0 = arith.constant 0 : i32
    %c0_i32_1 = arith.constant 0 : i32
    return %c0_i32, %c0_i32_0 : i32, i32
  }
  func.func @transform_5(%arg0: i32, %arg1: i32) -> (i32, i32) {
    %c0_i32 = arith.constant 0 : i32
    %c0_i32_0 = arith.constant 0 : i32
    %c0_i32_1 = arith.constant 0 : i32
    return %c0_i32, %c0_i32_0 : i32, i32
  }
  func.func @transform_6(%arg0: i32, %arg1: i32) -> (i32, i32) {
    %c0_i32 = arith.constant 0 : i32
    %c0_i32_0 = arith.constant 0 : i32
    %c0_i32_1 = arith.constant 0 : i32
    return %c0_i32, %c0_i32_0 : i32, i32
  }
  func.func @transform_7(%arg0: i32, %arg1: i32) -> (i32, i32, i32, i32) {
    %c0_i32 = arith.constant 0 : i32
    %c0_i32_0 = arith.constant 0 : i32
    %c0_i32_1 = arith.constant 0 : i32
    return %arg0, %arg1, %c0_i32, %c0_i32_0 : i32, i32, i32, i32
  }
}

</mosaic_0001>

<bundles_post_ra>
// kernel: tpu_custom_call.1
= control target key start
LH: loop header
LB: loop body
LE: loop exit
PB: predicated region body
PF: predicated region fallthrough
CT: control target
= control target key end

     0   :  { %s11004_s0 = inlined_call_operand.hbm [shape: bf16[2,32,32,32], index: 0, kind: input, shape index: {}]   ;;  %s11005_s1 = inlined_call_operand.hbm [shape: bf16[2,32,32,32], index: 1, kind: input, shape index: {}]   ;;  %s11006_s2 = inlined_call_operand.hbm [shape: bf16[2,32,32,32], index: 2, kind: input, shape index: {}]   ;;  %s11007_s3 = inlined_call_operand.vmem [shape: bf16[32,64], index: 3, kind: input, shape index: {}]   ;;  %s11008_s4 = inlined_call_operand.vmem [shape: f32[1,64], index: 4, kind: input, shape index: {}]   ;;  %s11009_s5 = inlined_call_operand.vmem [shape: bf16[576,64], index: 5, kind: input, shape index: {}]   ;;  %s11010_s6 = inlined_call_operand.vmem [shape: f32[1,64], index: 6, kind: input, shape index: {}]   ;;  %s11011_s7 = inlined_call_operand.hbm [shape: bf16[2,16,16,64], index: 7, kind: output, shape index: {}]  }
   0x1   :  { %11043 = sst [smem:[#allocation46_spill]] %s11004_s0 }
   0x2   :  { %11044 = sst [smem:[#allocation47_spill]] %s11005_s1 }
   0x3   :  { %11045 = sst [smem:[#allocation48_spill]] %s11007_s3 }
   0x4   :  { %11046 = sst [smem:[#allocation49_spill]] %s11008_s4 }
   0x5   :  { %11047 = sst [smem:[#allocation50_spill]] %s11009_s5 }
   0x6   :  { %11048 = sst [smem:[#allocation51_spill]] %s11010_s6 }
   0x7   :  { %11049 = sst [smem:[#allocation52_spill]] %s11011_s7 }
   0x8   :  { %12 = vsyncpa [#allocation5], 0 }
   0x9   :  { %14 = vsyncpa [#allocation5 + $0x1], 0 }
   0xa   :  { %15 = vsyncpa [#allocation8], 0 }
   0xb   :  { %17 = vsyncpa [#allocation8 + $0x1], 0 }
   0xc   :  { %18 = vsyncpa [#allocation6], 0 }
   0xd   :  { %20 = vsyncpa [#allocation6 + $0x1], 0  ;;  %s8076_s24 = smov 0   ;;  %s8078_s25 = smov 0  }
   0xe   :  { %s8080_s26 = smov 0   ;;  %s8082_s27 = smov 0  }
   0xf   :  { %s8084_s28 = smov 0   ;;  %s8086_s29 = smov 0  }
  0x10   :  { %s8088_s30 = smov 0   ;;  %s8090_s8 = smov 0  }
  0x11   :  { %s8092_s9 = smov 0   ;;  %s8094_s10 = smov 0  }
  0x12   :  { %s8096_s11 = smov 0   ;;  %s8098_s12 = smov 0  }
  0x13   :  { %s8100_s13 = smov 0   ;;  %s8102_s14 = smov 0  }
  0x14 LB: > { %11050 = sst [smem:[#allocation15_spill]] %s7996_s29  ;;  %s8147_s15 = sadd.s32 4294967295, %s8028_s14   ;;  %s8028_s14 = sphi %s8102_s14, %s26_s14   ;;  %s8024_s13 = sphi %s8100_s13, %s11170_s13   ;;  %s8020_s12 = sphi %s8098_s12, %s11169_s12   ;;  %s8016_s11 = sphi %s8096_s11, %s11168_s11   ;;  %s8012_s10 = sphi %s8094_s10, %s11167_s10   ;;  %s8008_s9 = sphi %s8092_s9, %s11166_s9   ;;  %s8004_s8 = sphi %s8090_s8, %s11177_s8   ;;  %s8000_s30 = sphi %s8088_s30, %s11176_s30   ;;  %s7996_s29 = sphi %s8086_s29, %s11164_s29   ;;  %s7992_s28 = sphi %s8084_s28, %s11175_s28   ;;  %s7988_s27 = sphi %s8082_s27, %s11174_s27   ;;  %s7984_s26 = sphi %s8080_s26, %s11173_s26   ;;  %s7980_s25 = sphi %s8078_s25, %s11172_s25   ;;  %s7976_s24 = sphi %s8076_s24, %s11171_s24  }
  0x15   : > { %11051 = sst [smem:[#allocation16_spill]] %s8000_s30  ;;  %s35_s16 = sadd.s32 1, %s8020_s12 }
  0x16   : > { %11052 = sst [smem:[#allocation17_spill]] %s8008_s9  ;;  %p36_p0 = scmp.ge.s32.totalorder %s35_s16, 4 }
  0x17   : > { %11053 = sst [smem:[#allocation18_spill]] %s8012_s10  ;;  %s38_s17 = sadd.s32 1, %s8024_s13 }
  0x18   : > { %11054 = sst [smem:[#allocation19_spill]] %s8016_s11  ;;  %p55_p1 = scmp.eq.s32.totalorder %s8028_s14, 0 }
  0x19   : > { %11055 = sst [smem:[#allocation20_spill]] %s8020_s12  ;;  %p61_p2 = scmp.eq.s32.totalorder %s8147_s15, 0 }
  0x1a   : > { %11056 = sst [smem:[#allocation21_spill]] %s8024_s13  ;;  %s11179_s16 = smov (%p36_p0, %s35_s16), 0 }
  0x1b   : > { %11057 = sst [smem:[#allocation22_spill]] %s11179_s16  ;;  %s11181_s17 = smov (!%p36_p0, %s38_s17), %s8024_s13 }
  0x1c   : > { %s43_s18 = ssub.s32 %s8020_s12, %s11179_s16  ;;  %s6708_s19 = sshll.u32 %s8020_s12, 3 }
  0x1d   : > { %p40_p3 = scmp.ge.s32.totalorder %s11181_s17, 2  ;;  %s6709_s20 = sadd.s32 4294967295, %s6708_s19 }
  0x1e   : > { %p72_p4 = scmp.gt.s32.totalorder %s6709_s20, 0  ;;  %s6710_s21 = sshll.u32 %s11179_s16, 3 }
  0x1f   : > { %s11183_s17 = smov (%p40_p3, %s11181_s17), 0  ;;  %s6711_s23 = sadd.s32 4294967295, %s6710_s21 }
  0x20   : > { %11058 = sst [smem:[#allocation23_spill]] %s11183_s17  ;;  %s11185_s20 = smov (!%p72_p4, %s6709_s20), 0 }
  0x21   : > { %s8164_s22 = ssub.s32 %s8024_s13, %s11183_s17  ;;  %p76_p5 = scmp.gt.s32.totalorder %s6711_s23, 0 }
  0x22   : > { %s8167_s7 = sor.u32 %s43_s18, %s8164_s22  ;;  %s83_s11 = sadd.s32 1, %s7996_s29 }
  0x23   : > { %p45_p6 = scmp.eq.s32.totalorder %s8167_s7, 0  ;;  %s11187_s23 = smov (!%p76_p5, %s6711_s23), 0 }
  0x24   : > { %p90_p7 = scmp.ne.s32.totalorder %s7996_s29, %s7992_s28  ;;  %p96_p8 = scmp.ne.s32.totalorder %s7992_s28, %s7988_s27 }
  0x25   : > { %s79_s16 = ssub.s32 %s11185_s20, %s11187_s23  ;;  %s8175_s17 = sadd.s32 8, %s6708_s19 }
  0x26   : > { %s80_s6 = sor.u32 %s79_s16, %s8164_s22  ;;  %p8180_p9 = por %p90_p7, %p55_p1 }
  0x27   : > { %p81_p10 = scmp.eq.s32.totalorder %s80_s6, 0  ;;  %p8186_p11 = por %p96_p8, %p61_p2 }
  0x28   : > { %s8191_s27 = sadd.s32 8, %s6710_s21  ;;  %p11029_p0 = scmp.lt.s32.totalorder %s8028_s14, 8 }
  0x29   : > { %s11060_s5 = scalar_select %p8186_p11, 1, 0 }
  0x2a   : > { %s8194_s19 = scalar_select %p81_p10, %s7996_s29, %s83_s11  }
  0x2b   : > { %11061 = sst [smem:[#allocation24_spill]] %s11060_s5  ;;  %s8199_s16 = sshll.u32 %s8024_s13, 7 }
  0x2c   : > { %11062 = sst [smem:[#allocation25_spill]] %s8194_s19  ;;  %s305_s6 = sand.u32 1, %s8028_s14  }
  0x2d   : > { %s307_s23 = sand.u32 1, %s7996_s29   ;;  %s6724_s4 = sshll.u32 %s11185_s20, 2 }
  0x2e   : > { %s6721_s10 = sshll.u32 %s307_s23, 4  ;;  %s318_s3 = sadd.s32 %s6724_s4, %s8199_s16 }
  0x2f   : > { %s309_s5 = scalar_lea.vmem [#allocation7], %s6721_s10  ;;  %s6726_s11 = sshll.u32 %s318_s3, 2 }
  0x30   : > { %s323_s21 = sshll.u32 %s309_s5, 4  ;;  %s11063_s1 = sld [smem:[#allocation47_spill]]  ;;  %s324_s21 = int_to_ptr.vmem [resolvable:$true] %s323_s21 }
  0x31   : > { %p7650_p3 = pnand %p11029_p0, %p8180_p9  ;;  %p6732_p4 = scmp.ge.s32.totalorder %s8028_s14, 1 }
  0x32   : > { %s8212_s5 = scalar_lea.sflag [#allocation8], %s305_s6  ;;  %s11022_s3 = smov 64  }
  0x33   : > { %s11024_s10 = smov 4   ;;  %p359_p5 = scmp.lt.s32.totalorder %s8028_s14, 9 }
  0x34   : > { %s47_s20 = sadd.s32 1, %s8008_s9  ;;  %p54_p8 = scmp.ne.s32.totalorder %s8008_s9, %s8004_s8 }
  0x35   : > { %p8219_p7 = pnand %p6732_p4, %p359_p5  ;;  %p60_p9 = scmp.ne.s32.totalorder %s8004_s8, %s8000_s30 }
  0x36   : > { %s320_s29 = scalar_lea.hbm %s11063_s1, %s6726_s11  ;;  %p242_p10 = scmp.eq.s32.totalorder %s8147_s15, 7 }
  0x37   : > { %s321_s4 = sshll.u32 %s320_s29, 4  ;;  %s6707_s29 = sadd.s32 4294967294, %s8028_s14   ;;  %s322_s4 = int_to_ptr.hbm [resolvable:$true] %s321_s4 }
  0x38   : > { %7652 = dma.hbm_to_vmem [thread:$0]  (!%p7650_p3), %s322_s4, 256, %s324_s21, %s8212_s5, %s11022_s3, %s11022_s3, %s11024_s10  }
  0x39   : > { %s8228_s18 = scalar_select %p45_p6, %s8008_s9, %s47_s20  }
  0x3a   : > { %p248_p13 = scmp.eq.s32.totalorder %s6707_s29, 7  ;;  %p8237_p12 = por %p55_p1, %p54_p8 }
  0x3b   : > { %11065 = sst [smem:[#allocation26_spill]] %s8228_s18  ;;  %p8243_p3 = por %p61_p2, %p60_p9 }
  0x3c   : > { %p8247_p4 = por %p242_p10, %p54_p8  ;;  %p8251_p6 = por %p248_p13, %p60_p9 }
  0x3d   : > { %s280_s21 = sand.u32 1, %s8008_s9   ;;  %s7488_s11 = sshll.u32 %s8020_s12, 5 }
  0x3e   : > { %s11069_s23 = scalar_select %p8251_p6, 1, 0 }
  0x3f   : > { %s6716_s4 = sshll.u32 %s280_s21, 7  ;;  %s290_s29 = sadd.s32 %s7488_s11, %s8199_s16 }
  0x40   : > { %11070 = sst [smem:[#allocation27_spill]] %s11069_s23  ;;  %s6720_s20 = sshll.u32 %s290_s29, 2 }
  0x41   : > { %s284_s3 = scalar_lea.vmem [#allocation4], %s6716_s4  ;;  %s11071_s0 = sld [smem:[#allocation46_spill]] }
  0x42   : > { %s295_s10 = sshll.u32 %s284_s3, 4  ;;  %p7647_p13 = pnand %p11029_p0, %p8237_p12  ;;  %s296_s10 = int_to_ptr.vmem [resolvable:$true] %s295_s10 }
  0x43   : > { %s281_s11 = scalar_lea.sflag [#allocation5], %s280_s21  ;;  %s11072_s12 = smov 4  }
  0x44   : > { %s11073_s29 = smov 64   ;;  %p11074_p5 = scmp.lt.s32.totalorder %s8175_s17, 31 }
  0x45   : > { %p11075_p8 = scmp.lt.s32.totalorder %s8191_s27, 31  ;;  %s119_s1 = sadd.s32 1, %s7984_s26 }
  0x46   : > { %s11189_s17 = smov (!%p11074_p5, %s8175_s17), 31  ;;  %p126_p9 = scmp.ne.s32.totalorder %s7984_s26, %s7980_s25 }
  0x47   : > { %s292_s23 = scalar_lea.hbm %s11071_s0, %s6720_s20  ;;  %s11191_s27 = smov (!%p11075_p8, %s8191_s27), 31 }
  0x48   : > { %s293_s9 = sshll.u32 %s292_s23, 4  ;;  %s115_s3 = ssub.s32 %s11189_s17, %s11191_s27  ;;  %s294_s9 = int_to_ptr.hbm [resolvable:$true] %s293_s9 }
  0x49   : > { %7649 = dma.hbm_to_vmem [thread:$0]  (!%p7647_p13), %s294_s9, 2048, %s296_s10, %s281_s11, %s11073_s29, %s11073_s29, %s11072_s12  }
  0x4a   : > { %p132_p10 = scmp.ne.s32.totalorder %s7980_s25, %s7976_s24  ;;  %s116_s18 = sor.u32 %s115_s3, %s8164_s22 }
  0x4b   : > { %p8282_p12 = por %p126_p9, %p55_p1  ;;  %p117_p0 = scmp.eq.s32.totalorder %s116_s18, 0 }
  0x4c   : > { %p8288_p13 = por %p132_p10, %p61_p2  ;;  %s335_s10 = sand.u32 1, %s7984_s26  }
  0x4d   : > { %s6729_s23 = sshll.u32 %s11189_s17, 2  ;;  %s6727_s24 = sshll.u32 %s335_s10, 4 }
  0x4e   : > { %s8294_s21 = scalar_select %p117_p0, %s7984_s26, %s119_s1  }
  0x4f   : > { %s346_s22 = sadd.s32 %s6729_s23, %s8199_s16  ;;  %s337_s3 = scalar_lea.vmem [#allocation9], %s6727_s24 }
  0x50   : > { %s6731_s27 = sshll.u32 %s346_s22, 2  ;;  %s351_s0 = sshll.u32 %s337_s3, 4  ;;  %s352_s0 = int_to_ptr.vmem [resolvable:$true] %s351_s0 }
  0x51   : > { %s348_s11 = scalar_lea.hbm %s11006_s2, %s6731_s27  ;;  %p11078_p1 = scmp.lt.s32.totalorder %s8028_s14, 8 }
  0x52   : > { %s349_s30 = sshll.u32 %s348_s11, 4  ;;  %363 = sbr.rel (%p8219_p7) target bundleno = 1197 (0x4ad), region = 48  ;;  %s350_s30 = int_to_ptr.hbm [resolvable:$true] %s349_s30 }
  0x53   : > { %p7653_p2 = pnand %p11078_p1, %p8282_p12 }
  0x55   : > { %7655 = dma.hbm_to_vmem [thread:$0]  (!%p7653_p2), %s350_s30, 256, %s352_s0, %s8212_s5, %s11073_s29, %s11073_s29, %s11072_s12  }
  0x57   : > { %s8311_s17 = sand.u32 1, %s8004_s8  }
  0x58   : > { %s6733_s16 = sshll.u32 %s8311_s17, 7  ;;  %s366_s1 = scalar_lea.sflag [#allocation5], %s8311_s17 }
  0x59   : > { %s8315_s18 = scalar_lea.vmem [#allocation4], %s6733_s16 }
  0x5a   : > { %7959 = dma.done.wait (%p8243_p3), %s366_s1, 2048  }
  0x5b   : > { %7961 = vsyncadd (%p8243_p3), %s366_s1, 4294965248  ;;  %s375_s30 = sand.u32 1, %s8147_s15   ;;  %s377_s12 = sand.u32 1, %s7992_s28  }
  0x5c   : > { %s8323_s5 = sshll.u32 %s377_s12, 4  ;;  %s376_s13 = scalar_lea.sflag [#allocation8], %s375_s30 }
  0x5d   : > { %s379_s29 = scalar_lea.vmem [#allocation7], %s8323_s5 }
  0x5e   : > { %7963 = dma.done.wait (%p8186_p11), %s376_s13, 256  }
  0x5f   : > { %7965 = vsyncadd (%p8186_p11), %s376_s13, 4294967040  ;;  %s387_s19 = sand.u32 1, %s7980_s25  }
  0x60   : > { %s8331_s6 = sshll.u32 %s387_s19, 4 }
  0x61   : > { %s389_s10 = scalar_lea.vmem [#allocation9], %s8331_s6 }
  0x62   : > { %7967 = dma.done.wait (%p8288_p13), %s376_s13, 256  }
  0x63   : > { %7969 = vsyncadd (%p8288_p13), %s376_s13, 4294967040  ;;  %s6736_s15 = sshll.u32 %s8311_s17, 5  ;;  %s11080_s22 = sld [smem:[#allocation48_spill]]  ;;  %v7489_v2 = vld [vmem:[%s8315_s18] sm:$0xff]  ;;  %v7499_v3 = vld [vmem:[%s8315_s18 + $0x50] sm:$0xff]  ;;  %vm574_vm0 = vcmask 261120  }
  0x64   : > { %v7490_v4 = vld [vmem:[%s8315_s18 + $0x8] sm:$0xff]  ;;  %v7500_v5 = vld [vmem:[%s8315_s18 + $0x58] sm:$0xff]  ;;  %v7491_v6 = vld [vmem:[%s8315_s18 + $0x10] sm:$0xff]  ;;  %vm870_vm1 = vcmask 516096   ;;  %vm871_vm2 = vsmask.f32 256 }
  0x65   : > { %v7501_v7 = vld [vmem:[%s8315_s18 + $0x60] sm:$0xff]  ;;  %v7492_v8 = vld [vmem:[%s8315_s18 + $0x18] sm:$0xff]  ;;  %v7502_v9 = vld [vmem:[%s8315_s18 + $0x68] sm:$0xff]  ;;  %vm903_vm4 = vsmask.f32 7938  ;;  %s11085_s11 = sld [smem:[#allocation49_spill]] }
  0x66   : > { %v7493_v10 = vld [vmem:[%s8315_s18 + $0x20] sm:$0xff]  ;;  %v7503_v11 = vld [vmem:[%s8315_s18 + $0x70] sm:$0xff]  ;;  %v7494_v12 = vld [vmem:[%s8315_s18 + $0x28] sm:$0xff]  ;;  %vm1258_vm6 = vcmask 519168   ;;  %vm935_vm8 = vsmask.f32 4368 }
  0x67   : > { %v7504_v13 = vld [vmem:[%s8315_s18 + $0x78] sm:$0xff]  ;;  %v7495_v14 = vld [vmem:[%s8315_s18 + $0x30] sm:$0xff]  ;;  %vm8378_vm3 = vmand %vm870_vm1, %vm871_vm2  ;;  %s8619_s3 = scalar_lea.vmem [#allocation10], %s6736_s15  ;;  %s11090_s16 = sld [smem:[#allocation18_spill]] }
  0x68   : > { %v7509_v15 = vld [vmem:[%s389_s10] sm:$0xff]  ;;  %v876_v18 = vld [vmem:[#allocation2 + $0x14] sm:$0x1]  ;;  %v873_v20 = vld [vmem:[#allocation2] sm:$0x1] }
  0x69   : > { %v7506_v0 = vld [vmem:[%s11080_s22 + $0x8] sm:$0xff]  ;;  %v7505_v1 = vld [vmem:[%s11080_s22] sm:$0xff]  ;;  %v877_v19 = vsel %vm8378_vm3, 0, %v876_v18  ;;  %v900_v21 = vld [vmem:[#allocation2 + $0xb4] sm:$0x1]  ;;  %v874_v22 = vsel %vm8378_vm3, 0, %v873_v20 }
  0x6a   : > { %629 = vmatpush.bf16.msra.mxu0 %v7506_v0  ;;  %7628 = vmatpush.bf16.msra.mxu2 %v7506_v0  ;;  %v7507_v16 = vld [vmem:[%s379_s29] sm:$0xff]  ;;  %878 = vst [vmem:[#allocation2 + $0x14] sm:$0x1] %v877_v19  ;;  %v901_v23 = vsel %vm8378_vm3, 0, %v900_v21  ;;  %v905_v24 = vld [vmem:[#allocation2 + $0x10] sm:$0x1]  ;;  %vm8391_vm5 = vmand %vm870_vm1, %vm903_vm4 }
  0x6b   : > { %802 = vmatpush.bf16.msra.mxu1 %v7506_v0  ;;  %875 = vst [vmem:[#allocation2] sm:$0x1] %v874_v22  ;;  %v932_v26 = vld [vmem:[#allocation2 + $0xc4] sm:$0x1]  ;;  %v906_v27 = vsel %vm8391_vm5, 0, %v905_v24  ;;  %v7497_v35 = vld [vmem:[%s8315_s18 + $0x40] sm:$0xff]  ;;  %vm8425_vm7 = vmand %vm1258_vm6, %vm903_vm4 }
  0x6c   : > { %902 = vst [vmem:[#allocation2 + $0xb4] sm:$0x1] %v901_v23  ;;  %v933_v28 = vsel %vm8391_vm5, 0, %v932_v26  ;;  %v7496_v29 = vld [vmem:[%s8315_s18 + $0x38] sm:$0xff]  ;;  %v879_v39 = vld [vmem:[#allocation2 + $0x28] sm:$0x1]  ;;  %vm8435_vm9 = vmor %vm871_vm2, %vm935_vm8 }
  0x6d   : > { %907 = vst [vmem:[#allocation2 + $0x10] sm:$0x1] %v906_v27  ;;  %v7510_v30 = vld [vmem:[%s389_s10 + $0x8] sm:$0xff]  ;;  %v880_v41 = vsel %vm8378_vm3, 0, %v879_v39  ;;  %v891_v45 = vld [vmem:[#allocation2 + $0x78] sm:$0x1] }
  0x6e   : > { %630 = vmatpush.bf16.msra.mxu0 %v7505_v1  ;;  %7629 = vmatpush.bf16.msra.mxu2 %v7505_v1  ;;  %934 = vst [vmem:[#allocation2 + $0xc4] sm:$0x1] %v933_v28  ;;  %v7508_v31 = vld [vmem:[%s379_s29 + $0x8] sm:$0xff]  ;;  %v892_v47 = vsel %vm8378_vm3, 0, %v891_v45  ;;  %p6845_p11 = scmp.ne.s32.totalorder %s11090_s16, 0 }
  0x6f   : > { %803 = vmatpush.bf16.msra.mxu1 %v7505_v1  ;;  %v908_v32 = vld [vmem:[#allocation2 + $0x24] sm:$0x1]  ;;  %v8412_v34 = vld [vmem:[%s11085_s11] ss:$0 sm:$0xff]  ;;  %881 = vst [vmem:[#allocation2 + $0x28] sm:$0x1] %v880_v41 }
  0x70   : > { %v909_v33 = vsel %vm8391_vm5, 0, %v908_v32  ;;  %893 = vst [vmem:[#allocation2 + $0x78] sm:$0x1] %v892_v47  ;;  %v7498_v63 = vld [vmem:[%s8315_s18 + $0x48] sm:$0xff] }
  0x71   : > { %6809 = vmatmul.msk.bf16.vlgmr.msra.gmra.mxu0 %vm574_vm0, %v7489_v2  ;;  %6819 = vmatmul.msk.bf16.vlgmr.msra.gmra.mxu2 %vm574_vm0, %v7499_v3  ;;  %910 = vst [vmem:[#allocation2 + $0x24] sm:$0x1] %v909_v33  ;;  %v1260_v53 = vld [vmem:[#allocation2 + $0x14] sm:$0xf] }
  0x72   : > { %849 = vmatpush.bf16.msrb.mxu2 %v7506_v0  ;;  %6833 = vmatmul.msk.bf16.vlgmr.msra.gmra.mxu1 %vm574_vm0, %v7507_v16 }
  0x76   : > { %850 = vmatpush.bf16.msrb.mxu2 %v7505_v1 }
  0x77   : > { %v1306_v3 = vld [vmem:[#allocation2 + $0x78] sm:$0xf] }
  0x81   : > { %6810 = vmatmul.msk.bf16.gmra.mxu0 %vm574_vm0, %v7490_v4  ;;  %6820 = vmatmul.msk.bf16.gmra.mxu2 %vm574_vm0, %v7500_v5 }
  0x82   : > { %6834 = vmatmul.msk.bf16.gmra.mxu1 %vm574_vm0, %v7508_v31 }
  0x91   : > { %6811 = vmatmul.msk.bf16.gmra.mxu0 %vm574_vm0, %v7491_v6  ;;  %6821 = vmatmul.msk.bf16.gmra.mxu2 %vm574_vm0, %v7501_v7 }
  0xa1   : > { %6812 = vmatmul.msk.bf16.gmra.mxu0 %vm574_vm0, %v7492_v8  ;;  %6822 = vmatmul.msk.bf16.gmra.mxu2 %vm574_vm0, %v7502_v9 }
  0xb1   : > { %6813 = vmatmul.msk.bf16.gmra.mxu0 %vm574_vm0, %v7493_v10  ;;  %6823 = vmatmul.msk.bf16.gmra.mxu2 %vm574_vm0, %v7503_v11 }
  0xc1   : > { %6814 = vmatmul.msk.bf16.gmra.mxu0 %vm574_vm0, %v7494_v12  ;;  %6824 = vmatmul.msk.bf16.gmra.mxu2 %vm574_vm0, %v7504_v13 }
  0xd1   : > { %6815 = vmatmul.msk.bf16.gmra.mxu0 %vm574_vm0, %v7495_v14  ;;  %6843 = vmatmul.msk.bf16.vlgmr.msrb.gmra.mxu2 %vm574_vm0, %v7509_v15 }
  0xe1   : > { %6816 = vmatmul.msk.bf16.gmra.mxu0 %vm574_vm0, %v7496_v29  ;;  %6844 = vmatmul.msk.bf16.gmra.mxu2 %vm574_vm0, %v7510_v30 }
  0xee   : > { %v632_v36 = vpop.f32.mrf.mxu0 }
  0xef   : > { %v633_v37 = vadd.f32 %v8412_v34, %v632_v36 }
  0xf1   : > { %v712_v38 = vmax.f32 %v633_v37, 0.0  ;;  %6817 = vmatmul.msk.bf16.gmra.mxu0 %vm574_vm0, %v7497_v35 }
  0xf3   : > { %v744_v40 = vpack.c.bf16 %v712_v38, %v712_v38  ;;  %v911_v38 = vld [vmem:[#allocation2 + $0x38] sm:$0x1] }
  0xf4   : > { %v682_v42 = vpop.f32.mrf.mxu2 }
  0xf5   : > { %v938_v43 = vshrl.u32 %v744_v40, 16  ;;  %v683_v44 = vadd.f32 %v8412_v34, %v682_v42  ;;  %v941_v49 = vshll.u32 %v744_v40, 16 }
  0xf6   : > { %v634_v46 = vpop.f32.mrf.mxu0 }
  0xf7   : > { %v940_v48 = vrot.slane %v938_v43, 7  ;;  %v635_v50 = vadd.f32 %v8412_v34, %v634_v46  ;;  %v732_v51 = vmax.f32 %v683_v44, 0.0  ;;  %v923_v43 = vld [vmem:[#allocation2 + $0x88] sm:$0x1]  ;;  %v912_v46 = vsel %vm8391_vm5, 0, %v911_v38 }
  0xf8   : > { %v924_v45 = vsel %vm8391_vm5, 0, %v923_v43  ;;  %913 = vst [vmem:[#allocation2 + $0x38] sm:$0x1] %v912_v46 }
  0xf9   : > { %v943_v54 = vor.u32 %v941_v49, %v940_v48  ;;  %v713_v55 = vmax.f32 %v635_v50, 0.0  ;;  %v764_v56 = vpack.c.bf16 %v732_v51, %v732_v51  ;;  %v944_v10 = vrot.slane %v940_v48, 4  ;;  %925 = vst [vmem:[#allocation2 + $0x88] sm:$0x1] %v924_v45 }
  0xfb   : > { %v1261_v57 = vsel %vm8425_vm7, %v943_v54, %v1260_v53  ;;  %v745_v58 = vpack.c.bf16 %v713_v55, %v713_v55  ;;  %v1113_v59 = vshrl.u32 %v764_v56, 16  ;;  %v1116_v60 = vshll.u32 %v764_v56, 16 }
  0xfc   : > { %1262 = vst [vmem:[#allocation2 + $0x14] sm:$0xf] %v1261_v57  ;;  %v684_v61 = vpop.f32.mrf.mxu2 }
  0xfd   : > { %v946_v62 = vshrl.u32 %v745_v58, 16  ;;  %v1115_v0 = vrot.slane %v1113_v59, 7  ;;  %v685_v1 = vadd.f32 %v8412_v34, %v684_v61  ;;  %v949_v5 = vshll.u32 %v745_v58, 16  ;;  %v1267_v58 = vld [vmem:[#allocation2 + $0x24] sm:$0x1] }
  0xfe   : > { %v637_v2 = vpop.f32.mrf.mxu0 }
  0xff   : > { %v948_v4 = vrot.slane %v946_v62, 7  ;;  %v638_v6 = vadd.f32 %v8412_v34, %v637_v2  ;;  %v1118_v7 = vor.u32 %v1116_v60, %v1115_v0  ;;  %v733_v9 = vmax.f32 %v685_v1, 0.0  ;;  %v882_v1 = vld [vmem:[#allocation2 + $0x3c] sm:$0x1] }
 0x100   : > { %v1119_v24 = vrot.slane %v1115_v0, 4 }
 0x101   : > { %v951_v11 = vor.u32 %v949_v5, %v948_v4  ;;  %v714_v12 = vmax.f32 %v638_v6, 0.0  ;;  %6818 = vmatmul.msk.bf16.gmra.mxu0 %vm574_vm0, %v7498_v63  ;;  %v1307_v13 = vsel %vm8425_vm7, %v1118_v7, %v1306_v3  ;;  %v765_v14 = vpack.c.bf16 %v733_v9, %v733_v9 }
 0x102   : > { %1308 = vst [vmem:[#allocation2 + $0x78] sm:$0xf] %v1307_v13  ;;  %v953_v32 = vrot.slane %v948_v4, 4  ;;  %v883_v5 = vsel %vm8378_vm3, 0, %v882_v1 }
 0x103   : > { %v952_v15 = vsel %vm8435_vm9, %v944_v10, %v951_v11  ;;  %v746_v16 = vpack.c.bf16 %v714_v12, %v714_v12  ;;  %v1121_v18 = vshrl.u32 %v765_v14, 16  ;;  %v1124_v19 = vshll.u32 %v765_v14, 16  ;;  %884 = vst [vmem:[#allocation2 + $0x3c] sm:$0x1] %v883_v5 }
 0x104   : > { %1264 = vst.msk [vmem:[#allocation2 + $0x18] sm:$0xf] %vm1258_vm6, %v952_v15  ;;  %v687_v20 = vpop.f32.mrf.mxu2 }
 0x105   : > { %v955_v21 = vshrl.u32 %v746_v16, 16  ;;  %v688_v22 = vadd.f32 %v8412_v34, %v687_v20  ;;  %v1123_v26 = vrot.slane %v1121_v18, 7  ;;  %v958_v28 = vshll.u32 %v746_v16, 16  ;;  %v894_v16 = vld [vmem:[#allocation2 + $0x8c] sm:$0x1] }
 0x106   : > { %v639_v23 = vpop.f32.mrf.mxu0  ;;  %v1312_v20 = vld [vmem:[#allocation2 + $0x88] sm:$0x1] }
 0x107   : > { %v957_v27 = vrot.slane %v955_v21, 7  ;;  %v640_v29 = vadd.f32 %v8412_v34, %v639_v23  ;;  %v734_v30 = vmax.f32 %v688_v22, 0.0  ;;  %v1126_v31 = vor.u32 %v1124_v19, %v1123_v26  ;;  %v1270_v23 = vld [vmem:[#allocation2 + $0x28] sm:$0xf] }
 0x108   : > { %v1128_v48 = vrot.slane %v1123_v26, 4  ;;  %v895_v22 = vsel %vm8378_vm3, 0, %v894_v16  ;;  %v926_v16 = vld [vmem:[#allocation2 + $0x9c] sm:$0x1] }
 0x109   : > { %v960_v33 = vor.u32 %v958_v28, %v957_v27  ;;  %v715_v35 = vmax.f32 %v640_v29, 0.0  ;;  %v766_v36 = vpack.c.bf16 %v734_v30, %v734_v30  ;;  %v1127_v37 = vsel %vm8435_vm9, %v1119_v24, %v1126_v31  ;;  %896 = vst [vmem:[#allocation2 + $0x8c] sm:$0x1] %v895_v22 }
 0x10a   : > { %1309 = vst.msk [vmem:[#allocation2 + $0x7c] sm:$0xf] %vm1258_vm6, %v1127_v37  ;;  %v962_v57 = vrot.slane %v957_v27, 4 }
 0x10b   : > { %v961_v39 = vsel %vm8435_vm9, %v953_v32, %v960_v33  ;;  %v747_v40 = vpack.c.bf16 %v715_v35, %v715_v35  ;;  %v1130_v41 = vshrl.u32 %v766_v36, 16  ;;  %v1133_v42 = vshll.u32 %v766_v36, 16 }
 0x10c   : > { %1265 = vst.msk [vmem:[#allocation2 + $0x1c] sm:$0xf] %vm1258_vm6, %v961_v39  ;;  %v689_v44 = vpop.f32.mrf.mxu2 }
 0x10d   : > { %v964_v47 = vshrl.u32 %v747_v40, 16  ;;  %v1132_v49 = vrot.slane %v1130_v41, 7  ;;  %v690_v50 = vadd.f32 %v8412_v34, %v689_v44  ;;  %v967_v54 = vshll.u32 %v747_v40, 16 }
 0x10e   : > { %v642_v51 = vpop.f32.mrf.mxu0 }
 0x10f   : > { %v966_v53 = vrot.slane %v964_v47, 7  ;;  %v643_v55 = vadd.f32 %v8412_v34, %v642_v51  ;;  %v1135_v56 = vor.u32 %v1133_v42, %v1132_v49  ;;  %v735_v59 = vmax.f32 %v690_v50, 0.0 }
 0x110   : > { %v1137_v11 = vrot.slane %v1132_v49, 4  ;;  %v1315_v46 = vld [vmem:[#allocation2 + $0x8c] sm:$0xf] }
 0x111   : > { %v969_v60 = vor.u32 %v967_v54, %v966_v53  ;;  %v971_v61 = vrot.slane %v966_v53, 4  ;;  %v716_v62 = vmax.f32 %v643_v55, 0.0  ;;  %v1136_v63 = vsel %vm8435_vm9, %v1128_v48, %v1135_v56 }
 0x112   : > { %1310 = vst.msk [vmem:[#allocation2 + $0x80] sm:$0xf] %vm1258_vm6, %v1136_v63  ;;  %v767_v0 = vpack.c.bf16 %v735_v59, %v735_v59 }
 0x113   : > { %v970_v2 = vsel %vm8435_vm9, %v962_v57, %v969_v60  ;;  %v1268_v3 = vsel %vm8378_vm3, %v971_v61, %v1267_v58  ;;  %v748_v4 = vpack.c.bf16 %v716_v62, %v716_v62 }
 0x114   : > { %1266 = vst.msk [vmem:[#allocation2 + $0x20] sm:$0xf] %vm1258_vm6, %v970_v2  ;;  %v1139_v6 = vshrl.u32 %v767_v0, 16  ;;  %v1142_v7 = vshll.u32 %v767_v0, 16  ;;  %v692_v9 = vpop.f32.mrf.mxu2 }
 0x115   : > { %1269 = vst [vmem:[#allocation2 + $0x24] sm:$0x1] %v1268_v3  ;;  %v973_v10 = vshrl.u32 %v748_v4, 16  ;;  %v693_v12 = vadd.f32 %v8412_v34, %v692_v9  ;;  %v976_v13 = vshll.u32 %v748_v4, 16 }
 0x116   : > { %v644_v14 = vpop.f32.mrf.mxu0  ;;  %v1141_v15 = vrot.slane %v1139_v6, 7 }
 0x117   : > { %v975_v18 = vrot.slane %v973_v10, 7  ;;  %v645_v19 = vadd.f32 %v8412_v34, %v644_v14  ;;  %v736_v21 = vmax.f32 %v693_v12, 0.0 }
 0x118   : > { %v1144_v24 = vor.u32 %v1142_v7, %v1141_v15  ;;  %v1146_v26 = vrot.slane %v1141_v15, 4 }
 0x119   : > { %v978_v27 = vor.u32 %v976_v13, %v975_v18  ;;  %v717_v28 = vmax.f32 %v645_v19, 0.0  ;;  %v768_v29 = vpack.c.bf16 %v736_v21, %v736_v21  ;;  %v979_v48 = vrot.slane %v975_v18, 4 }
 0x11a   : > { %v1145_v30 = vsel %vm8435_vm9, %v1137_v11, %v1144_v24  ;;  %v1313_v31 = vsel %vm8378_vm3, %v1146_v26, %v1312_v20  ;;  %v914_v11 = vld [vmem:[#allocation2 + $0x4c] sm:$0x1]  ;;  %v927_v19 = vsel %vm8391_vm5, 0, %v926_v16 }
 0x11b   : > { %v1271_v32 = vsel %vm8425_vm7, %v978_v27, %v1270_v23  ;;  %v749_v33 = vpack.c.bf16 %v717_v28, %v717_v28  ;;  %1311 = vst.msk [vmem:[#allocation2 + $0x84] sm:$0xf] %vm1258_vm6, %v1145_v30  ;;  %v1148_v35 = vshrl.u32 %v768_v29, 16  ;;  %v1151_v36 = vshll.u32 %v768_v29, 16 }
 0x11c   : > { %1272 = vst [vmem:[#allocation2 + $0x28] sm:$0xf] %v1271_v32  ;;  %v694_v37 = vpop.f32.mrf.mxu2  ;;  %v915_v20 = vsel %vm8391_vm5, 0, %v914_v11  ;;  %v1276_v32 = vld [vmem:[#allocation2 + $0x38] sm:$0x1] }
 0x11d   : > { %v981_v38 = vshrl.u32 %v749_v33, 16  ;;  %1314 = vst [vmem:[#allocation2 + $0x88] sm:$0x1] %v1313_v31  ;;  %v1150_v39 = vrot.slane %v1148_v35, 7  ;;  %v695_v40 = vadd.f32 %v8412_v34, %v694_v37  ;;  %v984_v43 = vshll.u32 %v749_v33, 16 }
 0x11e   : > { %v647_v41 = vpop.f32.mrf.mxu0  ;;  %928 = vst [vmem:[#allocation2 + $0x9c] sm:$0x1] %v927_v19 }
 0x11f   : > { %v983_v42 = vrot.slane %v981_v38, 7  ;;  %v648_v44 = vadd.f32 %v8412_v34, %v647_v41  ;;  %v1153_v45 = vor.u32 %v1151_v36, %v1150_v39  ;;  %v737_v47 = vmax.f32 %v695_v40, 0.0  ;;  %916 = vst [vmem:[#allocation2 + $0x4c] sm:$0x1] %v915_v20  ;;  %v885_v40 = vld [vmem:[#allocation2 + $0x50] sm:$0x1] }
 0x120   : > { %v1154_v62 = vrot.slane %v1150_v39, 4 }
 0x121   : > { %v986_v49 = vor.u32 %v984_v43, %v983_v42  ;;  %v718_v50 = vmax.f32 %v648_v44, 0.0  ;;  %v1316_v51 = vsel %vm8425_vm7, %v1153_v45, %v1315_v46  ;;  %v769_v53 = vpack.c.bf16 %v737_v47, %v737_v47 }
 0x122   : > { %1317 = vst [vmem:[#allocation2 + $0x8c] sm:$0xf] %v1316_v51  ;;  %v988_v5 = vrot.slane %v983_v42, 4  ;;  %v886_v44 = vsel %vm8378_vm3, 0, %v885_v40 }
 0x123   : > { %v987_v54 = vsel %vm8435_vm9, %v979_v48, %v986_v49  ;;  %v750_v55 = vpack.c.bf16 %v718_v50, %v718_v50  ;;  %v1156_v56 = vshrl.u32 %v769_v53, 16  ;;  %v1159_v57 = vshll.u32 %v769_v53, 16  ;;  %887 = vst [vmem:[#allocation2 + $0x50] sm:$0x1] %v886_v44 }
 0x124   : > { %1273 = vst.msk [vmem:[#allocation2 + $0x2c] sm:$0xf] %vm1258_vm6, %v987_v54  ;;  %v697_v58 = vpop.f32.mrf.mxu2 }
 0x125   : > { %v990_v59 = vshrl.u32 %v750_v55, 16  ;;  %v698_v60 = vadd.f32 %v8412_v34, %v697_v58  ;;  %v1158_v63 = vrot.slane %v1156_v56, 7  ;;  %v993_v1 = vshll.u32 %v750_v55, 16  ;;  %v897_v55 = vld [vmem:[#allocation2 + $0xa0] sm:$0x1] }
 0x126   : > { %v649_v61 = vpop.f32.mrf.mxu0  ;;  %v1321_v58 = vld [vmem:[#allocation2 + $0x9c] sm:$0x1] }
 0x127   : > { %v992_v0 = vrot.slane %v990_v59, 7  ;;  %v650_v2 = vadd.f32 %v8412_v34, %v649_v61  ;;  %v738_v3 = vmax.f32 %v698_v60, 0.0  ;;  %v1161_v4 = vor.u32 %v1159_v57, %v1158_v63  ;;  %v1279_v61 = vld [vmem:[#allocation2 + $0x3c] sm:$0xf] }
 0x128   : > { %v1163_v22 = vrot.slane %v1158_v63, 4  ;;  %v898_v60 = vsel %vm8378_vm3, 0, %v897_v55  ;;  %v929_v55 = vld [vmem:[#allocation2 + $0xb0] sm:$0x1] }
 0x129   : > { %v995_v6 = vor.u32 %v993_v1, %v992_v0  ;;  %v719_v7 = vmax.f32 %v650_v2, 0.0  ;;  %v770_v9 = vpack.c.bf16 %v738_v3, %v738_v3  ;;  %v1162_v10 = vsel %vm8435_vm9, %v1154_v62, %v1161_v4  ;;  %899 = vst [vmem:[#allocation2 + $0xa0] sm:$0x1] %v898_v60 }
 0x12a   : > { %1318 = vst.msk [vmem:[#allocation2 + $0x90] sm:$0xf] %vm1258_vm6, %v1162_v10  ;;  %v997_v31 = vrot.slane %v992_v0, 4 }
 0x12b   : > { %v996_v12 = vsel %vm8435_vm9, %v988_v5, %v995_v6  ;;  %v751_v13 = vpack.c.bf16 %v719_v7, %v719_v7  ;;  %v1165_v14 = vshrl.u32 %v770_v9, 16  ;;  %v1168_v15 = vshll.u32 %v770_v9, 16 }
 0x12c   : > { %1274 = vst.msk [vmem:[#allocation2 + $0x30] sm:$0xf] %vm1258_vm6, %v996_v12  ;;  %v699_v18 = vpop.f32.mrf.mxu2 }
 0x12d   : > { %v999_v21 = vshrl.u32 %v751_v13, 16  ;;  %v1167_v23 = vrot.slane %v1165_v14, 7  ;;  %v700_v24 = vadd.f32 %v8412_v34, %v699_v18  ;;  %v1002_v28 = vshll.u32 %v751_v13, 16 }
 0x12e   : > { %v652_v26 = vpop.f32.mrf.mxu0 }
 0x12f   : > { %v1001_v27 = vrot.slane %v999_v21, 7  ;;  %v653_v29 = vadd.f32 %v8412_v34, %v652_v26  ;;  %v1170_v30 = vor.u32 %v1168_v15, %v1167_v23  ;;  %v739_v33 = vmax.f32 %v700_v24, 0.0 }
 0x130   : > { %v1172_v49 = vrot.slane %v1167_v23, 4  ;;  %v1324_v20 = vld [vmem:[#allocation2 + $0xa0] sm:$0xf] }
 0x131   : > { %v1004_v35 = vor.u32 %v1002_v28, %v1001_v27  ;;  %v1006_v36 = vrot.slane %v1001_v27, 4  ;;  %v720_v37 = vmax.f32 %v653_v29, 0.0  ;;  %v1171_v38 = vsel %vm8435_vm9, %v1163_v22, %v1170_v30 }
 0x132   : > { %1319 = vst.msk [vmem:[#allocation2 + $0x94] sm:$0xf] %vm1258_vm6, %v1171_v38  ;;  %v771_v39 = vpack.c.bf16 %v739_v33, %v739_v33 }
 0x133   : > { %v1005_v41 = vsel %vm8435_vm9, %v997_v31, %v1004_v35  ;;  %v1277_v42 = vsel %vm8378_vm3, %v1006_v36, %v1276_v32  ;;  %v752_v43 = vpack.c.bf16 %v720_v37, %v720_v37 }
 0x134   : > { %1275 = vst.msk [vmem:[#allocation2 + $0x34] sm:$0xf] %vm1258_vm6, %v1005_v41  ;;  %v1174_v45 = vshrl.u32 %v771_v39, 16  ;;  %v1177_v46 = vshll.u32 %v771_v39, 16  ;;  %v702_v47 = vpop.f32.mrf.mxu2 }
 0x135   : > { %1278 = vst [vmem:[#allocation2 + $0x38] sm:$0x1] %v1277_v42  ;;  %v1008_v48 = vshrl.u32 %v752_v43, 16  ;;  %v703_v50 = vadd.f32 %v8412_v34, %v702_v47  ;;  %v1011_v51 = vshll.u32 %v752_v43, 16 }
 0x136   : > { %v654_v53 = vpop.f32.mrf.mxu0  ;;  %v1176_v54 = vrot.slane %v1174_v45, 7 }
 0x137   : > { %v1010_v56 = vrot.slane %v1008_v48, 7  ;;  %v655_v57 = vadd.f32 %v8412_v34, %v654_v53  ;;  %v740_v59 = vmax.f32 %v703_v50, 0.0 }
 0x138   : > { %v1179_v62 = vor.u32 %v1177_v46, %v1176_v54  ;;  %v1181_v63 = vrot.slane %v1176_v54, 4 }
 0x139   : > { %v1013_v0 = vor.u32 %v1011_v51, %v1010_v56  ;;  %v721_v1 = vmax.f32 %v655_v57, 0.0  ;;  %v772_v2 = vpack.c.bf16 %v740_v59, %v740_v59  ;;  %v1014_v22 = vrot.slane %v1010_v56, 4 }
 0x13a   : > { %v1180_v3 = vsel %vm8435_vm9, %v1172_v49, %v1179_v62  ;;  %v1322_v4 = vsel %vm8378_vm3, %v1181_v63, %v1321_v58  ;;  %v917_v49 = vld [vmem:[#allocation2 + $0x60] sm:$0x1]  ;;  %v930_v57 = vsel %vm8391_vm5, 0, %v929_v55 }
 0x13b   : > { %v1280_v5 = vsel %vm8425_vm7, %v1013_v0, %v1279_v61  ;;  %v753_v6 = vpack.c.bf16 %v721_v1, %v721_v1  ;;  %1320 = vst.msk [vmem:[#allocation2 + $0x98] sm:$0xf] %vm1258_vm6, %v1180_v3  ;;  %v1183_v7 = vshrl.u32 %v772_v2, 16  ;;  %v1186_v9 = vshll.u32 %v772_v2, 16 }
 0x13c   : > { %1281 = vst [vmem:[#allocation2 + $0x3c] sm:$0xf] %v1280_v5  ;;  %v704_v10 = vpop.f32.mrf.mxu2  ;;  %v918_v58 = vsel %vm8391_vm5, 0, %v917_v49  ;;  %v1285_v5 = vld [vmem:[#allocation2 + $0x4c] sm:$0x1] }
 0x13d   : > { %v1016_v11 = vshrl.u32 %v753_v6, 16  ;;  %1323 = vst [vmem:[#allocation2 + $0x9c] sm:$0x1] %v1322_v4  ;;  %v1185_v12 = vrot.slane %v1183_v7, 7  ;;  %v705_v13 = vadd.f32 %v8412_v34, %v704_v10  ;;  %v1019_v16 = vshll.u32 %v753_v6, 16  ;;  %v805_v7 = vpop.f32.mrf.mxu1 }
 0x13e   : > { %v657_v14 = vpop.f32.mrf.mxu0  ;;  %931 = vst [vmem:[#allocation2 + $0xb0] sm:$0x1] %v930_v57 }
 0x13f   : > { %v1018_v15 = vrot.slane %v1016_v11, 7  ;;  %v658_v18 = vadd.f32 %v8412_v34, %v657_v14  ;;  %v1188_v19 = vor.u32 %v1186_v9, %v1185_v12  ;;  %v741_v21 = vmax.f32 %v705_v13, 0.0  ;;  %919 = vst [vmem:[#allocation2 + $0x60] sm:$0x1] %v918_v58  ;;  %v888_v14 = vld [vmem:[#allocation2 + $0x64] sm:$0x1] }
 0x140   : > { %v1189_v37 = vrot.slane %v1185_v12, 4 }
 0x141   : > { %v1021_v23 = vor.u32 %v1019_v16, %v1018_v15  ;;  %v722_v24 = vmax.f32 %v658_v18, 0.0  ;;  %v1325_v26 = vsel %vm8425_vm7, %v1188_v19, %v1324_v20  ;;  %v773_v27 = vpack.c.bf16 %v741_v21, %v741_v21 }
 0x142   : > { %1326 = vst [vmem:[#allocation2 + $0xa0] sm:$0xf] %v1325_v26  ;;  %v1023_v44 = vrot.slane %v1018_v15, 4  ;;  %v889_v19 = vsel %vm8378_vm3, 0, %v888_v14 }
 0x143   : > { %v1022_v28 = vsel %vm8435_vm9, %v1014_v22, %v1021_v23  ;;  %v754_v29 = vpack.c.bf16 %v722_v24, %v722_v24  ;;  %v1191_v30 = vshrl.u32 %v773_v27, 16  ;;  %v1194_v31 = vshll.u32 %v773_v27, 16  ;;  %890 = vst [vmem:[#allocation2 + $0x64] sm:$0x1] %v889_v19 }
 0x144   : > { %1282 = vst.msk [vmem:[#allocation2 + $0x40] sm:$0xf] %vm1258_vm6, %v1022_v28  ;;  %v707_v32 = vpop.f32.mrf.mxu2 }
 0x145   : > { %v1025_v33 = vshrl.u32 %v754_v29, 16  ;;  %v708_v35 = vadd.f32 %v8412_v34, %v707_v32  ;;  %v1193_v38 = vrot.slane %v1191_v30, 7  ;;  %v1028_v40 = vshll.u32 %v754_v29, 16  ;;  %v1288_v32 = vld [vmem:[#allocation2 + $0x50] sm:$0xf] }
 0x146   : > { %v659_v36 = vpop.f32.mrf.mxu0 }
 0x147   : > { %v1027_v39 = vrot.slane %v1025_v33, 7  ;;  %v660_v41 = vadd.f32 %v8412_v34, %v659_v36  ;;  %v742_v42 = vmax.f32 %v708_v35, 0.0  ;;  %v1196_v43 = vor.u32 %v1194_v31, %v1193_v38  ;;  %v1330_v31 = vld [vmem:[#allocation2 + $0xb0] sm:$0x1]  ;;  %v807_v36 = vpop.f32.mrf.mxu1 }
 0x148   : > { %v1198_v60 = vrot.slane %v1193_v38, 4 }
 0x149   : > { %v1030_v45 = vor.u32 %v1028_v40, %v1027_v39  ;;  %v723_v46 = vmax.f32 %v660_v41, 0.0  ;;  %v774_v47 = vpack.c.bf16 %v742_v42, %v742_v42  ;;  %v1197_v48 = vsel %vm8435_vm9, %v1189_v37, %v1196_v43 }
 0x14a   : > { %1327 = vst.msk [vmem:[#allocation2 + $0xa4] sm:$0xf] %vm1258_vm6, %v1197_v48  ;;  %v1032_v4 = vrot.slane %v1027_v39, 4  ;;  %v806_v39 = vadd.f32 %v8412_v34, %v805_v7  ;;  %v808_v43 = vadd.f32 %v8412_v34, %v807_v36 }
 0x14b   : > { %v1031_v50 = vsel %vm8435_vm9, %v1023_v44, %v1030_v45  ;;  %v755_v51 = vpack.c.bf16 %v723_v46, %v723_v46  ;;  %v1200_v53 = vshrl.u32 %v774_v47, 16  ;;  %v1203_v54 = vshll.u32 %v774_v47, 16 }
 0x14c   : > { %1283 = vst.msk [vmem:[#allocation2 + $0x44] sm:$0xf] %vm1258_vm6, %v1031_v50  ;;  %v709_v56 = vpop.f32.mrf.mxu2  ;;  %v815_v46 = vmax.f32 %v806_v39, 0.0  ;;  %v816_v48 = vmax.f32 %v808_v43, 0.0  ;;  %v1294_v39 = vld [vmem:[#allocation2 + $0x60] sm:$0x1] }
 0x14d   : > { %v1034_v59 = vshrl.u32 %v755_v51, 16  ;;  %v1202_v61 = vrot.slane %v1200_v53, 7  ;;  %v710_v62 = vadd.f32 %v8412_v34, %v709_v56  ;;  %v1037_v1 = vshll.u32 %v755_v51, 16 }
 0x14e   : > { %v662_v63 = vpop.f32.mrf.mxu0  ;;  %v8564_v51 = vpack.c.bf16 %v815_v46, %v815_v46  ;;  %v8569_v56 = vpack.c.bf16 %v816_v48, %v816_v48 }
 0x14f   : > { %v1036_v0 = vrot.slane %v1034_v59, 7  ;;  %v663_v2 = vadd.f32 %v8412_v34, %v662_v63  ;;  %v1205_v3 = vor.u32 %v1203_v54, %v1202_v61  ;;  %v743_v6 = vmax.f32 %v710_v62, 0.0 }
 0x150   : > { %v1207_v26 = vrot.slane %v1202_v61, 4  ;;  %v810_v61 = vpop.f32.mrf.mxu1 }
 0x151   : > { %v1039_v9 = vor.u32 %v1037_v1, %v1036_v0  ;;  %v1041_v10 = vrot.slane %v1036_v0, 4  ;;  %v724_v11 = vmax.f32 %v663_v2, 0.0  ;;  %v1206_v12 = vsel %vm8435_vm9, %v1198_v60, %v1205_v3 }
 0x152   : > { %1328 = vst.msk [vmem:[#allocation2 + $0xa8] sm:$0xf] %vm1258_vm6, %v1206_v12  ;;  %v775_v13 = vpack.c.bf16 %v743_v6, %v743_v6 }
 0x153   : > { %v1040_v15 = vsel %vm8435_vm9, %v1032_v4, %v1039_v9  ;;  %v1286_v16 = vsel %vm8378_vm3, %v1041_v10, %v1285_v5  ;;  %v756_v18 = vpack.c.bf16 %v724_v11, %v724_v11 }
 0x154   : > { %1284 = vst.msk [vmem:[#allocation2 + $0x48] sm:$0xf] %vm1258_vm6, %v1040_v15  ;;  %v1209_v20 = vshrl.u32 %v775_v13, 16  ;;  %v1212_v21 = vshll.u32 %v775_v13, 16  ;;  %v852_v22 = vpop.f32.mrf.mxu2  ;;  %v811_v15 = vadd.f32 %v8412_v34, %v810_v61 }
 0x155   : > { %1287 = vst [vmem:[#allocation2 + $0x4c] sm:$0x1] %v1286_v16  ;;  %v1043_v23 = vshrl.u32 %v756_v18, 16  ;;  %v1046_v29 = vshll.u32 %v756_v18, 16  ;;  %v853_v42 = vadd.f32 %v8412_v34, %v852_v22  ;;  %v920_v18 = vld [vmem:[#allocation2 + $0x74] sm:$0x1] }
 0x156   : > { %v664_v24 = vpop.f32.mrf.mxu0  ;;  %v1211_v27 = vrot.slane %v1209_v20, 7  ;;  %v817_v22 = vmax.f32 %v811_v15, 0.0 }
 0x157   : > { %v1045_v28 = vrot.slane %v1043_v23, 7  ;;  %v665_v30 = vadd.f32 %v8412_v34, %v664_v24  ;;  %v862_v47 = vmax.f32 %v853_v42, 0.0  ;;  %v921_v23 = vsel %vm8391_vm5, 0, %v920_v18 }
 0x158   : > { %v1214_v33 = vor.u32 %v1212_v21, %v1211_v27  ;;  %v1216_v35 = vrot.slane %v1211_v27, 4  ;;  %v812_v11 = vpop.f32.mrf.mxu1  ;;  %922 = vst [vmem:[#allocation2 + $0x74] sm:$0x1] %v921_v23 }
 0x159   : > { %v1048_v37 = vor.u32 %v1046_v29, %v1045_v28  ;;  %v725_v38 = vmax.f32 %v665_v30, 0.0  ;;  %v8567_v55 = vpack.c.bf16 %v862_v47, %v862_v47  ;;  %v1049_v62 = vrot.slane %v1045_v28, 4 }
 0x15a   : > { %v1215_v40 = vsel %vm8435_vm9, %v1207_v26, %v1214_v33  ;;  %v1331_v41 = vsel %vm8378_vm3, %v1216_v35, %v1330_v31  ;;  %v813_v19 = vadd.f32 %v8412_v34, %v812_v11  ;;  %v8586_v29 = vpack.c.bf16 %v817_v22, %v817_v22 }
 0x15b   : > { %v1289_v44 = vsel %vm8425_vm7, %v1048_v37, %v1288_v32  ;;  %v757_v45 = vpack.c.bf16 %v725_v38, %v725_v38  ;;  %1329 = vst.msk [vmem:[#allocation2 + $0xac] sm:$0xf] %vm1258_vm6, %v1215_v40 }
 0x15c   : > { %1290 = vst [vmem:[#allocation2 + $0x50] sm:$0xf] %v1289_v44  ;;  %v854_v49 = vpop.f32.mrf.mxu2  ;;  %v818_v26 = vmax.f32 %v813_v19, 0.0 }
 0x15d   : > { %v1051_v50 = vshrl.u32 %v757_v45, 16  ;;  %1332 = vst [vmem:[#allocation2 + $0xb0] sm:$0x1] %v1331_v41  ;;  %v855_v53 = vadd.f32 %v8412_v34, %v854_v49  ;;  %v1054_v58 = vshll.u32 %v757_v45, 16 }
 0x15e   : > { %v667_v54 = vpop.f32.mrf.mxu0  ;;  %v8591_v33 = vpack.c.bf16 %v818_v26, %v818_v26 }
 0x15f   : > { %v1053_v57 = vrot.slane %v1051_v50, 7  ;;  %v668_v59 = vadd.f32 %v8412_v34, %v667_v54  ;;  %v863_v60 = vmax.f32 %v855_v53, 0.0  ;;  %v1297_v54 = vld [vmem:[#allocation2 + $0x64] sm:$0xf]  ;;  %v1303_v23 = vld [vmem:[#allocation2 + $0x74] sm:$0x1] }
 0x161   : > { %v1056_v63 = vor.u32 %v1054_v58, %v1053_v57  ;;  %v726_v0 = vmax.f32 %v668_v59, 0.0  ;;  %v8572_v1 = vpack.c.bf16 %v863_v60, %v863_v60  ;;  %v1058_v12 = vrot.slane %v1053_v57, 4 }
 0x163   : > { %v1057_v2 = vsel %vm8435_vm9, %v1049_v62, %v1056_v63  ;;  %v758_v3 = vpack.c.bf16 %v726_v0, %v726_v0 }
 0x164   : > { %1291 = vst.msk [vmem:[#allocation2 + $0x54] sm:$0xf] %vm1258_vm6, %v1057_v2  ;;  %v857_v4 = vpop.f32.mrf.mxu2 }
 0x165   : > { %v1060_v5 = vshrl.u32 %v758_v3, 16  ;;  %v1063_v9 = vshll.u32 %v758_v3, 16  ;;  %v858_v16 = vadd.f32 %v8412_v34, %v857_v4 }
 0x166   : > { %v669_v6 = vpop.f32.mrf.mxu0 }
 0x167   : > { %v1062_v7 = vrot.slane %v1060_v5, 7  ;;  %v670_v10 = vadd.f32 %v8412_v34, %v669_v6  ;;  %v864_v24 = vmax.f32 %v858_v16, 0.0 }
 0x169   : > { %v1065_v13 = vor.u32 %v1063_v9, %v1062_v7  ;;  %v727_v14 = vmax.f32 %v670_v10, 0.0  ;;  %v8589_v32 = vpack.c.bf16 %v864_v24, %v864_v24  ;;  %v1067_v38 = vrot.slane %v1062_v7, 4 }
 0x16b   : > { %v1066_v20 = vsel %vm8435_vm9, %v1058_v12, %v1065_v13  ;;  %v759_v21 = vpack.c.bf16 %v727_v14, %v727_v14 }
 0x16c   : > { %1292 = vst.msk [vmem:[#allocation2 + $0x58] sm:$0xf] %vm1258_vm6, %v1066_v20  ;;  %v859_v27 = vpop.f32.mrf.mxu2 }
 0x16d   : > { %v1069_v28 = vshrl.u32 %v759_v21, 16  ;;  %v860_v30 = vadd.f32 %v8412_v34, %v859_v27  ;;  %v1072_v36 = vshll.u32 %v759_v21, 16 }
 0x16e   : > { %v672_v31 = vpop.f32.mrf.mxu0 }
 0x16f   : > { %v1071_v35 = vrot.slane %v1069_v28, 7  ;;  %v673_v25 = vadd.f32 %v8412_v34, %v672_v31  ;;  %v865_v37 = vmax.f32 %v860_v30, 0.0 }
 0x171   : > { %v1074_v40 = vor.u32 %v1072_v36, %v1071_v35  ;;  %v1076_v41 = vrot.slane %v1071_v35, 4  ;;  %v728_v42 = vmax.f32 %v673_v25, 0.0  ;;  %v8594_v43 = vpack.c.bf16 %v865_v37, %v865_v37 }
 0x173   : > { %v1075_v44 = vsel %vm8435_vm9, %v1067_v38, %v1074_v40  ;;  %v1295_v45 = vsel %vm8378_vm3, %v1076_v41, %v1294_v39  ;;  %v760_v46 = vpack.c.bf16 %v728_v42, %v728_v42 }
 0x174   : > { %1293 = vst.msk [vmem:[#allocation2 + $0x5c] sm:$0xf] %vm1258_vm6, %v1075_v44 }
 0x175   : > { %1296 = vst [vmem:[#allocation2 + $0x60] sm:$0x1] %v1295_v45  ;;  %v1078_v47 = vshrl.u32 %v760_v46, 16  ;;  %v1081_v50 = vshll.u32 %v760_v46, 16 }
 0x176   : > { %v674_v48 = vpop.f32.mrf.mxu0 }
 0x177   : > { %v1080_v49 = vrot.slane %v1078_v47, 7  ;;  %v675_v53 = vadd.f32 %v8412_v34, %v674_v48 }
 0x179   : > { %v1083_v57 = vor.u32 %v1081_v50, %v1080_v49  ;;  %v729_v58 = vmax.f32 %v675_v53, 0.0  ;;  %v1084_v3 = vrot.slane %v1080_v49, 4 }
 0x17b   : > { %v1298_v59 = vsel %vm8425_vm7, %v1083_v57, %v1297_v54  ;;  %v761_v60 = vpack.c.bf16 %v729_v58, %v729_v58 }
 0x17c   : > { %1299 = vst [vmem:[#allocation2 + $0x64] sm:$0xf] %v1298_v59 }
 0x17d   : > { %v1086_v61 = vshrl.u32 %v761_v60, 16  ;;  %v1089_v0 = vshll.u32 %v761_v60, 16 }
 0x17e   : > { %v677_v62 = vpop.f32.mrf.mxu0 }
 0x17f   : > { %v1088_v63 = vrot.slane %v1086_v61, 7  ;;  %v678_v2 = vadd.f32 %v8412_v34, %v677_v62 }
 0x181   : > { %v1091_v4 = vor.u32 %v1089_v0, %v1088_v63  ;;  %v730_v5 = vmax.f32 %v678_v2, 0.0  ;;  %v1093_v14 = vrot.slane %v1088_v63, 4 }
 0x183   : > { %v1092_v6 = vsel %vm8435_vm9, %v1084_v3, %v1091_v4  ;;  %v762_v7 = vpack.c.bf16 %v730_v5, %v730_v5 }
 0x184   : > { %1300 = vst.msk [vmem:[#allocation2 + $0x68] sm:$0xf] %vm1258_vm6, %v1092_v6 }
 0x185   : > { %v1095_v9 = vshrl.u32 %v762_v7, 16  ;;  %v1098_v12 = vshll.u32 %v762_v7, 16 }
 0x186   : > { %v679_v10 = vpop.f32.mrf.mxu0 }
 0x187   : > { %v1097_v11 = vrot.slane %v1095_v9, 7  ;;  %v680_v13 = vadd.f32 %v8412_v34, %v679_v10 }
 0x189   : > { %v1100_v15 = vor.u32 %v1098_v12, %v1097_v11  ;;  %v731_v16 = vmax.f32 %v680_v13, 0.0  ;;  %v1102_v24 = vrot.slane %v1097_v11, 4 }
 0x18b   : > { %v1101_v18 = vsel %vm8435_vm9, %v1093_v14, %v1100_v15  ;;  %v763_v19 = vpack.c.bf16 %v731_v16, %v731_v16 }
 0x18c   : > { %1301 = vst.msk [vmem:[#allocation2 + $0x6c] sm:$0xf] %vm1258_vm6, %v1101_v18 }
 0x18d   : > { %v1104_v20 = vshrl.u32 %v763_v19, 16  ;;  %v1107_v22 = vshll.u32 %v763_v19, 16 }
 0x18f   : > { %v1106_v21 = vrot.slane %v1104_v20, 7 }
 0x191   : > { %v1109_v26 = vor.u32 %v1107_v22, %v1106_v21  ;;  %v1111_v27 = vrot.slane %v1106_v21, 4  ;;  %1336 = sbr.rel (%p6845_p11) target bundleno = 412 (0x19c), region = 64 }
 0x193   : > { %v1110_v34 = vsel %vm8435_vm9, %v1102_v24, %v1109_v26  ;;  %v1304_v28 = vsel %vm8378_vm3, %v1111_v27, %v1303_v23 }
 0x194   : > { %1302 = vst.msk [vmem:[#allocation2 + $0x70] sm:$0xf] %vm1258_vm6, %v1110_v34 }
 0x195   : > { %1305 = vst [vmem:[#allocation2 + $0x74] sm:$0x1] %v1304_v28 }
 0x196   : > { %v1337_v30 = vld [vmem:[#allocation2] sm:$0xf]  ;;  %v1343_v31 = vld [vmem:[#allocation2 + $0x10] sm:$0x1]  ;;  %v8032_v36 = vmov 0  }
 0x197   : > { %v1338_v35 = vsel %vm8425_vm7, 0, %v1337_v30  ;;  %1340 = vst.msk [vmem:[#allocation2 + $0x4] sm:$0xf] %vm1258_vm6, %v8032_v36  ;;  %v1344_v25 = vsel %vm8378_vm3, 0, %v1343_v31 }
 0x198   : > { %1339 = vst [vmem:[#allocation2] sm:$0xf] %v1338_v35 }
 0x199   : > { %1341 = vst.msk [vmem:[#allocation2 + $0x8] sm:$0xf] %vm1258_vm6, %v8032_v36 }
 0x19a   : > { %1342 = vst.msk [vmem:[#allocation2 + $0xc] sm:$0xf] %vm1258_vm6, %v8032_v36 }
 0x19b   : > { %1345 = vst [vmem:[#allocation2 + $0x10] sm:$0x1] %v1344_v25 }
 0x19c PF: > { %s11091_s1 = sld [smem:[#allocation18_spill]] }
 0x1a2   : > { %p6846_p0 = scmp.le.s32.totalorder %s11091_s1, 0 }
 0x1a4   : > { %1349 = sbr.rel (%p6846_p0) target bundleno = 437 (0x1b5), region = 68 }
 0x1a9   : > { %v1351_v37 = vshrl.u32 %v8564_v51, 16  ;;  %v1354_v38 = vshll.u32 %v8564_v51, 16  ;;  %v1359_v39 = vshrl.u32 %v8569_v56, 16  ;;  %v1362_v40 = vshll.u32 %v8569_v56, 16  ;;  %v1390_v48 = vld [vmem:[#allocation2] sm:$0xf] }
 0x1aa   : > { %v1368_v41 = vshrl.u32 %v8586_v29, 16  ;;  %v1371_v42 = vshll.u32 %v8586_v29, 16  ;;  %v1377_v44 = vshrl.u32 %v8591_v33, 16  ;;  %v1380_v45 = vshll.u32 %v8591_v33, 16  ;;  %v1396_v61 = vld [vmem:[#allocation2 + $0x10] sm:$0x1] }
 0x1ab   : > { %v1353_v46 = vrot.slane %v1351_v37, 7  ;;  %v1361_v47 = vrot.slane %v1359_v39, 7 }
 0x1ac   : > { %v1370_v49 = vrot.slane %v1368_v41, 7  ;;  %v1379_v50 = vrot.slane %v1377_v44, 7 }
 0x1ad   : > { %v1356_v53 = vor.u32 %v1354_v38, %v1353_v46  ;;  %v1357_v54 = vrot.slane %v1353_v46, 4  ;;  %v1364_v51 = vor.u32 %v1362_v40, %v1361_v47  ;;  %v1366_v57 = vrot.slane %v1361_v47, 4 }
 0x1ae   : > { %v1373_v58 = vor.u32 %v1371_v42, %v1370_v49  ;;  %v1375_v59 = vrot.slane %v1370_v49, 4  ;;  %v1382_v56 = vor.u32 %v1380_v45, %v1379_v50  ;;  %v1384_v60 = vrot.slane %v1379_v50, 4 }
 0x1af   : > { %v1391_v29 = vsel %vm8425_vm7, %v1356_v53, %v1390_v48  ;;  %v1365_v33 = vsel %vm8435_vm9, %v1357_v54, %v1364_v51 }
 0x1b0   : > { %1392 = vst [vmem:[#allocation2] sm:$0xf] %v1391_v29  ;;  %v1374_v62 = vsel %vm8435_vm9, %v1366_v57, %v1373_v58  ;;  %v1383_v63 = vsel %vm8435_vm9, %v1375_v59, %v1382_v56  ;;  %v1397_v0 = vsel %vm8378_vm3, %v1384_v60, %v1396_v61 }
 0x1b1   : > { %1393 = vst.msk [vmem:[#allocation2 + $0x4] sm:$0xf] %vm1258_vm6, %v1365_v33 }
 0x1b2   : > { %1394 = vst.msk [vmem:[#allocation2 + $0x8] sm:$0xf] %vm1258_vm6, %v1374_v62 }
 0x1b3   : > { %1395 = vst.msk [vmem:[#allocation2 + $0xc] sm:$0xf] %vm1258_vm6, %v1383_v63 }
 0x1b4   : > { %1398 = vst [vmem:[#allocation2 + $0x10] sm:$0x1] %v1397_v0 }
 0x1b5 PF: > { %s11092_s18 = sld [smem:[#allocation18_spill]] }
 0x1bb   : > { %p6847_p7 = scmp.ne.s32.totalorder %s11092_s18, 3 }
 0x1bd   : > { %1402 = sbr.rel (%p6847_p7) target bundleno = 456 (0x1c8), region = 72 }
 0x1c2   : > { %v1404_v2 = vld [vmem:[#allocation2 + $0xb4] sm:$0xf]  ;;  %v1410_v3 = vld [vmem:[#allocation2 + $0xc4] sm:$0x1]  ;;  %v8033_v5 = vmov 0  }
 0x1c3   : > { %v1405_v4 = vsel %vm8425_vm7, 0, %v1404_v2  ;;  %1407 = vst.msk [vmem:[#allocation2 + $0xb8] sm:$0xf] %vm1258_vm6, %v8033_v5  ;;  %v1411_v6 = vsel %vm8378_vm3, 0, %v1410_v3 }
 0x1c4   : > { %1406 = vst [vmem:[#allocation2 + $0xb4] sm:$0xf] %v1405_v4 }
 0x1c5   : > { %1408 = vst.msk [vmem:[#allocation2 + $0xbc] sm:$0xf] %vm1258_vm6, %v8033_v5 }
 0x1c6   : > { %1409 = vst.msk [vmem:[#allocation2 + $0xc0] sm:$0xf] %vm1258_vm6, %v8033_v5 }
 0x1c7   : > { %1412 = vst [vmem:[#allocation2 + $0xc4] sm:$0x1] %v1411_v6 }
 0x1c8 PF: > { %s11093_s0 = sld [smem:[#allocation18_spill]] }
 0x1ce   : > { %p6848_p3 = scmp.ge.s32.totalorder %s11093_s0, 3 }
 0x1d0   : > { %1416 = sbr.rel (%p6848_p3) target bundleno = 481 (0x1e1), region = 76 }
 0x1d5   : > { %v1418_v7 = vshrl.u32 %v8567_v55, 16  ;;  %v1421_v9 = vshll.u32 %v8567_v55, 16  ;;  %v1426_v10 = vshrl.u32 %v8572_v1, 16  ;;  %v1429_v11 = vshll.u32 %v8572_v1, 16  ;;  %v1458_v19 = vld [vmem:[#allocation2 + $0xb4] sm:$0xf] }
 0x1d6   : > { %v1435_v12 = vshrl.u32 %v8589_v32, 16  ;;  %v1438_v13 = vshll.u32 %v8589_v32, 16  ;;  %v1444_v14 = vshrl.u32 %v8594_v43, 16  ;;  %v1447_v15 = vshll.u32 %v8594_v43, 16  ;;  %v1464_v28 = vld [vmem:[#allocation2 + $0xc4] sm:$0x1] }
 0x1d7   : > { %v1420_v16 = vrot.slane %v1418_v7, 7  ;;  %v1428_v18 = vrot.slane %v1426_v10, 7 }
 0x1d8   : > { %v1437_v20 = vrot.slane %v1435_v12, 7  ;;  %v1446_v21 = vrot.slane %v1444_v14, 7 }
 0x1d9   : > { %v1423_v22 = vor.u32 %v1421_v9, %v1420_v16  ;;  %v1424_v23 = vrot.slane %v1420_v16, 4  ;;  %v1431_v55 = vor.u32 %v1429_v11, %v1428_v18  ;;  %v1433_v24 = vrot.slane %v1428_v18, 4 }
 0x1da   : > { %v1440_v26 = vor.u32 %v1438_v13, %v1437_v20  ;;  %v1442_v27 = vrot.slane %v1437_v20, 4  ;;  %v1449_v1 = vor.u32 %v1447_v15, %v1446_v21  ;;  %v1451_v34 = vrot.slane %v1446_v21, 4 }
 0x1db   : > { %v1459_v32 = vsel %vm8425_vm7, %v1423_v22, %v1458_v19  ;;  %v1432_v43 = vsel %vm8435_vm9, %v1424_v23, %v1431_v55 }
 0x1dc   : > { %1460 = vst [vmem:[#allocation2 + $0xb4] sm:$0xf] %v1459_v32  ;;  %v1441_v30 = vsel %vm8435_vm9, %v1433_v24, %v1440_v26  ;;  %v1450_v31 = vsel %vm8435_vm9, %v1442_v27, %v1449_v1  ;;  %v1465_v35 = vsel %vm8378_vm3, %v1451_v34, %v1464_v28 }
 0x1dd   : > { %1461 = vst.msk [vmem:[#allocation2 + $0xb8] sm:$0xf] %vm1258_vm6, %v1432_v43 }
 0x1de   : > { %1462 = vst.msk [vmem:[#allocation2 + $0xbc] sm:$0xf] %vm1258_vm6, %v1441_v30 }
 0x1df   : > { %1463 = vst.msk [vmem:[#allocation2 + $0xc0] sm:$0xf] %vm1258_vm6, %v1450_v31 }
 0x1e0   : > { %1466 = vst [vmem:[#allocation2 + $0xc4] sm:$0x1] %v1465_v35 }
 0x1e1 PF: > { %v1551_v52 = vld [vmem:[#allocation2 + $0x50] sm:$0xf]  ;;  %v1552_v36 = vld [vmem:[#allocation2 + $0x54] sm:$0xf]  ;;  %vm1571_vm10 = vsmask.f32 3328 }
 0x1e2   : > { %v1751_v25 = vshrl.u32 %v1551_v52, 16  ;;  %v1754_v37 = vshll.u32 %v1551_v52, 16  ;;  %v1760_v38 = vshll.u32 %v1552_v36, 16  ;;  %v1764_v39 = vshrl.u32 %v1552_v36, 16  ;;  %v1531_v8 = vld [vmem:[#allocation2] sm:$0xf] }
 0x1e3   : > { %v1532_v40 = vld [vmem:[#allocation2 + $0x4] sm:$0xf]  ;;  %vm1572_vm11 = vsmask.f32 7440  ;;  %v1575_v17 = vshrl.u32 %v1531_v8, 16  ;;  %v1578_v45 = vshll.u32 %v1531_v8, 16 }
 0x1e4   : > { %v1753_v41 = vrot.slane %v1751_v25, 4  ;;  %v1756_v42 = vrot.slane %v1754_v37, 5  ;;  %v1766_v44 = vrot.slane %v1764_v39, 4  ;;  %v1584_v46 = vshll.u32 %v1532_v40, 16  ;;  %v1553_v48 = vld [vmem:[#allocation2 + $0x58] sm:$0xf]  ;;  %vm8682_vm12 = vmor %vm1571_vm10, %vm1572_vm11 }
 0x1e5   : > { %v1588_v47 = vshrl.u32 %v1532_v40, 16  ;;  %v1762_v50 = vrot.slane %v1760_v38, 5  ;;  %v1577_v53 = vrot.slane %v1575_v17, 4  ;;  %v1554_v54 = vld [vmem:[#allocation2 + $0x5c] sm:$0xf]  ;;  %v1580_v57 = vrot.slane %v1578_v45, 5 }
 0x1e6   : > { %v1757_v49 = vor.u32 %v1756_v42, %v1753_v41  ;;  %v1533_v59 = vld [vmem:[#allocation2 + $0x8] sm:$0xf]  ;;  %v1770_v61 = vshll.u32 %v1553_v48, 16  ;;  %v1780_v29 = vshll.u32 %v1554_v54, 16  ;;  %v1586_v62 = vrot.slane %v1584_v46, 5  ;;  %s8034_s30 = smov 64  }
 0x1e7   : > { %v1590_v58 = vrot.slane %v1588_v47, 4  ;;  %v1767_v60 = vor.u32 %v1766_v44, %v1762_v50  ;;  %v1581_v33 = vor.u32 %v1580_v57, %v1577_v53  ;;  %v1784_v63 = vshrl.u32 %v1554_v54, 16  ;;  %v1534_v0 = vld [vmem:[#allocation2 + $0xc] sm:$0xf]  ;;  %v1555_v7 = vld [vmem:[#allocation2 + $0x60] sm:$0x1] }
 0x1e8   : > { %v1758_v56 = vrot.slane %v1757_v49, 4  ;;  %v1774_v3 = vshrl.u32 %v1553_v48, 16  ;;  %v1594_v4 = vshll.u32 %v1533_v59, 16  ;;  %v8689_v9 = vrot.slane %v1780_v29, 5  ;;  %v1537_v18 = vld [vmem:[#allocation2 + $0x18] sm:$0xf] }
 0x1e9   : > { %v1582_v5 = vrot.slane %v1581_v33, 4  ;;  %v1591_v6 = vor.u32 %v1590_v58, %v1586_v62  ;;  %v1786_v10 = vrot.slane %v1784_v63, 4  ;;  %v1768_v11 = vrot.slane %v1767_v60, 4  ;;  %v1556_v22 = vld [vmem:[#allocation2 + $0x64] sm:$0xf]  ;;  %s11096_s13 = sld [smem:[#allocation50_spill]] }
 0x1ea   : > { %v1763_v2 = vsel %vm8682_vm12, %v1758_v56, %v1762_v50  ;;  %v1772_v12 = vrot.slane %v1770_v61, 5  ;;  %v1598_v13 = vshrl.u32 %v1533_v59, 16  ;;  %v1604_v14 = vshll.u32 %v1534_v0, 16  ;;  %v1535_v28 = vld [vmem:[#allocation2 + $0x10] sm:$0x1]  ;;  %s11118_s29 = sld [smem:[#allocation51_spill]] }
 0x1eb   : > { %1958 = vrot.lane.b32.xlu1 %v1763_v2, %s8034_s30  ;;  %v1587_v15 = vsel %vm8682_vm12, %v1582_v5, %v1586_v62  ;;  %v1608_v16 = vshrl.u32 %v1534_v0, 16  ;;  %v1596_v19 = vrot.slane %v1594_v4, 5  ;;  %v1790_v20 = vshll.u32 %v1555_v7, 16  ;;  %v1539_v39 = vld [vmem:[#allocation2 + $0x20] sm:$0xf]  ;;  %s11157_s27 = sld [smem:[#allocation18_spill]] }
 0x1ec   : > { %1926 = vrot.lane.b32.xlu0 %v1587_v15, %s8034_s30  ;;  %v1600_v21 = vrot.slane %v1598_v13, 4  ;;  %v1592_v23 = vrot.slane %v1591_v6, 4  ;;  %v1787_v55 = vor.u32 %v1786_v10, %v8689_v9  ;;  %v1776_v24 = vrot.slane %v1774_v3, 4  ;;  %v1536_v17 = vld [vmem:[#allocation2 + $0x14] sm:$0xf]  ;;  %s11158_s4 = sld [smem:[#allocation19_spill]] }
 0x1ed   : > { %v1610_v26 = vrot.slane %v1608_v16, 4  ;;  %v1773_v27 = vsel %vm8682_vm12, %v1768_v11, %v1772_v12  ;;  %v1606_v34 = vrot.slane %v1604_v14, 5  ;;  %v1628_v32 = vshll.u32 %v1537_v18, 16  ;;  %v1557_v46 = vld [vmem:[#allocation2 + $0x68] sm:$0xf]  ;;  %s11159_s0 = sld [smem:[#allocation52_spill]] }
 0x1ee   : > { %v1601_v1 = vor.u32 %v1600_v21, %v1596_v19  ;;  %v1632_v43 = vshrl.u32 %v1537_v18, 16  ;;  %v1795_v30 = vshrl.u32 %v1556_v22, 16  ;;  %v1792_v31 = vrot.slane %v1790_v20, 5  ;;  %v1538_v47 = vld [vmem:[#allocation2 + $0x1c] sm:$0xf]  ;;  %s6564_s5 = sshll.u32 %s8619_s3, 4  ;;  %s6565_s5 = int_to_ptr.vmem [resolvable:$true] %s6564_s5 }
 0x1ef   : > { %v1798_v52 = vshll.u32 %v1556_v22, 16  ;;  %v1597_v36 = vsel %vm8682_vm12, %v1592_v23, %v1596_v19  ;;  %v1788_v25 = vrot.slane %v1787_v55, 4  ;;  %v1777_v37 = vor.u32 %v1776_v24, %v1772_v12  ;;  %v1540_v2 = vld [vmem:[#allocation2 + $0x24] sm:$0x1]  ;;  %v1541_v15 = vld [vmem:[#allocation2 + $0x28] sm:$0xf]  ;;  %s11097_s19 = smov %s11096_s13 }
 0x1f0   : > { %v1602_v35 = vrot.slane %v1601_v1, 4  ;;  %v1611_v38 = vor.u32 %v1610_v26, %v1606_v34  ;;  %v1797_v40 = vrot.slane %v1795_v30, 4  ;;  %v1614_v42 = vshll.u32 %v1535_v28, 16  ;;  %v1558_v20 = vld [vmem:[#allocation2 + $0x6c] sm:$0xf]  ;;  %s11119_s6 = smov %s11118_s29 }
 0x1f1   : > { %v1800_v41 = vrot.slane %v1798_v52, 5  ;;  %v1630_v44 = vrot.slane %v1628_v32, 5  ;;  %v1634_v45 = vrot.slane %v1632_v43, 4  ;;  %v1778_v50 = vrot.slane %v1777_v37, 4  ;;  %v1559_v22 = vld [vmem:[#allocation2 + $0x70] sm:$0xf] }
 0x1f2   : > { %v1607_v8 = vsel %vm8682_vm12, %v1602_v35, %v1606_v34  ;;  %v1612_v48 = vrot.slane %v1611_v38, 4  ;;  %v1616_v49 = vrot.slane %v1614_v42, 5  ;;  %v1648_v53 = vshll.u32 %v1539_v39, 16  ;;  %s7627_s9 = sshll.u32 %s11157_s27, 3  ;;  %s7484_s20 = sshll.u32 %s11158_s4, 5 }
 0x1f3   : > { %1960 = vrot.lane.b32.xlu1 %v1773_v27, %s8034_s30  ;;  %1930 = vrot.lane.b32.xlu2 %v1607_v8, %s8034_s30  ;;  %v1652_v54 = vshrl.u32 %v1539_v39, 16  ;;  %v1619_v57 = vshrl.u32 %v1536_v17, 16  ;;  %v1793_v58 = vsel %vm8682_vm12, %v1788_v25, %v1792_v31  ;;  %v1801_v59 = vor.u32 %v1800_v41, %v1797_v40  ;;  %v1562_v25 = vld [vmem:[#allocation2 + $0x7c] sm:$0xf]  ;;  %v1560_v41 = vld [vmem:[#allocation2 + $0x74] sm:$0x1]  ;;  %s6561_s11 = sadd.s32 %s7627_s9, %s7484_s20 }
 0x1f4   : > { %1928 = vrot.lane.b32.xlu0 %v1597_v36, %s8034_s30  ;;  %v1804_v56 = vshll.u32 %v1557_v46, 16  ;;  %v1635_v60 = vor.u32 %v1634_v45, %v1630_v44  ;;  %v1638_v61 = vshll.u32 %v1538_v47, 16  ;;  %v1622_v33 = vshll.u32 %v1536_v17, 16  ;;  %v1542_v36 = vld [vmem:[#allocation2 + $0x2c] sm:$0xf]  ;;  %s7485_s16 = sshll.u32 %s6561_s11, 2 }
 0x1f5   : > { %v1621_v29 = vrot.slane %v1619_v57, 4  ;;  %v1642_v62 = vshrl.u32 %v1538_v47, 16  ;;  %v1808_v63 = vshrl.u32 %v1557_v46, 16  ;;  %v1617_v0 = vsel %vm8682_vm12, %v1612_v48, %v1616_v49  ;;  %v1561_v48 = vld [vmem:[#allocation2 + $0x78] sm:$0xf]  ;;  %s6563_s12 = scalar_lea.hbm %s11159_s0, %s7485_s16  ;;  %s7894_s27 = scalar_lea.hbm %s11159_s0, 256 }
 0x1f6   : > { %v1783_v3 = vsel %vm8682_vm12, %v1778_v50, %v8689_v9  ;;  %v8712_v4 = vrot.slane %v1648_v53, 5  ;;  %v1654_v5 = vrot.slane %v1652_v54, 4  ;;  %v1624_v6 = vrot.slane %v1622_v33, 5 }
 0x1f7   : > { %v1802_v7 = vrot.slane %v1801_v59, 4  ;;  %v1806_v10 = vrot.slane %v1804_v56, 5  ;;  %v1636_v11 = vrot.slane %v1635_v60, 4  ;;  %v1640_v12 = vrot.slane %v1638_v61, 5 }
 0x1f8   : > { %v1658_v13 = vshll.u32 %v1540_v2, 16  ;;  %v1625_v14 = vor.u32 %v1624_v6, %v1621_v29  ;;  %v1810_v16 = vrot.slane %v1808_v63, 4  ;;  %v1655_v18 = vor.u32 %v1654_v5, %v8712_v4  ;;  %v7598_v2 = vld [vmem:[%s11096_s13 + $0x38] sm:$0xff]  ;;  %s6566_s13 = sshll.u32 %s6563_s12, 4  ;;  %s6567_s13 = int_to_ptr.hbm [resolvable:$true] %s6566_s13 }
 0x1f9   : > { %v1644_v19 = vrot.slane %v1642_v62, 4  ;;  %v1807_v21 = vsel %vm8682_vm12, %v1802_v7, %v1806_v10  ;;  %v1663_v23 = vshrl.u32 %v1541_v15, 16  ;;  %v1666_v55 = vshll.u32 %v1541_v15, 16  ;;  %v1563_v62 = vld [vmem:[#allocation2 + $0x80] sm:$0xf]  ;;  %4936 = vmatpush.bf16.msrb.mxu1 %v7598_v2  ;;  %7630 = vmatpush.bf16.msra.mxu3 %v7598_v2  ;;  %s7888_s10 = sshra.s32 %s6567_s13, 4  ;;  %s7889_s10 = int_to_ptr.hbm [resolvable:$true] %s7888_s10 }
 0x1fa   : > { %v1626_v9 = vrot.slane %v1625_v14, 4  ;;  %v1641_v24 = vsel %vm8682_vm12, %v1636_v11, %v1640_v12  ;;  %v1660_v26 = vrot.slane %v1658_v13, 5  ;;  %v1811_v1 = vor.u32 %v1810_v16, %v1806_v10  ;;  %v1543_v7 = vld [vmem:[#allocation2 + $0x30] sm:$0xf]  ;;  %v1544_v14 = vld [vmem:[#allocation2 + $0x34] sm:$0xf]  ;;  %p7895_p10 = scmp.lt.s32.totalorder %s7889_s10, %s11159_s0 }
 0x1fb   : > { %1964 = vrot.lane.b32.xlu1 %v1793_v58, %s8034_s30  ;;  %1932 = vrot.lane.b32.xlu2 %v1617_v0, %s8034_s30  ;;  %v1814_v34 = vshll.u32 %v1558_v20, 16  ;;  %v1818_v28 = vshrl.u32 %v1558_v20, 16  ;;  %v1656_v32 = vrot.slane %v1655_v18, 4  ;;  %v1645_v43 = vor.u32 %v1644_v19, %v1640_v12  ;;  %s7890_s15 = scalar_lea.hbm %s7889_s10, 32 }
 0x1fc   : > { %1962 = vrot.lane.b32.xlu0 %v1783_v3, %s8034_s30  ;;  %v1631_v27 = vsel %vm8682_vm12, %v1626_v9, %v1630_v44  ;;  %v1824_v30 = vshll.u32 %v1559_v22, 16  ;;  %v1828_v31 = vshrl.u32 %v1559_v22, 16  ;;  %v1665_v35 = vrot.slane %v1663_v23, 4  ;;  %p7891_p5 = scmp.ne.s32.totalorder %s7889_s10, %s7890_s15  ;;  %p7896_p12 = scmp.lt.s32.totalorder %s7894_s27, %s7890_s15 }
 0x1fd   : > { %v1668_v52 = vrot.slane %v1666_v55, 5  ;;  %v1812_v37 = vrot.slane %v1811_v1, 4  ;;  %v1816_v38 = vrot.slane %v1814_v34, 5  ;;  %v1820_v39 = vrot.slane %v1818_v28, 4 }
 0x1fe   : > { %v1661_v8 = vsel %vm8682_vm12, %v1656_v32, %v1660_v26  ;;  %v1646_v40 = vrot.slane %v1645_v43, 4  ;;  %v1826_v42 = vrot.slane %v1824_v30, 5  ;;  %v1830_v17 = vrot.slane %v1828_v31, 4  ;;  %v7597_v32 = vld [vmem:[%s11097_s19 + $0x30] sm:$0xff]  ;;  %v1545_v30 = vld [vmem:[#allocation2 + $0x38] sm:$0x1]  ;;  %p7892_p8 = pnand %p7891_p5, %p8247_p4  ;;  %p7897_p13 = por %p7896_p12, %p7895_p10 }
 0x1ff   : > { %v1669_v44 = vor.u32 %v1668_v52, %v1665_v35  ;;  %v1672_v45 = vshll.u32 %v1542_v36, 16  ;;  %v1848_v46 = vshll.u32 %v1562_v25, 16  ;;  %v1852_v47 = vshrl.u32 %v1562_v25, 16  ;;  %4937 = vmatpush.bf16.msrb.mxu1 %v7597_v32  ;;  %7631 = vmatpush.bf16.msra.mxu3 %v7597_v32 }
 0x200   : > { %v1834_v49 = vshll.u32 %v1560_v41, 16  ;;  %v1676_v50 = vshrl.u32 %v1542_v36, 16  ;;  %v1817_v53 = vsel %vm8682_vm12, %v1812_v37, %v1816_v38  ;;  %v1821_v54 = vor.u32 %v1820_v39, %v1816_v38  ;;  %v1546_v39 = vld [vmem:[#allocation2 + $0x3c] sm:$0xf]  ;;  %p7893_p9 = pneg %p7892_p8 }
 0x201   : > { %v1651_v57 = vsel %vm8682_vm12, %v1646_v40, %v8712_v4  ;;  %v1831_v58 = vor.u32 %v1830_v17, %v1826_v42  ;;  %v1839_v59 = vshrl.u32 %v1561_v48, 16  ;;  %v1842_v56 = vshll.u32 %v1561_v48, 16 }
 0x202   : > { %v1670_v60 = vrot.slane %v1669_v44, 4  ;;  %v1674_v61 = vrot.slane %v1672_v45, 5  ;;  %v8734_v29 = vrot.slane %v1848_v46, 5  ;;  %v1854_v33 = vrot.slane %v1852_v47, 4  ;;  %p7898_p1 = pnand %p7897_p13, %p7893_p9 }
 0x203   : > { %1966 = vrot.lane.b32.xlu1 %v1807_v21, %s8034_s30  ;;  %1934 = vrot.lane.b32.xlu2 %v1631_v27, %s8034_s30  ;;  %v1822_v63 = vrot.slane %v1821_v54, 4  ;;  %v1678_v0 = vrot.slane %v1676_v50, 4  ;;  %v1832_v3 = vrot.slane %v1831_v58, 4  ;;  %v1836_v4 = vrot.slane %v1834_v49, 5  ;;  %v1547_v27 = vld [vmem:[#allocation2 + $0x40] sm:$0xf] }
 0x204   : > { %1936 = vrot.lane.b32.xlu0 %v1641_v24, %s8034_s30  ;;  %v1841_v5 = vrot.slane %v1839_v59, 4  ;;  %v1844_v6 = vrot.slane %v1842_v56, 5  ;;  %v1675_v10 = vsel %vm8682_vm12, %v1670_v60, %v1674_v61  ;;  %v1855_v11 = vor.u32 %v1854_v33, %v8734_v29  ;;  %v1564_v24 = vld [vmem:[#allocation2 + $0x84] sm:$0xf]  ;;  %v1565_v33 = vld [vmem:[#allocation2 + $0x88] sm:$0x1] }
 0x205   : > { %v1858_v12 = vshll.u32 %v1563_v62, 16  ;;  %v1862_v13 = vshrl.u32 %v1563_v62, 16  ;;  %v1827_v15 = vsel %vm8682_vm12, %v1822_v63, %v1826_v42  ;;  %v1679_v16 = vor.u32 %v1678_v0, %v1674_v61  ;;  %v1548_v54 = vld [vmem:[#allocation2 + $0x44] sm:$0xf] }
 0x206   : > { %v1682_v18 = vshll.u32 %v1543_v7, 16  ;;  %v1686_v19 = vshrl.u32 %v1543_v7, 16  ;;  %v1837_v9 = vsel %vm8682_vm12, %v1832_v3, %v1836_v4  ;;  %v1845_v20 = vor.u32 %v1844_v6, %v1841_v5  ;;  %v7595_v59 = vld [vmem:[%s11097_s19 + $0x20] sm:$0xff]  ;;  %v1567_v3 = vld [vmem:[#allocation2 + $0x90] sm:$0xf] }
 0x207   : > { %v1692_v21 = vshll.u32 %v1544_v14, 16  ;;  %v1696_v22 = vshrl.u32 %v1544_v14, 16  ;;  %v1856_v23 = vrot.slane %v1855_v11, 4  ;;  %v1860_v55 = vrot.slane %v1858_v12, 5 }
 0x208   : > { %v1864_v26 = vrot.slane %v1862_v13, 4  ;;  %v1680_v1 = vrot.slane %v1679_v16, 4  ;;  %v1684_v34 = vrot.slane %v1682_v18, 5  ;;  %v1688_v28 = vrot.slane %v1686_v19, 4  ;;  %v8778_v16 = vld [vmem:[#allocation2 + $0x48] sm:$0xf] }
 0x209   : > { %v1846_v43 = vrot.slane %v1845_v20, 4  ;;  %v1694_v31 = vrot.slane %v1692_v21, 5  ;;  %v1698_v35 = vrot.slane %v1696_v22, 4  ;;  %v1868_v52 = vshll.u32 %v1564_v24, 16 }
 0x20a   : > { %v1861_v36 = vsel %vm8682_vm12, %v1856_v23, %v1860_v55  ;;  %v1865_v25 = vor.u32 %v1864_v26, %v1860_v55  ;;  %v1716_v37 = vshll.u32 %v1547_v27, 16  ;;  %v1720_v38 = vshrl.u32 %v1547_v27, 16  ;;  %v1568_v23 = vld [vmem:[#allocation2 + $0x94] sm:$0xf] }
 0x20b   : > { %1940 = vrot.lane.b32.xlu1 %v1661_v8, %s8034_s30  ;;  %1968 = vrot.lane.b32.xlu2 %v1817_v53, %s8034_s30  ;;  %v7596_v8 = vld [vmem:[%s11097_s19 + $0x28] sm:$0xff]  ;;  %v1702_v40 = vshll.u32 %v1545_v30, 16  ;;  %v1872_v41 = vshrl.u32 %v1564_v24, 16  ;;  %v1685_v42 = vsel %vm8682_vm12, %v1680_v1, %v1684_v34  ;;  %v1689_v17 = vor.u32 %v1688_v28, %v1684_v34 }
 0x20c   : > { %1938 = vrot.lane.b32.xlu0 %v1651_v57, %s8034_s30  ;;  %v1851_v44 = vsel %vm8682_vm12, %v1846_v43, %v8734_v29  ;;  %v1699_v45 = vor.u32 %v1698_v35, %v1694_v31  ;;  %v1707_v46 = vshrl.u32 %v1546_v39, 16  ;;  %v1710_v47 = vshll.u32 %v1546_v39, 16  ;;  %4938 = vmatpush.bf16.msrb.mxu1 %v7596_v8 }
 0x20d   : > { %v1866_v48 = vrot.slane %v1865_v25, 4  ;;  %v1870_v49 = vrot.slane %v1868_v52, 5  ;;  %v1718_v50 = vrot.slane %v1716_v37, 5  ;;  %v1722_v53 = vrot.slane %v1720_v38, 4  ;;  %7632 = vmatpush.bf16.msra.mxu3 %v7596_v8 }
 0x20e   : > { %v1690_v57 = vrot.slane %v1689_v17, 4  ;;  %v1874_v58 = vrot.slane %v1872_v41, 4  ;;  %v1700_v56 = vrot.slane %v1699_v45, 4  ;;  %v1704_v60 = vrot.slane %v1702_v40, 5  ;;  %v1570_v17 = vld [vmem:[#allocation2 + $0x9c] sm:$0x1] }
 0x20f   : > { %v1709_v61 = vrot.slane %v1707_v46, 4  ;;  %v1712_v29 = vrot.slane %v1710_v47, 5  ;;  %v1871_v62 = vsel %vm8682_vm12, %v1866_v48, %v1870_v49  ;;  %v1723_v63 = vor.u32 %v1722_v53, %v1718_v50  ;;  %v1467_v47 = vld [vmem:[#allocation2] sm:$0xf] }
 0x210   : > { %v1726_v0 = vshll.u32 %v1548_v54, 16  ;;  %v1730_v2 = vshrl.u32 %v1548_v54, 16  ;;  %4939 = vmatpush.bf16.msrb.mxu1 %v7595_v59  ;;  %v1695_v4 = vsel %vm8682_vm12, %v1690_v57, %v1694_v31  ;;  %v1875_v5 = vor.u32 %v1874_v58, %v1870_v49  ;;  %1499 = vst.msk [vmem:[#allocation3] sm:$0xf] %vm1258_vm6, %v1467_v47  ;;  %v7594_v54 = vld [vmem:[%s11097_s19 + $0x18] sm:$0xff] }
 0x211   : > { %7633 = vmatpush.bf16.msra.mxu3 %v7595_v59  ;;  %v1878_v6 = vshll.u32 %v1565_v33, 16  ;;  %v1705_v7 = vsel %vm8682_vm12, %v1700_v56, %v1704_v60  ;;  %v1892_v11 = vshll.u32 %v1567_v3, 16  ;;  %v1896_v12 = vshrl.u32 %v1567_v3, 16  ;;  %v8815_v57 = vld [vmem:[#allocation2 + $0x1c] sm:$0xf] }
 0x212   : > { %v1724_v13 = vrot.slane %v1723_v63, 4  ;;  %v1728_v14 = vrot.slane %v1726_v0, 5  ;;  %v1876_v18 = vrot.slane %v1875_v5, 4  ;;  %v1736_v24 = vshll.u32 %v8778_v16, 16  ;;  %v3331_v33 = vld [vmem:[#allocation2 + $0x28] sm:$0xf] }
 0x213   : > { %1942 = vrot.lane.b32.xlu1 %v1675_v10, %s8034_s30  ;;  %1970 = vrot.lane.b32.xlu2 %v1827_v15, %s8034_s30  ;;  %v1713_v10 = vor.u32 %v1712_v29, %v1709_v61  ;;  %v1732_v15 = vrot.slane %v1730_v2, 4  ;;  %v1880_v19 = vrot.slane %v1878_v6, 5  ;;  %v8781_v20 = vrot.slane %v1892_v11, 5  ;;  %v7593_v61 = vld [vmem:[%s11097_s19 + $0x10] sm:$0xff]  ;;  %v1566_v29 = vld [vmem:[#allocation2 + $0x8c] sm:$0xf] }
 0x214   : > { %1972 = vrot.lane.b32.xlu0 %v1837_v9, %s8034_s30  ;;  %v1898_v21 = vrot.slane %v1896_v12, 4  ;;  %v1729_v22 = vsel %vm8682_vm12, %v1724_v13, %v1728_v14  ;;  %v1902_v34 = vshll.u32 %v1568_v23, 16  ;;  %v1906_v28 = vshrl.u32 %v1568_v23, 16  ;;  %4940 = vmatpush.bf16.msrb.mxu1 %v7594_v54  ;;  %v1484_v63 = vld [vmem:[#allocation2 + $0x54] sm:$0xf]  ;;  %v7591_v23 = vld [vmem:[%s11097_s19] sm:$0xff] }
 0x215   : > { %v1714_v9 = vrot.slane %v1713_v10, 4  ;;  %v1733_v55 = vor.u32 %v1732_v15, %v1728_v14  ;;  %v1881_v26 = vsel %vm8682_vm12, %v1876_v18, %v1880_v19  ;;  %v8792_v43 = vrot.slane %v1736_v24, 5  ;;  %7634 = vmatpush.bf16.msra.mxu3 %v7594_v54  ;;  %1516 = vst.msk [vmem:[#allocation3 + $0x154] sm:$0xf] %vm1258_vm6, %v1484_v63  ;;  %v1468_v6 = vld [vmem:[#allocation2 + $0x4] sm:$0xf] }
 0x216   : > { %v1899_v1 = vor.u32 %v1898_v21, %v8781_v20  ;;  %v1904_v31 = vrot.slane %v1902_v34, 5  ;;  %v1908_v35 = vrot.slane %v1906_v28, 4  ;;  %v1922_v46 = vshll.u32 %v1570_v17, 16  ;;  %1500 = vst.msk [vmem:[#allocation3 + $0x14] sm:$0xf] %vm1258_vm6, %v1468_v6  ;;  %v7592_v15 = vld [vmem:[%s11097_s19 + $0x8] sm:$0xff] }
 0x217   : > { %v1719_v27 = vsel %vm8682_vm12, %v1714_v9, %v1718_v50  ;;  %v1734_v32 = vrot.slane %v1733_v55, 4  ;;  %v8808_v50 = vld [vmem:[#allocation2 + $0x18] sm:$0xf]  ;;  %vm2135_vm13 = vcmask 1042432   ;;  %vm2136_vm14 = vcmask 1046532  }
 0x218   : > { %v1900_v30 = vrot.slane %v1899_v1, 4  ;;  %v1909_v37 = vor.u32 %v1908_v35, %v1904_v31  ;;  %v1924_v49 = vrot.slane %v1922_v46, 5  ;;  %v3036_v58 = vrot.slane %v8808_v50, 5  ;;  %vm8819_vm15 = vmor %vm2135_vm13, %vm2136_vm14  ;;  %4941 = vmatpush.bf16.msrb.mxu1 %v7593_v61  ;;  %v3332_v11 = vld [vmem:[#allocation2 + $0x2c] sm:$0xf]  ;;  %v7626_v17 = vld [vmem:[%s11097_s19 + $0x118] sm:$0xff] }
 0x219   : > { %v1739_v52 = vsel %vm8682_vm12, %v1734_v32, %v8792_v43  ;;  %v3039_v56 = vrot.slane %v8815_v57, 5  ;;  %v1883_v0 = vshrl.u32 %v1566_v29, 16  ;;  %v1886_v2 = vshll.u32 %v1566_v29, 16  ;;  %7635 = vmatpush.bf16.msra.mxu3 %v7593_v61  ;;  %v2306_v14 = vld [vmem:[#allocation2 + $0x14] sm:$0xf] }
 0x21a   : > { %v1905_v25 = vsel %vm8682_vm12, %v1900_v30, %v1904_v31  ;;  %v1910_v39 = vrot.slane %v1909_v37, 4  ;;  %v3038_v60 = vrot.slane %v3036_v58, 4  ;;  %v3372_v3 = vshrl.u32 %v3331_v33, 16  ;;  %v1470_v55 = vld [vmem:[#allocation2 + $0xc] sm:$0xf] }
 0x21b   : > { %1976 = vrot.lane.b32.xlu1 %v1861_v36, %s8034_s30  ;;  %1944 = vrot.lane.b32.xlu2 %v1685_v42, %s8034_s30  ;;  %v1569_v36 = vld [vmem:[#allocation2 + $0x98] sm:$0xf]  ;;  %v3375_v5 = vshll.u32 %v3331_v33, 16  ;;  %v1888_v10 = vrot.slane %v1886_v2, 5  ;;  %v3381_v19 = vshll.u32 %v3332_v11, 16  ;;  %v3385_v9 = vshrl.u32 %v3332_v11, 16 }
 0x21c   : > { %1974 = vrot.lane.b32.xlu0 %v1851_v44, %s8034_s30  ;;  %v1912_v38 = vshll.u32 %v1569_v36, 16  ;;  %v1916_v40 = vshrl.u32 %v1569_v36, 16  ;;  %v1483_v44 = vld [vmem:[#allocation2 + $0x50] sm:$0xf]  ;;  %v3374_v12 = vrot.slane %v3372_v3, 4  ;;  %v1740_v21 = vshrl.u32 %v8778_v16, 16  ;;  %4942 = vmatpush.bf16.msrb.mxu1 %v7592_v15 }
 0x21d   : > { %1515 = vst.msk [vmem:[#allocation3 + $0x140] sm:$0xf] %vm1258_vm6, %v1483_v44  ;;  %v3377_v13 = vrot.slane %v3375_v5, 5  ;;  %v3333_v24 = vld [vmem:[#allocation2 + $0x30] sm:$0xf]  ;;  %7636 = vmatpush.bf16.msra.mxu3 %v7592_v15  ;;  %v3387_v1 = vrot.slane %v3385_v9, 4 }
 0x21e   : > { %v1914_v8 = vrot.slane %v1912_v38, 5  ;;  %v1918_v42 = vrot.slane %v1916_v40, 4  ;;  %1502 = vst.msk [vmem:[#allocation3 + $0x3c] sm:$0xf] %vm1258_vm6, %v1470_v55  ;;  %v3391_v34 = vshll.u32 %v3333_v24, 16  ;;  %vm2022_vm0 = vcmask 1043968  }
 0x21f   : > { %v1742_v36 = vrot.slane %v1740_v21, 4  ;;  %v8854_v37 = vld [vmem:[#allocation2 + $0x20] sm:$0xf]  ;;  %v3395_v40 = vshrl.u32 %v3333_v24, 16  ;;  %v1486_v47 = vld [vmem:[#allocation2 + $0x5c] sm:$0xf] }
 0x220   : > { %v1915_v41 = vsel %vm8682_vm12, %v1910_v39, %v1914_v8  ;;  %v1919_v45 = vor.u32 %v1918_v42, %v1914_v8  ;;  %v3393_v30 = vrot.slane %v3391_v34, 5  ;;  %4943 = vmatpush.bf16.msrb.mxu1 %v7591_v23  ;;  %v3042_v8 = vrot.slane %v8854_v37, 5  ;;  %v7606_v42 = vld [vmem:[%s11097_s19 + $0x78] sm:$0xff]  ;;  %1518 = vst.msk [vmem:[#allocation3 + $0x17c] sm:$0xf] %vm1258_vm6, %v1486_v47  ;;  %v7605_v55 = vld [vmem:[%s11097_s19 + $0x70] sm:$0xff] }
 0x221   : > { %7637 = vmatpush.bf16.msra.mxu3 %v7591_v23  ;;  %v1743_v38 = vor.u32 %v1742_v36, %v8792_v43  ;;  %v2954_v54 = vld [vmem:[#allocation2 + $0x14] sm:$0xe]  ;;  %v3397_v61 = vrot.slane %v3395_v40, 4  ;;  %v2308_v63 = vld [vmem:[#allocation2 + $0x1c] sm:$0xf]  ;;  %vm4887_vm1 = vcmask 523264  }
 0x222   : > { %v1920_v48 = vrot.slane %v1919_v45, 4  ;;  %v3044_v43 = vrot.slane %v3042_v8, 4  ;;  %v1471_v2 = vld [vmem:[#allocation2 + $0x14] sm:$0xf]  ;;  %v1472_v5 = vld [vmem:[#allocation2 + $0x18] sm:$0xf] }
 0x223   : > { %1978 = vrot.lane.b32.xlu1 %v1871_v62, %s8034_s30  ;;  %1946 = vrot.lane.b32.xlu2 %v1695_v4, %s8034_s30  ;;  %v3040_v62 = vsel %vm8819_vm15, %v3038_v60, %v3039_v56  ;;  %v1469_v4 = vld [vmem:[#allocation2 + $0x8] sm:$0xf]  ;;  %v1744_v44 = vrot.slane %v1743_v38, 4  ;;  %v3334_v60 = vld [vmem:[#allocation2 + $0x34] sm:$0xf]  ;;  %v3398_v3 = vor.u32 %v3397_v61, %v3393_v30  ;;  %vm6406_vm2 = vcmask 1041409  }
 0x224   : > { %1948 = vrot.lane.b32.xlu0 %v1705_v7, %s8034_s30  ;;  %v1925_v53 = vsel %vm8682_vm12, %v1920_v48, %v1924_v49  ;;  %1501 = vst.msk [vmem:[#allocation3 + $0x28] sm:$0xf] %vm1258_vm6, %v1469_v4  ;;  %v1885_v7 = vrot.slane %v1883_v0, 4  ;;  %v1485_v48 = vld [vmem:[#allocation2 + $0x58] sm:$0xf]  ;;  %5025 = vmatpush.bf16.msra.mxu1 %v7606_v42  ;;  %v3401_v29 = vshll.u32 %v3334_v60, 16 }
 0x225   : > { %5296 = vmatpush.bf16.msrb.mxu3 %v7626_v17  ;;  %1517 = vst.msk [vmem:[#allocation3 + $0x168] sm:$0xf] %vm1258_vm6, %v1485_v48  ;;  %v3405_v33 = vshrl.u32 %v3334_v60, 16  ;;  %v6857_v0 = vrot.slane %v2954_v54, 9  ;;  %v3335_v6 = vld [vmem:[#allocation2 + $0x38] sm:$0x1] }
 0x226   : > { %v1889_v18 = vor.u32 %v1888_v10, %v1885_v7  ;;  %v3403_v4 = vrot.slane %v3401_v29, 5  ;;  %1503 = vst.msk [vmem:[#allocation3 + $0x50] sm:$0xf] %vm1258_vm6, %v1471_v2  ;;  %v3399_v10 = vrot.slane %v3398_v3, 4  ;;  %v3411_v11 = vshll.u32 %v3335_v6, 16  ;;  %v7604_v6 = vld [vmem:[%s11097_s19 + $0x68] sm:$0xff] }
 0x227   : > { %v3407_v7 = vrot.slane %v3405_v33, 4  ;;  %1504 = vst.msk [vmem:[#allocation3 + $0x64] sm:$0xf] %vm1258_vm6, %v1472_v5  ;;  %v8898_v23 = vld [vmem:[#allocation2 + $0x30] sm:$0xf]  ;;  %vm6409_vm3 = vcmask 1042434  }
 0x228   : > { %v3413_v15 = vrot.slane %v3411_v11, 5  ;;  %v2307_v24 = vld [vmem:[#allocation2 + $0x18] sm:$0xf]  ;;  %v1488_v34 = vld [vmem:[#allocation2 + $0x68] sm:$0xf]  ;;  %5026 = vmatpush.bf16.msra.mxu1 %v7605_v55  ;;  %vm6412_vm4 = vcmask 1043459  }
 0x229   : > { %1520 = vst.msk [vmem:[#allocation3 + $0x1a4] sm:$0xf] %vm1258_vm6, %v1488_v34  ;;  %v1473_v42 = vld [vmem:[#allocation2 + $0x1c] sm:$0xf]  ;;  %v2963_v5 = vld [vmem:[#allocation2 + $0x38] sm:$0x1] }
 0x22a   : > { %1505 = vst.msk [vmem:[#allocation3 + $0x78] sm:$0xf] %vm1258_vm6, %v1473_v42  ;;  %v3339_v55 = vld [vmem:[#allocation2 + $0x48] sm:$0xf]  ;;  %vm6415_vm5 = vcmask 1044484   ;;  %vm6418_vm7 = vcmask 1045509  }
 0x22b   : > { %1952 = vrot.lane.b32.xlu1 %v1729_v22, %s8034_s30  ;;  %1980 = vrot.lane.b32.xlu2 %v1881_v26, %s8034_s30  ;;  %v3378_v22 = vor.u32 %v3377_v13, %v3374_v12  ;;  %v1890_v26 = vrot.slane %v1889_v18, 4  ;;  %v3037_v12 = vsel %vm8819_vm15, %v6857_v0, %v3036_v58  ;;  %v3408_v13 = vor.u32 %v3407_v7, %v3403_v4  ;;  %v8893_v58 = vld [vmem:[#allocation2 + $0x2c] sm:$0xf]  ;;  %v8933_v0 = vld [vmem:[#allocation2 + $0x34] sm:$0xf] }
 0x22c   : > { %1950 = vrot.lane.b32.xlu0 %v1719_v27, %s8034_s30  ;;  %v3383_v27 = vrot.slane %v3381_v19, 5  ;;  %v3055_v3 = vrot.slane %v8933_v0, 5  ;;  %v7625_v7 = vld [vmem:[%s11097_s19 + $0x110] sm:$0xff]  ;;  %5027 = vmatpush.bf16.msra.mxu1 %v7604_v6  ;;  %v3449_v34 = vshrl.u32 %v3339_v55, 16  ;;  %vm6421_vm8 = vcmask 1046534  }
 0x22d   : > { %v3379_v28 = vrot.slane %v3378_v22, 4  ;;  %v1895_v16 = vsel %vm8682_vm12, %v1890_v26, %v8781_v20  ;;  %v3409_v19 = vrot.slane %v3408_v13, 4  ;;  %v3049_v22 = vrot.slane %v8893_v58, 5  ;;  %5297 = vmatpush.bf16.msrb.mxu3 %v7625_v7 }
 0x22e   : > { %v3388_v32 = vor.u32 %v3387_v1, %v3383_v27  ;;  %v1487_v1 = vld [vmem:[#allocation2 + $0x64] sm:$0xf]  ;;  %v3057_v11 = vrot.slane %v3055_v3, 4  ;;  %vm6424_vm9 = vcmask 1047559  }
 0x22f   : > { %v3384_v31 = vsel %vm8682_vm12, %v3379_v28, %v3383_v27  ;;  %v3414_v50 = vsel %vm8682_vm12, %v3409_v19, %v3413_v15  ;;  %v3051_v26 = vrot.slane %v3049_v22, 4  ;;  %v3052_v27 = vrot.slane %v8898_v23, 5  ;;  %1519 = vst.msk [vmem:[#allocation3 + $0x190] sm:$0xf] %vm1258_vm6, %v1487_v1  ;;  %v1490_v15 = vld [vmem:[#allocation2 + $0x70] sm:$0xf] }
 0x230   : > { %v3041_v28 = vrot.slane %v3039_v56, 4  ;;  %v3445_v1 = vshll.u32 %v3339_v55, 16  ;;  %1522 = vst.msk [vmem:[#allocation3 + $0x1cc] sm:$0xf] %vm1258_vm6, %v1490_v15 }
 0x233   : > { %1954 = vrot.lane.b32.xlu1 %v1739_v52, %s8034_s30  ;;  %1982 = vrot.lane.b32.xlu2 %v1895_v16, %s8034_s30  ;;  %v3389_v52 = vrot.slane %v3388_v32, 4  ;;  %v3053_v32 = vsel %vm8819_vm15, %v3051_v26, %v3052_v27 }
 0x234   : > { %1984 = vrot.lane.b32.xlu0 %v1905_v25, %s8034_s30  ;;  %v1550_v25 = vld [vmem:[#allocation2 + $0x4c] sm:$0x1] }
 0x235   : > { %v3394_v20 = vsel %vm8682_vm12, %v3389_v52, %v3393_v30  ;;  %v1746_v39 = vshll.u32 %v1550_v25, 16  ;;  %v2310_v30 = vld [vmem:[#allocation2 + $0x28] sm:$0xf] }
 0x237   : > { %v1748_v45 = vrot.slane %v1746_v39, 5 }
 0x239   : > { %v1749_v49 = vsel %vm8682_vm12, %v1744_v44, %v1748_v45  ;;  %v3338_v45 = vld [vmem:[#allocation2 + $0x44] sm:$0xf] }
 0x23a   : > { %v3435_v47 = vshll.u32 %v3338_v45, 16 }
 0x23b   : > { %1988 = vrot.lane.b32.xlu1 %v1925_v53, %s8034_s30  ;;  %1956 = vrot.lane.b32.xlu2 %v1749_v49, %s8034_s30 }
 0x23c   : > { %1986 = vrot.lane.b32.xlu0 %v1915_v41, %s8034_s30  ;;  %v2958_v41 = vld [vmem:[#allocation2 + $0x24] sm:$0x1]  ;;  %v3437_v61 = vrot.slane %v3435_v47, 5 }
 0x23d   : > { %v3045_v46 = vrot.slane %v2958_v41, 5 }
 0x23f   : > { %v3046_v53 = vsel %vm8819_vm15, %v3044_v43, %v3045_v46  ;;  %v3043_v43 = vsel %vm8819_vm15, %v3041_v28, %v3042_v8  ;;  %v1475_v28 = vld [vmem:[#allocation2 + $0x28] sm:$0xf] }
 0x240   : > { %1507 = vst.msk [vmem:[#allocation3 + $0xa0] sm:$0xf] %vm1258_vm6, %v1475_v28 }
 0x243   : > { %2370 = vrot.lane.b32.xlu1 %v2306_v14, %s8034_s30  ;;  %v3404_v14 = vsel %vm8682_vm12, %v3399_v10, %v3403_v4  ;;  %3138 = vrot.lane.b32.xlu2 %v3037_v12, %s8034_s30  ;;  %v3439_v4 = vshrl.u32 %v3338_v45, 16  ;;  %v2309_v10 = vld [vmem:[#allocation2 + $0x20] sm:$0xf]  ;;  %v3058_v12 = vrot.slane %v2963_v5, 5 }
 0x244   : > { %3140 = vrot.lane.b32.xlu0 %v3040_v62, %s8034_s30 }
 0x245   : > { %v3059_v19 = vsel %vm8819_vm15, %v3057_v11, %v3058_v12 }
 0x24b   : > { %3725 = vrot.lane.b32.xlu1 %v3394_v20, %s8034_s30  ;;  %2372 = vrot.lane.b32.xlu2 %v2307_v24, %s8034_s30  ;;  %v1474_v20 = vld [vmem:[#allocation2 + $0x20] sm:$0xf]  ;;  %v3441_v24 = vrot.slane %v3439_v4, 4 }
 0x24c   : > { %3723 = vrot.lane.b32.xlu0 %v3384_v31, %s8034_s30  ;;  %v3336_v31 = vld [vmem:[#allocation2 + $0x3c] sm:$0xf]  ;;  %1506 = vst.msk [vmem:[#allocation3 + $0x8c] sm:$0xf] %vm1258_vm6, %v1474_v20 }
 0x24d   : > { %v1931_v35 = vpop.permute.xlu2 %1930  ;;  %v3416_v52 = vshrl.u32 %v3336_v31, 16  ;;  %v3419_v36 = vshll.u32 %v3336_v31, 16  ;;  %v1476_v31 = vld [vmem:[#allocation2 + $0x2c] sm:$0xf] }
 0x24e   : > { %2025 = vst.msk [vmem:[#allocation3 + $0x28] sm:$0xf] %vm2022_vm0, %v1931_v35  ;;  %v3337_v35 = vld [vmem:[#allocation2 + $0x40] sm:$0xf] }
 0x24f   : > { %v3425_v56 = vshll.u32 %v3337_v35, 16  ;;  %v3429_v25 = vshrl.u32 %v3337_v35, 16  ;;  %v3418_v39 = vrot.slane %v3416_v52, 4  ;;  %v3421_v40 = vrot.slane %v3419_v36, 5  ;;  %v3340_v52 = vld [vmem:[#allocation2 + $0x4c] sm:$0x1] }
 0x250   : > { %v3447_v35 = vrot.slane %v3445_v1, 5  ;;  %v3451_v36 = vrot.slane %v3449_v34, 4  ;;  %1508 = vst.msk [vmem:[#allocation3 + $0xb4] sm:$0xf] %vm1258_vm6, %v1476_v31 }
 0x251   : > { %v3427_v41 = vrot.slane %v3425_v56, 5  ;;  %v3431_v17 = vrot.slane %v3429_v25, 4  ;;  %v3422_v44 = vor.u32 %v3421_v40, %v3418_v39  ;;  %v3455_v56 = vshll.u32 %v3340_v52, 16 }
 0x253   : > { %2374 = vrot.lane.b32.xlu1 %v2308_v63, %s8034_s30  ;;  %v3432_v46 = vor.u32 %v3431_v17, %v3427_v41  ;;  %v3423_v48 = vrot.slane %v3422_v44, 4  ;;  %3142 = vrot.lane.b32.xlu2 %v3043_v43, %s8034_s30  ;;  %v8970_v43 = vld [vmem:[#allocation2 + $0x40] sm:$0xf] }
 0x254   : > { %3144 = vrot.lane.b32.xlu0 %v3046_v53, %s8034_s30  ;;  %v3062_v47 = vrot.slane %v8970_v43, 5 }
 0x255   : > { %v1933_v62 = vpop.permute.xlu2 %1932  ;;  %v3433_v60 = vrot.slane %v3432_v46, 4  ;;  %v3428_v37 = vsel %vm8682_vm12, %v3423_v48, %v3427_v41  ;;  %v3457_v41 = vrot.slane %v3455_v56, 5  ;;  %v6895_v44 = vld [vmem:[#allocation3 + $0x28] sm:$0xf]  ;;  %v8975_v48 = vld [vmem:[#allocation2 + $0x44] sm:$0xf] }
 0x256   : > { %2026 = vst.msk [vmem:[#allocation3 + $0x3c] sm:$0xf] %vm2022_vm0, %v1933_v62  ;;  %v2968_v56 = vld [vmem:[#allocation2 + $0x4c] sm:$0x1] }
 0x257   : > { %v3438_v8 = vsel %vm8682_vm12, %v3433_v60, %v3437_v61  ;;  %v3065_v60 = vrot.slane %v8975_v48, 5 }
 0x25b   : > { %3729 = vrot.lane.b32.xlu1 %v3414_v50, %s8034_s30  ;;  %v2959_v50 = vld [vmem:[#allocation2 + $0x28] sm:$0xe]  ;;  %2376 = vrot.lane.b32.xlu2 %v2309_v10, %s8034_s30  ;;  %v1477_v10 = vld [vmem:[#allocation2 + $0x30] sm:$0xf] }
 0x25c   : > { %3727 = vrot.lane.b32.xlu0 %v3404_v14, %s8034_s30  ;;  %v1489_v14 = vld [vmem:[#allocation2 + $0x6c] sm:$0xf]  ;;  %1509 = vst.msk [vmem:[#allocation3 + $0xc8] sm:$0xf] %vm1258_vm6, %v1477_v10 }
 0x25d   : > { %v1959_v18 = vpop.permute.xlu1 %1958  ;;  %v1935_v9 = vpop.permute.xlu2 %1934  ;;  %1521 = vst.msk [vmem:[#allocation3 + $0x1b8] sm:$0xf] %vm1258_vm6, %v1489_v14  ;;  %v7518_v45 = vld [vmem:[#allocation3 + $0x38] sm:$0xf0] }
 0x25e   : > { %2039 = vst.msk [vmem:[#allocation3 + $0x140] sm:$0xf] %vm2022_vm0, %v1959_v18  ;;  %v1927_v21 = vpop.permute.xlu0 %1926  ;;  %v6896_v46 = vor.u32 %v7518_v45, %v6895_v44 }
 0x25f   : > { %2027 = vst.msk [vmem:[#allocation3 + $0x50] sm:$0xf] %vm2022_vm0, %v1935_v9  ;;  %v2312_v9 = vld [vmem:[#allocation2 + $0x30] sm:$0xf] }
 0x260   : > { %2023 = vst.msk [vmem:[#allocation3] sm:$0xf] %vm2022_vm0, %v1927_v21  ;;  %v6858_v21 = vrot.slane %v2959_v50, 9  ;;  %v3343_v50 = vld [vmem:[#allocation2 + $0x58] sm:$0xf] }
 0x262   : > { %v3050_v25 = vsel %vm8819_vm15, %v6858_v21, %v3049_v22 }
 0x263   : > { %2378 = vrot.lane.b32.xlu1 %v2310_v30, %s8034_s30  ;;  %v3442_v30 = vor.u32 %v3441_v24, %v3437_v61  ;;  %3146 = vrot.lane.b32.xlu2 %v3050_v25, %s8034_s30  ;;  %v1492_v61 = vld [vmem:[#allocation2 + $0x7c] sm:$0xf]  ;;  %v3479_v24 = vshll.u32 %v3343_v50, 16 }
 0x264   : > { %3148 = vrot.lane.b32.xlu0 %v3053_v32, %s8034_s30  ;;  %1524 = vst.msk [vmem:[#allocation3 + $0x1f4] sm:$0xf] %vm1258_vm6, %v1492_v61  ;;  %v7602_v25 = vld [vmem:[%s11097_s19 + $0x58] sm:$0xff] }
 0x265   : > { %v1961_v16 = vpop.permute.xlu1 %1960  ;;  %v1969_v57 = vpop.permute.xlu2 %1968  ;;  %v7035_v49 = vld [vmem:[#allocation3 + $0x140] sm:$0xf] }
 0x266   : > { %2040 = vst.msk [vmem:[#allocation3 + $0x154] sm:$0xf] %vm2022_vm0, %v1961_v16  ;;  %v1929_v38 = vpop.permute.xlu0 %1928 }
 0x267   : > { %2044 = vst.msk [vmem:[#allocation3 + $0x1a4] sm:$0xf] %vm2022_vm0, %v1969_v57  ;;  %v6875_v33 = vld [vmem:[#allocation3] sm:$0xf]  ;;  %v3443_v57 = vrot.slane %v3442_v30, 4 }
 0x268   : > { %2024 = vst.msk [vmem:[#allocation3 + $0x14] sm:$0xf] %vm2022_vm0, %v1929_v38  ;;  %v3452_v38 = vor.u32 %v3451_v36, %v3447_v35 }
 0x269   : > { %v3448_v40 = vsel %vm8682_vm12, %v3443_v57, %v3447_v35  ;;  %v9010_v35 = vld [vmem:[#allocation2 + $0x48] sm:$0xf]  ;;  %v3483_v57 = vshrl.u32 %v3343_v50, 16  ;;  %v7614_v50 = vld [vmem:[%s11097_s19 + $0xb8] sm:$0xff] }
 0x26a   : > { %v3453_v17 = vrot.slane %v3452_v38, 4  ;;  %v3068_v36 = vrot.slane %v9010_v35, 5  ;;  %v2313_v38 = vld [vmem:[#allocation2 + $0x34] sm:$0xf]  ;;  %5114 = vmatpush.bf16.msra.mxu2 %v7614_v50  ;;  %v7611_v35 = vld [vmem:[%s11097_s19 + $0xa0] sm:$0xff] }
 0x26b   : > { %3733 = vrot.lane.b32.xlu1 %v3438_v8, %s8034_s30  ;;  %v7621_v50 = vld [vmem:[%s11097_s19 + $0xf0] sm:$0xff] }
 0x26c   : > { %3731 = vrot.lane.b32.xlu0 %v3428_v37, %s8034_s30  ;;  %v3458_v58 = vsel %vm8682_vm12, %v3453_v17, %v3457_v41  ;;  %v3054_v37 = vrot.slane %v3052_v27, 4  ;;  %v1493_v41 = vld [vmem:[#allocation2 + $0x80] sm:$0xf] }
 0x26d   : > { %v7553_v53 = vld [vmem:[#allocation3 + $0x150] sm:$0xf0]  ;;  %v1965_v54 = vpop.permute.xlu1 %1964  ;;  %v1971_v13 = vpop.permute.xlu2 %1970  ;;  %1525 = vst.msk [vmem:[#allocation3 + $0x208] sm:$0xf] %vm1258_vm6, %v1493_v41 }
 0x26e   : > { %v7036_v29 = vor.u32 %v7553_v53, %v7035_v49  ;;  %2042 = vst.msk [vmem:[#allocation3 + $0x17c] sm:$0xf] %vm2022_vm0, %v1965_v54  ;;  %v1963_v63 = vpop.permute.xlu0 %1962  ;;  %v7603_v49 = vld [vmem:[%s11097_s19 + $0x60] sm:$0xff]  ;;  %v2311_v53 = vld [vmem:[#allocation2 + $0x2c] sm:$0xf]  ;;  %v3064_v54 = vrot.slane %v3062_v47, 4  ;;  %v3056_v21 = vsel %vm8819_vm15, %v3054_v37, %v3055_v3 }
 0x26f   : > { %v7513_v62 = vld [vmem:[#allocation3 + $0x10] sm:$0xf0]  ;;  %2041 = vst.msk [vmem:[#allocation3 + $0x168] sm:$0xf] %vm2022_vm0, %v1963_v63  ;;  %5028 = vmatpush.bf16.msra.mxu1 %v7603_v49  ;;  %v3341_v63 = vld [vmem:[#allocation2 + $0x50] sm:$0xf]  ;;  %2380 = vrot.lane.b32.xlu2 %v2311_v53, %s8034_s30 }
 0x270   : > { %4984 = vmatmul.bf16.vlgmr.msra.gmra.mxu3 %v7036_v29  ;;  %v6876_v2 = vor.u32 %v7513_v62, %v6875_v33  ;;  %2045 = vst.msk [vmem:[#allocation3 + $0x1b8] sm:$0xf] %vm2022_vm0, %v1971_v13  ;;  %v1491_v29 = vld [vmem:[#allocation2 + $0x78] sm:$0xf]  ;;  %v3066_v33 = vsel %vm8819_vm15, %v3064_v54, %v3065_v60  ;;  %v2314_v62 = vld [vmem:[#allocation2 + $0x3c] sm:$0xf] }
 0x271   : > { %v3460_v4 = vshrl.u32 %v3341_v63, 16  ;;  %v3463_v5 = vshll.u32 %v3341_v63, 16  ;;  %v7563_v23 = vld [vmem:[#allocation3 + $0x1a0] sm:$0xf0]  ;;  %1523 = vst.msk [vmem:[#allocation3 + $0x1e0] sm:$0xf] %vm1258_vm6, %v1491_v29 }
 0x272   : > { %4944 = vmatmul.bf16.vlgmr.msrb.gmra.mxu1 %v6876_v2  ;;  %v3342_v2 = vld [vmem:[#allocation2 + $0x54] sm:$0xf]  ;;  %v3344_v49 = vld [vmem:[#allocation2 + $0x5c] sm:$0xf]  ;;  %v3485_v53 = vrot.slane %v3483_v57, 4 }
 0x273   : > { %2382 = vrot.lane.b32.xlu1 %v2312_v9, %s8034_s30  ;;  %v3469_v27 = vshll.u32 %v3342_v2, 16  ;;  %v3473_v6 = vshrl.u32 %v3342_v2, 16  ;;  %v3462_v13 = vrot.slane %v3460_v4, 4  ;;  %v3465_v14 = vrot.slane %v3463_v5, 5  ;;  %5029 = vmatpush.bf16.msra.mxu1 %v7602_v25  ;;  %v1480_v37 = vld [vmem:[#allocation2 + $0x40] sm:$0xf] }
 0x274   : > { %3152 = vrot.lane.b32.xlu0 %v3059_v19, %s8034_s30  ;;  %v3489_v61 = vshll.u32 %v3344_v49, 16  ;;  %v3493_v29 = vshrl.u32 %v3344_v49, 16  ;;  %v1479_v63 = vld [vmem:[#allocation2 + $0x3c] sm:$0xf]  ;;  %v3345_v4 = vld [vmem:[#allocation2 + $0x60] sm:$0x1] }
 0x275   : > { %v1967_v18 = vpop.permute.xlu1 %1966  ;;  %v7558_v26 = vld [vmem:[#allocation3 + $0x178] sm:$0xf0]  ;;  %v1945_v20 = vpop.permute.xlu2 %1944  ;;  %v3471_v15 = vrot.slane %v3469_v27, 5  ;;  %v3475_v19 = vrot.slane %v3473_v6, 4  ;;  %v3466_v9 = vor.u32 %v3465_v14, %v3462_v13  ;;  %1512 = vst.msk [vmem:[#allocation3 + $0x104] sm:$0xf] %vm1258_vm6, %v1480_v37 }
 0x276   : > { %2043 = vst.msk [vmem:[#allocation3 + $0x190] sm:$0xf] %vm2022_vm0, %v1967_v18  ;;  %v1937_v16 = vpop.permute.xlu0 %1936  ;;  %v7055_v32 = vld [vmem:[#allocation3 + $0x168] sm:$0xf]  ;;  %v1478_v18 = vld [vmem:[#allocation2 + $0x34] sm:$0xf] }
 0x277   : > { %2028 = vst.msk [vmem:[#allocation3 + $0x64] sm:$0xf] %vm2022_vm0, %v1937_v16  ;;  %v7056_v39 = vor.u32 %v7558_v26, %v7055_v32  ;;  %v3476_v55 = vor.u32 %v3475_v19, %v3471_v15  ;;  %v3467_v1 = vrot.slane %v3466_v9, 4  ;;  %v3481_v16 = vrot.slane %v3479_v24, 5  ;;  %v6915_v32 = vld [vmem:[#allocation3 + $0x50] sm:$0xf]  ;;  %3150 = vrot.lane.b32.xlu2 %v3056_v21, %s8034_s30 }
 0x278   : > { %2032 = vst.msk [vmem:[#allocation3 + $0xb4] sm:$0xf] %vm2022_vm0, %v1945_v20  ;;  %v7624_v20 = vld [vmem:[%s11097_s19 + $0x108] sm:$0xff]  ;;  %v7095_v54 = vld [vmem:[#allocation3 + $0x1b8] sm:$0xf]  ;;  %v3491_v2 = vrot.slane %v3489_v61, 5 }
 0x279   : > { %1510 = vst.msk [vmem:[#allocation3 + $0xdc] sm:$0xf] %vm1258_vm6, %v1478_v18  ;;  %v3477_v28 = vrot.slane %v3476_v55, 4  ;;  %v3472_v0 = vsel %vm8682_vm12, %v3467_v1, %v3471_v15  ;;  %5298 = vmatpush.bf16.msrb.mxu3 %v7624_v20  ;;  %v3495_v5 = vrot.slane %v3493_v29, 4  ;;  %v3499_v27 = vshll.u32 %v3345_v4, 16  ;;  %v7601_v24 = vld [vmem:[%s11097_s19 + $0x50] sm:$0xff] }
 0x27a   : > { %1511 = vst.msk [vmem:[#allocation3 + $0xf0] sm:$0xf] %vm1258_vm6, %v1479_v63  ;;  %v9047_v9 = vld [vmem:[#allocation2 + $0x54] sm:$0xf]  ;;  %v9053_v21 = vld [vmem:[#allocation2 + $0x58] sm:$0xf]  ;;  %5030 = vmatpush.bf16.msra.mxu1 %v7601_v24 }
 0x27b   : > { %3737 = vrot.lane.b32.xlu1 %v3458_v58, %s8034_s30  ;;  %v3482_v3 = vsel %vm8682_vm12, %v3477_v28, %v3481_v16  ;;  %v2316_v58 = vld [vmem:[#allocation2 + $0x44] sm:$0xf]  ;;  %v3075_v55 = vrot.slane %v9047_v9, 5  ;;  %v3078_v1 = vrot.slane %v9053_v21, 5  ;;  %v3347_v57 = vld [vmem:[#allocation2 + $0x68] sm:$0xf] }
 0x27c   : > { %3735 = vrot.lane.b32.xlu0 %v3448_v40, %s8034_s30  ;;  %v3071_v40 = vrot.slane %v2968_v56, 5  ;;  %v1497_v49 = vld [vmem:[#allocation2 + $0x94] sm:$0xf]  ;;  %v2973_v24 = vld [vmem:[#allocation2 + $0x60] sm:$0x1] }
 0x27d   : > { %v1941_v42 = vpop.permute.xlu1 %1940  ;;  %v1947_v7 = vpop.permute.xlu2 %1946  ;;  %v7075_v11 = vld [vmem:[#allocation3 + $0x190] sm:$0xf]  ;;  %v3077_v28 = vrot.slane %v3075_v55, 4  ;;  %1529 = vst.msk [vmem:[#allocation3 + $0x258] sm:$0xf] %vm1258_vm6, %v1497_v49 }
 0x27e   : > { %2030 = vst.msk [vmem:[#allocation3 + $0x8c] sm:$0xf] %vm2022_vm0, %v1941_v42  ;;  %v1939_v22 = vpop.permute.xlu0 %1938  ;;  %v7076_v26 = vor.u32 %v7563_v23, %v7075_v11  ;;  %v7523_v30 = vld [vmem:[#allocation3 + $0x60] sm:$0xf0]  ;;  %v1494_v42 = vld [vmem:[#allocation2 + $0x84] sm:$0xf] }
 0x27f   : > { %2029 = vst.msk [vmem:[#allocation3 + $0x78] sm:$0xf] %vm2022_vm0, %v1939_v22  ;;  %v6916_v52 = vor.u32 %v7523_v30, %v6915_v32  ;;  %v2964_v22 = vld [vmem:[#allocation2 + $0x3c] sm:$0xe]  ;;  %2384 = vrot.lane.b32.xlu2 %v2313_v38, %s8034_s30  ;;  %v1496_v32 = vld [vmem:[#allocation2 + $0x90] sm:$0xf] }
 0x280   : > { %4989 = vmatmul.bf16.gmra.mxu3 %v7056_v39  ;;  %2033 = vst.msk [vmem:[#allocation3 + $0xc8] sm:$0xf] %vm2022_vm0, %v1947_v7  ;;  %v3070_v39 = vrot.slane %v3068_v36, 4  ;;  %v3496_v7 = vor.u32 %v3495_v5, %v3491_v2  ;;  %v3067_v30 = vrot.slane %v3065_v60, 4  ;;  %v3513_v38 = vshll.u32 %v3347_v57, 16 }
 0x281   : > { %1526 = vst.msk [vmem:[#allocation3 + $0x21c] sm:$0xf] %vm1258_vm6, %v1494_v42  ;;  %v7612_v42 = vld [vmem:[%s11097_s19 + $0xa8] sm:$0xff]  ;;  %v2499_v5 = vld [vmem:[#allocation2 + $0x18] sm:$0xf] }
 0x282   : > { %4949 = vmatmul.bf16.gmra.mxu1 %v6896_v46  ;;  %v3072_v17 = vsel %vm8819_vm15, %v3070_v39, %v3071_v40  ;;  %v6859_v46 = vrot.slane %v2964_v22, 9  ;;  %v3497_v14 = vrot.slane %v3496_v7, 4  ;;  %1528 = vst.msk [vmem:[#allocation3 + $0x244] sm:$0xf] %vm1258_vm6, %v1496_v32  ;;  %v3517_v39 = vshrl.u32 %v3347_v57, 16 }
 0x283   : > { %2386 = vrot.lane.b32.xlu1 %v2314_v62, %s8034_s30  ;;  %v3486_v62 = vor.u32 %v3485_v53, %v3481_v16  ;;  %v1495_v16 = vld [vmem:[#allocation2 + $0x8c] sm:$0xf]  ;;  %v3515_v22 = vrot.slane %v3513_v38, 5  ;;  %v3084_v32 = vrot.slane %v2973_v24, 5  ;;  %v3350_v9 = vld [vmem:[#allocation2 + $0x74] sm:$0x1] }
 0x284   : > { %3156 = vrot.lane.b32.xlu0 %v3066_v33, %s8034_s30  ;;  %v3063_v6 = vsel %vm8819_vm15, %v6859_v46, %v3062_v47  ;;  %1527 = vst.msk [vmem:[#allocation3 + $0x230] sm:$0xf] %vm1258_vm6, %v1495_v16  ;;  %v3519_v46 = vrot.slane %v3517_v39, 4  ;;  %v9086_v53 = vld [vmem:[#allocation2 + $0x6c] sm:$0xf]  ;;  %v7607_v24 = vld [vmem:[%s11097_s19 + $0x80] sm:$0xff] }
 0x285   : > { %v1943_v8 = vpop.permute.xlu1 %1942  ;;  %v1981_v45 = vpop.permute.xlu2 %1980  ;;  %v3487_v23 = vrot.slane %v3486_v62, 4  ;;  %v7528_v18 = vld [vmem:[#allocation3 + $0x88] sm:$0xf0]  ;;  %v3523_v37 = vshll.u32 %v9086_v53, 16 }
 0x286   : > { %2031 = vst.msk [vmem:[#allocation3 + $0xa0] sm:$0xf] %vm2022_vm0, %v1943_v8  ;;  %v1973_v12 = vpop.permute.xlu0 %1972  ;;  %v6935_v15 = vld [vmem:[#allocation3 + $0x78] sm:$0xf]  ;;  %v3520_v29 = vor.u32 %v3519_v46, %v3515_v22 }
 0x287   : > { %2046 = vst.msk [vmem:[#allocation3 + $0x1cc] sm:$0xf] %vm2022_vm0, %v1973_v12  ;;  %v3492_v11 = vsel %vm8682_vm12, %v3487_v23, %v3491_v2  ;;  %v3501_v12 = vrot.slane %v3499_v27, 5  ;;  %3154 = vrot.lane.b32.xlu2 %v3063_v6, %s8034_s30  ;;  %v6936_v19 = vor.u32 %v7528_v18, %v6935_v15  ;;  %v9098_v4 = vrot.slane %v3523_v37, 5  ;;  %v3349_v37 = vld [vmem:[#allocation2 + $0x70] sm:$0xf] }
 0x288   : > { %2050 = vst.msk [vmem:[#allocation3 + $0x21c] sm:$0xf] %vm2022_vm0, %v1981_v45  ;;  %v3521_v2 = vrot.slane %v3520_v29, 4 }
 0x289   : > { %v3502_v43 = vsel %vm8682_vm12, %v3497_v14, %v3501_v12  ;;  %v3527_v12 = vshrl.u32 %v9086_v53, 16  ;;  %v2969_v53 = vld [vmem:[#allocation2 + $0x50] sm:$0xe] }
 0x28a   : > { %v3526_v27 = vsel %vm8682_vm12, %v3521_v2, %v9098_v4  ;;  %v6860_v29 = vrot.slane %v2969_v53, 9  ;;  %v3537_v2 = vshrl.u32 %v3349_v37, 16 }
 0x28b   : > { %3741 = vrot.lane.b32.xlu1 %v3482_v3, %s8034_s30  ;;  %v1481_v3 = vld [vmem:[#allocation2 + $0x44] sm:$0xf] }
 0x28c   : > { %3739 = vrot.lane.b32.xlu0 %v3472_v0, %s8034_s30  ;;  %v2318_v0 = vld [vmem:[#allocation2 + $0x50] sm:$0xf]  ;;  %1513 = vst.msk [vmem:[#allocation3 + $0x118] sm:$0xf] %vm1258_vm6, %v1481_v3  ;;  %v7620_v3 = vld [vmem:[%s11097_s19 + $0xe8] sm:$0xff] }
 0x28d   : > { %v1977_v34 = vpop.permute.xlu1 %1976  ;;  %v1983_v40 = vpop.permute.xlu2 %1982  ;;  %v6955_v62 = vld [vmem:[#allocation3 + $0xa0] sm:$0xf] }
 0x28e   : > { %2048 = vst.msk [vmem:[#allocation3 + $0x1f4] sm:$0xf] %vm2022_vm0, %v1977_v34  ;;  %v1975_v31 = vpop.permute.xlu0 %1974  ;;  %v7568_v8 = vld [vmem:[#allocation3 + $0x1c8] sm:$0xf0] }
 0x28f   : > { %2047 = vst.msk [vmem:[#allocation3 + $0x1e0] sm:$0xf] %vm2022_vm0, %v1975_v31  ;;  %v7096_v10 = vor.u32 %v7568_v8, %v7095_v54  ;;  %v7613_v34 = vld [vmem:[%s11097_s19 + $0xb0] sm:$0xff]  ;;  %v3079_v31 = vsel %vm8819_vm15, %v3077_v28, %v3078_v1  ;;  %v3069_v54 = vsel %vm8819_vm15, %v3067_v30, %v3068_v36  ;;  %v7533_v8 = vld [vmem:[#allocation3 + $0xb0] sm:$0xf0] }
 0x290   : > { %4994 = vmatmul.bf16.gmra.mxu3 %v7076_v26  ;;  %v2315_v26 = vld [vmem:[#allocation2 + $0x40] sm:$0xf]  ;;  %5115 = vmatpush.bf16.msra.mxu2 %v7613_v34  ;;  %2051 = vst.msk [vmem:[#allocation3 + $0x230] sm:$0xf] %vm2022_vm0, %v1983_v40  ;;  %v2498_v36 = vld [vmem:[#allocation2 + $0x14] sm:$0xf]  ;;  %v6956_v7 = vor.u32 %v7533_v8, %v6955_v62 }
 0x291   : > { %2388 = vrot.lane.b32.xlu2 %v2315_v26, %s8034_s30  ;;  %v2539_v6 = vshrl.u32 %v2498_v36, 16  ;;  %v2542_v14 = vshll.u32 %v2498_v36, 16  ;;  %v7600_v26 = vld [vmem:[%s11097_s19 + $0x48] sm:$0xff]  ;;  %v7623_v34 = vld [vmem:[%s11097_s19 + $0x100] sm:$0xff]  ;;  %v1498_v28 = vld [vmem:[#allocation2 + $0x98] sm:$0xf] }
 0x292   : > { %4954 = vmatmul.bf16.gmra.mxu1 %v6916_v52  ;;  %v3346_v52 = vld [vmem:[#allocation2 + $0x64] sm:$0xf]  ;;  %1530 = vst.msk [vmem:[#allocation3 + $0x26c] sm:$0xf] %vm1258_vm6, %v1498_v28  ;;  %5299 = vmatpush.bf16.msrb.mxu3 %v7623_v34  ;;  %v2055_v40 = vld [vmem:[#allocation2] sm:$0xe] }
 0x293   : > { %2390 = vrot.lane.b32.xlu1 %v2316_v58, %s8034_s30  ;;  %v3504_v60 = vshrl.u32 %v3346_v52, 16  ;;  %v3507_v20 = vshll.u32 %v3346_v52, 16  ;;  %v2541_v18 = vrot.slane %v2539_v6, 4  ;;  %5031 = vmatpush.bf16.msra.mxu1 %v7600_v26  ;;  %v2544_v52 = vrot.slane %v2542_v14, 5  ;;  %v7608_v62 = vld [vmem:[%s11097_s19 + $0x88] sm:$0xff] }
 0x294   : > { %3160 = vrot.lane.b32.xlu0 %v3072_v17, %s8034_s30  ;;  %v7622_v17 = vld [vmem:[%s11097_s19 + $0xf8] sm:$0xff]  ;;  %5116 = vmatpush.bf16.msra.mxu2 %v7612_v42  ;;  %v3529_v42 = vrot.slane %v3527_v12, 4  ;;  %v6849_v46 = vrot.slane %v2055_v40, 9  ;;  %v9155_v36 = vld [vmem:[#allocation2 + $0x8] sm:$0xf] }
 0x295   : > { %v1979_v44 = vpop.permute.xlu1 %1978  ;;  %v7573_v25 = vld [vmem:[#allocation3 + $0x1f0] sm:$0xf0]  ;;  %v3506_v45 = vrot.slane %v3504_v60, 4  ;;  %v3509_v58 = vrot.slane %v3507_v20, 5  ;;  %5203 = vmatpush.bf16.msrb.mxu0 %v7622_v17  ;;  %v2320_v20 = vld [vmem:[#allocation2 + $0x58] sm:$0xf]  ;;  %v2545_v39 = vor.u32 %v2544_v52, %v2541_v18 }
 0x296   : > { %2049 = vst.msk [vmem:[#allocation3 + $0x208] sm:$0xf] %vm2022_vm0, %v1979_v44  ;;  %v1949_v33 = vpop.permute.xlu0 %1948  ;;  %v7115_v56 = vld [vmem:[#allocation3 + $0x1e0] sm:$0xf]  ;;  %v3530_v8 = vor.u32 %v3529_v42, %v9098_v4  ;;  %v3076_v4 = vsel %vm8819_vm15, %v6860_v29, %v3075_v55  ;;  %v6975_v6 = vld [vmem:[#allocation3 + $0xc8] sm:$0xf] }
 0x297   : > { %2034 = vst.msk [vmem:[#allocation3 + $0xdc] sm:$0xf] %vm2022_vm0, %v1949_v33  ;;  %v1482_v44 = vld [vmem:[#allocation2 + $0x48] sm:$0xf]  ;;  %v3510_v61 = vor.u32 %v3509_v58, %v3506_v45  ;;  %v7116_v33 = vor.u32 %v7573_v25, %v7115_v56  ;;  %v9135_v56 = vld [vmem:[#allocation2 + $0x1c] sm:$0xf] }
 0x298   : > { %1514 = vst.msk [vmem:[#allocation3 + $0x12c] sm:$0xf] %vm1258_vm6, %v1482_v44  ;;  %5117 = vmatpush.bf16.msra.mxu2 %v7611_v35  ;;  %v7609_v25 = vld [vmem:[%s11097_s19 + $0x90] sm:$0xff]  ;;  %v2558_v60 = vshll.u32 %v9135_v56, 16  ;;  %v3533_v35 = vshll.u32 %v3349_v37, 16  ;;  %v2143_v18 = vrot.slane %v9155_v36, 5 }
 0x299   : > { %v3511_v63 = vrot.slane %v3510_v61, 4  ;;  %3158 = vrot.lane.b32.xlu2 %v3069_v54, %s8034_s30  ;;  %5204 = vmatpush.bf16.msrb.mxu0 %v7621_v50  ;;  %v7578_v54 = vld [vmem:[#allocation3 + $0x218] sm:$0xf0]  ;;  %v2546_v61 = vrot.slane %v2545_v39, 4  ;;  %v2562_v55 = vshrl.u32 %v9135_v56, 16 }
 0x29a   : > { %v9143_v45 = vrot.slane %v2558_v60, 5  ;;  %v3535_v14 = vrot.slane %v3533_v35, 5  ;;  %v2501_v34 = vld [vmem:[#allocation2 + $0x20] sm:$0xf]  ;;  %v3268_v39 = vld [vmem:[#allocation2 + $0x2c] sm:$0xf] }
 0x29b   : > { %3745 = vrot.lane.b32.xlu1 %v3502_v43, %s8034_s30  ;;  %v3516_v23 = vsel %vm8682_vm12, %v3511_v63, %v3515_v22  ;;  %v2548_v43 = vshll.u32 %v2499_v5, 16  ;;  %v7619_v22 = vld [vmem:[%s11097_s19 + $0xe0] sm:$0xff]  ;;  %v2564_v56 = vrot.slane %v2562_v55, 4  ;;  %v9206_v42 = vld [vmem:[#allocation3 + $0x230] sm:$0xf] }
 0x29c   : > { %3743 = vrot.lane.b32.xlu0 %v3492_v11, %s8034_s30  ;;  %3300 = vst.msk [vmem:[#allocation3 + $0x20] sm:$0xf] %vm1258_vm6, %v3268_v39  ;;  %v2059_v55 = vld [vmem:[#allocation2 + $0x10] sm:$0x1] }
 0x29d   : > { %v1953_v13 = vpop.permute.xlu1 %1952  ;;  %v2550_v57 = vrot.slane %v2548_v43, 5  ;;  %v7135_v38 = vld [vmem:[#allocation3 + $0x208] sm:$0xf]  ;;  %5205 = vmatpush.bf16.msrb.mxu0 %v7620_v3  ;;  %v7618_v43 = vld [vmem:[%s11097_s19 + $0xd8] sm:$0xff] }
 0x29e   : > { %2036 = vst.msk [vmem:[#allocation3 + $0x104] sm:$0xf] %vm2022_vm0, %v1953_v13  ;;  %v1951_v47 = vpop.permute.xlu0 %1950  ;;  %v9108_v13 = vld [vmem:[#allocation2 + $0x5c] sm:$0xf] }
 0x29f   : > { %2035 = vst.msk [vmem:[#allocation3 + $0xf0] sm:$0xf] %vm2022_vm0, %v1951_v47  ;;  %v3081_v15 = vrot.slane %v9108_v13, 5  ;;  %v2552_v47 = vshrl.u32 %v2499_v5, 16  ;;  %v2551_v5 = vsel %vm8682_vm12, %v2546_v61, %v2550_v57  ;;  %v2572_v61 = vshrl.u32 %v2501_v34, 16 }
 0x2a0   : > { %4999 = vmatmul.bf16.gmra.mxu3 %v7096_v10  ;;  %v1957_v10 = vpop.permute.xlu2 %1956  ;;  %2922 = vst.msk [vmem:[#allocation3 + $0x8] sm:$0xf] %vm1258_vm6, %v2551_v5 }
 0x2a1   : > { %2038 = vst.msk [vmem:[#allocation3 + $0x12c] sm:$0xf] %vm2022_vm0, %v1957_v10  ;;  %v3083_v16 = vrot.slane %v3081_v15, 4  ;;  %v7136_v10 = vor.u32 %v7578_v54, %v7135_v38  ;;  %5206 = vmatpush.bf16.msrb.mxu0 %v7619_v22  ;;  %v7599_v38 = vld [vmem:[%s11097_s19 + $0x40] sm:$0xff]  ;;  %v2319_v22 = vld [vmem:[#allocation2 + $0x54] sm:$0xf] }
 0x2a2   : > { %4959 = vmatmul.bf16.gmra.mxu1 %v6936_v19  ;;  %v7610_v19 = vld [vmem:[%s11097_s19 + $0x98] sm:$0xff] }
 0x2a3   : > { %2394 = vrot.lane.b32.xlu1 %v2318_v0, %s8034_s30  ;;  %v2317_v0 = vld [vmem:[#allocation2 + $0x48] sm:$0xf]  ;;  %5118 = vmatpush.bf16.msra.mxu2 %v7610_v19  ;;  %v3543_v19 = vshll.u32 %v3350_v9, 16 }
 0x2a4   : > { %3164 = vrot.lane.b32.xlu0 %v3079_v31, %s8034_s30  ;;  %v3085_v31 = vsel %vm8819_vm15, %v3083_v16, %v3084_v32  ;;  %2392 = vrot.lane.b32.xlu2 %v2317_v0, %s8034_s30  ;;  %v2568_v0 = vshll.u32 %v2501_v34, 16 }
 0x2a5   : > { %v1955_v48 = vpop.permute.xlu1 %1954  ;;  %v3545_v16 = vrot.slane %v3543_v19, 5  ;;  %5207 = vmatpush.bf16.msrb.mxu0 %v7618_v43  ;;  %5032 = vmatpush.bf16.msra.mxu1 %v7599_v38 }
 0x2a6   : > { %v1985_v41 = vpop.permute.xlu0 %1984  ;;  %2037 = vst.msk [vmem:[#allocation3 + $0x118] sm:$0xf] %vm2022_vm0, %v1955_v48  ;;  %v2554_v48 = vrot.slane %v2552_v47, 4  ;;  %v3539_v47 = vrot.slane %v3537_v2, 4  ;;  %v2570_v53 = vrot.slane %v2568_v0, 5  ;;  %v2574_v2 = vrot.slane %v2572_v61, 4 }
 0x2a7   : > { %2052 = vst.msk [vmem:[#allocation3 + $0x244] sm:$0xf] %vm2022_vm0, %v1985_v41  ;;  %v2056_v41 = vld [vmem:[#allocation2 + $0x4] sm:$0xf]  ;;  %5119 = vmatpush.bf16.msra.mxu2 %v7609_v25  ;;  %v7617_v25 = vld [vmem:[%s11097_s19 + $0xd0] sm:$0xff] }
 0x2a8   : > { %v3139_v17 = vpop.permute.xlu2 %3138  ;;  %v2555_v44 = vor.u32 %v2554_v48, %v2550_v57  ;;  %v2140_v49 = vrot.slane %v2056_v41, 5  ;;  %v3540_v28 = vor.u32 %v3539_v47, %v3535_v14  ;;  %v9189_v57 = vld [vmem:[#allocation2 + $0x68] sm:$0xf]  ;;  %v9195_v48 = vld [vmem:[#allocation2 + $0x6c] sm:$0xf]  ;;  %v2565_v41 = vor.u32 %v2564_v56, %v9143_v45 }
 0x2a9   : > { %3234 = vst.msk [vmem:[#allocation3 + $0x8] sm:$0xf] %vm2022_vm0, %v3139_v17  ;;  %v3088_v60 = vrot.slane %v9189_v57, 5  ;;  %v3091_v40 = vrot.slane %v9195_v48, 5  ;;  %5208 = vmatpush.bf16.msrb.mxu0 %v7617_v25  ;;  %v6995_v43 = vld [vmem:[#allocation3 + $0xf0] sm:$0xf] }
 0x2aa   : > { %v2141_v63 = vsel %vm8819_vm15, %v6849_v46, %v2140_v49  ;;  %v3541_v52 = vrot.slane %v3540_v28, 4  ;;  %v7543_v47 = vld [vmem:[#allocation3 + $0x100] sm:$0xf0] }
 0x2ab   : > { %3749 = vrot.lane.b32.xlu1 %v3526_v27, %s8034_s30  ;;  %2274 = vst.msk [vmem:[#allocation3 + $0x4] sm:$0xf] %vm1258_vm6, %v2141_v63  ;;  %v2142_v27 = vrot.slane %v2140_v49, 4  ;;  %5120 = vmatpush.bf16.msra.mxu2 %v7608_v62  ;;  %v3090_v46 = vrot.slane %v3088_v60, 4  ;;  %v2566_v49 = vrot.slane %v2565_v41, 4  ;;  %v6996_v38 = vor.u32 %v7543_v47, %v6995_v43 }
 0x2ac   : > { %3747 = vrot.lane.b32.xlu0 %v3516_v23, %s8034_s30  ;;  %v3531_v23 = vrot.slane %v3530_v8, 4  ;;  %3162 = vrot.lane.b32.xlu2 %v3076_v4, %s8034_s30  ;;  %v2322_v62 = vld [vmem:[#allocation2 + $0x64] sm:$0xf]  ;;  %v2058_v63 = vld [vmem:[#allocation2 + $0xc] sm:$0xf]  ;;  %v2145_v4 = vrot.slane %v2143_v18, 4 }
 0x2ad   : > { %v1989_v30 = vpop.permute.xlu1 %1988  ;;  %v2144_v26 = vsel %vm8819_vm15, %v2142_v27, %v2143_v18  ;;  %v3092_v37 = vsel %vm8819_vm15, %v3090_v46, %v3091_v40  ;;  %v2571_v8 = vsel %vm8682_vm12, %v2566_v49, %v2570_v53  ;;  %v3352_v18 = vld [vmem:[#allocation2 + $0x7c] sm:$0xf]  ;;  %v3269_v41 = vld [vmem:[#allocation2 + $0x30] sm:$0xf]  ;;  %v3851_v46 = vld [vmem:[#allocation2 + $0x28] sm:$0xe] }
 0x2ae   : > { %v1987_v11 = vpop.permute.xlu0 %1986  ;;  %2054 = vst.msk [vmem:[#allocation3 + $0x26c] sm:$0xf] %vm2022_vm0, %v1989_v30  ;;  %v3536_v50 = vsel %vm8682_vm12, %v3531_v23, %v3535_v14  ;;  %v3267_v30 = vld [vmem:[#allocation2 + $0x28] sm:$0xf]  ;;  %v9208_v17 = vld [vmem:[#allocation3 + $0x240] sm:$0xf0] }
 0x2af   : > { %2053 = vst.msk [vmem:[#allocation3 + $0x258] sm:$0xf] %vm2022_vm0, %v1987_v11  ;;  %5121 = vmatpush.bf16.msra.mxu2 %v7607_v24  ;;  %v2146_v23 = vrot.slane %v2058_v63, 5  ;;  %v7156_v27 = vor.u32 %v9208_v17, %v9206_v42  ;;  %v6865_v61 = vrot.slane %v3851_v46, 9  ;;  %v2504_v43 = vld [vmem:[#allocation2 + $0x2c] sm:$0xf] }
 0x2b0   : > { %5004 = vmatmul.bf16.gmra.mxu3 %v7116_v33  ;;  %v2556_v33 = vrot.slane %v2555_v44, 4  ;;  %v2373_v32 = vpop.permute.xlu2 %2372  ;;  %2275 = vst.msk [vmem:[#allocation3 + $0x18] sm:$0xf] %vm1258_vm6, %v2144_v26  ;;  %v6883_v44 = vld [vmem:[#allocation3 + $0x8] sm:$0xf] }
 0x2b1   : > { %2467 = vst.msk [vmem:[#allocation3 + $0x18] sm:$0xf] %vm2022_vm0, %v2373_v32  ;;  %v2147_v14 = vsel %vm8819_vm15, %v2145_v4, %v2146_v23  ;;  %v2149_v32 = vrot.slane %v2059_v55, 5  ;;  %v9273_v4 = vld [vmem:[#allocation2 + $0x70] sm:$0xf] }
 0x2b2   : > { %4964 = vmatmul.bf16.gmra.mxu1 %v6956_v7  ;;  %v7538_v7 = vld [vmem:[#allocation3 + $0xd8] sm:$0xf0]  ;;  %v2561_v11 = vsel %vm8682_vm12, %v2556_v33, %v9143_v45  ;;  %3299 = vst.msk [vmem:[#allocation3 + $0xc] sm:$0xf] %vm1258_vm6, %v3267_v30  ;;  %v7616_v45 = vld [vmem:[%s11097_s19 + $0xc8] sm:$0xff] }
 0x2b3   : > { %2398 = vrot.lane.b32.xlu1 %v2320_v20, %s8034_s30  ;;  %2923 = vst.msk [vmem:[#allocation3 + $0x1c] sm:$0xf] %vm1258_vm6, %v2561_v11  ;;  %v6976_v3 = vor.u32 %v7538_v7, %v6975_v6  ;;  %v3546_v20 = vsel %vm8682_vm12, %v3541_v52, %v3545_v16  ;;  %v2502_v33 = vld [vmem:[#allocation2 + $0x24] sm:$0x1]  ;;  %5209 = vmatpush.bf16.msrb.mxu0 %v7616_v45  ;;  %v3351_v11 = vld [vmem:[#allocation2 + $0x78] sm:$0xf] }
 0x2b4   : > { %3168 = vrot.lane.b32.xlu0 %v3085_v31, %s8034_s30  ;;  %2396 = vrot.lane.b32.xlu2 %v2319_v22, %s8034_s30  ;;  %2924 = vst.msk [vmem:[#allocation3 + $0x30] sm:$0xf] %vm1258_vm6, %v2571_v8  ;;  %v2578_v5 = vshll.u32 %v2502_v33, 16  ;;  %v7615_v7 = vld [vmem:[%s11097_s19 + $0xc0] sm:$0xff]  ;;  %v3548_v9 = vshrl.u32 %v3351_v11, 16  ;;  %v3551_v21 = vshll.u32 %v3351_v11, 16 }
 0x2b5   : > { %v2371_v12 = vpop.permute.xlu1 %2370  ;;  %2276 = vst.msk [vmem:[#allocation3 + $0x2c] sm:$0xf] %vm1258_vm6, %v2147_v14  ;;  %v2148_v16 = vrot.slane %v2146_v23, 4  ;;  %v3353_v52 = vld [vmem:[#allocation2 + $0x80] sm:$0xf] }
 0x2b6   : > { %v3141_v58 = vpop.permute.xlu0 %3140  ;;  %2466 = vst.msk [vmem:[#allocation3 + $0x4] sm:$0xf] %vm2022_vm0, %v2371_v12  ;;  %v2575_v12 = vor.u32 %v2574_v2, %v2570_v53  ;;  %v2580_v36 = vrot.slane %v2578_v5, 5  ;;  %v3550_v34 = vrot.slane %v3548_v9, 4  ;;  %v3553_v30 = vrot.slane %v3551_v21, 5 }
 0x2b7   : > { %3235 = vst.msk [vmem:[#allocation3 + $0x1c] sm:$0xf] %vm2022_vm0, %v3141_v58  ;;  %5210 = vmatpush.bf16.msrb.mxu0 %v7615_v7  ;;  %v3571_v22 = vshrl.u32 %v3353_v52, 16  ;;  %v3852_v45 = vld [vmem:[#allocation2 + $0x2c] sm:$0xf]  ;;  %v3094_v7 = vrot.slane %v9273_v4, 5 }
 0x2b8   : > { %v3143_v35 = vpop.permute.xlu2 %3142  ;;  %v2576_v24 = vrot.slane %v2575_v12, 4  ;;  %v3554_v56 = vor.u32 %v3553_v30, %v3550_v34  ;;  %3301 = vst.msk [vmem:[#allocation3 + $0x34] sm:$0xf] %vm1258_vm6, %v3269_v41  ;;  %v9268_v63 = vld [vmem:[#allocation3 + $0x268] sm:$0xf0]  ;;  %v2596_v34 = vshrl.u32 %v2504_v43, 16 }
 0x2b9   : > { %3236 = vst.msk [vmem:[#allocation3 + $0x30] sm:$0xf] %vm2022_vm0, %v3143_v35  ;;  %v3270_v2 = vld [vmem:[#allocation2 + $0x34] sm:$0xf]  ;;  %v2321_v5 = vld [vmem:[#allocation2 + $0x5c] sm:$0xf] }
 0x2ba   : > { %v3555_v42 = vrot.slane %v3554_v56, 4  ;;  %3302 = vst.msk [vmem:[#allocation3 + $0x48] sm:$0xf] %vm1258_vm6, %v3270_v2  ;;  %v3573_v12 = vrot.slane %v3571_v22, 4  ;;  %v2503_v9 = vld [vmem:[#allocation2 + $0x28] sm:$0xf] }
 0x2bb   : > { %3753 = vrot.lane.b32.xlu1 %v3546_v20, %s8034_s30  ;;  %v3567_v20 = vshll.u32 %v3353_v52, 16  ;;  %v2583_v47 = vshrl.u32 %v2503_v9, 16  ;;  %v2598_v52 = vrot.slane %v2596_v34, 4  ;;  %v2061_v56 = vld [vmem:[#allocation2 + $0x18] sm:$0xf] }
 0x2bc   : > { %3751 = vrot.lane.b32.xlu0 %v3536_v50, %s8034_s30  ;;  %v3561_v50 = vshrl.u32 %v3352_v18, 16 }
 0x2bd   : > { %v3726_v58 = vpop.permute.xlu1 %3725 }
 0x2be   : > { %v3724_v31 = vpop.permute.xlu0 %3723  ;;  %v7514_v54 = vld [vmem:[#allocation3 + $0x18] sm:$0xf0]  ;;  %3820 = vst.msk [vmem:[#allocation3 + $0x20] sm:$0xf] %vm2022_vm0, %v3726_v58  ;;  %v3563_v25 = vrot.slane %v3561_v50, 4  ;;  %v9255_v58 = vrot.slane %v3567_v20, 5 }
 0x2bf   : > { %3819 = vst.msk [vmem:[#allocation3 + $0xc] sm:$0xf] %vm2022_vm0, %v3724_v31  ;;  %v6884_v29 = vor.u32 %v7514_v54, %v6883_v44  ;;  %v2150_v31 = vsel %vm8819_vm15, %v2148_v16, %v2149_v32  ;;  %v9261_v54 = vld [vmem:[#allocation2 + $0x30] sm:$0xf]  ;;  %v2324_v16 = vld [vmem:[#allocation2 + $0x6c] sm:$0xf] }
 0x2c0   : > { %5009 = vmatmul.bf16.gmra.mxu3 %v7136_v10  ;;  %v3080_v10 = vrot.slane %v3078_v1, 4  ;;  %v3557_v1 = vshll.u32 %v3352_v18, 16  ;;  %v2377_v39 = vpop.permute.xlu2 %2376  ;;  %2277 = vst.msk [vmem:[#allocation3 + $0x40] sm:$0xf] %vm1258_vm6, %v2150_v31  ;;  %v3936_v8 = vrot.slane %v9261_v54, 5  ;;  %v3096_v18 = vrot.slane %v3094_v7, 4 }
 0x2c1   : > { %5122 = vmatmul.bf16.vlgmr.msra.gmra.mxu2 %v6884_v29  ;;  %2469 = vst.msk [vmem:[#allocation3 + $0x40] sm:$0xf] %vm2022_vm0, %v2377_v39  ;;  %v6903_v29 = vld [vmem:[#allocation3 + $0x30] sm:$0xf]  ;;  %v2585_v32 = vrot.slane %v2583_v47, 4 }
 0x2c2   : > { %4969 = vmatmul.bf16.gmra.mxu1 %v6976_v3  ;;  %v3082_v19 = vsel %vm8819_vm15, %v3080_v10, %v3081_v15  ;;  %v3559_v0 = vrot.slane %v3557_v1, 5  ;;  %v2581_v15 = vsel %vm8682_vm12, %v2576_v24, %v2580_v36  ;;  %v3574_v1 = vor.u32 %v3573_v12, %v9255_v58  ;;  %v3355_v12 = vld [vmem:[#allocation2 + $0x88] sm:$0x1]  ;;  %v3271_v47 = vld [vmem:[#allocation2 + $0x3c] sm:$0xf] }
 0x2c3   : > { %2402 = vrot.lane.b32.xlu1 %v2322_v62, %s8034_s30  ;;  %3166 = vrot.lane.b32.xlu2 %v3082_v19, %s8034_s30  ;;  %2925 = vst.msk [vmem:[#allocation3 + $0x44] sm:$0xf] %vm1258_vm6, %v2581_v15  ;;  %v9266_v62 = vld [vmem:[#allocation3 + $0x258] sm:$0xf]  ;;  %v2586_v19 = vshll.u32 %v2503_v9, 16 }
 0x2c4   : > { %3172 = vrot.lane.b32.xlu0 %v3092_v37, %s8034_s30  ;;  %v3564_v44 = vor.u32 %v3563_v25, %v3559_v0  ;;  %v3560_v49 = vsel %vm8682_vm12, %v3555_v42, %v3559_v0  ;;  %v3933_v37 = vrot.slane %v3852_v45, 5  ;;  %v7176_v50 = vor.u32 %v9268_v63, %v9266_v62  ;;  %v2060_v15 = vld [vmem:[#allocation2 + $0x14] sm:$0xe]  ;;  %3303 = vst.msk [vmem:[#allocation3 + $0x5c] sm:$0xf] %vm1258_vm6, %v3271_v47 }
 0x2c5   : > { %v2375_v26 = vpop.permute.xlu1 %2374  ;;  %v6885_v13 = vld [vmem:[#allocation3 + $0x1c] sm:$0xf0]  ;;  %v2588_v30 = vrot.slane %v2586_v19, 5  ;;  %v6850_v25 = vrot.slane %v2060_v15, 9  ;;  %v2153_v42 = vrot.slane %v2061_v56, 5 }
 0x2c6   : > { %v3145_v6 = vpop.permute.xlu0 %3144  ;;  %v7512_v28 = vld [vmem:[#allocation3 + $0xc] sm:$0xf]  ;;  %2468 = vst.msk [vmem:[#allocation3 + $0x2c] sm:$0xf] %vm2022_vm0, %v2375_v26  ;;  %v3565_v53 = vrot.slane %v3564_v44, 4  ;;  %v3934_v23 = vsel %vm8819_vm15, %v6865_v61, %v3933_v37  ;;  %v2592_v26 = vshll.u32 %v2504_v43, 16 }
 0x2c7   : > { %v6888_v3 = vor.u32 %v7512_v28, %v6885_v13  ;;  %3237 = vst.msk [vmem:[#allocation3 + $0x44] sm:$0xf] %vm2022_vm0, %v3145_v6  ;;  %v2978_v6 = vld [vmem:[#allocation2 + $0x74] sm:$0x1]  ;;  %v2505_v28 = vld [vmem:[#allocation2 + $0x30] sm:$0xf]  ;;  %v2589_v39 = vor.u32 %v2588_v30, %v2585_v32  ;;  %v2154_v61 = vsel %vm8819_vm15, %v6850_v25, %v2153_v42 }
 0x2c8   : > { %v3570_v35 = vsel %vm8682_vm12, %v3565_v53, %v9255_v58  ;;  %4067 = vst.msk [vmem:[#allocation3 + $0x10] sm:$0xf] %vm1258_vm6, %v3934_v23  ;;  %v3097_v11 = vrot.slane %v2978_v6, 5  ;;  %v9289_v55 = vpop.permute.xlu2 %3146  ;;  %v2602_v0 = vshll.u32 %v2505_v28, 16  ;;  %v2606_v13 = vshrl.u32 %v2505_v28, 16 }
 0x2c9   : > { %5211 = vmatmul.bf16.vlgmr.msrb.gmra.mxu0 %v6888_v3  ;;  %v7015_v3 = vld [vmem:[#allocation3 + $0x118] sm:$0xf]  ;;  %v2594_v31 = vrot.slane %v2592_v26, 5  ;;  %v3354_v44 = vld [vmem:[#allocation2 + $0x84] sm:$0xf]  ;;  %v2590_v53 = vrot.slane %v2589_v39, 4 }
 0x2ca   : > { %v3098_v24 = vsel %vm8819_vm15, %v3096_v18, %v3097_v11  ;;  %v9300_v41 = vrot.slane %v2602_v0, 5  ;;  %v7548_v58 = vld [vmem:[#allocation3 + $0x128] sm:$0xf0]  ;;  %v3577_v45 = vshll.u32 %v3354_v44, 16  ;;  %2278 = vst.msk [vmem:[#allocation3 + $0x54] sm:$0xf] %vm1258_vm6, %v2154_v61 }
 0x2cb   : > { %3757 = vrot.lane.b32.xlu1 %v3570_v35, %s8034_s30  ;;  %2400 = vrot.lane.b32.xlu2 %v2321_v5, %s8034_s30  ;;  %v2599_v22 = vor.u32 %v2598_v52, %v2594_v31  ;;  %v7016_v23 = vor.u32 %v7548_v58, %v7015_v3  ;;  %v2062_v6 = vld [vmem:[#allocation2 + $0x1c] sm:$0xf]  ;;  %v3938_v18 = vrot.slane %v3936_v8, 4  ;;  %v2608_v9 = vrot.slane %v2606_v13, 4  ;;  %v3272_v0 = vld [vmem:[#allocation2 + $0x40] sm:$0xf] }
 0x2cc   : > { %3755 = vrot.lane.b32.xlu0 %v3560_v49, %s8034_s30  ;;  %v3581_v49 = vshrl.u32 %v3354_v44, 16  ;;  %v3579_v35 = vrot.slane %v3577_v45, 5  ;;  %v2156_v11 = vrot.slane %v2062_v6, 5  ;;  %v9338_v3 = vld [vmem:[#allocation2 + $0x7c] sm:$0xf] }
 0x2cd   : > { %v3730_v33 = vpop.permute.xlu1 %3729  ;;  %v2600_v62 = vrot.slane %v2599_v22, 4  ;;  %v2609_v54 = vor.u32 %v2608_v9, %v9300_v41  ;;  %v3101_v25 = vrot.slane %v9338_v3, 5  ;;  %v2507_v58 = vld [vmem:[#allocation2 + $0x38] sm:$0x1]  ;;  %v6877_v45 = vld [vmem:[#allocation3 + $0x14] sm:$0xf0] }
 0x2ce   : > { %v3728_v17 = vpop.permute.xlu0 %3727  ;;  %v7519_v10 = vld [vmem:[#allocation3 + $0x40] sm:$0xf0]  ;;  %3822 = vst.msk [vmem:[#allocation3 + $0x48] sm:$0xf] %vm2022_vm0, %v3730_v33  ;;  %v2155_v33 = vrot.slane %v2153_v42, 4  ;;  %v2158_v22 = vrot.slane %v2156_v11, 4 }
 0x2cf   : > { %3821 = vst.msk [vmem:[#allocation3 + $0x34] sm:$0xf] %vm2022_vm0, %v3728_v17  ;;  %v6904_v36 = vor.u32 %v7519_v10, %v6903_v29  ;;  %v2974_v17 = vld [vmem:[#allocation2 + $0x64] sm:$0xe]  ;;  %v2605_v57 = vsel %vm8682_vm12, %v2600_v62, %v9300_v41  ;;  %v6891_v28 = vld [vmem:[#allocation3 + $0x10] sm:$0xf] }
 0x2d0   : > { %5014 = vmatmul.bf16.gmra.mxu3 %v7156_v27  ;;  %v3935_v27 = vrot.slane %v3933_v37, 4  ;;  %v6861_v46 = vrot.slane %v2974_v17, 9  ;;  %v2381_v5 = vpop.permute.xlu2 %2380  ;;  %2927 = vst.msk [vmem:[#allocation3 + $0x6c] sm:$0xf] %vm1258_vm6, %v2605_v57  ;;  %v2157_v43 = vsel %vm8819_vm15, %v2155_v33, %v2156_v11  ;;  %v2610_v13 = vrot.slane %v2609_v54, 4 }
 0x2d1   : > { %5127 = vmatmul.bf16.gmra.mxu2 %v6904_v36  ;;  %v3583_v36 = vrot.slane %v3581_v49, 4  ;;  %2279 = vst.msk [vmem:[#allocation3 + $0x68] sm:$0xf] %vm1258_vm6, %v2157_v43  ;;  %v3103_v44 = vrot.slane %v3101_v25, 4  ;;  %v3356_v6 = vld [vmem:[#allocation2 + $0x8c] sm:$0xf] }
 0x2d2   : > { %4974 = vmatmul.bf16.gmra.mxu1 %v6996_v38  ;;  %v3937_v14 = vsel %vm8819_vm15, %v3935_v27, %v3936_v8  ;;  %v3575_v38 = vrot.slane %v3574_v1, 4  ;;  %v3089_v63 = vsel %vm8819_vm15, %v6861_v46, %v3088_v60  ;;  %v2595_v27 = vsel %vm8682_vm12, %v2590_v53, %v2594_v31  ;;  %v3854_v1 = vld [vmem:[#allocation2 + $0x34] sm:$0xf]  ;;  %2471 = vst.msk [vmem:[#allocation3 + $0x68] sm:$0xf] %vm2022_vm0, %v2381_v5 }
 0x2d3   : > { %4068 = vst.msk [vmem:[#allocation3 + $0x24] sm:$0xf] %vm1258_vm6, %v3937_v14  ;;  %2406 = vrot.lane.b32.xlu1 %v2324_v16, %s8034_s30  ;;  %3170 = vrot.lane.b32.xlu2 %v3089_v63, %s8034_s30  ;;  %v3587_v14 = vshll.u32 %v3355_v12, 16  ;;  %v3584_v19 = vor.u32 %v3583_v36, %v3579_v35  ;;  %v3939_v26 = vrot.slane %v3854_v1, 5  ;;  %v9340_v31 = vld [vmem:[#allocation2 + $0x80] sm:$0xf] }
 0x2d4   : > { %3176 = vrot.lane.b32.xlu0 %v3098_v24, %s8034_s30  ;;  %2926 = vst.msk [vmem:[#allocation3 + $0x58] sm:$0xf] %vm1258_vm6, %v2595_v27  ;;  %v3580_v60 = vsel %vm8682_vm12, %v3575_v38, %v3579_v35  ;;  %v3855_v24 = vld [vmem:[#allocation2 + $0x38] sm:$0x1]  ;;  %v2506_v38 = vld [vmem:[#allocation2 + $0x34] sm:$0xf] }
 0x2d5   : > { %v2379_v20 = vpop.permute.xlu1 %2378  ;;  %v6905_v37 = vld [vmem:[#allocation3 + $0x44] sm:$0xf0]  ;;  %3238 = vst.msk [vmem:[#allocation3 + $0x58] sm:$0xf] %vm2022_vm0, %v9289_v55  ;;  %v3589_v55 = vrot.slane %v3587_v14, 5  ;;  %v3585_v8 = vrot.slane %v3584_v19, 4  ;;  %v3940_v32 = vsel %vm8819_vm15, %v3938_v18, %v3939_v26 }
 0x2d6   : > { %v9292_v21 = vpop.permute.xlu0 %3148  ;;  %v7517_v29 = vld [vmem:[#allocation3 + $0x34] sm:$0xf]  ;;  %2470 = vst.msk [vmem:[#allocation3 + $0x54] sm:$0xf] %vm2022_vm0, %v2379_v20  ;;  %v3942_v34 = vrot.slane %v3855_v24, 5  ;;  %v3941_v30 = vrot.slane %v3939_v26, 4 }
 0x2d7   : > { %v6908_v2 = vor.u32 %v7517_v29, %v6905_v37  ;;  %3239 = vst.msk [vmem:[#allocation3 + $0x6c] sm:$0xf] %vm2022_vm0, %v9292_v21  ;;  %v2323_v21 = vld [vmem:[#allocation2 + $0x68] sm:$0xf]  ;;  %v3590_v15 = vsel %vm8682_vm12, %v3585_v8, %v3589_v55  ;;  %v3104_v20 = vrot.slane %v9340_v31, 5  ;;  %v2612_v42 = vshll.u32 %v2506_v38, 16 }
 0x2d8   : > { %v3151_v52 = vpop.permute.xlu2 %3150  ;;  %v3943_v56 = vsel %vm8819_vm15, %v3941_v30, %v3942_v34  ;;  %4069 = vst.msk [vmem:[#allocation3 + $0x38] sm:$0xf] %vm1258_vm6, %v3940_v32  ;;  %v2616_v17 = vshrl.u32 %v2506_v38, 16  ;;  %v7511_v46 = vld [vmem:[#allocation3 + $0x4] sm:$0xf]  ;;  %v2622_v63 = vshll.u32 %v2507_v58, 16 }
 0x2d9   : > { %5216 = vmatmul.bf16.gmra.mxu0 %v6908_v2  ;;  %4070 = vst.msk [vmem:[#allocation3 + $0x4c] sm:$0xf] %vm1258_vm6, %v3943_v56  ;;  %v2614_v61 = vrot.slane %v2612_v42, 5  ;;  %v3105_v62 = vsel %vm8819_vm15, %v3103_v44, %v3104_v20  ;;  %v2326_v35 = vld [vmem:[#allocation2 + $0x78] sm:$0xf]  ;;  %v3093_v2 = vrot.slane %v3091_v40, 4  ;;  %v6880_v43 = vor.u32 %v7511_v46, %v6877_v45 }
 0x2da   : > { %v7515_v16 = vld [vmem:[#allocation3 + $0x20] sm:$0xf0]  ;;  %3304 = vst.msk [vmem:[#allocation3 + $0x70] sm:$0xf] %vm1258_vm6, %v3272_v0  ;;  %v2618_v29 = vrot.slane %v2616_v17, 4  ;;  %v2624_v57 = vrot.slane %v2622_v63, 5 }
 0x2db   : > { %3761 = vrot.lane.b32.xlu1 %v3590_v15, %s8034_s30  ;;  %2404 = vrot.lane.b32.xlu2 %v2323_v21, %s8034_s30  ;;  %v6892_v49 = vor.u32 %v7515_v16, %v6891_v28  ;;  %v2615_v5 = vsel %vm8682_vm12, %v2610_v13, %v2614_v61  ;;  %v2063_v27 = vld [vmem:[#allocation2 + $0x20] sm:$0xf]  ;;  %v3095_v48 = vsel %vm8819_vm15, %v3093_v2, %v3094_v7  ;;  %v3592_v40 = vshrl.u32 %v3356_v6, 16  ;;  %v2064_v54 = vld [vmem:[#allocation2 + $0x24] sm:$0x1] }
 0x2dc   : > { %3759 = vrot.lane.b32.xlu0 %v3580_v60, %s8034_s30  ;;  %v6923_v41 = vld [vmem:[#allocation3 + $0x58] sm:$0xf]  ;;  %2928 = vst.msk [vmem:[#allocation3 + $0x80] sm:$0xf] %vm1258_vm6, %v2615_v5  ;;  %v2159_v60 = vrot.slane %v2063_v27, 5  ;;  %v3595_v36 = vshll.u32 %v3356_v6, 16 }
 0x2dd   : > { %3240 = vst.msk [vmem:[#allocation3 + $0x80] sm:$0xf] %vm2022_vm0, %v3151_v52  ;;  %v3594_v7 = vrot.slane %v3592_v40, 4  ;;  %v3273_v8 = vld [vmem:[#allocation2 + $0x44] sm:$0xf]  ;;  %v2162_v16 = vrot.slane %v2064_v54, 5 }
 0x2de   : > { %v3732_v10 = vpop.permute.xlu0 %3731  ;;  %v7524_v53 = vld [vmem:[#allocation3 + $0x68] sm:$0xf0]  ;;  %v2160_v4 = vsel %vm8819_vm15, %v2158_v22, %v2159_v60  ;;  %v2161_v24 = vrot.slane %v2159_v60, 4  ;;  %3305 = vst.msk [vmem:[#allocation3 + $0x84] sm:$0xf] %vm1258_vm6, %v3273_v8 }
 0x2df   : > { %3823 = vst.msk [vmem:[#allocation3 + $0x5c] sm:$0xf] %vm2022_vm0, %v3732_v10  ;;  %v6924_v33 = vor.u32 %v7524_v53, %v6923_v41  ;;  %v3357_v10 = vld [vmem:[#allocation2 + $0x90] sm:$0xf]  ;;  %v3358_v21 = vld [vmem:[#allocation2 + $0x94] sm:$0xf] }
 0x2e0   : > { %5019 = vmatmul.bf16.gmra.mxu3 %v7176_v50  ;;  %v3734_v50 = vpop.permute.xlu1 %3733  ;;  %v3601_v14 = vshll.u32 %v3357_v10, 16  ;;  %v3605_v18 = vshrl.u32 %v3357_v10, 16  ;;  %v2385_v9 = vpop.permute.xlu2 %2384  ;;  %2280 = vst.msk [vmem:[#allocation3 + $0x7c] sm:$0xf] %vm1258_vm6, %v2160_v4  ;;  %v2163_v15 = vsel %vm8819_vm15, %v2161_v24, %v2162_v16  ;;  %v3611_v56 = vshll.u32 %v3358_v21, 16 }
 0x2e1   : > { %3824 = vst.msk [vmem:[#allocation3 + $0x70] sm:$0xf] %vm2022_vm0, %v3734_v50  ;;  %5132 = vmatmul.bf16.gmra.mxu2 %v6924_v33  ;;  %v3597_v50 = vrot.slane %v3595_v36, 5  ;;  %v6911_v38 = vld [vmem:[#allocation3 + $0x38] sm:$0xf] }
 0x2e2   : > { %4979 = vmatmul.bf16.gmra.mxu1 %v7016_v23  ;;  %v2619_v23 = vor.u32 %v2618_v29, %v2614_v61  ;;  %v3603_v55 = vrot.slane %v3601_v14, 5  ;;  %v3607_v32 = vrot.slane %v3605_v18, 4  ;;  %v7520_v41 = vld [vmem:[#allocation3 + $0x48] sm:$0xf0]  ;;  %2281 = vst.msk [vmem:[#allocation3 + $0x90] sm:$0xf] %vm1258_vm6, %v2163_v15 }
 0x2e3   : > { %2410 = vrot.lane.b32.xlu1 %v2326_v35, %s8034_s30  ;;  %3174 = vrot.lane.b32.xlu2 %v3095_v48, %s8034_s30  ;;  %v3598_v34 = vor.u32 %v3597_v50, %v3594_v7  ;;  %2473 = vst.msk [vmem:[#allocation3 + $0x90] sm:$0xf] %vm2022_vm0, %v2385_v9  ;;  %v9394_v22 = vrot.slane %v3611_v56, 5  ;;  %v3856_v46 = vld [vmem:[#allocation2 + $0x3c] sm:$0xe]  ;;  %v6912_v6 = vor.u32 %v7520_v41, %v6911_v38 }
 0x2e4   : > { %3180 = vrot.lane.b32.xlu0 %v3105_v62, %s8034_s30  ;;  %v2620_v12 = vrot.slane %v2619_v23, 4  ;;  %v3608_v52 = vor.u32 %v3607_v32, %v3603_v55  ;;  %v6943_v42 = vld [vmem:[#allocation3 + $0x80] sm:$0xf]  ;;  %v9400_v53 = vld [vmem:[#allocation2 + $0x44] sm:$0xf] }
 0x2e5   : > { %v3599_v13 = vrot.slane %v3598_v34, 4  ;;  %v3949_v62 = vrot.slane %v9400_v53, 5  ;;  %v3274_v63 = vld [vmem:[#allocation2 + $0x48] sm:$0xf]  ;;  %v2325_v5 = vld [vmem:[#allocation2 + $0x70] sm:$0xf] }
 0x2e6   : > { %v3153_v39 = vpop.permute.xlu0 %3152  ;;  %v7522_v47 = vld [vmem:[#allocation3 + $0x5c] sm:$0xf]  ;;  %v2625_v1 = vsel %vm8682_vm12, %v2620_v12, %v2624_v57  ;;  %v3609_v58 = vrot.slane %v3608_v52, 4  ;;  %3306 = vst.msk [vmem:[#allocation3 + $0x98] sm:$0xf] %vm1258_vm6, %v3274_v63 }
 0x2e7   : > { %2929 = vst.msk [vmem:[#allocation3 + $0x94] sm:$0xf] %vm1258_vm6, %v2625_v1  ;;  %v3604_v44 = vsel %vm8682_vm12, %v3599_v13, %v3603_v55  ;;  %v7516_v23 = vld [vmem:[#allocation3 + $0x2c] sm:$0xf]  ;;  %v6897_v27 = vld [vmem:[#allocation3 + $0x3c] sm:$0xf0] }
 0x2e8   : > { %v2383_v37 = vpop.permute.xlu1 %2382  ;;  %3241 = vst.msk [vmem:[#allocation3 + $0x94] sm:$0xf] %vm2022_vm0, %v3153_v39  ;;  %v6925_v28 = vld [vmem:[#allocation3 + $0x6c] sm:$0xf0]  ;;  %v3615_v39 = vshrl.u32 %v3358_v21, 16  ;;  %v9396_v45 = vpop.permute.xlu2 %3154  ;;  %v3614_v29 = vsel %vm8682_vm12, %v3609_v58, %v9394_v22 }
 0x2e9   : > { %2472 = vst.msk [vmem:[#allocation3 + $0x7c] sm:$0xf] %vm2022_vm0, %v2383_v37  ;;  %v6928_v0 = vor.u32 %v7522_v47, %v6925_v28  ;;  %v6866_v37 = vrot.slane %v3856_v46, 9  ;;  %v9416_v48 = vld [vmem:[#allocation2 + $0x84] sm:$0xf]  ;;  %v6900_v28 = vor.u32 %v7516_v23, %v6897_v27 }
 0x2ea   : > { %v2983_v12 = vld [vmem:[#allocation2 + $0x88] sm:$0x1]  ;;  %v3107_v36 = vrot.slane %v9416_v48, 5  ;;  %v3617_v14 = vrot.slane %v3615_v39, 4  ;;  %v2509_v4 = vld [vmem:[#allocation2 + $0x40] sm:$0xf] }
 0x2eb   : > { %5221 = vmatmul.bf16.gmra.mxu0 %v6928_v0  ;;  %3765 = vrot.lane.b32.xlu1 %v3614_v29, %s8034_s30  ;;  %v3110_v9 = vrot.slane %v2983_v12, 5  ;;  %v2636_v1 = vshll.u32 %v2509_v4, 16  ;;  %v2640_v55 = vshrl.u32 %v2509_v4, 16  ;;  %v2510_v24 = vld [vmem:[#allocation2 + $0x44] sm:$0xf] }
 0x2ec   : > { %3763 = vrot.lane.b32.xlu0 %v3604_v44, %s8034_s30  ;;  %2408 = vrot.lane.b32.xlu2 %v2325_v5, %s8034_s30  ;;  %v3109_v7 = vrot.slane %v3107_v36, 4  ;;  %v2328_v54 = vld [vmem:[#allocation2 + $0x80] sm:$0xf]  ;;  %v3618_v8 = vor.u32 %v3617_v14, %v9394_v22  ;;  %v2065_v0 = vld [vmem:[#allocation2 + $0x28] sm:$0xe]  ;;  %v2646_v56 = vshll.u32 %v2510_v24, 16 }
 0x2ed   : > { %v2066_v21 = vld [vmem:[#allocation2 + $0x2c] sm:$0xf]  ;;  %v2638_v15 = vrot.slane %v2636_v1, 5  ;;  %v2642_v52 = vrot.slane %v2640_v55, 4  ;;  %v2979_v38 = vld [vmem:[#allocation2 + $0x78] sm:$0xe] }
 0x2ee   : > { %v3736_v19 = vpop.permute.xlu0 %3735  ;;  %v3111_v16 = vsel %vm8819_vm15, %v3109_v7, %v3110_v9  ;;  %v2166_v44 = vrot.slane %v2066_v21, 5  ;;  %v6862_v58 = vrot.slane %v2979_v38, 9  ;;  %v3359_v22 = vld [vmem:[#allocation2 + $0x98] sm:$0xf]  ;;  %v2650_v29 = vshrl.u32 %v2510_v24, 16 }
 0x2ef   : > { %v9369_v11 = vpop.f32.mrf.mxu1  ;;  %3825 = vst.msk [vmem:[#allocation3 + $0x84] sm:$0xf] %vm2022_vm0, %v3736_v19  ;;  %v7529_v2 = vld [vmem:[#allocation3 + $0x90] sm:$0xf0]  ;;  %v2643_v46 = vor.u32 %v2642_v52, %v2638_v15  ;;  %v3621_v27 = vshll.u32 %v3359_v22, 16  ;;  %v3951_v14 = vrot.slane %v3949_v62, 4 }
 0x2f0   : > { %7337 = vmatmul.msk.bf16.vlgmr.msrb.gmra.mxu3 %vm4887_vm1, %v6892_v49  ;;  %v3738_v30 = vpop.permute.xlu1 %3737  ;;  %v3857_v49 = vld [vmem:[#allocation2 + $0x40] sm:$0xf]  ;;  %v6944_v10 = vor.u32 %v7529_v2, %v6943_v42  ;;  %v9433_v34 = vpop.permute.xlu2 %2388  ;;  %v6851_v42 = vrot.slane %v2065_v0, 9  ;;  %v3102_v23 = vsel %vm8819_vm15, %v6862_v58, %v3101_v25  ;;  %v2168_v9 = vrot.slane %v2166_v44, 4  ;;  %v6917_v52 = vld [vmem:[#allocation3 + $0x64] sm:$0xf0] }
 0x2f1   : > { %v3946_v33 = vrot.slane %v3857_v49, 5  ;;  %3826 = vst.msk [vmem:[#allocation3 + $0x98] sm:$0xf] %vm2022_vm0, %v3738_v30  ;;  %v2648_v49 = vrot.slane %v2646_v56, 5  ;;  %v3623_v25 = vrot.slane %v3621_v27, 5  ;;  %v2652_v55 = vrot.slane %v2650_v29, 4 }
 0x2f2   : > { %5033 = vmatmul.bf16.vlgmr.msra.gmra.mxu1 %v6880_v43  ;;  %v2508_v43 = vld [vmem:[#allocation2 + $0x3c] sm:$0xf]  ;;  %5137 = vmatmul.bf16.gmra.mxu2 %v6944_v10  ;;  %v2167_v5 = vsel %vm8819_vm15, %v6851_v42, %v2166_v44  ;;  %v9451_v10 = vld [vmem:[#allocation2 + $0x30] sm:$0xf]  ;;  %v3276_v58 = vld [vmem:[#allocation2 + $0x54] sm:$0xf] }
 0x2f3   : > { %v9380_v26 = vpop.f32.mrf.mxu3  ;;  %v3947_v57 = vsel %vm8819_vm15, %v6866_v37, %v3946_v33  ;;  %v3948_v60 = vrot.slane %v3946_v33, 4  ;;  %v2627_v47 = vshrl.u32 %v2508_v43, 16  ;;  %v2630_v19 = vshll.u32 %v2508_v43, 16  ;;  %2414 = vrot.lane.b32.xlu1 %v2328_v54, %s8034_s30  ;;  %2282 = vst.msk [vmem:[#allocation3 + $0xa4] sm:$0xf] %vm1258_vm6, %v2167_v5 }
 0x2f4   : > { %4071 = vst.msk [vmem:[#allocation3 + $0x60] sm:$0xf] %vm1258_vm6, %v3947_v57  ;;  %3184 = vrot.lane.b32.xlu0 %v3111_v16, %s8034_s30  ;;  %v3619_v37 = vrot.slane %v3618_v8, 4  ;;  %v2644_v57 = vrot.slane %v2643_v46, 4  ;;  %3178 = vrot.lane.b32.xlu2 %v3102_v23, %s8034_s30  ;;  %v2169_v53 = vrot.slane %v9451_v10, 5  ;;  %v2653_v21 = vor.u32 %v2652_v55, %v2648_v49 }
 0x2f5   : > { %v3950_v18 = vsel %vm8819_vm15, %v3948_v60, %v3949_v62  ;;  %v2629_v32 = vrot.slane %v2627_v47, 4  ;;  %v2632_v30 = vrot.slane %v2630_v19, 5  ;;  %v3625_v60 = vshrl.u32 %v3359_v22, 16  ;;  %v3360_v62 = vld [vmem:[#allocation2 + $0x9c] sm:$0x1] }
 0x2f6   : > { %v9402_v61 = vpop.permute.xlu0 %3156  ;;  %4072 = vst.msk [vmem:[#allocation3 + $0x74] sm:$0xf] %vm1258_vm6, %v3950_v18  ;;  %v7527_v33 = vld [vmem:[#allocation3 + $0x84] sm:$0xf]  ;;  %v2649_v4 = vsel %vm8682_vm12, %v2644_v57, %v2648_v49  ;;  %v3631_v1 = vshll.u32 %v3360_v62, 16  ;;  %v2170_v54 = vsel %vm8819_vm15, %v2168_v9, %v2169_v53  ;;  %v2654_v46 = vrot.slane %v2653_v21, 4 }
 0x2f7   : > { %v9389_v17 = vpop.f32.mrf.mxu1  ;;  %v2633_v39 = vor.u32 %v2632_v30, %v2629_v32  ;;  %v3627_v7 = vrot.slane %v3625_v60, 4  ;;  %2931 = vst.msk [vmem:[#allocation3 + $0xbc] sm:$0xf] %vm1258_vm6, %v2649_v4  ;;  %v3275_v8 = vld [vmem:[#allocation2 + $0x50] sm:$0xf] }
 0x2f8   : > { %v9418_v40 = vpop.permute.xlu1 %2386  ;;  %v9467_v47 = vpop.permute.xlu2 %3158  ;;  %v3859_v16 = vld [vmem:[#allocation2 + $0x48] sm:$0xf]  ;;  %3243 = vst.msk [vmem:[#allocation3 + $0xbc] sm:$0xf] %vm2022_vm0, %v9402_v61  ;;  %v3860_v30 = vld [vmem:[#allocation2 + $0x4c] sm:$0x1] }
 0x2f9   : > { %v2634_v2 = vrot.slane %v2633_v39, 4  ;;  %2474 = vst.msk [vmem:[#allocation3 + $0xa4] sm:$0xf] %vm2022_vm0, %v9418_v40  ;;  %v3624_v40 = vsel %vm8682_vm12, %v3619_v37, %v3623_v25  ;;  %v3952_v0 = vrot.slane %v3859_v16, 5  ;;  %v3955_v39 = vrot.slane %v3860_v30, 5 }
 0x2fa   : > { %2283 = vst.msk [vmem:[#allocation3 + $0xb8] sm:$0xf] %vm1258_vm6, %v2170_v54  ;;  %v2327_v22 = vld [vmem:[#allocation2 + $0x7c] sm:$0xf]  ;;  %v9494_v29 = vld [vmem:[#allocation2 + $0x90] sm:$0xf] }
 0x2fb   : > { %v9408_v35 = vpop.f32.mrf.mxu3  ;;  %v6931_v18 = vld [vmem:[#allocation3 + $0x60] sm:$0xf]  ;;  %v2639_v3 = vsel %vm8682_vm12, %v2634_v2, %v2638_v15  ;;  %v7521_v15 = vld [vmem:[#allocation3 + $0x54] sm:$0xf]  ;;  %2475 = vst.msk [vmem:[#allocation3 + $0xb8] sm:$0xf] %vm2022_vm0, %v9433_v34  ;;  %v3953_v44 = vsel %vm8819_vm15, %v3951_v14, %v3952_v0 }
 0x2fc   : > { %2930 = vst.msk [vmem:[#allocation3 + $0xa8] sm:$0xf] %vm1258_vm6, %v2639_v3  ;;  %3767 = vrot.lane.b32.xlu0 %v3624_v40, %s8034_s30  ;;  %v3954_v61 = vrot.slane %v3952_v0, 4  ;;  %2412 = vrot.lane.b32.xlu2 %v2327_v22, %s8034_s30  ;;  %v9496_v37 = vld [vmem:[#allocation2 + $0x94] sm:$0xf]  ;;  %v6920_v57 = vor.u32 %v7521_v15, %v6917_v52  ;;  %v2171_v14 = vrot.slane %v2169_v53, 4 }
 0x2fd   : > { %v7525_v19 = vld [vmem:[#allocation3 + $0x70] sm:$0xf0]  ;;  %3242 = vst.msk [vmem:[#allocation3 + $0xa8] sm:$0xf] %vm2022_vm0, %v9396_v45  ;;  %v3633_v45 = vrot.slane %v3631_v1, 5  ;;  %v3117_v2 = vrot.slane %v9496_v37, 5 }
 0x2fe   : > { %v9437_v13 = vpop.permute.xlu0 %3739  ;;  %v6932_v56 = vor.u32 %v7525_v19, %v6931_v18  ;;  %3307 = vst.msk [vmem:[#allocation3 + $0xac] sm:$0xf] %vm1258_vm6, %v3275_v8  ;;  %v3956_v34 = vsel %vm8819_vm15, %v3954_v61, %v3955_v39  ;;  %v2511_v5 = vld [vmem:[#allocation2 + $0x48] sm:$0xf]  ;;  %v2330_v19 = vld [vmem:[#allocation2 + $0x8c] sm:$0xf] }
 0x2ff   : > { %v9429_v50 = vpop.f32.mrf.mxu1  ;;  %3827 = vst.msk [vmem:[#allocation3 + $0xac] sm:$0xf] %vm2022_vm0, %v9437_v13  ;;  %v2660_v10 = vshrl.u32 %v2511_v5, 16  ;;  %v7534_v3 = vld [vmem:[#allocation3 + $0xb8] sm:$0xf0]  ;;  %v3106_v40 = vrot.slane %v3104_v20, 4 }
 0x300   : > { %7338 = vmatmul.msk.bf16.gmra.mxu3 %vm4887_vm1, %v6912_v6  ;;  %v9443_v63 = vpop.permute.xlu1 %3741  ;;  %v6945_v6 = vld [vmem:[#allocation3 + $0x94] sm:$0xf0]  ;;  %4073 = vst.msk [vmem:[#allocation3 + $0x88] sm:$0xf] %vm1258_vm6, %v3953_v44  ;;  %v9509_v13 = vpop.permute.xlu2 %2392  ;;  %v2068_v54 = vld [vmem:[#allocation2 + $0x34] sm:$0xf] }
 0x301   : > { %v6948_v12 = vor.u32 %v7527_v33, %v6945_v6  ;;  %v3114_v33 = vrot.slane %v9494_v29, 5  ;;  %v2656_v6 = vshll.u32 %v2511_v5, 16  ;;  %4074 = vst.msk [vmem:[#allocation3 + $0x9c] sm:$0xf] %vm1258_vm6, %v3956_v34  ;;  %v2662_v9 = vrot.slane %v2660_v10, 4 }
 0x302   : > { %5038 = vmatmul.bf16.gmra.mxu1 %v6900_v28  ;;  %v3628_v28 = vor.u32 %v3627_v7, %v3623_v25  ;;  %3308 = vst.msk [vmem:[#allocation3 + $0xc0] sm:$0xf] %vm1258_vm6, %v3276_v58  ;;  %v3361_v8 = vld [vmem:[#allocation2 + $0xa0] sm:$0xf]  ;;  %v3108_v31 = vsel %vm8819_vm15, %v3106_v40, %v3107_v36  ;;  %v9640_v29 = vld [vmem:[#allocation2 + $0x44] sm:$0xf] }
 0x303   : > { %v9440_v41 = vpop.f32.mrf.mxu3  ;;  %5226 = vmatmul.bf16.gmra.mxu0 %v6948_v12  ;;  %v3116_v60 = vrot.slane %v3114_v33, 4  ;;  %v2512_v12 = vld [vmem:[#allocation2 + $0x4c] sm:$0x1]  ;;  %v2658_v25 = vrot.slane %v2656_v6, 5  ;;  %3828 = vst.msk [vmem:[#allocation3 + $0xc0] sm:$0xf] %vm2022_vm0, %v9443_v63 }
 0x304   : > { %11100 = vst [vmem:[#allocation28_spill] sm:$0xff] %v9440_v41  ;;  %v3629_v38 = vrot.slane %v3628_v28, 4  ;;  %v6963_v27 = vld [vmem:[#allocation3 + $0xa8] sm:$0xf]  ;;  %v2666_v53 = vshll.u32 %v2512_v12, 16  ;;  %v3636_v20 = vshrl.u32 %v3361_v8, 16  ;;  %3182 = vrot.lane.b32.xlu2 %v3108_v31, %s8034_s30 }
 0x305   : > { %v6964_v62 = vor.u32 %v7534_v3, %v6963_v27  ;;  %v3118_v7 = vsel %vm8819_vm15, %v3116_v60, %v3117_v2  ;;  %v2659_v1 = vsel %vm8682_vm12, %v2654_v46, %v2658_v25  ;;  %v2663_v55 = vor.u32 %v2662_v9, %v2658_v25  ;;  %v3362_v28 = vld [vmem:[#allocation2 + $0xa4] sm:$0xf]  ;;  %v2069_v46 = vld [vmem:[#allocation2 + $0x38] sm:$0x1]  ;;  %v3363_v12 = vld [vmem:[#allocation2 + $0xa8] sm:$0xf] }
 0x306   : > { %v9473_v24 = vpop.permute.xlu0 %3160  ;;  %v3634_v49 = vsel %vm8682_vm12, %v3629_v38, %v3633_v45  ;;  %3188 = vrot.lane.b32.xlu0 %v3118_v7, %s8034_s30  ;;  %2932 = vst.msk [vmem:[#allocation3 + $0xd0] sm:$0xf] %vm1258_vm6, %v2659_v1  ;;  %v2668_v16 = vrot.slane %v2666_v53, 5  ;;  %v2172_v45 = vrot.slane %v2068_v54, 5  ;;  %v3639_v0 = vshll.u32 %v3361_v8, 16 }
 0x307   : > { %v9461_v43 = vpop.f32.mrf.mxu1  ;;  %3769 = vrot.lane.b32.xlu1 %v3634_v49, %s8034_s30  ;;  %5142 = vmatmul.bf16.gmra.mxu2 %v6964_v62  ;;  %3244 = vst.msk [vmem:[#allocation3 + $0xd0] sm:$0xf] %vm2022_vm0, %v9467_v47  ;;  %v2664_v30 = vrot.slane %v2663_v55, 4  ;;  %v3645_v21 = vshll.u32 %v3362_v28, 16  ;;  %v3649_v15 = vshrl.u32 %v3362_v28, 16  ;;  %v3638_v48 = vrot.slane %v3636_v20, 4 }
 0x308   : > { %v9484_v42 = vpop.permute.xlu1 %2390  ;;  %v6951_v52 = vld [vmem:[#allocation3 + $0x88] sm:$0xf]  ;;  %v7532_v38 = vld [vmem:[#allocation3 + $0xac] sm:$0xf]  ;;  %v2174_v39 = vrot.slane %v2172_v45, 4  ;;  %v3641_v61 = vrot.slane %v3639_v0, 5  ;;  %v9548_v22 = vpop.permute.xlu2 %3162 }
 0x309   : > { %v7530_v44 = vld [vmem:[#allocation3 + $0x98] sm:$0xf0]  ;;  %v2669_v47 = vsel %vm8682_vm12, %v2664_v30, %v2668_v16  ;;  %v3647_v58 = vrot.slane %v3645_v21, 5  ;;  %v3277_v49 = vld [vmem:[#allocation2 + $0x58] sm:$0xf]  ;;  %v2175_v6 = vrot.slane %v2069_v46, 5 }
 0x30a   : > { %2933 = vst.msk [vmem:[#allocation3 + $0xe4] sm:$0xf] %vm1258_vm6, %v2669_v47  ;;  %v3642_v5 = vor.u32 %v3641_v61, %v3638_v48  ;;  %v6965_v27 = vld [vmem:[#allocation3 + $0xbc] sm:$0xf0]  ;;  %v3651_v10 = vrot.slane %v3649_v15, 4  ;;  %v6952_v25 = vor.u32 %v7530_v44, %v6951_v52  ;;  %v3655_v53 = vshll.u32 %v3363_v12, 16 }
 0x30b   : > { %v9479_v32 = vpop.f32.mrf.mxu3  ;;  %3245 = vst.msk [vmem:[#allocation3 + $0xe4] sm:$0xf] %vm2022_vm0, %v9473_v24  ;;  %v6968_v60 = vor.u32 %v7532_v38, %v6965_v27  ;;  %v6937_v3 = vld [vmem:[#allocation3 + $0x8c] sm:$0xf0]  ;;  %v2176_v62 = vsel %vm8819_vm15, %v2174_v39, %v2175_v6  ;;  %v3861_v55 = vld [vmem:[#allocation2 + $0x50] sm:$0xe] }
 0x30c   : > { %11101 = vst [vmem:[#allocation29_spill] sm:$0xff] %v9479_v32  ;;  %v3643_v9 = vrot.slane %v3642_v5, 4  ;;  %v3652_v24 = vor.u32 %v3651_v10, %v3647_v58  ;;  %v3657_v54 = vrot.slane %v3655_v53, 5  ;;  %v3862_v8 = vld [vmem:[#allocation2 + $0x54] sm:$0xf]  ;;  %v6867_v28 = vrot.slane %v3861_v55, 9 }
 0x30d   : > { %3309 = vst.msk [vmem:[#allocation3 + $0xd4] sm:$0xf] %vm1258_vm6, %v3277_v49  ;;  %v3959_v31 = vrot.slane %v3862_v8, 5  ;;  %v3278_v20 = vld [vmem:[#allocation2 + $0x5c] sm:$0xf] }
 0x30e   : > { %v9514_v18 = vpop.permute.xlu0 %3743  ;;  %2285 = vst.msk [vmem:[#allocation3 + $0xe0] sm:$0xf] %vm1258_vm6, %v2176_v62  ;;  %v3648_v40 = vsel %vm8682_vm12, %v3643_v9, %v3647_v58  ;;  %v3653_v1 = vrot.slane %v3652_v24, 4  ;;  %v2329_v38 = vld [vmem:[#allocation2 + $0x84] sm:$0xf] }
 0x30f   : > { %v9505_v23 = vpop.f32.mrf.mxu1  ;;  %2418 = vrot.lane.b32.xlu1 %v2330_v19, %s8034_s30  ;;  %v3659_v19 = vshrl.u32 %v3363_v12, 16  ;;  %2477 = vst.msk [vmem:[#allocation3 + $0xe0] sm:$0xf] %vm2022_vm0, %v9509_v13  ;;  %3771 = vrot.lane.b32.xlu0 %v3648_v40, %s8034_s30  ;;  %v3961_v48 = vrot.slane %v3959_v31, 4  ;;  %v9594_v47 = vld [vmem:[#allocation2 + $0x98] sm:$0xf] }
 0x310   : > { %7339 = vmatmul.msk.bf16.gmra.mxu3 %vm4887_vm1, %v6932_v56  ;;  %v9530_v63 = vpop.permute.xlu1 %3745  ;;  %v2173_v56 = vsel %vm8819_vm15, %v2171_v14, %v2172_v45  ;;  %v7526_v14 = vld [vmem:[#allocation3 + $0x7c] sm:$0xf]  ;;  %3829 = vst.msk [vmem:[#allocation3 + $0xd4] sm:$0xf] %vm2022_vm0, %v9514_v18  ;;  %v9575_v45 = vld [vmem:[#allocation2 + $0x58] sm:$0xf]  ;;  %v9577_v13 = vpop.permute.xlu2 %2396  ;;  %v3658_v21 = vsel %vm8682_vm12, %v3653_v1, %v3657_v54  ;;  %2416 = vrot.lane.b32.xlu2 %v2329_v38, %s8034_s30 }
 0x311   : > { %2284 = vst.msk [vmem:[#allocation3 + $0xcc] sm:$0xf] %vm1258_vm6, %v2173_v56  ;;  %v3661_v30 = vrot.slane %v3659_v19, 4  ;;  %v6940_v0 = vor.u32 %v7526_v14, %v6937_v3  ;;  %v3962_v18 = vrot.slane %v9575_v45, 5  ;;  %v3960_v56 = vsel %vm8819_vm15, %v6867_v28, %v3959_v31  ;;  %v2988_v61 = vld [vmem:[#allocation2 + $0x9c] sm:$0x1] }
 0x312   : > { %5043 = vmatmul.bf16.gmra.mxu1 %v6920_v57  ;;  %2476 = vst.msk [vmem:[#allocation3 + $0xcc] sm:$0xf] %vm2022_vm0, %v9484_v42  ;;  %v6983_v42 = vld [vmem:[#allocation3 + $0xd0] sm:$0xf]  ;;  %v7539_v15 = vld [vmem:[#allocation3 + $0xe0] sm:$0xf0] }
 0x313   : > { %v9517_v4 = vpop.f32.mrf.mxu3  ;;  %5231 = vmatmul.bf16.gmra.mxu0 %v6968_v60  ;;  %3310 = vst.msk [vmem:[#allocation3 + $0xe8] sm:$0xf] %vm1258_vm6, %v3278_v20  ;;  %v6984_v52 = vor.u32 %v7539_v15, %v6983_v42  ;;  %v3963_v58 = vsel %vm8819_vm15, %v3961_v48, %v3962_v18  ;;  %v3123_v46 = vrot.slane %v2988_v61, 5  ;;  %v2513_v49 = vld [vmem:[#allocation2 + $0x50] sm:$0xf]  ;;  %v3662_v27 = vor.u32 %v3661_v30, %v3657_v54 }
 0x314   : > { %11102 = vst [vmem:[#allocation30_spill] sm:$0xff] %v9517_v4  ;;  %v2514_v5 = vld [vmem:[#allocation2 + $0x54] sm:$0xf]  ;;  %v2671_v10 = vshrl.u32 %v2513_v49, 16  ;;  %v2674_v60 = vshll.u32 %v2513_v49, 16 }
 0x315   : > { %3830 = vst.msk [vmem:[#allocation3 + $0xe8] sm:$0xf] %vm2022_vm0, %v9530_v63  ;;  %v3120_v63 = vrot.slane %v9594_v47, 5  ;;  %v2680_v12 = vshll.u32 %v2514_v5, 16  ;;  %v2684_v14 = vshrl.u32 %v2514_v5, 16 }
 0x316   : > { %v9551_v34 = vpop.permute.xlu0 %3164  ;;  %4075 = vst.msk [vmem:[#allocation3 + $0xb0] sm:$0xf] %vm1258_vm6, %v3960_v56  ;;  %v2332_v9 = vld [vmem:[#allocation2 + $0x94] sm:$0xf]  ;;  %v2673_v62 = vrot.slane %v2671_v10, 4  ;;  %v2676_v24 = vrot.slane %v2674_v60, 5 }
 0x317   : > { %v9543_v36 = vpop.f32.mrf.mxu1  ;;  %3773 = vrot.lane.b32.xlu1 %v3658_v21, %s8034_s30  ;;  %5147 = vmatmul.bf16.gmra.mxu2 %v6984_v52  ;;  %4076 = vst.msk [vmem:[#allocation3 + $0xc4] sm:$0xf] %vm1258_vm6, %v3963_v58  ;;  %v3122_v3 = vrot.slane %v3120_v63, 4  ;;  %v2682_v53 = vrot.slane %v2680_v12, 5  ;;  %v2686_v19 = vrot.slane %v2684_v14, 4  ;;  %v3663_v21 = vrot.slane %v3662_v27, 4 }
 0x318   : > { %v9562_v7 = vpop.permute.xlu1 %2394  ;;  %v2070_v42 = vld [vmem:[#allocation2 + $0x3c] sm:$0xe]  ;;  %v2071_v54 = vld [vmem:[#allocation2 + $0x40] sm:$0xf]  ;;  %v2677_v28 = vor.u32 %v2676_v24, %v2673_v62  ;;  %v2984_v30 = vld [vmem:[#allocation2 + $0x8c] sm:$0xe] }
 0x319   : > { %v3124_v1 = vsel %vm8819_vm15, %v3122_v3, %v3123_v46  ;;  %v6852_v8 = vrot.slane %v2070_v42, 9  ;;  %v2687_v31 = vor.u32 %v2686_v19, %v2682_v53  ;;  %v2179_v20 = vrot.slane %v2071_v54, 5  ;;  %v7537_v27 = vld [vmem:[#allocation3 + $0xd4] sm:$0xf]  ;;  %v7531_v12 = vld [vmem:[#allocation3 + $0xa4] sm:$0xf] }
 0x31a   : > { %3192 = vrot.lane.b32.xlu0 %v3124_v1, %s8034_s30  ;;  %v6863_v56 = vrot.slane %v2984_v30, 9  ;;  %v2678_v49 = vrot.slane %v2677_v28, 4  ;;  %v3365_v28 = vld [vmem:[#allocation2 + $0xb0] sm:$0x1]  ;;  %v3279_v30 = vld [vmem:[#allocation2 + $0x64] sm:$0xf] }
 0x31b   : > { %v9555_v57 = vpop.f32.mrf.mxu3  ;;  %v2688_v5 = vrot.slane %v2687_v31, 4  ;;  %v2180_v10 = vsel %vm8819_vm15, %v6852_v8, %v2179_v20  ;;  %v3280_v45 = vld [vmem:[#allocation2 + $0x68] sm:$0xf]  ;;  %3311 = vst.msk [vmem:[#allocation3 + $0xfc] sm:$0xf] %vm1258_vm6, %v3279_v30 }
 0x31c   : > { %11103 = vst [vmem:[#allocation31_spill] sm:$0xff] %v9555_v57  ;;  %v6985_v60 = vld [vmem:[#allocation3 + $0xe4] sm:$0xf0]  ;;  %v3115_v3 = vsel %vm8819_vm15, %v6863_v56, %v3114_v33  ;;  %v2683_v42 = vsel %vm8682_vm12, %v2678_v49, %v2682_v53  ;;  %v2181_v33 = vrot.slane %v2179_v20, 4  ;;  %v2182_v53 = vrot.slane %v9640_v29, 5 }
 0x31d   : > { %v6971_v15 = vld [vmem:[#allocation3 + $0xb0] sm:$0xf]  ;;  %v9617_v61 = vpop.permute.xlu2 %3166  ;;  %2286 = vst.msk [vmem:[#allocation3 + $0xf4] sm:$0xf] %vm1258_vm6, %v2180_v10  ;;  %v6988_v62 = vor.u32 %v7537_v27, %v6985_v60  ;;  %3186 = vrot.lane.b32.xlu2 %v3115_v3, %s8034_s30  ;;  %v3865_v56 = vld [vmem:[#allocation2 + $0x60] sm:$0x1] }
 0x31e   : > { %v9588_v39 = vpop.permute.xlu0 %3747  ;;  %v7535_v14 = vld [vmem:[#allocation3 + $0xc0] sm:$0xf0]  ;;  %2478 = vst.msk [vmem:[#allocation3 + $0xf4] sm:$0xf] %vm2022_vm0, %v9562_v7  ;;  %v2183_v20 = vsel %vm8819_vm15, %v2181_v33, %v2182_v53 }
 0x31f   : > { %v9572_v16 = vpop.f32.mrf.mxu1  ;;  %2422 = vrot.lane.b32.xlu1 %v2332_v9, %s8034_s30  ;;  %v6972_v19 = vor.u32 %v7535_v14, %v6971_v15  ;;  %2934 = vst.msk [vmem:[#allocation3 + $0xf8] sm:$0xf] %vm1258_vm6, %v2683_v42  ;;  %v9674_v14 = vld [vmem:[#allocation2 + $0xa4] sm:$0xf] }
 0x320   : > { %7340 = vmatmul.msk.bf16.gmra.mxu3 %vm4887_vm1, %v6952_v25  ;;  %v9601_v6 = vpop.permute.xlu1 %3749  ;;  %v9606_v25 = vld [vmem:[#allocation2 + $0x58] sm:$0xf]  ;;  %3246 = vst.msk [vmem:[#allocation3 + $0xf8] sm:$0xf] %vm2022_vm0, %v9548_v22  ;;  %v3964_v22 = vrot.slane %v3962_v18, 4 }
 0x321   : > { %v2690_v55 = vshll.u32 %v9606_v25, 16  ;;  %v2694_v7 = vshrl.u32 %v9606_v25, 16  ;;  %v3864_v25 = vld [vmem:[#allocation2 + $0x5c] sm:$0xf]  ;;  %2287 = vst.msk [vmem:[#allocation3 + $0x108] sm:$0xf] %vm1258_vm6, %v2183_v20 }
 0x322   : > { %5048 = vmatmul.bf16.gmra.mxu1 %v6940_v0  ;;  %v3364_v0 = vld [vmem:[#allocation2 + $0xac] sm:$0xf]  ;;  %v3965_v49 = vrot.slane %v3864_v25, 5  ;;  %2479 = vst.msk [vmem:[#allocation3 + $0x108] sm:$0xf] %vm2022_vm0, %v9577_v13 }
 0x323   : > { %v9590_v44 = vpop.f32.mrf.mxu3  ;;  %v9614_v52 = vrot.slane %v2690_v55, 5  ;;  %v3665_v48 = vshll.u32 %v3364_v0, 16  ;;  %v3669_v38 = vshrl.u32 %v3364_v0, 16  ;;  %v6957_v55 = vld [vmem:[#allocation3 + $0xb4] sm:$0xf0]  ;;  %5236 = vmatmul.bf16.gmra.mxu0 %v6988_v62  ;;  %v2696_v62 = vrot.slane %v2694_v7, 4 }
 0x324   : > { %11104 = vst [vmem:[#allocation32_spill] sm:$0xff] %v9590_v44  ;;  %v6960_v15 = vor.u32 %v7531_v12, %v6957_v55  ;;  %v3966_v60 = vsel %vm8819_vm15, %v3964_v22, %v3965_v49  ;;  %v3967_v12 = vrot.slane %v3965_v49, 4  ;;  %v9682_v13 = vld [vmem:[#allocation2 + $0xa8] sm:$0xf]  ;;  %v2516_v55 = vld [vmem:[#allocation2 + $0x5c] sm:$0xf] }
 0x325   : > { %v3667_v9 = vrot.slane %v3665_v48, 5  ;;  %v2693_v1 = vsel %vm8682_vm12, %v2688_v5, %v9614_v52  ;;  %v3671_v8 = vrot.slane %v3669_v38, 4  ;;  %v3968_v5 = vrot.slane %v3865_v56, 5  ;;  %v9676_v3 = vpop.permute.xlu2 %2400  ;;  %3831 = vst.msk [vmem:[#allocation3 + $0xfc] sm:$0xf] %vm2022_vm0, %v9588_v39 }
 0x326   : > { %v9619_v58 = vpop.permute.xlu0 %3168  ;;  %2935 = vst.msk [vmem:[#allocation3 + $0x10c] sm:$0xf] %vm1258_vm6, %v2693_v1  ;;  %v11032_v1 = vrot.slane %v9682_v13, 5  ;;  %v2700_v20 = vshll.u32 %v2516_v55, 16  ;;  %v2704_v30 = vshrl.u32 %v2516_v55, 16 }
 0x327   : > { %v9608_v40 = vpop.f32.mrf.mxu1  ;;  %v3668_v54 = vsel %vm8682_vm12, %v3663_v21, %v3667_v9  ;;  %v3672_v0 = vor.u32 %v3671_v8, %v3667_v9  ;;  %v3675_v21 = vshll.u32 %v3365_v28, 16  ;;  %3247 = vst.msk [vmem:[#allocation3 + $0x10c] sm:$0xf] %vm2022_vm0, %v9551_v34  ;;  %v2331_v34 = vld [vmem:[#allocation2 + $0x90] sm:$0xf]  ;;  %v11034_v9 = vrot.slane %v9674_v14, 5 }
 0x328   : > { %v9630_v24 = vpop.permute.xlu1 %2398  ;;  %3775 = vrot.lane.b32.xlu0 %v3668_v54, %s8034_s30  ;;  %2420 = vrot.lane.b32.xlu2 %v2331_v34, %s8034_s30  ;;  %v3969_v42 = vsel %vm8819_vm15, %v3967_v12, %v3968_v5  ;;  %4077 = vst.msk [vmem:[#allocation3 + $0xd8] sm:$0xf] %vm1258_vm6, %v3966_v60  ;;  %v2697_v54 = vor.u32 %v2696_v62, %v9614_v52  ;;  %v3119_v8 = vrot.slane %v3117_v2, 4  ;;  %v2517_v22 = vld [vmem:[#allocation2 + $0x60] sm:$0x1]  ;;  %v2702_v37 = vrot.slane %v2700_v20, 5 }
 0x329   : > { %v3673_v48 = vrot.slane %v3672_v0, 4  ;;  %v3677_v38 = vrot.slane %v3675_v21, 5  ;;  %4078 = vst.msk [vmem:[#allocation3 + $0xec] sm:$0xf] %vm1258_vm6, %v3969_v42  ;;  %v3129_v39 = vrot.slane %v11034_v9, 4  ;;  %v2706_v2 = vrot.slane %v2704_v30, 4 }
 0x32a   : > { %3312 = vst.msk [vmem:[#allocation3 + $0x110] sm:$0xf] %vm1258_vm6, %v3280_v45  ;;  %v2698_v52 = vrot.slane %v2697_v54, 4  ;;  %v2334_v25 = vld [vmem:[#allocation2 + $0xa0] sm:$0xf]  ;;  %v3121_v56 = vsel %vm8819_vm15, %v3119_v8, %v3120_v63 }
 0x32b   : > { %v9621_v46 = vpop.f32.mrf.mxu3  ;;  %v3678_v18 = vsel %vm8682_vm12, %v3673_v48, %v3677_v38  ;;  %3832 = vst.msk [vmem:[#allocation3 + $0x110] sm:$0xf] %vm2022_vm0, %v9601_v6  ;;  %v3131_v21 = vsel %vm8819_vm15, %v3129_v39, %v11032_v1  ;;  %v2073_v6 = vld [vmem:[#allocation2 + $0x48] sm:$0xf]  ;;  %v2184_v38 = vrot.slane %v2182_v53, 4 }
 0x32c   : > { %11105 = vst [vmem:[#allocation33_spill] sm:$0xff] %v9621_v46  ;;  %3777 = vrot.lane.b32.xlu1 %v3678_v18, %s8034_s30  ;;  %v3366_v49 = vld [vmem:[#allocation2 + $0xb4] sm:$0xf]  ;;  %v6977_v45 = vld [vmem:[#allocation3 + $0xdc] sm:$0xf0]  ;;  %v2703_v34 = vsel %vm8682_vm12, %v2698_v52, %v2702_v37  ;;  %v2707_v18 = vor.u32 %v2706_v2, %v2702_v37 }
 0x32d   : > { %v7536_v5 = vld [vmem:[#allocation3 + $0xcc] sm:$0xf]  ;;  %v3367_v12 = vld [vmem:[#allocation2 + $0xb8] sm:$0xf]  ;;  %v7542_v47 = vld [vmem:[#allocation3 + $0xfc] sm:$0xf]  ;;  %v9724_v55 = vpop.permute.xlu2 %3170 }
 0x32e   : > { %v9663_v10 = vpop.permute.xlu0 %3751  ;;  %v7544_v28 = vld [vmem:[#allocation3 + $0x108] sm:$0xf0]  ;;  %2936 = vst.msk [vmem:[#allocation3 + $0x120] sm:$0xf] %vm1258_vm6, %v2703_v34  ;;  %v3680_v29 = vshrl.u32 %v3366_v49, 16  ;;  %v2708_v42 = vrot.slane %v2707_v18, 4 }
 0x32f   : > { %v9649_v31 = vpop.f32.mrf.mxu1  ;;  %v6991_v63 = vld [vmem:[#allocation3 + $0xd8] sm:$0xf]  ;;  %3248 = vst.msk [vmem:[#allocation3 + $0x120] sm:$0xf] %vm2022_vm0, %v9617_v61  ;;  %v3683_v39 = vshll.u32 %v3366_v49, 16  ;;  %v3689_v20 = vshll.u32 %v3367_v12, 16 }
 0x330   : > { %7341 = vmatmul.msk.bf16.gmra.mxu3 %vm4887_vm1, %v6972_v19  ;;  %v7003_v19 = vld [vmem:[#allocation3 + $0xf8] sm:$0xf]  ;;  %v9689_v33 = vpop.permute.xlu1 %3753  ;;  %3196 = vrot.lane.b32.xlu0 %v3131_v21, %s8034_s30  ;;  %v7540_v53 = vld [vmem:[#allocation3 + $0xe8] sm:$0xf0]  ;;  %v2074_v30 = vld [vmem:[#allocation2 + $0x4c] sm:$0x1] }
 0x331   : > { %v7004_v0 = vor.u32 %v7544_v28, %v7003_v19  ;;  %v2185_v19 = vrot.slane %v2073_v6, 5  ;;  %3190 = vrot.lane.b32.xlu2 %v3121_v56, %s8034_s30  ;;  %v6992_v54 = vor.u32 %v7540_v53, %v6991_v63  ;;  %v3682_v28 = vrot.slane %v3680_v29, 4  ;;  %v10180_v44 = vld [vmem:[#allocation2 + $0x7c] sm:$0xf] }
 0x332   : > { %5053 = vmatmul.bf16.gmra.mxu1 %v6960_v15  ;;  %v2710_v15 = vshll.u32 %v2517_v22, 16  ;;  %v3685_v61 = vrot.slane %v3683_v39, 5  ;;  %v3693_v37 = vshrl.u32 %v3367_v12, 16  ;;  %v7005_v2 = vld [vmem:[#allocation3 + $0x10c] sm:$0xf0]  ;;  %v2188_v34 = vrot.slane %v2074_v30, 5 }
 0x333   : > { %v9665_v27 = vpop.f32.mrf.mxu3  ;;  %5152 = vmatmul.bf16.gmra.mxu2 %v7004_v0  ;;  %v2186_v8 = vsel %vm8819_vm15, %v2184_v38, %v2185_v19  ;;  %v3368_v0 = vld [vmem:[#allocation2 + $0xbc] sm:$0xf]  ;;  %v7008_v56 = vor.u32 %v7542_v47, %v7005_v2  ;;  %v2187_v6 = vrot.slane %v2185_v19, 4  ;;  %v3281_v38 = vld [vmem:[#allocation2 + $0x6c] sm:$0xf] }
 0x334   : > { %11106 = vst [vmem:[#allocation34_spill] sm:$0xff] %v9665_v27  ;;  %v2712_v60 = vrot.slane %v2710_v15, 5  ;;  %2426 = vrot.lane.b32.xlu1 %v2334_v25, %s8034_s30  ;;  %v6980_v15 = vor.u32 %v7536_v5, %v6977_v45  ;;  %v3691_v25 = vrot.slane %v3689_v20, 5  ;;  %v3686_v49 = vor.u32 %v3685_v61, %v3682_v28  ;;  %v3867_v39 = vld [vmem:[#allocation2 + $0x68] sm:$0xf] }
 0x335   : > { %2288 = vst.msk [vmem:[#allocation3 + $0x11c] sm:$0xf] %vm1258_vm6, %v2186_v8  ;;  %v3695_v18 = vrot.slane %v3693_v37, 4  ;;  %5241 = vmatmul.bf16.gmra.mxu0 %v7008_v56  ;;  %v2189_v45 = vsel %vm8819_vm15, %v2187_v6, %v2188_v34  ;;  %v3703_v47 = vshrl.u32 %v3368_v0, 16  ;;  %v9758_v8 = vld [vmem:[#allocation2 + $0x6c] sm:$0xf]  ;;  %v9766_v61 = vpop.permute.xlu2 %2404 }
 0x336   : > { %v9717_v62 = vpop.permute.xlu0 %3172  ;;  %v2713_v22 = vsel %vm8682_vm12, %v2708_v42, %v2712_v60  ;;  %v3699_v60 = vshll.u32 %v3368_v0, 16  ;;  %2480 = vst.msk [vmem:[#allocation3 + $0x11c] sm:$0xf] %vm2022_vm0, %v9630_v24  ;;  %v3687_v5 = vrot.slane %v3686_v49, 4  ;;  %v7023_v29 = vld [vmem:[#allocation3 + $0x120] sm:$0xf] }
 0x337   : > { %v9697_v7 = vpop.f32.mrf.mxu1  ;;  %2937 = vst.msk [vmem:[#allocation3 + $0x134] sm:$0xf] %vm1258_vm6, %v2713_v22  ;;  %v3696_v12 = vor.u32 %v3695_v18, %v3691_v25  ;;  %v3972_v28 = vrot.slane %v3867_v39, 5  ;;  %v3282_v0 = vld [vmem:[#allocation2 + $0x70] sm:$0xf] }
 0x338   : > { %v9728_v21 = vpop.permute.xlu1 %2402  ;;  %3249 = vst.msk [vmem:[#allocation3 + $0x134] sm:$0xf] %vm2022_vm0, %v9619_v58  ;;  %v3866_v58 = vld [vmem:[#allocation2 + $0x64] sm:$0xe]  ;;  %v9747_v19 = vrot.slane %v3699_v60, 5  ;;  %v3692_v42 = vsel %vm8682_vm12, %v3687_v5, %v3691_v25 }
 0x339   : > { %3313 = vst.msk [vmem:[#allocation3 + $0x124] sm:$0xf] %vm1258_vm6, %v3281_v38  ;;  %v6868_v53 = vrot.slane %v3866_v58, 9  ;;  %v3697_v24 = vrot.slane %v3696_v12, 4  ;;  %3779 = vrot.lane.b32.xlu0 %v3692_v42, %s8034_s30  ;;  %v2333_v22 = vld [vmem:[#allocation2 + $0x98] sm:$0xf] }
 0x33a   : > { %2289 = vst.msk [vmem:[#allocation3 + $0x130] sm:$0xf] %vm1258_vm6, %v2189_v45  ;;  %v3974_v2 = vrot.slane %v3972_v28, 4  ;;  %2424 = vrot.lane.b32.xlu2 %v2333_v22, %s8034_s30  ;;  %v9778_v6 = vld [vmem:[#allocation2 + $0xac] sm:$0xf] }
 0x33b   : > { %v9711_v48 = vpop.f32.mrf.mxu3  ;;  %2481 = vst.msk [vmem:[#allocation3 + $0x130] sm:$0xf] %vm2022_vm0, %v9676_v3  ;;  %v3702_v30 = vsel %vm8682_vm12, %v3697_v24, %v9747_v19  ;;  %v11033_v3 = vrot.slane %v9758_v8, 5  ;;  %v2993_v38 = vld [vmem:[#allocation2 + $0xb0] sm:$0x1]  ;;  %v11031_v18 = vrot.slane %v9778_v6, 5 }
 0x33c   : > { %11107 = vst [vmem:[#allocation35_spill] sm:$0xff] %v9711_v48  ;;  %3781 = vrot.lane.b32.xlu1 %v3702_v30, %s8034_s30  ;;  %v3136_v60 = vrot.slane %v2993_v38, 5  ;;  %v2518_v5 = vld [vmem:[#allocation2 + $0x64] sm:$0xf]  ;;  %v7541_v45 = vld [vmem:[#allocation3 + $0xf4] sm:$0xf] }
 0x33d   : > { %3833 = vst.msk [vmem:[#allocation3 + $0x124] sm:$0xf] %vm2022_vm0, %v9663_v10  ;;  %v3973_v10 = vsel %vm8819_vm15, %v6868_v53, %v3972_v28  ;;  %v3976_v34 = vsel %vm8819_vm15, %v3974_v2, %v11033_v3  ;;  %v6997_v12 = vld [vmem:[#allocation3 + $0x104] sm:$0xf0]  ;;  %v2715_v58 = vshrl.u32 %v2518_v5, 16  ;;  %v3135_v42 = vrot.slane %v11031_v18, 4 }
 0x33e   : > { %3314 = vst.msk [vmem:[#allocation3 + $0x138] sm:$0xf] %vm1258_vm6, %v3282_v0  ;;  %v2336_v22 = vld [vmem:[#allocation2 + $0xa8] sm:$0xf]  ;;  %v2075_v38 = vld [vmem:[#allocation2 + $0x50] sm:$0xe]  ;;  %v7000_v9 = vor.u32 %v7541_v45, %v6997_v12 }
 0x33f   : > { %v9730_v52 = vpop.f32.mrf.mxu1  ;;  %v7549_v37 = vld [vmem:[#allocation3 + $0x130] sm:$0xf0]  ;;  %4079 = vst.msk [vmem:[#allocation3 + $0x100] sm:$0xf] %vm1258_vm6, %v3973_v10  ;;  %v2717_v28 = vrot.slane %v2715_v58, 4  ;;  %v3137_v10 = vsel %vm8819_vm15, %v3135_v42, %v3136_v60 }
 0x340   : > { %7342 = vmatmul.msk.bf16.gmra.mxu3 %vm4887_vm1, %v6992_v54  ;;  %v9753_v54 = vpop.permute.xlu0 %3755  ;;  %v9775_v25 = vpop.permute.xlu1 %3757  ;;  %v7024_v56 = vor.u32 %v7549_v37, %v7023_v29  ;;  %3834 = vst.msk [vmem:[#allocation3 + $0x138] sm:$0xf] %vm2022_vm0, %v9689_v33  ;;  %v2718_v29 = vshll.u32 %v2518_v5, 16  ;;  %v2520_v33 = vld [vmem:[#allocation2 + $0x6c] sm:$0xf] }
 0x341   : > { %4080 = vst.msk [vmem:[#allocation3 + $0x114] sm:$0xf] %vm1258_vm6, %v3976_v34  ;;  %v2734_v0 = vshll.u32 %v2520_v33, 16  ;;  %v2076_v34 = vld [vmem:[#allocation2 + $0x54] sm:$0xf]  ;;  %3200 = vrot.lane.b32.xlu0 %v3137_v10, %s8034_s30  ;;  %v2738_v58 = vshrl.u32 %v2520_v33, 16  ;;  %v9808_v33 = vpop.permute.xlu2 %3174 }
 0x342   : > { %5058 = vmatmul.bf16.gmra.mxu1 %v6980_v15  ;;  %v9773_v15 = vrot.slane %v3703_v47, 4  ;;  %v2519_v47 = vld [vmem:[#allocation2 + $0x68] sm:$0xf]  ;;  %v2720_v30 = vrot.slane %v2718_v29, 5  ;;  %v6853_v29 = vrot.slane %v2075_v38, 9  ;;  %v2192_v1 = vrot.slane %v2076_v34, 5 }
 0x343   : > { %v9739_v63 = vpop.f32.mrf.mxu3  ;;  %5157 = vmatmul.bf16.gmra.mxu2 %v7024_v56  ;;  %v2724_v24 = vshll.u32 %v2519_v47, 16  ;;  %v2728_v39 = vshrl.u32 %v2519_v47, 16  ;;  %v2989_v3 = vld [vmem:[#allocation2 + $0xa0] sm:$0xe]  ;;  %v2736_v60 = vrot.slane %v2734_v0, 5 }
 0x344   : > { %11108 = vst [vmem:[#allocation36_spill] sm:$0xff] %v9739_v63  ;;  %v9790_v53 = vpop.f32.mrf.mxu2  ;;  %v3706_v5 = vor.u32 %v9773_v15, %v9747_v19  ;;  %v2721_v47 = vor.u32 %v2720_v30, %v2717_v28  ;;  %2430 = vrot.lane.b32.xlu1 %v2336_v22, %s8034_s30  ;;  %v6864_v42 = vrot.slane %v2989_v3, 9  ;;  %v2193_v19 = vsel %vm8819_vm15, %v6853_v29, %v2192_v1  ;;  %v9806_v48 = vld [vmem:[#allocation2 + $0x58] sm:$0xf] }
 0x345   : > { %v2726_v2 = vrot.slane %v2724_v24, 5  ;;  %v2730_v56 = vrot.slane %v2728_v39, 4  ;;  %v7547_v24 = vld [vmem:[#allocation3 + $0x124] sm:$0xf]  ;;  %v2194_v28 = vrot.slane %v2192_v1, 4  ;;  %v11111_v3 = vrot.slane %v9674_v14, 5 }
 0x346   : > { %v2722_v39 = vrot.slane %v2721_v47, 4  ;;  %2290 = vst.msk [vmem:[#allocation3 + $0x144] sm:$0xf] %vm1258_vm6, %v2193_v19  ;;  %v2195_v10 = vrot.slane %v9806_v48, 5  ;;  %v3707_v38 = vrot.slane %v3706_v5, 4  ;;  %v9825_v14 = vpop.f32.mrf.mxu0  ;;  %v2740_v5 = vrot.slane %v2738_v58, 4 }
 0x347   : > { %v9760_v20 = vpop.f32.mrf.mxu1  ;;  %v2731_v63 = vor.u32 %v2730_v56, %v2726_v2  ;;  %v7025_v15 = vld [vmem:[#allocation3 + $0x134] sm:$0xf0]  ;;  %v3128_v0 = vsel %vm8819_vm15, %v6864_v42, %v11111_v3  ;;  %2482 = vst.msk [vmem:[#allocation3 + $0x144] sm:$0xf] %vm2022_vm0, %v9728_v21  ;;  %v3370_v47 = vld [vmem:[#allocation2 + $0xc4] sm:$0x1] }
 0x348   : > { %v9794_v37 = vpop.permute.xlu0 %3176  ;;  %v7545_v30 = vld [vmem:[#allocation3 + $0x110] sm:$0xf0]  ;;  %v7028_v22 = vor.u32 %v7547_v24, %v7025_v15  ;;  %v9818_v56 = vpop.permute.xlu1 %2406  ;;  %3194 = vrot.lane.b32.xlu2 %v3128_v0, %s8034_s30  ;;  %v2196_v21 = vsel %vm8819_vm15, %v2194_v28, %v2195_v10  ;;  %v11112_v19 = vrot.slane %v9758_v8, 5  ;;  %v3283_v28 = vld [vmem:[#allocation2 + $0x78] sm:$0xf]  ;;  %v2741_v58 = vor.u32 %v2740_v5, %v2736_v60 }
 0x349   : > { %v2732_v12 = vrot.slane %v2731_v63, 4  ;;  %v3369_v63 = vld [vmem:[#allocation2 + $0xc0] sm:$0xf]  ;;  %v3869_v0 = vld [vmem:[#allocation2 + $0x70] sm:$0xf]  ;;  %v11115_v48 = vrot.slane %v9778_v6, 5 }
 0x34a   : > { %5246 = vmatmul.bf16.gmra.mxu0 %v7028_v22  ;;  %v3713_v29 = vshrl.u32 %v3369_v63, 16  ;;  %v3977_v15 = vrot.slane %v11112_v19, 4  ;;  %2291 = vst.msk [vmem:[#allocation3 + $0x158] sm:$0xf] %vm1258_vm6, %v2196_v21  ;;  %v2522_v5 = vld [vmem:[#allocation2 + $0x74] sm:$0x1] }
 0x34b   : > { %v9780_v49 = vpop.f32.mrf.mxu3  ;;  %v2737_v34 = vsel %vm8682_vm12, %v2732_v12, %v2736_v60  ;;  %2483 = vst.msk [vmem:[#allocation3 + $0x158] sm:$0xf] %vm2022_vm0, %v9766_v61  ;;  %v2521_v61 = vld [vmem:[#allocation2 + $0x70] sm:$0xf] }
 0x34c   : > { %11109 = vst [vmem:[#allocation37_spill] sm:$0xff] %v9780_v49  ;;  %v7011_v49 = vld [vmem:[#allocation3 + $0x100] sm:$0xf]  ;;  %v9830_v42 = vpop.f32.mrf.mxu2 }
 0x34d   : > { %v7012_v1 = vor.u32 %v7545_v30, %v7011_v49  ;;  %v3709_v49 = vshll.u32 %v3369_v63, 16  ;;  %2939 = vst.msk [vmem:[#allocation3 + $0x15c] sm:$0xf] %vm1258_vm6, %v2737_v34  ;;  %v11113_v30 = vrot.slane %v9682_v13, 5  ;;  %v3978_v13 = vrot.slane %v3869_v0, 5 }
 0x34e   : > { %3251 = vst.msk [vmem:[#allocation3 + $0x15c] sm:$0xf] %vm2022_vm0, %v9717_v62  ;;  %v3284_v63 = vld [vmem:[#allocation2 + $0x7c] sm:$0xf]  ;;  %v2742_v34 = vrot.slane %v2741_v58, 4 }
 0x34f   : > { %v9800_v18 = vpop.f32.mrf.mxu1  ;;  %v3711_v24 = vrot.slane %v3709_v49, 5  ;;  %v3132_v12 = vrot.slane %v11113_v30, 4  ;;  %3315 = vst.msk [vmem:[#allocation3 + $0x14c] sm:$0xf] %vm1258_vm6, %v3283_v28  ;;  %v7546_v49 = vld [vmem:[#allocation3 + $0x11c] sm:$0xf]  ;;  %v2409_v28 = vpop.permute.xlu2 %2408 }
 0x350   : > { %7343 = vmatmul.msk.bf16.gmra.mxu3 %vm4887_vm1, %v7012_v1  ;;  %v9844_v3 = vpop.permute.xlu0 %3759  ;;  %v3980_v21 = vrot.slane %v3978_v13, 4  ;;  %3835 = vst.msk [vmem:[#allocation3 + $0x14c] sm:$0xf] %vm2022_vm0, %v9753_v54  ;;  %v2744_v30 = vshll.u32 %v2521_v61, 16  ;;  %v9869_v0 = vpop.permute.xlu1 %3761  ;;  %v2754_v54 = vshll.u32 %v2522_v5, 16 }
 0x351   : > { %v3712_v8 = vsel %vm8682_vm12, %v3707_v38, %v3711_v24  ;;  %v3979_v38 = vsel %vm8819_vm15, %v3977_v15, %v3978_v13  ;;  %v2748_v15 = vshrl.u32 %v2521_v61, 16  ;;  %v2078_v58 = vld [vmem:[#allocation2 + $0x5c] sm:$0xf]  ;;  %3316 = vst.msk [vmem:[#allocation3 + $0x160] sm:$0xf] %vm1258_vm6, %v3284_v63 }
 0x352   : > { %5063 = vmatmul.bf16.gmra.mxu1 %v7000_v9  ;;  %v2727_v9 = vsel %vm8682_vm12, %v2722_v39, %v2726_v2  ;;  %v3719_v2 = vshll.u32 %v3370_v47, 16  ;;  %v3715_v39 = vrot.slane %v3713_v29, 4  ;;  %3783 = vrot.lane.b32.xlu0 %v3712_v8, %s8034_s30  ;;  %v7017_v29 = vld [vmem:[#allocation3 + $0x12c] sm:$0xf0]  ;;  %4081 = vst.msk [vmem:[#allocation3 + $0x128] sm:$0xf] %vm1258_vm6, %v3979_v38 }
 0x353   : > { %v9810_v45 = vpop.f32.mrf.mxu3  ;;  %2938 = vst.msk [vmem:[#allocation3 + $0x148] sm:$0xf] %vm1258_vm6, %v2727_v9  ;;  %v3870_v9 = vld [vmem:[#allocation2 + $0x74] sm:$0x1]  ;;  %v2750_v13 = vrot.slane %v2748_v15, 4  ;;  %v7020_v38 = vor.u32 %v7546_v49, %v7017_v29 }
 0x354   : > { %11110 = vst [vmem:[#allocation38_spill] sm:$0xff] %v9810_v45  ;;  %v3716_v22 = vor.u32 %v3715_v39, %v3711_v24  ;;  %v3721_v1 = vrot.slane %v3719_v2, 5  ;;  %v3981_v62 = vrot.slane %v3870_v9, 5  ;;  %v2335_v2 = vld [vmem:[#allocation2 + $0xa4] sm:$0xf]  ;;  %v2746_v9 = vrot.slane %v2744_v30, 5 }
 0x355   : > { %3250 = vst.msk [vmem:[#allocation3 + $0x148] sm:$0xf] %vm2022_vm0, %v9724_v55  ;;  %2428 = vrot.lane.b32.xlu2 %v2335_v2, %s8034_s30  ;;  %v7554_v8 = vld [vmem:[#allocation3 + $0x158] sm:$0xf0]  ;;  %v2198_v2 = vrot.slane %v2078_v58, 5 }
 0x356   : > { %v3717_v60 = vrot.slane %v3716_v22, 4  ;;  %v3982_v19 = vsel %vm8819_vm15, %v3980_v21, %v3981_v62  ;;  %v2197_v22 = vrot.slane %v2195_v10, 4  ;;  %v9878_v62 = vpop.f32.mrf.mxu2  ;;  %3836 = vst.msk [vmem:[#allocation3 + $0x160] sm:$0xf] %vm2022_vm0, %v9775_v25  ;;  %v3134_v10 = vsel %vm8819_vm15, %v3132_v12, %v11115_v48  ;;  %v2079_v61 = vld [vmem:[#allocation2 + $0x60] sm:$0x1] }
 0x357   : > { %v9848_v55 = vpop.f32.mrf.mxu1  ;;  %4082 = vst.msk [vmem:[#allocation3 + $0x13c] sm:$0xf] %vm1258_vm6, %v3982_v19  ;;  %v2747_v63 = vsel %vm8682_vm12, %v2742_v34, %v2746_v9  ;;  %v2751_v5 = vor.u32 %v2750_v13, %v2746_v9  ;;  %v2201_v19 = vrot.slane %v2079_v61, 5  ;;  %v2200_v49 = vrot.slane %v2198_v2, 4  ;;  %v7552_v34 = vld [vmem:[#allocation3 + $0x14c] sm:$0xf]  ;;  %v9913_v48 = vpop.permute.xlu2 %3178 }
 0x358   : > { %v3722_v24 = vsel %vm8682_vm12, %v3717_v60, %v3721_v1  ;;  %v9875_v1 = vpop.f32.mrf.mxu0  ;;  %v9890_v30 = vpop.permute.xlu0 %3180  ;;  %2940 = vst.msk [vmem:[#allocation3 + $0x170] sm:$0xf] %vm1258_vm6, %v2747_v63  ;;  %v2199_v25 = vsel %vm8819_vm15, %v2197_v22, %v2198_v2  ;;  %v3285_v22 = vld [vmem:[#allocation2 + $0x80] sm:$0xf] }
 0x359   : > { %3785 = vrot.lane.b32.xlu1 %v3722_v24, %s8034_s30  ;;  %v2756_v24 = vrot.slane %v2754_v54, 5  ;;  %3252 = vst.msk [vmem:[#allocation3 + $0x170] sm:$0xf] %vm2022_vm0, %v9808_v33  ;;  %v2752_v12 = vrot.slane %v2751_v5, 4  ;;  %v7031_v29 = vld [vmem:[#allocation3 + $0x128] sm:$0xf]  ;;  %v2202_v58 = vsel %vm8819_vm15, %v2200_v49, %v2201_v19 }
 0x35a   : > { %2292 = vst.msk [vmem:[#allocation3 + $0x16c] sm:$0xf] %vm1258_vm6, %v2199_v25  ;;  %v3872_v33 = vld [vmem:[#allocation2 + $0x7c] sm:$0xf]  ;;  %v9908_v9 = vld [vmem:[#allocation2 + $0x80] sm:$0xf] }
 0x35b   : > { %v9856_v47 = vpop.f32.mrf.mxu3  ;;  %v2757_v54 = vsel %vm8682_vm12, %v2752_v12, %v2756_v24  ;;  %2484 = vst.msk [vmem:[#allocation3 + $0x16c] sm:$0xf] %vm2022_vm0, %v9818_v56  ;;  %v11035_v2 = vrot.slane %v9908_v9, 5  ;;  %v9915_v56 = vpop.permute.xlu1 %2410  ;;  %v3286_v19 = vld [vmem:[#allocation2 + $0x84] sm:$0xf] }
 0x35c   : > { %11114 = vst [vmem:[#allocation39_spill] sm:$0xff] %v9856_v47  ;;  %v7043_v39 = vld [vmem:[#allocation3 + $0x148] sm:$0xf]  ;;  %v2523_v25 = vld [vmem:[#allocation2 + $0x78] sm:$0xf] }
 0x35d   : > { %v7044_v21 = vor.u32 %v7554_v8, %v7043_v39  ;;  %3198 = vrot.lane.b32.xlu2 %v3134_v10, %s8034_s30  ;;  %v3871_v39 = vld [vmem:[#allocation2 + $0x78] sm:$0xe]  ;;  %2941 = vst.msk [vmem:[#allocation3 + $0x184] sm:$0xf] %vm1258_vm6, %v2757_v54  ;;  %v2524_v49 = vld [vmem:[#allocation2 + $0x7c] sm:$0xf] }
 0x35e   : > { %v7550_v15 = vld [vmem:[#allocation3 + $0x138] sm:$0xf0]  ;;  %v6869_v13 = vrot.slane %v3871_v39, 9  ;;  %3253 = vst.msk [vmem:[#allocation3 + $0x184] sm:$0xf] %vm2022_vm0, %v9794_v37  ;;  %v9931_v12 = vpop.f32.mrf.mxu2  ;;  %v2759_v39 = vshrl.u32 %v2523_v25, 16 }
 0x35f   : > { %v9880_v60 = vpop.f32.mrf.mxu1  ;;  %5162 = vmatmul.bf16.gmra.mxu2 %v7044_v21  ;;  %v7032_v8 = vor.u32 %v7550_v15, %v7031_v29  ;;  %v7045_v21 = vld [vmem:[#allocation3 + $0x15c] sm:$0xf0]  ;;  %2293 = vst.msk [vmem:[#allocation3 + $0x180] sm:$0xf] %vm1258_vm6, %v2202_v58  ;;  %v9926_v37 = vld [vmem:[%s11118_s29] ss:$0 sm:$0xff] }
 0x360   : > { %v7048_v61 = vor.u32 %v7552_v34, %v7045_v21  ;;  %v9921_v5 = vpop.f32.mrf.mxu0  ;;  %2485 = vst.msk [vmem:[#allocation3 + $0x180] sm:$0xf] %vm2022_vm0, %v2409_v28  ;;  %v7063_v34 = vld [vmem:[#allocation3 + $0x170] sm:$0xf]  ;;  %v2762_v15 = vshll.u32 %v2523_v25, 16  ;;  %v2768_v54 = vshll.u32 %v2524_v49, 16 }
 0x361   : > { %7344 = vmatmul.msk.bf16.gmra.mxu3 %vm4887_vm1, %v7032_v8  ;;  %3317 = vst.msk [vmem:[#allocation3 + $0x174] sm:$0xf] %vm1258_vm6, %v3285_v22  ;;  %v2772_v58 = vshrl.u32 %v2524_v49, 16  ;;  %v9944_v8 = vpop.permute.xlu0 %3763  ;;  %v7551_v22 = vld [vmem:[#allocation3 + $0x144] sm:$0xf]  ;;  %s6549_s29 = scalar_lea.sflag [#allocation6], %s8311_s17 }
 0x362   : > { %5068 = vmatmul.bf16.gmra.mxu1 %v7020_v38  ;;  %v3985_v38 = vrot.slane %v3872_v33, 5  ;;  %5251 = vmatmul.bf16.gmra.mxu0 %v7048_v61  ;;  %3837 = vst.msk [vmem:[#allocation3 + $0x174] sm:$0xf] %vm2022_vm0, %v9844_v3  ;;  %v9942_v33 = vld [vmem:[#allocation2 + $0x80] sm:$0xf] }
 0x363   : > { %v9895_v6 = vpop.f32.mrf.mxu3  ;;  %v2778_v21 = vshll.u32 %v9942_v33, 16  ;;  %v7037_v61 = vld [vmem:[#allocation3 + $0x154] sm:$0xf0]  ;;  %v2774_v25 = vrot.slane %v2772_v58, 4  ;;  %3318 = vst.msk [vmem:[#allocation3 + $0x188] sm:$0xf] %vm1258_vm6, %v3286_v19 }
 0x364   : > { %11116 = vst [vmem:[#allocation40_spill] sm:$0xff] %v9895_v6  ;;  %v3987_v63 = vrot.slane %v3985_v38, 4  ;;  %v3986_v24 = vsel %vm8819_vm15, %v6869_v13, %v3985_v38  ;;  %v2761_v13 = vrot.slane %v2759_v39, 4  ;;  %v2764_v38 = vrot.slane %v2762_v15, 5  ;;  %v2337_v39 = vld [vmem:[#allocation2 + $0xac] sm:$0xf] }
 0x365   : > { %4083 = vst.msk [vmem:[#allocation3 + $0x150] sm:$0xf] %vm1258_vm6, %v3986_v24  ;;  %v9950_v49 = vrot.slane %v2778_v21, 5  ;;  %v2080_v15 = vld [vmem:[#allocation2 + $0x64] sm:$0xe]  ;;  %2432 = vrot.lane.b32.xlu2 %v2337_v39, %s8034_s30 }
 0x366   : > { %v3989_v29 = vsel %vm8819_vm15, %v3987_v63, %v11035_v2  ;;  %v2770_v63 = vrot.slane %v2768_v54, 5  ;;  %v7559_v2 = vld [vmem:[#allocation3 + $0x180] sm:$0xf0]  ;;  %v2765_v3 = vor.u32 %v2764_v38, %v2761_v13  ;;  %3838 = vst.msk [vmem:[#allocation3 + $0x188] sm:$0xf] %vm2022_vm0, %v9869_v0  ;;  %v6854_v58 = vrot.slane %v2080_v15, 9 }
 0x367   : > { %v9918_v10 = vpop.f32.mrf.mxu1  ;;  %4084 = vst.msk [vmem:[#allocation3 + $0x164] sm:$0xf] %vm1258_vm6, %v3989_v29  ;;  %v7064_v6 = vor.u32 %v7559_v2, %v7063_v34  ;;  %v2081_v54 = vld [vmem:[#allocation2 + $0x68] sm:$0xf]  ;;  %v9957_v19 = vld [vmem:[#allocation2 + $0x6c] sm:$0xf]  ;;  %v7040_v38 = vor.u32 %v7551_v22, %v7037_v61  ;;  %v9959_v2 = vpop.permute.xlu1 %3765 }
 0x368   : > { %11117 = vst [vmem:[#allocation41_spill] sm:$0xff] %v9918_v10  ;;  %v2775_v24 = vor.u32 %v2774_v25, %v2770_v63  ;;  %v2766_v29 = vrot.slane %v2765_v3, 4  ;;  %v2205_v45 = vrot.slane %v2081_v54, 5  ;;  %v2782_v34 = vshrl.u32 %v9942_v33, 16  ;;  %v2413_v3 = vpop.permute.xlu2 %2412  ;;  %v9966_v39 = vpop.f32.mrf.mxu0 }
 0x369   : > { %v11036_v25 = vrot.slane %v9957_v19, 5  ;;  %v11121_v33 = vrot.slane %v9908_v9, 5  ;;  %v9981_v54 = vpop.permute.xlu0 %3184  ;;  %v3875_v9 = vld [vmem:[#allocation2 + $0x88] sm:$0x1] }
 0x36a   : > { %v2776_v21 = vrot.slane %v2775_v24, 4  ;;  %v2771_v0 = vsel %vm8682_vm12, %v2766_v29, %v2770_v63  ;;  %v2207_v61 = vrot.slane %v2205_v45, 4  ;;  %v9975_v24 = vpop.f32.mrf.mxu2  ;;  %v7557_v29 = vld [vmem:[#allocation3 + $0x174] sm:$0xf] }
 0x36b   : > { %v9938_v28 = vpop.f32.mrf.mxu3  ;;  %2942 = vst.msk [vmem:[#allocation3 + $0x198] sm:$0xf] %vm1258_vm6, %v2771_v0  ;;  %v3990_v63 = vrot.slane %v11121_v33, 4  ;;  %v2784_v33 = vrot.slane %v2782_v34, 4 }
 0x36c   : > { %11120 = vst [vmem:[#allocation42_spill] sm:$0xff] %v9938_v28  ;;  %v4946_v28 = vadd.f32 %v9926_v37, %v9369_v11  ;;  %v3287_v11 = vld [vmem:[#allocation2 + $0x8c] sm:$0xf] }
 0x36d   : > { %3319 = vst.msk [vmem:[#allocation3 + $0x19c] sm:$0xf] %vm1258_vm6, %v3287_v11  ;;  %v7065_v11 = vld [vmem:[#allocation3 + $0x184] sm:$0xf0] }
 0x36e   : > { %v7555_v15 = vld [vmem:[#allocation3 + $0x160] sm:$0xf0]  ;;  %3254 = vst.msk [vmem:[#allocation3 + $0x198] sm:$0xf] %vm2022_vm0, %v9913_v48  ;;  %v2209_v48 = vsel %vm8819_vm15, %v2207_v61, %v11036_v25 }
 0x36f   : > { %v5034_v47 = vpop.f32.mrf.mxu1  ;;  %5167 = vmatmul.bf16.gmra.mxu2 %v7064_v6  ;;  %v2781_v6 = vsel %vm8682_vm12, %v2776_v21, %v9950_v49  ;;  %v3874_v21 = vld [vmem:[#allocation2 + $0x84] sm:$0xf]  ;;  %2295 = vst.msk [vmem:[#allocation3 + $0x1a8] sm:$0xf] %vm1258_vm6, %v2209_v48 }
 0x370   : > { %v5035_v13 = vadd.f32 %v5034_v47, %v4946_v28  ;;  %v7051_v28 = vld [vmem:[#allocation3 + $0x150] sm:$0xf]  ;;  %2943 = vst.msk [vmem:[#allocation3 + $0x1ac] sm:$0xf] %vm1258_vm6, %v2781_v6 }
 0x371   : > { %3255 = vst.msk [vmem:[#allocation3 + $0x1ac] sm:$0xf] %vm2022_vm0, %v9890_v30 }
 0x372   : > { %v5124_v47 = vadd.f32 %v9790_v53, %v5035_v13  ;;  %5073 = vmatmul.bf16.gmra.mxu1 %v7040_v38  ;;  %v2206_v53 = vsel %vm8819_vm15, %v6854_v58, %v2205_v45  ;;  %v7052_v13 = vor.u32 %v7555_v15, %v7051_v28  ;;  %v3991_v45 = vrot.slane %v3874_v21, 5  ;;  %v2526_v28 = vld [vmem:[#allocation2 + $0x84] sm:$0xf]  ;;  %2487 = vst.msk [vmem:[#allocation3 + $0x1a8] sm:$0xf] %vm2022_vm0, %v2413_v3 }
 0x373   : > { %v5301_v22 = vpop.f32.mrf.mxu3  ;;  %v4948_v58 = vadd.f32 %v9926_v37, %v9389_v17  ;;  %2294 = vst.msk [vmem:[#allocation3 + $0x194] sm:$0xf] %vm1258_vm6, %v2206_v53  ;;  %v2788_v15 = vshll.u32 %v2526_v28, 16  ;;  %v2527_v53 = vld [vmem:[#allocation2 + $0x88] sm:$0x1] }
 0x374   : > { %v5213_v38 = vadd.f32 %v9825_v14, %v5124_v47  ;;  %v7068_v14 = vor.u32 %v7557_v29, %v7065_v11  ;;  %v3994_v47 = vrot.slane %v3875_v9, 5  ;;  %7345 = vmatmul.msk.bf16.gmra.mxu3 %vm4887_vm1, %v7052_v13  ;;  %2486 = vst.msk [vmem:[#allocation3 + $0x194] sm:$0xf] %vm2022_vm0, %v9915_v56  ;;  %v3993_v30 = vrot.slane %v3991_v45, 4  ;;  %v7556_v29 = vld [vmem:[#allocation3 + $0x16c] sm:$0xf] }
 0x375   : > { %v3992_v17 = vsel %vm8819_vm15, %v3990_v63, %v3991_v45  ;;  %v7057_v13 = vld [vmem:[#allocation3 + $0x17c] sm:$0xf0]  ;;  %v2785_v56 = vor.u32 %v2784_v33, %v9950_v49  ;;  %3839 = vst.msk [vmem:[#allocation3 + $0x19c] sm:$0xf] %vm2022_vm0, %v9944_v8  ;;  %v3288_v11 = vld [vmem:[#allocation2 + $0x90] sm:$0xf]  ;;  %v10008_v63 = vpop.permute.xlu1 %2414  ;;  %v10012_v49 = vpop.f32.mrf.mxu0  ;;  %v4951_v8 = vadd.f32 %v9926_v37, %v9429_v50 }
 0x376   : > { %v5302_v0 = vadd.f32 %v5301_v22, %v5213_v38  ;;  %v2792_v22 = vshrl.u32 %v2526_v28, 16  ;;  %5256 = vmatmul.bf16.gmra.mxu0 %v7068_v14  ;;  %v2790_v38 = vrot.slane %v2788_v15, 5  ;;  %v3995_v9 = vsel %vm8819_vm15, %v3993_v30, %v3994_v47  ;;  %4085 = vst.msk [vmem:[#allocation3 + $0x178] sm:$0xf] %vm1258_vm6, %v3992_v17  ;;  %v2083_v30 = vld [vmem:[#allocation2 + $0x70] sm:$0xf] }
 0x377   : > { %v5036_v6 = vpop.f32.mrf.mxu1  ;;  %v2798_v48 = vshll.u32 %v2527_v53, 16  ;;  %v2786_v3 = vrot.slane %v2785_v56, 4  ;;  %v10016_v14 = vadd.f32 %v9926_v37, %v9380_v26  ;;  %4086 = vst.msk [vmem:[#allocation3 + $0x18c] sm:$0xf] %vm1258_vm6, %v3995_v9  ;;  %v2084_v17 = vld [vmem:[#allocation2 + $0x74] sm:$0x1]  ;;  %v7060_v56 = vor.u32 %v7556_v29, %v7057_v13 }
 0x378   : > { %v9997_v61 = vmax.f32 %v5302_v0, 0.0  ;;  %v5037_v21 = vadd.f32 %v5036_v6, %v4948_v58  ;;  %v7083_v58 = vld [vmem:[#allocation3 + $0x198] sm:$0xf]  ;;  %v2794_v0 = vrot.slane %v2792_v22, 4  ;;  %v7564_v28 = vld [vmem:[#allocation3 + $0x1a8] sm:$0xf0]  ;;  %v3183_v6 = vpop.permute.xlu2 %3182  ;;  %v10027_v22 = vpop.permute.xlu0 %3767 }
 0x379   : > { %11122 = vst [vmem:[#allocation43_spill] sm:$0xff] %v10016_v14  ;;  %v7084_v15 = vor.u32 %v7564_v28, %v7083_v58  ;;  %v2800_v47 = vrot.slane %v2798_v48, 5  ;;  %v2211_v58 = vrot.slane %v2083_v30, 5  ;;  %v2214_v29 = vrot.slane %v2084_v17, 5 }
 0x37a   : > { %v5126_v45 = vadd.f32 %v9830_v42, %v5037_v21  ;;  %v10021_v42 = vpop.f32.mrf.mxu2  ;;  %v2791_v21 = vsel %vm8682_vm12, %v2786_v3, %v2790_v38  ;;  %v2795_v26 = vor.u32 %v2794_v0, %v2790_v38  ;;  %v11037_v50 = vrot.slane %v9997_v61, 4  ;;  %3320 = vst.msk [vmem:[#allocation3 + $0x1b0] sm:$0xf] %vm1258_vm6, %v3288_v11 }
 0x37b   : > { %v5303_v34 = vpop.f32.mrf.mxu3  ;;  %3840 = vst.msk [vmem:[#allocation3 + $0x1b0] sm:$0xf] %vm2022_vm0, %v9959_v2  ;;  %v7353_v3 = vrot.slane %v9997_v61, 9  ;;  %v11124_v0 = vrot.slane %v9997_v61, 2  ;;  %v10049_v11 = vadd.f32 %v9926_v37, %v9408_v35  ;;  %v10061_v35 = vadd.f32 %v9926_v37, %v9505_v23 }
 0x37c   : > { %v5215_v33 = vadd.f32 %v9875_v1, %v5126_v45  ;;  %v2796_v9 = vrot.slane %v2795_v26, 4  ;;  %v11123_v45 = vrot.slane %v9957_v19, 5  ;;  %2944 = vst.msk [vmem:[#allocation3 + $0x1c0] sm:$0xf] %vm1258_vm6, %v2791_v21  ;;  %v7355_v48 = vrot.slane %v11037_v50, 9 }
 0x37d   : > { %v7354_v28 = vrot.slane %v11124_v0, 9  ;;  %3256 = vst.msk [vmem:[#allocation3 + $0x1c0] sm:$0xf] %vm2022_vm0, %v3183_v6  ;;  %v7071_v26 = vld [vmem:[#allocation3 + $0x178] sm:$0xf]  ;;  %v10069_v17 = vadd.f32 %v9926_v37, %v9543_v36  ;;  %v10085_v36 = vadd.f32 %v9926_v37, %v9608_v40  ;;  %v10095_v0 = vpop.f32.mrf.mxu0  ;;  %v10102_v40 = vmax.f32 %v9997_v61, %v7353_v3 }
 0x37e   : > { %v5304_v25 = vadd.f32 %v5303_v34, %v5215_v33  ;;  %v2210_v38 = vrot.slane %v11123_v45, 4  ;;  %v2801_v2 = vsel %vm8682_vm12, %v2796_v9, %v2800_v47  ;;  %v2213_v34 = vrot.slane %v2211_v58, 4  ;;  %11125 = vst [vmem:[#allocation44_spill] sm:$0xff] %v10049_v11  ;;  %v7562_v47 = vld [vmem:[#allocation3 + $0x19c] sm:$0xf]  ;;  %v3770_v45 = vpop.permute.xlu1 %3769 }
 0x37f   : > { %v5039_v1 = vpop.f32.mrf.mxu1  ;;  %5172 = vmatmul.bf16.gmra.mxu2 %v7084_v15  ;;  %2945 = vst.msk [vmem:[#allocation3 + $0x1d4] sm:$0xf] %vm1258_vm6, %v2801_v2  ;;  %v4953_v33 = vadd.f32 %v9926_v37, %v9461_v43  ;;  %v10073_v43 = vadd.f32 %v9926_v37, %v9572_v16  ;;  %v3876_v9 = vld [vmem:[#allocation2 + $0x8c] sm:$0xe]  ;;  %v10089_v16 = vadd.f32 %v9926_v37, %v9649_v31 }
 0x380   : > { %v5040_v53 = vadd.f32 %v5039_v1, %v4951_v8  ;;  %v10040_v13 = vmax.f32 %v5304_v25, 0.0  ;;  %v2212_v19 = vsel %vm8819_vm15, %v2210_v38, %v2211_v58  ;;  %v11126_v25 = vrot.slane %v9997_v61, 6  ;;  %3257 = vst.msk [vmem:[#allocation3 + $0x1d4] sm:$0xf] %vm2022_vm0, %v9981_v54  ;;  %v10079_v1 = vld [vmem:[#allocation3 + $0x194] sm:$0xf] }
 0x381   : > { %2296 = vst.msk [vmem:[#allocation3 + $0x1bc] sm:$0xf] %vm1258_vm6, %v2212_v19  ;;  %v10081_v54 = vld [vmem:[#allocation3 + $0x1a4] sm:$0xf0] }
 0x382   : > { %v7356_v8 = vrot.slane %v11126_v25, 9  ;;  %v5129_v30 = vadd.f32 %v9878_v62, %v5040_v53  ;;  %5078 = vmatmul.bf16.gmra.mxu1 %v7060_v56  ;;  %v11038_v15 = vrot.slane %v10040_v13, 2  ;;  %v11039_v21 = vrot.slane %v10040_v13, 4  ;;  %v3289_v62 = vld [vmem:[#allocation2 + $0x94] sm:$0xf] }
 0x383   : > { %v5306_v6 = vpop.f32.mrf.mxu3  ;;  %v7560_v53 = vld [vmem:[#allocation3 + $0x188] sm:$0xf0]  ;;  %v2215_v56 = vsel %vm8819_vm15, %v2213_v34, %v2214_v29  ;;  %v7357_v38 = vrot.slane %v10040_v13, 9  ;;  %2488 = vst.msk [vmem:[#allocation3 + $0x1bc] sm:$0xf] %vm2022_vm0, %v10008_v63  ;;  %v10099_v29 = vadd.f32 %v9926_v37, %v9697_v7  ;;  %v2417_v34 = vpop.permute.xlu2 %2416  ;;  %v11128_v63 = vrot.slane %v9997_v61, 2 }
 0x384   : > { %v5218_v23 = vadd.f32 %v9921_v5, %v5129_v30  ;;  %v5450_v5 = vrot.slane %v10040_v13, 6  ;;  %v3877_v58 = vld [vmem:[#allocation2 + $0x90] sm:$0xf]  ;;  %v7072_v2 = vor.u32 %v7560_v53, %v7071_v26  ;;  %v7085_v19 = vld [vmem:[#allocation3 + $0x1ac] sm:$0xf0]  ;;  %v10107_v30 = vpop.f32.mrf.mxu2  ;;  %v7358_v7 = vrot.slane %v11038_v15, 9  ;;  %v10118_v53 = vpop.permute.xlu0 %3188 }
 0x385   : > { %11127 = vst [vmem:[#allocation45_spill] sm:$0xff] %v10099_v29  ;;  %v10105_v25 = vld [vmem:[#allocation2 + $0x94] sm:$0xf]  ;;  %v10111_v50 = vmax.f32 %v11128_v63, %v7354_v28  ;;  %v7359_v37 = vrot.slane %v11039_v21, 9  ;;  %v3290_v26 = vld [vmem:[#allocation2 + $0x98] sm:$0xf] }
 0x386   : > { %v5307_v31 = vadd.f32 %v5306_v6, %v5218_v23  ;;  %2297 = vst.msk [vmem:[#allocation3 + $0x1d0] sm:$0xf] %vm1258_vm6, %v2215_v56  ;;  %v7088_v6 = vor.u32 %v7562_v47, %v7085_v19  ;;  %v11129_v23 = vrot.slane %v9997_v61, 4  ;;  %7346 = vmatmul.msk.bf16.gmra.mxu3 %vm4887_vm1, %v7072_v2  ;;  %v6870_v15 = vrot.slane %v3876_v9, 9  ;;  %v2528_v21 = vld [vmem:[#allocation2 + $0x8c] sm:$0xf] }
 0x387   : > { %v5041_v3 = vpop.f32.mrf.mxu1  ;;  %2489 = vst.msk [vmem:[#allocation3 + $0x1d0] sm:$0xf] %vm2022_vm0, %v2417_v34  ;;  %v11130_v47 = vrot.slane %v9997_v61, 6  ;;  %v7103_v34 = vld [vmem:[#allocation3 + $0x1c0] sm:$0xf]  ;;  %v3998_v2 = vrot.slane %v3877_v58, 5 }
 0x388   : > { %v10122_v56 = vmax.f32 %v11129_v23, %v7355_v48  ;;  %v10125_v28 = vmax.f32 %v5307_v31, 0.0  ;;  %v5042_v63 = vadd.f32 %v5041_v3, %v4953_v33  ;;  %3321 = vst.msk [vmem:[#allocation3 + $0x1c4] sm:$0xf] %vm1258_vm6, %v3289_v62  ;;  %5261 = vmatmul.bf16.gmra.mxu0 %v7088_v6  ;;  %v7080_v48 = vor.u32 %v10079_v1, %v10081_v54  ;;  %v7569_v3 = vld [vmem:[#allocation3 + $0x1d0] sm:$0xf0] }
 0x389   : > { %v10130_v19 = vmax.f32 %v11130_v47, %v7356_v8  ;;  %3841 = vst.msk [vmem:[#allocation3 + $0x1c4] sm:$0xf] %vm2022_vm0, %v10027_v22  ;;  %v11042_v31 = vrot.slane %v10105_v25, 5  ;;  %v7360_v33 = vrot.slane %v5450_v5, 9  ;;  %v10141_v6 = vmax.f32 %v10040_v13, %v7357_v38 }
 0x38a   : > { %v11041_v62 = vrot.slane %v10125_v28, 2  ;;  %v11040_v9 = vrot.slane %v10125_v28, 4  ;;  %v5131_v22 = vadd.f32 %v9931_v12, %v5042_v63  ;;  %v3999_v1 = vsel %vm8819_vm15, %v6870_v15, %v3998_v2  ;;  %3322 = vst.msk [vmem:[#allocation3 + $0x1d8] sm:$0xf] %vm1258_vm6, %v3290_v26  ;;  %v2529_v12 = vld [vmem:[#allocation2 + $0x90] sm:$0xf] }
 0x38b   : > { %v5308_v8 = vpop.f32.mrf.mxu3  ;;  %v4000_v54 = vrot.slane %v3998_v2, 4  ;;  %v11131_v58 = vrot.slane %v10040_v13, 2  ;;  %v7361_v47 = vrot.slane %v10125_v28, 9  ;;  %v7104_v38 = vor.u32 %v7569_v3, %v7103_v34  ;;  %4087 = vst.msk [vmem:[#allocation3 + $0x1a0] sm:$0xf] %vm1258_vm6, %v3999_v1  ;;  %v3187_v41 = vpop.permute.xlu2 %3186 }
 0x38c   : > { %v10154_v61 = vrot.slane %v11041_v62, 9  ;;  %v10159_v15 = vrot.slane %v11040_v9, 9  ;;  %v5220_v26 = vadd.f32 %v9966_v39, %v5131_v22  ;;  %3842 = vst.msk [vmem:[#allocation3 + $0x1d8] sm:$0xf] %vm2022_vm0, %v3770_v45  ;;  %v2803_v63 = vshrl.u32 %v2528_v21, 16  ;;  %v10178_v62 = vpop.permute.xlu1 %2418 }
 0x38d   : > { %v10149_v23 = vmax.f32 %v11131_v58, %v7358_v7  ;;  %v4002_v7 = vsel %vm8819_vm15, %v4000_v54, %v11042_v31  ;;  %v10167_v2 = vld [vmem:[#allocation2 + $0x94] sm:$0xf]  ;;  %v11132_v34 = vrot.slane %v10040_v13, 4  ;;  %v10173_v1 = vmax.f32 %v5450_v5, %v7360_v33  ;;  %v2085_v22 = vld [vmem:[#allocation2 + $0x78] sm:$0xe] }
 0x38e   : > { %v11133_v58 = vrot.slane %v10125_v28, 6  ;;  %4088 = vst.msk [vmem:[#allocation3 + $0x1b4] sm:$0xf] %vm1258_vm6, %v4002_v7  ;;  %v2806_v39 = vshll.u32 %v2528_v21, 16  ;;  %v5309_v54 = vadd.f32 %v5308_v8, %v5220_v26  ;;  %v2805_v31 = vrot.slane %v2803_v63, 4  ;;  %v10187_v7 = vpop.f32.mrf.mxu0  ;;  %v10189_v63 = vpop.f32.mrf.mxu2 }
 0x38f   : > { %v10171_v3 = vmax.f32 %v11132_v34, %v7359_v37  ;;  %v5044_v45 = vpop.f32.mrf.mxu1  ;;  %v2812_v27 = vshll.u32 %v2529_v12, 16  ;;  %v2816_v46 = vshrl.u32 %v2529_v12, 16  ;;  %v10183_v13 = vmax.f32 %v10125_v28, %v7361_v47  ;;  %5177 = vmatmul.bf16.gmra.mxu2 %v7104_v38  ;;  %v10191_v12 = vpop.permute.xlu0 %3771 }
 0x390   : > { %v7364_v9 = vrot.slane %v11133_v58, 9  ;;  %v5045_v5 = vadd.f32 %v5044_v45, %v10061_v35  ;;  %v2808_v37 = vrot.slane %v2806_v39, 5  ;;  %v2822_v33 = vshll.u32 %v10167_v2, 16  ;;  %v3291_v45 = vld [vmem:[#allocation2 + $0xa0] sm:$0xf] }
 0x391   : > { %v5384_v21 = vmax.f32 %v5309_v54, 0.0  ;;  %v2814_v34 = vrot.slane %v2812_v27, 5  ;;  %v2818_v8 = vrot.slane %v2816_v46, 4  ;;  %v6855_v26 = vrot.slane %v2085_v22, 9  ;;  %3323 = vst.msk [vmem:[#allocation3 + $0x1ec] sm:$0xf] %vm1258_vm6, %v3291_v45 }
 0x392   : > { %v5134_v58 = vadd.f32 %v9975_v24, %v5045_v5  ;;  %5083 = vmatmul.bf16.gmra.mxu1 %v7080_v48  ;;  %v2809_v57 = vor.u32 %v2808_v37, %v2805_v31  ;;  %v10194_v35 = vrot.slane %v2822_v33, 5  ;;  %v2218_v39 = vrot.slane %v10180_v44, 5  ;;  %v7091_v46 = vld [vmem:[#allocation3 + $0x1a0] sm:$0xf]  ;;  %v7567_v48 = vld [vmem:[#allocation3 + $0x1c4] sm:$0xf] }
 0x393   : > { %v5311_v47 = vpop.f32.mrf.mxu3  ;;  %v5454_v32 = vrot.slane %v5384_v21, 2  ;;  %v5455_v54 = vrot.slane %v5384_v21, 4  ;;  %v5456_v38 = vrot.slane %v5384_v21, 6  ;;  %v7365_v27 = vrot.slane %v5384_v21, 9  ;;  %3843 = vst.msk [vmem:[#allocation3 + $0x1ec] sm:$0xf] %vm2022_vm0, %v10191_v12  ;;  %v2421_v12 = vpop.permute.xlu2 %2420 }
 0x394   : > { %v5223_v22 = vadd.f32 %v10012_v49, %v5134_v58  ;;  %v2810_v4 = vrot.slane %v2809_v57, 4  ;;  %v2819_v11 = vor.u32 %v2818_v8, %v2814_v34  ;;  %v2219_v24 = vsel %vm8819_vm15, %v6855_v26, %v2218_v39  ;;  %v7105_v8 = vld [vmem:[#allocation3 + $0x1d4] sm:$0xf0] }
 0x395   : > { %v7366_v31 = vrot.slane %v5454_v32, 9  ;;  %v7367_v5 = vrot.slane %v5455_v54, 9  ;;  %v7368_v44 = vrot.slane %v5456_v38, 9  ;;  %v7565_v37 = vld [vmem:[#allocation3 + $0x1b0] sm:$0xf0]  ;;  %v11134_v26 = vrot.slane %v10125_v28, 2 }
 0x396   : > { %v7092_v14 = vor.u32 %v7565_v37, %v7091_v46  ;;  %v5312_v29 = vadd.f32 %v5311_v47, %v5223_v22  ;;  %v2815_v49 = vsel %vm8682_vm12, %v2810_v4, %v2814_v34  ;;  %v2820_v57 = vrot.slane %v2819_v11, 4  ;;  %2298 = vst.msk [vmem:[#allocation3 + $0x1e4] sm:$0xf] %vm1258_vm6, %v2219_v24  ;;  %v10205_v58 = vld [vmem:[#allocation2 + $0x80] sm:$0xf] }
 0x397   : > { %v10210_v45 = vmax.f32 %v11134_v26, %v10154_v61  ;;  %v11135_v10 = vrot.slane %v10125_v28, 4  ;;  %v11136_v47 = vrot.slane %v10125_v28, 6  ;;  %v10221_v4 = vmax.f32 %v5384_v21, %v7365_v27  ;;  %2946 = vst.msk [vmem:[#allocation3 + $0x1e8] sm:$0xf] %vm1258_vm6, %v2815_v49  ;;  %v5046_v11 = vpop.f32.mrf.mxu1  ;;  %v10224_v34 = vld [vmem:[#allocation3 + $0x1bc] sm:$0xf] }
 0x398   : > { %v10226_v22 = vld [vmem:[#allocation3 + $0x1cc] sm:$0xf0]  ;;  %v10228_v61 = vmax.f32 %v5454_v32, %v7366_v31  ;;  %7347 = vmatmul.msk.bf16.gmra.mxu3 %vm4887_vm1, %v7092_v14  ;;  %v5385_v24 = vmax.f32 %v5312_v29, 0.0  ;;  %3258 = vst.msk [vmem:[#allocation3 + $0x1e8] sm:$0xf] %vm2022_vm0, %v3187_v41  ;;  %v5047_v28 = vadd.f32 %v5046_v11, %v10069_v17  ;;  %v10236_v21 = vmax.f32 %v5455_v54, %v7367_v5  ;;  %v10243_v17 = vpop.f32.mrf.mxu0 }
 0x399   : > { %v10215_v33 = vmax.f32 %v11135_v10, %v10159_v15  ;;  %v10219_v46 = vmax.f32 %v11136_v47, %v7364_v9  ;;  %v2825_v10 = vsel %vm8682_vm12, %v2820_v57, %v10194_v35  ;;  %v3879_v9 = vld [vmem:[#allocation2 + $0x98] sm:$0xf]  ;;  %v3774_v15 = vpop.permute.xlu1 %3773  ;;  %v10238_v27 = vmax.f32 %v5456_v38, %v7368_v44  ;;  %v3880_v14 = vld [vmem:[#allocation2 + $0x9c] sm:$0x1]  ;;  %2490 = vst.msk [vmem:[#allocation3 + $0x1e4] sm:$0xf] %vm2022_vm0, %v10178_v62 }
 0x39a   : > { %2947 = vst.msk [vmem:[#allocation3 + $0x1fc] sm:$0xf] %vm1258_vm6, %v2825_v10  ;;  %v7108_v32 = vor.u32 %v7567_v48, %v7105_v8  ;;  %v2220_v31 = vrot.slane %v2218_v39, 4  ;;  %v5457_v29 = vrot.slane %v5385_v24, 2  ;;  %v5458_v37 = vrot.slane %v5385_v24, 4  ;;  %v10253_v8 = vpop.f32.mrf.mxu2 }
 0x39b   : > { %v5459_v41 = vrot.slane %v5385_v24, 6  ;;  %v7369_v49 = vrot.slane %v5385_v24, 9  ;;  %3259 = vst.msk [vmem:[#allocation3 + $0x1fc] sm:$0xf] %vm2022_vm0, %v10118_v53  ;;  %v5313_v57 = vpop.f32.mrf.mxu3  ;;  %v5136_v54 = vadd.f32 %v10021_v42, %v5047_v28  ;;  %v2221_v38 = vrot.slane %v10205_v58, 5  ;;  %v10255_v53 = vpop.permute.xlu0 %3192 }
 0x39c   : > { %5266 = vmatmul.bf16.gmra.mxu0 %v7108_v32  ;;  %v7100_v39 = vor.u32 %v10224_v34, %v10226_v22  ;;  %v11137_v48 = vrot.slane %v10105_v25, 5  ;;  %v3292_v44 = vld [vmem:[#allocation2 + $0xa4] sm:$0xf]  ;;  %v7370_v26 = vrot.slane %v5457_v29, 9  ;;  %v7371_v47 = vrot.slane %v5458_v37, 9 }
 0x39d   : > { %v7372_v42 = vrot.slane %v5459_v41, 9  ;;  %v6037_v11 = vmax.f32 %v5385_v24, %v7369_v49  ;;  %v5225_v62 = vadd.f32 %v10095_v0, %v5136_v54  ;;  %v2222_v25 = vsel %vm8819_vm15, %v2220_v31, %v2221_v38  ;;  %3324 = vst.msk [vmem:[#allocation3 + $0x200] sm:$0xf] %vm1258_vm6, %v3292_v44  ;;  %v3881_v58 = vld [vmem:[#allocation2 + $0xa0] sm:$0xe] }
 0x39e   : > { %v4003_v5 = vrot.slane %v11137_v48, 4  ;;  %v4004_v34 = vrot.slane %v3879_v9, 5  ;;  %v4007_v22 = vrot.slane %v3880_v14, 5  ;;  %v6038_v10 = vmax.f32 %v5457_v29, %v7370_v26  ;;  %2299 = vst.msk [vmem:[#allocation3 + $0x1f8] sm:$0xf] %vm1258_vm6, %v2222_v25 }
 0x39f   : > { %v6039_v28 = vmax.f32 %v5458_v37, %v7371_v47  ;;  %v6040_v32 = vmax.f32 %v5459_v41, %v7372_v42  ;;  %v6149_v24 = vmax.f32 %v10102_v40, %v6037_v11  ;;  %v5314_v0 = vadd.f32 %v5313_v57, %v5225_v62  ;;  %2491 = vst.msk [vmem:[#allocation3 + $0x1f8] sm:$0xf] %vm2022_vm0, %v2421_v12  ;;  %v5049_v49 = vpop.f32.mrf.mxu1 }
 0x3a0   : > { %v4005_v9 = vsel %vm8819_vm15, %v4003_v5, %v4004_v34  ;;  %v4006_v31 = vrot.slane %v4004_v34, 4  ;;  %v11138_v14 = vshrl.u32 %v10167_v2, 16  ;;  %v6150_v37 = vmax.f32 %v10111_v50, %v6038_v10  ;;  %3844 = vst.msk [vmem:[#allocation3 + $0x200] sm:$0xf] %vm2022_vm0, %v3774_v15 }
 0x3a1   : > { %v6151_v40 = vmax.f32 %v10122_v56, %v6039_v28  ;;  %v6152_v41 = vmax.f32 %v10130_v19, %v6040_v32  ;;  %v6213_v54 = vpack.c.bf16 %v6149_v24, %v6149_v24  ;;  %4089 = vst.msk [vmem:[#allocation3 + $0x1c8] sm:$0xf] %vm1258_vm6, %v4005_v9  ;;  %v5386_v57 = vmax.f32 %v5314_v0, 0.0  ;;  %v7123_v56 = vld [vmem:[#allocation3 + $0x1e8] sm:$0xf]  ;;  %v10282_v42 = vpop.permute.xlu1 %2422  ;;  %v10287_v32 = vpop.f32.mrf.mxu0 }
 0x3a2   : > { %v2828_v29 = vrot.slane %v11138_v14, 4  ;;  %v5050_v48 = vadd.f32 %v5049_v49, %v10073_v43  ;;  %v4008_v44 = vsel %vm8819_vm15, %v4006_v31, %v4007_v22  ;;  %v6214_v5 = vpack.c.bf16 %v6150_v37, %v6150_v37  ;;  %5088 = vmatmul.bf16.gmra.mxu1 %v7100_v39  ;;  %v7574_v34 = vld [vmem:[#allocation3 + $0x1f8] sm:$0xf0]  ;;  %v10285_v28 = vld [vmem:[#allocation2 + $0x98] sm:$0xf]  ;;  %v10289_v9 = vpop.f32.mrf.mxu2 }
 0x3a3   : > { %v6215_v26 = vpack.c.bf16 %v6151_v40, %v6151_v40  ;;  %v6216_v50 = vpack.c.bf16 %v6152_v41, %v6152_v41  ;;  %v6341_v47 = vunpack.c.l.b16 %v6213_v54  ;;  %4090 = vst.msk [vmem:[#allocation3 + $0x1dc] sm:$0xf] %vm1258_vm6, %v4008_v44  ;;  %v5316_v19 = vpop.f32.mrf.mxu3  ;;  %v5460_v11 = vrot.slane %v5386_v57, 2  ;;  %v3293_v39 = vld [vmem:[#allocation2 + $0xa8] sm:$0xf]  ;;  %v3776_v31 = vpop.permute.xlu0 %3775 }
 0x3a4   : > { %v2829_v2 = vor.u32 %v2828_v29, %v10194_v35  ;;  %v5461_v43 = vrot.slane %v5386_v57, 4  ;;  %v5462_v62 = vrot.slane %v5386_v57, 6  ;;  %v7373_v25 = vrot.slane %v5386_v57, 9  ;;  %3325 = vst.msk [vmem:[#allocation3 + $0x214] sm:$0xf] %vm1258_vm6, %v3293_v39 }
 0x3a5   : > { %v6342_v22 = vunpack.c.l.b16 %v6214_v5  ;;  %v6343_v15 = vunpack.c.l.b16 %v6215_v26  ;;  %v6344_v10 = vunpack.c.l.b16 %v6216_v50  ;;  %v5139_v35 = vadd.f32 %v10107_v30, %v5050_v48  ;;  %3845 = vst.msk [vmem:[#allocation3 + $0x214] sm:$0xf] %vm2022_vm0, %v3776_v31 }
 0x3a6   : > { %v7374_v24 = vrot.slane %v5460_v11, 9  ;;  %v7375_v12 = vrot.slane %v5461_v43, 9  ;;  %v7376_v0 = vrot.slane %v5462_v62, 9  ;;  %v6041_v49 = vmax.f32 %v5386_v57, %v7373_v25 }
 0x3a7   : > { %v6405_v14 = vrot.slane %v6342_v22, 7  ;;  %v6408_v29 = vrot.slane %v6343_v15, 6  ;;  %v6411_v37 = vrot.slane %v6344_v10, 5  ;;  %v7124_v30 = vor.u32 %v7574_v34, %v7123_v56  ;;  %v10294_v44 = vpop.f32.mrf.mxu1  ;;  %v2532_v34 = vld [vmem:[#allocation2 + $0x9c] sm:$0x1] }
 0x3a8   : > { %v6042_v40 = vmax.f32 %v5460_v11, %v7374_v24  ;;  %v6043_v41 = vmax.f32 %v5461_v43, %v7375_v12  ;;  %v6044_v54 = vmax.f32 %v5462_v62, %v7376_v0  ;;  %v6153_v48 = vmax.f32 %v10141_v6, %v6041_v49  ;;  %v7111_v57 = vld [vmem:[#allocation3 + $0x1c8] sm:$0xf]  ;;  %v3294_v12 = vld [vmem:[#allocation2 + $0xac] sm:$0xf] }
 0x3a9   : > { %v6407_v5 = vsel %vm6406_vm2, %v6405_v14, %v6341_v47  ;;  %5182 = vmatmul.bf16.gmra.mxu2 %v7124_v30  ;;  %v5228_v26 = vadd.f32 %v10187_v7, %v5139_v35  ;;  %v2830_v50 = vrot.slane %v2829_v2, 4  ;;  %v2832_v56 = vshll.u32 %v10285_v28, 16  ;;  %3326 = vst.msk [vmem:[#allocation3 + $0x228] sm:$0xf] %vm1258_vm6, %v3294_v12  ;;  %v3778_v31 = vpop.permute.xlu1 %3777 }
 0x3aa   : > { %v6410_v25 = vsel %vm6409_vm3, %v6408_v29, %v6407_v5  ;;  %v6154_v11 = vmax.f32 %v10149_v23, %v6042_v40  ;;  %v6155_v43 = vmax.f32 %v10171_v3, %v6043_v41  ;;  %v6156_v6 = vmax.f32 %v10173_v1, %v6044_v54  ;;  %v7570_v62 = vld [vmem:[#allocation3 + $0x1d8] sm:$0xf0]  ;;  %v3191_v1 = vpop.permute.xlu2 %3190  ;;  %3846 = vst.msk [vmem:[#allocation3 + $0x228] sm:$0xf] %vm2022_vm0, %v3778_v31 }
 0x3ab   : > { %v6413_v22 = vsel %vm6412_vm4, %v6411_v37, %v6410_v25  ;;  %v6217_v47 = vpack.c.bf16 %v6153_v48, %v6153_v48  ;;  %v7112_v15 = vor.u32 %v7570_v62, %v7111_v57  ;;  %v5317_v10 = vadd.f32 %v5316_v19, %v5228_v26  ;;  %v10304_v39 = vpop.f32.mrf.mxu3  ;;  %v10316_v25 = vpop.f32.mrf.mxu2 }
 0x3ac   : > { %v6218_v7 = vpack.c.bf16 %v6154_v11, %v6154_v11  ;;  %v6219_v2 = vpack.c.bf16 %v6155_v43, %v6155_v43  ;;  %v6220_v35 = vpack.c.bf16 %v6156_v6, %v6156_v6  ;;  %v2834_v24 = vrot.slane %v2832_v56, 5 }
 0x3ad   : > { %v6345_v0 = vunpack.c.l.b16 %v6217_v47  ;;  %7348 = vmatmul.msk.bf16.gmra.mxu3 %vm4887_vm1, %v7112_v15  ;;  %v5387_v23 = vmax.f32 %v5317_v10, 0.0  ;;  %v2836_v3 = vshrl.u32 %v10285_v28, 16  ;;  %v2842_v49 = vshll.u32 %v2532_v34, 16  ;;  %v10313_v28 = vpop.f32.mrf.mxu0 }
 0x3ae   : > { %v6346_v14 = vunpack.c.l.b16 %v6218_v7  ;;  %v6347_v19 = vunpack.c.l.b16 %v6219_v2  ;;  %v6348_v29 = vunpack.c.l.b16 %v6220_v35  ;;  %v2835_v37 = vsel %vm8682_vm12, %v2830_v50, %v2834_v24 }
 0x3af   : > { %v6414_v30 = vrot.slane %v6345_v0, 4  ;;  %v5463_v40 = vrot.slane %v5387_v23, 2  ;;  %v5464_v41 = vrot.slane %v5387_v23, 4  ;;  %v5465_v54 = vrot.slane %v5387_v23, 6  ;;  %2948 = vst.msk [vmem:[#allocation3 + $0x210] sm:$0xf] %vm1258_vm6, %v2835_v37  ;;  %v5054_v56 = vpop.f32.mrf.mxu1 }
 0x3b0   : > { %v6417_v48 = vrot.slane %v6346_v14, 3  ;;  %v6420_v57 = vrot.slane %v6347_v19, 2  ;;  %v6423_v5 = vrot.slane %v6348_v29, 1  ;;  %v7377_v26 = vrot.slane %v5387_v23, 9  ;;  %3260 = vst.msk [vmem:[#allocation3 + $0x210] sm:$0xf] %vm2022_vm0, %v3191_v1 }
 0x3b1   : > { %v6416_v50 = vsel %vm6415_vm5, %v6414_v30, %v6413_v22  ;;  %v7378_v11 = vrot.slane %v5463_v40, 9  ;;  %v7379_v43 = vrot.slane %v5464_v41, 9  ;;  %v7380_v6 = vrot.slane %v5465_v54, 9  ;;  %v2088_v14 = vld [vmem:[#allocation2 + $0x84] sm:$0xf] }
 0x3b2   : > { %v6419_v62 = vsel %vm6418_vm7, %v6417_v48, %v6416_v50  ;;  %v6045_v34 = vmax.f32 %v5387_v23, %v7377_v26  ;;  %v2838_v47 = vrot.slane %v2836_v3, 4  ;;  %v2844_v15 = vrot.slane %v2842_v49, 5  ;;  %v7572_v29 = vld [vmem:[#allocation3 + $0x1ec] sm:$0xf]  ;;  %v7125_v37 = vld [vmem:[#allocation3 + $0x1fc] sm:$0xf0] }
 0x3b3   : > { %v6422_v10 = vsel %vm6421_vm8, %v6420_v57, %v6419_v62  ;;  %v6046_v7 = vmax.f32 %v5463_v40, %v7378_v11  ;;  %v6047_v2 = vmax.f32 %v5464_v41, %v7379_v43  ;;  %v6048_v35 = vmax.f32 %v5465_v54, %v7380_v6  ;;  %v10321_v12 = vpop.f32.mrf.mxu3  ;;  %v7117_v26 = vld [vmem:[#allocation3 + $0x1f4] sm:$0xf0]  ;;  %v3882_v62 = vld [vmem:[#allocation2 + $0xa4] sm:$0xf] }
 0x3b4   : > { %v6425_v0 = vsel %vm6424_vm9, %v6423_v5, %v6422_v10  ;;  %v6157_v22 = vmax.f32 %v10183_v13, %v6045_v34  ;;  %v2839_v1 = vor.u32 %v2838_v47, %v2834_v24  ;;  %v5052_v31 = vadd.f32 %v10294_v44, %v10085_v36  ;;  %v10333_v24 = vpop.permute.xlu0 %3196  ;;  %v10345_v34 = vld [vmem:[#allocation2 + $0xa8] sm:$0xf]  ;;  %v10347_v47 = vpop.permute.xlu1 %2426 }
 0x3b5   : > { %v6524_v23 = vpack.c.b16 %v6425_v0, %v6425_v0  ;;  %v6158_v3 = vmax.f32 %v10210_v45, %v6046_v7  ;;  %v6159_v49 = vmax.f32 %v10215_v33, %v6047_v2  ;;  %v6160_v19 = vmax.f32 %v10219_v46, %v6048_v35  ;;  %v2089_v33 = vld [vmem:[#allocation2 + $0x88] sm:$0x1]  ;;  %v2533_v35 = vld [vmem:[#allocation2 + $0xa0] sm:$0xf]  ;;  %v10355_v0 = vpop.f32.mrf.mxu2 }
 0x3b6   : > { %v6221_v30 = vpack.c.bf16 %v6157_v22, %v6157_v22  ;;  %v2840_v40 = vrot.slane %v2839_v1, 4  ;;  %v5141_v41 = vadd.f32 %v10189_v63, %v5052_v31  ;;  %v2223_v13 = vrot.slane %v2221_v38, 4  ;;  %v7571_v63 = vld [vmem:[#allocation3 + $0x1e4] sm:$0xf] }
 0x3b7   : > { %6540 = vst.msk [vmem:[%s8619_s3] sm:$0xf] %vm1258_vm6, %v6524_v23  ;;  %v6222_v36 = vpack.c.bf16 %v6158_v3, %v6158_v3  ;;  %v6223_v44 = vpack.c.bf16 %v6159_v49, %v6159_v49  ;;  %v6224_v45 = vpack.c.bf16 %v6160_v19, %v6160_v19  ;;  %v2224_v54 = vrot.slane %v2088_v14, 5  ;;  %v10340_v38 = vpop.f32.mrf.mxu1  ;;  %v3295_v3 = vld [vmem:[#allocation2 + $0xb4] sm:$0xf]  ;;  %v2425_v19 = vpop.permute.xlu2 %2424 }
 0x3b8   : > { %v6349_v48 = vunpack.c.l.b16 %v6221_v30  ;;  %v2845_v46 = vsel %vm8682_vm12, %v2840_v40, %v2844_v15  ;;  %v5230_v57 = vadd.f32 %v10243_v17, %v5141_v41  ;;  %v7128_v5 = vor.u32 %v7572_v29, %v7125_v37  ;;  %v10349_v17 = vpop.f32.mrf.mxu0  ;;  %3327 = vst.msk [vmem:[#allocation3 + $0x23c] sm:$0xf] %vm1258_vm6, %v3295_v3 }
 0x3b9   : > { %v6350_v50 = vunpack.c.l.b16 %v6222_v36  ;;  %v6351_v11 = vunpack.c.l.b16 %v6223_v44  ;;  %v6352_v43 = vunpack.c.l.b16 %v6224_v45  ;;  %2949 = vst.msk [vmem:[#allocation3 + $0x224] sm:$0xf] %vm1258_vm6, %v2845_v46  ;;  %v2225_v6 = vsel %vm8819_vm15, %v2223_v13, %v2224_v54  ;;  %v7143_v45 = vld [vmem:[#allocation3 + $0x210] sm:$0xf] }
 0x3ba   : > { %3261 = vst.msk [vmem:[#allocation3 + $0x224] sm:$0xf] %vm2022_vm0, %v10255_v53  ;;  %v5319_v15 = vadd.f32 %v10304_v39, %v5230_v57  ;;  %5271 = vmatmul.bf16.gmra.mxu0 %v7128_v5  ;;  %v2226_v10 = vrot.slane %v2224_v54, 4  ;;  %v2227_v7 = vrot.slane %v2089_v33, 5  ;;  %v5055_v2 = vadd.f32 %v5054_v56, %v10089_v16 }
 0x3bb   : > { %v6426_v22 = vrot.slane %v6350_v50, 7  ;;  %v6428_v1 = vrot.slane %v6351_v11, 6  ;;  %v6430_v31 = vrot.slane %v6352_v43, 5  ;;  %2300 = vst.msk [vmem:[#allocation3 + $0x20c] sm:$0xf] %vm1258_vm6, %v2225_v6  ;;  %v7120_v14 = vor.u32 %v7571_v63, %v7117_v26  ;;  %v10358_v23 = vpop.f32.mrf.mxu3 }
 0x3bc   : > { %2492 = vst.msk [vmem:[#allocation3 + $0x20c] sm:$0xf] %vm2022_vm0, %v10282_v42  ;;  %v5388_v53 = vmax.f32 %v5319_v15, 0.0  ;;  %v2228_v39 = vsel %vm8819_vm15, %v2226_v10, %v2227_v7  ;;  %v5144_v16 = vadd.f32 %v10253_v8, %v5055_v2  ;;  %v6871_v56 = vrot.slane %v3881_v58, 9  ;;  %v2534_v8 = vld [vmem:[#allocation2 + $0xa4] sm:$0xf]  ;;  %v3780_v63 = vpop.permute.xlu0 %3779 }
 0x3bd   : > { %v6427_v49 = vsel %vm6406_vm2, %v6426_v22, %v6349_v48  ;;  %2301 = vst.msk [vmem:[#allocation3 + $0x220] sm:$0xf] %vm1258_vm6, %v2228_v39  ;;  %5093 = vmatmul.bf16.gmra.mxu1 %v7120_v14  ;;  %v4011_v29 = vrot.slane %v3882_v62, 5  ;;  %v4014_v37 = vrot.slane %v10345_v34, 5  ;;  %v2847_v30 = vshrl.u32 %v2533_v35, 16  ;;  %v3782_v14 = vpop.permute.xlu1 %3781  ;;  %v10396_v3 = vpop.f32.mrf.mxu2 }
 0x3be   : > { %v6429_v42 = vsel %vm6409_vm3, %v6428_v1, %v6427_v49  ;;  %v5466_v40 = vrot.slane %v5388_v53, 2  ;;  %v5467_v41 = vrot.slane %v5388_v53, 4  ;;  %v5468_v13 = vrot.slane %v5388_v53, 6  ;;  %2493 = vst.msk [vmem:[#allocation3 + $0x220] sm:$0xf] %vm2022_vm0, %v2425_v19 }
 0x3bf   : > { %v10371_v36 = vsel %vm6412_vm4, %v6430_v31, %v6429_v42  ;;  %v7381_v44 = vrot.slane %v5388_v53, 9  ;;  %v4012_v54 = vsel %vm8819_vm15, %v6871_v56, %v4011_v29  ;;  %v4013_v33 = vrot.slane %v4011_v29, 4  ;;  %v10378_v26 = vpop.f32.mrf.mxu1  ;;  %3847 = vst.msk [vmem:[#allocation3 + $0x23c] sm:$0xf] %vm2022_vm0, %v3780_v63  ;;  %v3296_v31 = vld [vmem:[#allocation2 + $0xb8] sm:$0xf] }
 0x3c0   : > { %v7382_v48 = vrot.slane %v5466_v40, 9  ;;  %v7383_v46 = vrot.slane %v5467_v41, 9  ;;  %v7384_v57 = vrot.slane %v5468_v13, 9  ;;  %4091 = vst.msk [vmem:[#allocation3 + $0x1f0] sm:$0xf] %vm1258_vm6, %v4012_v54  ;;  %v5233_v5 = vadd.f32 %v10287_v32, %v5144_v16  ;;  %v3195_v54 = vpop.permute.xlu2 %3194 }
 0x3c1   : > { %v6049_v58 = vmax.f32 %v5388_v53, %v7381_v44  ;;  %v7579_v50 = vld [vmem:[#allocation3 + $0x220] sm:$0xf0]  ;;  %v4015_v11 = vsel %vm8819_vm15, %v4013_v33, %v4014_v37  ;;  %v10384_v43 = vrot.slane %v2847_v30, 4  ;;  %v2850_v6 = vshll.u32 %v2533_v35, 16  ;;  %v10390_v53 = vpop.f32.mrf.mxu0  ;;  %3328 = vst.msk [vmem:[#allocation3 + $0x250] sm:$0xf] %vm1258_vm6, %v3296_v31 }
 0x3c2   : > { %v6050_v62 = vmax.f32 %v5466_v40, %v7382_v48  ;;  %v6051_v15 = vmax.f32 %v5467_v41, %v7383_v46  ;;  %v6052_v10 = vmax.f32 %v5468_v13, %v7384_v57  ;;  %v7144_v7 = vor.u32 %v7579_v50, %v7143_v45  ;;  %4092 = vst.msk [vmem:[#allocation3 + $0x204] sm:$0xf] %vm1258_vm6, %v4015_v11  ;;  %v10422_v33 = vld [vmem:[#allocation2 + $0xa8] sm:$0xf]  ;;  %v2090_v11 = vld [vmem:[#allocation2 + $0x8c] sm:$0xe] }
 0x3c3   : > { %v6161_v32 = vmax.f32 %v10221_v4, %v6049_v58  ;;  %v5322_v2 = vadd.f32 %v10321_v12, %v5233_v5  ;;  %v2852_v22 = vrot.slane %v2850_v6, 5  ;;  %v2856_v1 = vshll.u32 %v2534_v8, 16  ;;  %v10401_v4 = vld [vmem:[%s11119_s6] ss:$0 sm:$0xff]  ;;  %3848 = vst.msk [vmem:[#allocation3 + $0x250] sm:$0xf] %vm2022_vm0, %v3782_v14  ;;  %v10414_v49 = vpop.f32.mrf.mxu3 }
 0x3c4   : > { %v6162_v35 = vmax.f32 %v10228_v61, %v6050_v62  ;;  %v6163_v39 = vmax.f32 %v10236_v21, %v6051_v15  ;;  %v6164_v16 = vmax.f32 %v10238_v27, %v6052_v10  ;;  %5187 = vmatmul.bf16.gmra.mxu2 %v7144_v7  ;;  %v2860_v56 = vshrl.u32 %v2534_v8, 16  ;;  %v11139_v5 = vld [vmem:[#allocation41_spill] sm:$0xff] }
 0x3c5   : > { %v10405_v12 = vadd.f32 %v10401_v4, %v9730_v52  ;;  %v10409_v61 = vadd.f32 %v10401_v4, %v9760_v20  ;;  %v6225_v21 = vpack.c.bf16 %v6161_v32, %v6161_v32  ;;  %v10411_v27 = vmax.f32 %v5322_v2, 0.0  ;;  %v2091_v10 = vld [vmem:[#allocation2 + $0x90] sm:$0xf]  ;;  %v7577_v2 = vld [vmem:[#allocation3 + $0x214] sm:$0xf] }
 0x3c6   : > { %v10418_v19 = vadd.f32 %v10401_v4, %v9800_v18  ;;  %v6226_v29 = vpack.c.bf16 %v6162_v35, %v6162_v35  ;;  %v6227_v30 = vpack.c.bf16 %v6163_v39, %v6163_v39  ;;  %v6228_v42 = vpack.c.bf16 %v6164_v16, %v6164_v16  ;;  %v7145_v39 = vld [vmem:[#allocation3 + $0x224] sm:$0xf0]  ;;  %v10453_v16 = vpop.f32.mrf.mxu2 }
 0x3c7   : > { %v6353_v52 = vunpack.c.l.b16 %v6225_v21  ;;  %v7131_v40 = vld [vmem:[#allocation3 + $0x1f0] sm:$0xf]  ;;  %v5469_v41 = vrot.slane %v10411_v27, 2  ;;  %v2853_v20 = vor.u32 %v2852_v22, %v10384_v43  ;;  %v2858_v13 = vrot.slane %v2856_v1, 5  ;;  %v10424_v46 = vpop.f32.mrf.mxu1 }
 0x3c8   : > { %v6354_v8 = vunpack.c.l.b16 %v6226_v29  ;;  %v6355_v44 = vunpack.c.l.b16 %v6227_v30  ;;  %v6356_v45 = vunpack.c.l.b16 %v6228_v42  ;;  %v2862_v48 = vrot.slane %v2860_v56, 4  ;;  %v11140_v30 = vld [vmem:[#allocation45_spill] sm:$0xff] }
 0x3c9   : > { %v10428_v18 = vadd.f32 %v10401_v4, %v9848_v55  ;;  %v10432_v57 = vadd.f32 %v10401_v4, %v9880_v60  ;;  %v10436_v63 = vadd.f32 %v10401_v4, %v11139_v5  ;;  %v6432_v58 = vrot.slane %v6353_v52, 4  ;;  %v7575_v50 = vld [vmem:[#allocation3 + $0x200] sm:$0xf0]  ;;  %v10447_v22 = vpop.f32.mrf.mxu0  ;;  %v7576_v52 = vld [vmem:[#allocation3 + $0x20c] sm:$0xf] }
 0x3ca   : > { %v6434_v43 = vrot.slane %v6354_v8, 3  ;;  %v6436_v6 = vrot.slane %v6355_v44, 2  ;;  %v7132_v62 = vor.u32 %v7575_v50, %v7131_v40  ;;  %v5470_v15 = vrot.slane %v10411_v27, 4  ;;  %v7137_v40 = vld [vmem:[#allocation3 + $0x21c] sm:$0xf0] }
 0x3cb   : > { %v6433_v55 = vsel %vm6415_vm5, %v6432_v58, %v10371_v36  ;;  %v5471_v7 = vrot.slane %v10411_v27, 6  ;;  %v7385_v60 = vrot.slane %v10411_v27, 9  ;;  %v10445_v32 = vrot.slane %v5469_v41, 9  ;;  %v10451_v36 = vld [vmem:[#allocation2 + $0x94] sm:$0xf] }
 0x3cc   : > { %v6435_v1 = vsel %vm6418_vm7, %v6434_v43, %v6433_v55  ;;  %v6438_v31 = vrot.slane %v6356_v45, 1  ;;  %7349 = vmatmul.msk.bf16.gmra.mxu3 %vm4887_vm1, %v7132_v62  ;;  %v2854_v14 = vrot.slane %v2853_v20, 4  ;;  %v2863_v35 = vor.u32 %v2862_v48, %v2858_v13  ;;  %v3884_v48 = vld [vmem:[#allocation2 + $0xac] sm:$0xf]  ;;  %v10467_v43 = vpop.f32.mrf.mxu3 }
 0x3cd   : > { %v6437_v56 = vsel %vm6421_vm8, %v6436_v6, %v6435_v1  ;;  %v2866_v21 = vshll.u32 %v10422_v33, 16  ;;  %v2870_v29 = vshrl.u32 %v10422_v33, 16  ;;  %v5057_v42 = vadd.f32 %v10340_v38, %v11140_v30  ;;  %v3885_v38 = vld [vmem:[#allocation2 + $0xb0] sm:$0x1]  ;;  %v2536_v55 = vld [vmem:[#allocation2 + $0xac] sm:$0xf]  ;;  %v10473_v1 = vpop.permute.xlu1 %2430 }
 0x3ce   : > { %v6439_v8 = vsel %vm6424_vm9, %v6438_v31, %v6437_v56  ;;  %v2859_v20 = vsel %vm8682_vm12, %v2854_v14, %v2858_v13  ;;  %v2864_v44 = vrot.slane %v2863_v35, 4  ;;  %v6856_v45 = vrot.slane %v2090_v11, 9 }
 0x3cf   : > { %v6525_v5 = vpack.c.b16 %v6439_v8, %v6439_v8  ;;  %2950 = vst.msk [vmem:[#allocation3 + $0x238] sm:$0xf] %vm1258_vm6, %v2859_v20  ;;  %v10464_v58 = vrot.slane %v2866_v21, 5  ;;  %v5146_v33 = vadd.f32 %v10289_v9, %v5057_v42  ;;  %v2231_v50 = vrot.slane %v2091_v10, 5  ;;  %v10475_v31 = vpop.f32.mrf.mxu1 }
 0x3d0   : > { %3262 = vst.msk [vmem:[#allocation3 + $0x238] sm:$0xf] %vm2022_vm0, %v3195_v54  ;;  %v7148_v6 = vor.u32 %v7577_v2, %v7145_v39  ;;  %v2234_v13 = vrot.slane %v10451_v36, 5  ;;  %v5060_v11 = vadd.f32 %v10378_v26, %v10405_v12  ;;  %v7140_v62 = vor.u32 %v7576_v52, %v7137_v40  ;;  %v2429_v26 = vpop.permute.xlu2 %2428 }
 0x3d1   : > { %6541 = vst.msk [vmem:[%s8619_s3 + $0x4] sm:$0xf] %vm1258_vm6, %v6525_v5  ;;  %v2869_v9 = vsel %vm8682_vm12, %v2864_v44, %v10464_v58  ;;  %v2232_v54 = vsel %vm8819_vm15, %v6856_v45, %v2231_v50  ;;  %v5235_v10 = vadd.f32 %v10313_v28, %v5146_v33  ;;  %v2233_v2 = vrot.slane %v2231_v50, 4  ;;  %v10500_v52 = vpop.f32.mrf.mxu0  ;;  %v2537_v44 = vld [vmem:[#allocation2 + $0xb0] sm:$0x1]  ;;  %v10515_v45 = vpop.f32.mrf.mxu2 }
 0x3d2   : > { %2951 = vst.msk [vmem:[#allocation3 + $0x24c] sm:$0xf] %vm1258_vm6, %v2869_v9  ;;  %5276 = vmatmul.bf16.gmra.mxu0 %v7148_v6  ;;  %v5149_v12 = vadd.f32 %v10316_v25, %v5060_v11  ;;  %5098 = vmatmul.bf16.gmra.mxu1 %v7140_v62  ;;  %v4016_v14 = vrot.slane %v4014_v37, 4  ;;  %v4017_v35 = vrot.slane %v3884_v48, 5  ;;  %v4020_v39 = vrot.slane %v3885_v38, 5 }
 0x3d3   : > { %3263 = vst.msk [vmem:[#allocation3 + $0x24c] sm:$0xf] %vm2022_vm0, %v10333_v24  ;;  %v5324_v56 = vadd.f32 %v10358_v23, %v5235_v10  ;;  %v2235_v28 = vsel %vm8819_vm15, %v2233_v2, %v2234_v13  ;;  %v2872_v21 = vrot.slane %v2870_v29, 4  ;;  %v2876_v30 = vshll.u32 %v2536_v55, 16  ;;  %v3298_v50 = vld [vmem:[#allocation2 + $0xc0] sm:$0xf] }
 0x3d4   : > { %v7387_v25 = vrot.slane %v5470_v15, 9  ;;  %2302 = vst.msk [vmem:[#allocation3 + $0x234] sm:$0xf] %vm1258_vm6, %v2232_v54  ;;  %v4019_v34 = vrot.slane %v4017_v35, 4  ;;  %v5238_v37 = vadd.f32 %v10349_v17, %v5149_v12  ;;  %v2880_v42 = vshrl.u32 %v2536_v55, 16 }
 0x3d5   : > { %2494 = vst.msk [vmem:[#allocation3 + $0x234] sm:$0xf] %vm2022_vm0, %v10347_v47  ;;  %v10504_v24 = vmax.f32 %v5324_v56, 0.0  ;;  %v4018_v23 = vsel %vm8819_vm15, %v4016_v14, %v4017_v35  ;;  %v2873_v29 = vor.u32 %v2872_v21, %v10464_v58  ;;  %v2878_v40 = vrot.slane %v2876_v30, 5  ;;  %v10544_v55 = vld [vmem:[#allocation2 + $0x98] sm:$0xf]  ;;  %v3786_v14 = vpop.permute.xlu1 %3785 }
 0x3d6   : > { %v7388_v8 = vrot.slane %v5471_v7, 9  ;;  %2303 = vst.msk [vmem:[#allocation3 + $0x248] sm:$0xf] %vm1258_vm6, %v2235_v28  ;;  %v4021_v17 = vsel %vm8819_vm15, %v4019_v34, %v4020_v39  ;;  %v5327_v20 = vadd.f32 %v10414_v49, %v5238_v37  ;;  %v2882_v47 = vrot.slane %v2880_v42, 4  ;;  %v7582_v12 = vld [vmem:[#allocation3 + $0x23c] sm:$0xf] }
 0x3d7   : > { %v10520_v48 = vmax.f32 %v10411_v27, %v7385_v60  ;;  %v5472_v5 = vrot.slane %v10504_v24, 2  ;;  %v5473_v58 = vrot.slane %v10504_v24, 4  ;;  %2495 = vst.msk [vmem:[#allocation3 + $0x248] sm:$0xf] %vm2022_vm0, %v2429_v26  ;;  %v5062_v33 = vadd.f32 %v10424_v46, %v10409_v61  ;;  %v7163_v6 = vld [vmem:[#allocation3 + $0x238] sm:$0xf]  ;;  %v10540_v62 = vpop.f32.mrf.mxu1 }
 0x3d8   : > { %v10530_v49 = vmax.f32 %v5469_v41, %v10445_v32  ;;  %v10534_v38 = vmax.f32 %v5470_v15, %v7387_v25  ;;  %v5474_v60 = vrot.slane %v10504_v24, 6  ;;  %4093 = vst.msk [vmem:[#allocation3 + $0x218] sm:$0xf] %vm1258_vm6, %v4018_v23  ;;  %v10538_v11 = vmax.f32 %v5327_v20, 0.0  ;;  %v10546_v15 = vpop.f32.mrf.mxu3  ;;  %v7165_v21 = vld [vmem:[#allocation3 + $0x24c] sm:$0xf0] }
 0x3d9   : > { %v7389_v61 = vrot.slane %v10504_v24, 9  ;;  %4094 = vst.msk [vmem:[#allocation3 + $0x22c] sm:$0xf] %vm1258_vm6, %v4021_v17  ;;  %v2874_v46 = vrot.slane %v2873_v29, 4  ;;  %v2883_v41 = vor.u32 %v2882_v47, %v2878_v40  ;;  %v2886_v32 = vshll.u32 %v2537_v44, 16  ;;  %v10574_v29 = vpop.f32.mrf.mxu0 }
 0x3da   : > { %v7390_v9 = vrot.slane %v5472_v5, 9  ;;  %v7584_v54 = vld [vmem:[#allocation3 + $0x248] sm:$0xf0]  ;;  %v5475_v10 = vrot.slane %v10538_v11, 2  ;;  %v5476_v2 = vrot.slane %v10538_v11, 4  ;;  %v5477_v26 = vrot.slane %v10538_v11, 6 }
 0x3db   : > { %v10553_v35 = vmax.f32 %v5471_v7, %v7388_v8  ;;  %v10557_v39 = vrot.slane %v5473_v58, 9  ;;  %v7164_v56 = vor.u32 %v7584_v54, %v7163_v6  ;;  %v5151_v28 = vadd.f32 %v10355_v0, %v5062_v33  ;;  %v3886_v30 = vld [vmem:[#allocation2 + $0xb4] sm:$0xe]  ;;  %v3887_v25 = vld [vmem:[#allocation2 + $0xb8] sm:$0xf]  ;;  %v3199_v0 = vpop.permute.xlu2 %3198  ;;  %v3201_v6 = vpop.permute.xlu0 %3200 }
 0x3dc   : > { %3330 = vst.msk [vmem:[#allocation3 + $0x278] sm:$0xf] %vm1258_vm6, %v3298_v50  ;;  %v10563_v34 = vrot.slane %v5474_v60, 9  ;;  %v7393_v27 = vrot.slane %v10538_v11, 9  ;;  %v10568_v7 = vrot.slane %v5475_v10, 9  ;;  %v10572_v37 = vrot.slane %v5476_v2, 9 }
 0x3dd   : > { %v7581_v42 = vld [vmem:[#allocation3 + $0x234] sm:$0xf]  ;;  %5192 = vmatmul.bf16.gmra.mxu2 %v7164_v56  ;;  %v2879_v8 = vsel %vm8682_vm12, %v2874_v46, %v2878_v40  ;;  %v2884_v17 = vrot.slane %v2883_v41, 4  ;;  %v2888_v20 = vrot.slane %v2886_v32, 5  ;;  %v2236_v44 = vrot.slane %v2234_v13, 4 }
 0x3de   : > { %v3888_v23 = vld [vmem:[#allocation2 + $0xbc] sm:$0xf]  ;;  %3850 = vst.msk [vmem:[#allocation3 + $0x278] sm:$0xf] %vm2022_vm0, %v3786_v14  ;;  %v10582_v47 = vmax.f32 %v10504_v24, %v7389_v61  ;;  %v10584_v33 = vmax.f32 %v5472_v5, %v7390_v9  ;;  %v7396_v50 = vrot.slane %v5477_v26, 9  ;;  %v2237_v40 = vrot.slane %v10544_v55, 5 }
 0x3df   : > { %2952 = vst.msk [vmem:[#allocation3 + $0x260] sm:$0xf] %vm1258_vm6, %v2879_v8  ;;  %v7157_v46 = vld [vmem:[#allocation3 + $0x244] sm:$0xf0]  ;;  %v7151_v41 = vld [vmem:[#allocation3 + $0x218] sm:$0xf]  ;;  %v2889_v36 = vsel %vm8682_vm12, %v2884_v17, %v2888_v20  ;;  %v5240_v13 = vadd.f32 %v10390_v53, %v5151_v28  ;;  %v7168_v61 = vor.u32 %v7582_v12, %v7165_v21  ;;  %v5065_v5 = vadd.f32 %v10475_v31, %v10418_v19  ;;  %v5069_v51 = vpop.f32.mrf.mxu1 }
 0x3e0   : > { %3264 = vst.msk [vmem:[#allocation3 + $0x260] sm:$0xf] %vm2022_vm0, %v3199_v0  ;;  %v2094_v32 = vld [vmem:[#allocation2 + $0x9c] sm:$0x1]  ;;  %v7580_v9 = vld [vmem:[#allocation3 + $0x228] sm:$0xf0]  ;;  %v2238_v55 = vsel %vm8819_vm15, %v2236_v44, %v2237_v40  ;;  %v7160_v54 = vor.u32 %v7581_v42, %v7157_v46  ;;  %v10599_v0 = vpop.f32.mrf.mxu2  ;;  %v5333_v12 = vpop.f32.mrf.mxu3  ;;  %v5070_v17 = vadd.f32 %v5069_v51, %v10432_v57  ;;  %v10619_v20 = vmax.f32 %v5473_v58, %v10557_v39 }
 0x3e1   : > { %2953 = vst.msk [vmem:[#allocation3 + $0x274] sm:$0xf] %vm1258_vm6, %v2889_v36  ;;  %v6872_v14 = vrot.slane %v3886_v30, 9  ;;  %v4024_v56 = vrot.slane %v3887_v25, 5  ;;  %v7152_v8 = vor.u32 %v7580_v9, %v7151_v41  ;;  %v5329_v53 = vadd.f32 %v10467_v43, %v5240_v13  ;;  %v3889_v28 = vld [vmem:[#allocation2 + $0xc0] sm:$0xf]  ;;  %v10626_v46 = vpop.f32.mrf.mxu0 }
 0x3e2   : > { %3265 = vst.msk [vmem:[#allocation3 + $0x274] sm:$0xf] %vm2022_vm0, %v3201_v6  ;;  %v5154_v19 = vadd.f32 %v10396_v3, %v5065_v5  ;;  %v4027_v31 = vrot.slane %v3888_v23, 5  ;;  %5281 = vmatmul.bf16.gmra.mxu0 %v7168_v61  ;;  %5103 = vmatmul.bf16.gmra.mxu1 %v7160_v54  ;;  %v2239_v25 = vrot.slane %v2237_v40, 4  ;;  %v2240_v42 = vrot.slane %v2094_v32, 5 }
 0x3e3   : > { %2304 = vst.msk [vmem:[#allocation3 + $0x25c] sm:$0xf] %vm1258_vm6, %v2238_v55  ;;  %v4025_v21 = vsel %vm8819_vm15, %v6872_v14, %v4024_v56  ;;  %v4026_v30 = vrot.slane %v4024_v56, 4  ;;  %7350 = vmatmul.msk.bf16.gmra.mxu3 %vm4887_vm1, %v7152_v8  ;;  %v10610_v43 = vmax.f32 %v5329_v53, 0.0  ;;  %v5067_v23 = vadd.f32 %v10540_v62, %v10428_v18  ;;  %v2433_v6 = vpop.permute.xlu2 %2432  ;;  %v3890_v61 = vld [vmem:[#allocation2 + $0xc4] sm:$0x1] }
 0x3e4   : > { %2496 = vst.msk [vmem:[#allocation3 + $0x25c] sm:$0xf] %vm2022_vm0, %v10473_v1  ;;  %v5243_v3 = vadd.f32 %v10447_v22, %v5154_v19  ;;  %v2241_v1 = vsel %vm8819_vm15, %v2239_v25, %v2240_v42  ;;  %v3297_v22 = vld [vmem:[#allocation2 + $0xbc] sm:$0xf]  ;;  %v4029_v40 = vrot.slane %v4027_v31, 4  ;;  %v10631_v18 = vmax.f32 %v5474_v60, %v10563_v34  ;;  %v3784_v60 = vpop.permute.xlu0 %3783 }
 0x3e5   : > { %v4028_v44 = vsel %vm8819_vm15, %v4026_v30, %v4027_v31  ;;  %4095 = vst.msk [vmem:[#allocation3 + $0x240] sm:$0xf] %vm1258_vm6, %v4025_v21  ;;  %v5478_v57 = vrot.slane %v10610_v43, 2  ;;  %v5479_v58 = vrot.slane %v10610_v43, 4  ;;  %v4030_v62 = vrot.slane %v3889_v28, 5 }
 0x3e6   : > { %4096 = vst.msk [vmem:[#allocation3 + $0x254] sm:$0xf] %vm1258_vm6, %v4028_v44  ;;  %v10639_v39 = vmax.f32 %v10538_v11, %v7393_v27  ;;  %v10644_v41 = vmax.f32 %v5475_v10, %v10568_v7  ;;  %v5332_v34 = vadd.f32 %v10546_v15, %v5243_v3  ;;  %v5156_v36 = vadd.f32 %v10453_v16, %v5067_v23 }
 0x3e7   : > { %v7183_v24 = vld [vmem:[#allocation3 + $0x260] sm:$0xf]  ;;  %2305 = vst.msk [vmem:[#allocation3 + $0x270] sm:$0xf] %vm1258_vm6, %v2241_v1  ;;  %v10652_v13 = vmax.f32 %v5476_v2, %v10572_v37  ;;  %v10656_v27 = vmax.f32 %v5477_v26, %v7396_v50  ;;  %v5480_v10 = vrot.slane %v10610_v43, 6  ;;  %v5159_v7 = vadd.f32 %v10515_v45, %v5070_v17  ;;  %v5071_v26 = vpop.f32.mrf.mxu1 }
 0x3e8   : > { %2497 = vst.msk [vmem:[#allocation3 + $0x270] sm:$0xf] %vm2022_vm0, %v2433_v6  ;;  %v7397_v15 = vrot.slane %v10610_v43, 9  ;;  %v5393_v16 = vmax.f32 %v5332_v34, 0.0  ;;  %v5245_v2 = vadd.f32 %v10500_v52, %v5156_v36  ;;  %v4031_v11 = vsel %vm8819_vm15, %v4029_v40, %v4030_v62  ;;  %v10675_v14 = vpop.f32.mrf.mxu2  ;;  %v5336_v31 = vpop.f32.mrf.mxu3 }
 0x3e9   : > { %v7589_v5 = vld [vmem:[#allocation3 + $0x270] sm:$0xf0]  ;;  %3329 = vst.msk [vmem:[#allocation3 + $0x264] sm:$0xf] %vm1258_vm6, %v3297_v22  ;;  %v10668_v37 = vrot.slane %v5478_v57, 9  ;;  %v10672_v45 = vrot.slane %v5479_v58, 9  ;;  %v5248_v19 = vadd.f32 %v10574_v29, %v5159_v7  ;;  %v5072_v44 = vadd.f32 %v5071_v26, %v10436_v63  ;;  %v10688_v29 = vpop.f32.mrf.mxu0 }
 0x3ea   : > { %v7184_v50 = vor.u32 %v7589_v5, %v7183_v24  ;;  %3849 = vst.msk [vmem:[#allocation3 + $0x264] sm:$0xf] %vm2022_vm0, %v3784_v60  ;;  %v4032_v32 = vrot.slane %v4030_v62, 4  ;;  %v5481_v9 = vrot.slane %v5393_v16, 2  ;;  %v5482_v55 = vrot.slane %v5393_v16, 4 }
 0x3eb   : > { %v5483_v54 = vrot.slane %v5393_v16, 6  ;;  %v7401_v52 = vrot.slane %v5393_v16, 9  ;;  %v10679_v56 = vrot.slane %v5480_v10, 9  ;;  %v5334_v8 = vadd.f32 %v5333_v12, %v5245_v2  ;;  %4097 = vst.msk [vmem:[#allocation3 + $0x268] sm:$0xf] %vm1258_vm6, %v4031_v11 }
 0x3ec   : > { %v7171_v51 = vld [vmem:[#allocation3 + $0x240] sm:$0xf]  ;;  %v4033_v53 = vrot.slane %v3890_v61, 5  ;;  %v7402_v21 = vrot.slane %v5481_v9, 9  ;;  %v7403_v30 = vrot.slane %v5482_v55, 9  ;;  %v5337_v7 = vadd.f32 %v5336_v31, %v5248_v19 }
 0x3ed   : > { %v7585_v28 = vld [vmem:[#allocation3 + $0x250] sm:$0xf0]  ;;  %v7404_v25 = vrot.slane %v5483_v54, 9  ;;  %v6069_v42 = vmax.f32 %v5393_v16, %v7401_v52  ;;  %5197 = vmatmul.bf16.gmra.mxu2 %v7184_v50  ;;  %v5394_v23 = vmax.f32 %v5334_v8, 0.0  ;;  %v7185_v63 = vld [vmem:[#allocation3 + $0x274] sm:$0xf0] }
 0x3ee   : > { %v7172_v3 = vor.u32 %v7585_v28, %v7171_v51  ;;  %v4034_v17 = vsel %vm8819_vm15, %v4032_v32, %v4033_v53  ;;  %v6070_v12 = vmax.f32 %v5481_v9, %v7402_v21  ;;  %v6071_v1 = vmax.f32 %v5482_v55, %v7403_v30 }
 0x3ef   : > { %v6072_v6 = vmax.f32 %v5483_v54, %v7404_v25  ;;  %v6165_v22 = vmax.f32 %v10520_v48, %v6069_v42  ;;  %4098 = vst.msk [vmem:[#allocation3 + $0x27c] sm:$0xf] %vm1258_vm6, %v4034_v17  ;;  %v5484_v40 = vrot.slane %v5394_v23, 2  ;;  %v5485_v62 = vrot.slane %v5394_v23, 4  ;;  %v10693_v61 = vpop.f32.mrf.mxu1  ;;  %v7586_v54 = vld [vmem:[#allocation3 + $0x25c] sm:$0xf] }
 0x3f0   : > { %v5486_v24 = vrot.slane %v5394_v23, 6  ;;  %v7405_v60 = vrot.slane %v5394_v23, 9  ;;  %v6166_v34 = vmax.f32 %v10530_v49, %v6070_v12  ;;  %v6167_v59 = vmax.f32 %v10534_v38, %v6071_v1  ;;  %v7177_v52 = vld [vmem:[#allocation3 + $0x26c] sm:$0xf0]  ;;  %v5338_v51 = vpop.f32.mrf.mxu3  ;;  %v10697_v28 = vpop.f32.mrf.mxu2 }
 0x3f1   : > { %v6168_v36 = vmax.f32 %v10553_v35, %v6072_v6  ;;  %v7406_v5 = vrot.slane %v5484_v40, 9  ;;  %v7407_v48 = vrot.slane %v5485_v62, 9  ;;  %v7587_v11 = vld [vmem:[#allocation3 + $0x264] sm:$0xf]  ;;  %v6229_v26 = vpack.c.bf16 %v6165_v22, %v6165_v22 }
 0x3f2   : > { %v7408_v16 = vrot.slane %v5486_v24, 9  ;;  %v6073_v2 = vmax.f32 %v5394_v23, %v7405_v60  ;;  %v6230_v50 = vpack.c.bf16 %v6166_v34, %v6166_v34  ;;  %v6231_v32 = vpack.c.bf16 %v6167_v59, %v6167_v59 }
 0x3f3   : > { %v6232_v9 = vpack.c.bf16 %v6168_v36, %v6168_v36  ;;  %7351 = vmatmul.msk.bf16.gmra.mxu3 %vm4887_vm1, %v7172_v3  ;;  %v6074_v49 = vmax.f32 %v5484_v40, %v7406_v5  ;;  %v6075_v55 = vmax.f32 %v5485_v62, %v7407_v48  ;;  %v7188_v31 = vor.u32 %v7587_v11, %v7185_v63 }
 0x3f4   : > { %v6076_v38 = vmax.f32 %v5486_v24, %v7408_v16  ;;  %v6169_v35 = vmax.f32 %v10582_v47, %v6073_v2  ;;  %v6358_v8 = vunpack.c.l.b16 %v6230_v50  ;;  %v6359_v53 = vunpack.c.l.b16 %v6231_v32  ;;  %v7191_v24 = vld [vmem:[#allocation3 + $0x268] sm:$0xf] }
 0x3f5   : > { %v6360_v19 = vunpack.c.l.b16 %v6232_v9  ;;  %v6170_v21 = vmax.f32 %v10584_v33, %v6074_v49  ;;  %v6171_v30 = vmax.f32 %v10619_v20, %v6075_v55  ;;  %v6357_v3 = vunpack.c.l.b16 %v6229_v26  ;;  %5286 = vmatmul.bf16.gmra.mxu0 %v7188_v31 }
 0x3f6   : > { %v6172_v25 = vmax.f32 %v10631_v18, %v6076_v38  ;;  %v6233_v42 = vpack.c.bf16 %v6169_v35, %v6169_v35  ;;  %v6440_v23 = vrot.slane %v6358_v8, 7  ;;  %v6442_v17 = vrot.slane %v6359_v53, 6  ;;  %v7590_v33 = vld [vmem:[#allocation3 + $0x278] sm:$0xf0]  ;;  %v10704_v18 = vpop.f32.mrf.mxu0 }
 0x3f7   : > { %v7180_v47 = vor.u32 %v7586_v54, %v7177_v52  ;;  %v6234_v12 = vpack.c.bf16 %v6170_v21, %v6170_v21  ;;  %v6235_v1 = vpack.c.bf16 %v6171_v30, %v6171_v30  ;;  %v6444_v62 = vrot.slane %v6360_v19, 5  ;;  %v10706_v34 = vpop.f32.mrf.mxu1 }
 0x3f8   : > { %v6236_v6 = vpack.c.bf16 %v6172_v25, %v6172_v25  ;;  %v6361_v22 = vunpack.c.l.b16 %v6233_v42  ;;  %v6441_v40 = vsel %vm6406_vm2, %v6440_v23, %v6357_v3  ;;  %v5395_v60 = vmax.f32 %v5337_v7, 0.0  ;;  %v10710_v9 = vpop.f32.mrf.mxu3  ;;  %v10716_v21 = vpop.f32.mrf.mxu2  ;;  %v11141_v3 = vld [vmem:[#allocation43_spill] sm:$0xff] }
 0x3f9   : > { %5108 = vmatmul.bf16.gmra.mxu1 %v7180_v47  ;;  %v5161_v20 = vadd.f32 %v10599_v0, %v5072_v44  ;;  %v6443_v59 = vsel %vm6409_vm3, %v6442_v17, %v6441_v40  ;;  %v6362_v36 = vunpack.c.l.b16 %v6234_v12  ;;  %v6363_v63 = vunpack.c.l.b16 %v6235_v1 }
 0x3fa   : > { %v6364_v5 = vunpack.c.l.b16 %v6236_v6  ;;  %v6445_v48 = vsel %vm6412_vm4, %v6444_v62, %v6443_v59  ;;  %v6446_v16 = vrot.slane %v6361_v22, 4  ;;  %v5487_v2 = vrot.slane %v5395_v60, 2 }
 0x3fb   : > { %v5488_v11 = vrot.slane %v5395_v60, 4  ;;  %v6448_v26 = vrot.slane %v6362_v36, 3  ;;  %v6450_v50 = vrot.slane %v6363_v63, 2  ;;  %v7192_v32 = vor.u32 %v7590_v33, %v7191_v24 }
 0x3fc   : > { %v5489_v7 = vrot.slane %v5395_v60, 6  ;;  %v6447_v0 = vsel %vm6415_vm5, %v6446_v16, %v6445_v48  ;;  %v7409_v44 = vrot.slane %v5395_v60, 9  ;;  %v7410_v49 = vrot.slane %v5487_v2, 9 }
 0x3fd   : > { %v7411_v55 = vrot.slane %v5488_v11, 9  ;;  %v6449_v38 = vsel %vm6418_vm7, %v6448_v26, %v6447_v0  ;;  %v6452_v35 = vrot.slane %v6364_v5, 1  ;;  %v5250_v52 = vadd.f32 %v10626_v46, %v5161_v20 }
 0x3fe   : > { %v7412_v54 = vrot.slane %v5489_v7, 9  ;;  %v6451_v8 = vsel %vm6421_vm8, %v6450_v50, %v6449_v38  ;;  %v6077_v53 = vmax.f32 %v5395_v60, %v7409_v44  ;;  %v6078_v19 = vmax.f32 %v5487_v2, %v7410_v49  ;;  %v10736_v62 = vpop.f32.mrf.mxu0 }
 0x3ff   : > { %v6079_v31 = vmax.f32 %v5488_v11, %v7411_v55  ;;  %v6453_v30 = vsel %vm6424_vm9, %v6452_v35, %v6451_v8  ;;  %v5339_v42 = vadd.f32 %v5338_v51, %v5250_v52  ;;  %v5075_v23 = vadd.f32 %v10693_v61, %v11141_v3  ;;  %v5079_v1 = vpop.f32.mrf.mxu1 }
 0x400   : > { %v6080_v25 = vmax.f32 %v5489_v7, %v7412_v54  ;;  %v6526_v17 = vpack.c.b16 %v6453_v30, %v6453_v30  ;;  %v6173_v47 = vmax.f32 %v10639_v39, %v6077_v53  ;;  %v6174_v46 = vmax.f32 %v10644_v41, %v6078_v19  ;;  %v5170_v55 = vpop.f32.mrf.mxu2  ;;  %v11143_v53 = vld [vmem:[#allocation28_spill] sm:$0xff] }
 0x401   : > { %v6175_v12 = vmax.f32 %v10652_v13, %v6079_v31  ;;  %v6065_v6 = vmax.f32 %v10610_v43, %v7397_v15  ;;  %v6066_v22 = vmax.f32 %v5478_v57, %v10668_v37  ;;  %v5396_v40 = vmax.f32 %v5339_v42, 0.0  ;;  %v5343_v37 = vpop.f32.mrf.mxu3 }
 0x402   : > { %v6176_v51 = vmax.f32 %v10656_v27, %v6080_v25  ;;  %v6067_v39 = vmax.f32 %v5479_v58, %v10672_v45  ;;  %6542 = vst.msk [vmem:[%s8619_s3 + $0x8] sm:$0xf] %vm1258_vm6, %v6526_v17  ;;  %v6237_v41 = vpack.c.bf16 %v6173_v47, %v6173_v47  ;;  %v6238_v13 = vpack.c.bf16 %v6174_v46, %v6174_v46 }
 0x403   : > { %v6239_v61 = vpack.c.bf16 %v6175_v12, %v6175_v12  ;;  %7352 = vmatmul.msk.bf16.gmra.mxu3 %vm4887_vm1, %v7192_v32  ;;  %v5490_v24 = vrot.slane %v5396_v40, 2  ;;  %v5491_v33 = vrot.slane %v5396_v40, 4  ;;  %v5492_v57 = vrot.slane %v5396_v40, 6 }
 0x404   : > { %v6240_v15 = vpack.c.bf16 %v6176_v51, %v6176_v51  ;;  %v6366_v27 = vunpack.c.l.b16 %v6238_v13  ;;  %v7413_v20 = vrot.slane %v5396_v40, 9  ;;  %v5164_v59 = vadd.f32 %v10675_v14, %v5075_v23  ;;  %v11142_v14 = vld [vmem:[#allocation44_spill] sm:$0xff]  ;;  %v11144_v51 = vld [vmem:[#allocation30_spill] sm:$0xff] }
 0x405   : > { %v6367_v60 = vunpack.c.l.b16 %v6239_v61  ;;  %v7414_v45 = vrot.slane %v5490_v24, 9  ;;  %v7415_v36 = vrot.slane %v5491_v33, 9  ;;  %v7416_v63 = vrot.slane %v5492_v57, 9  ;;  %v11145_v61 = vld [vmem:[#allocation29_spill] sm:$0xff] }
 0x406   : > { %v6368_v58 = vunpack.c.l.b16 %v6240_v15  ;;  %v6365_v5 = vunpack.c.l.b16 %v6237_v41  ;;  %v6454_v48 = vrot.slane %v6366_v27, 7  ;;  %v6081_v2 = vmax.f32 %v5396_v40, %v7413_v20  ;;  %v5259_v23 = vpop.f32.mrf.mxu0 }
 0x407   : > { %v6456_v16 = vrot.slane %v6367_v60, 6  ;;  %v6068_v11 = vmax.f32 %v5480_v10, %v10679_v56  ;;  %v6082_v26 = vmax.f32 %v5490_v24, %v7414_v45  ;;  %v6083_v50 = vmax.f32 %v5491_v33, %v7415_v36  ;;  %v5081_v38 = vpop.f32.mrf.mxu1 }
 0x408   : > { %v6084_v32 = vmax.f32 %v5492_v57, %v7416_v63  ;;  %v6455_v7 = vsel %vm6406_vm2, %v6454_v48, %v6365_v5  ;;  %v6458_v0 = vrot.slane %v6368_v58, 5  ;;  %v6177_v44 = vmax.f32 %v6065_v6, %v6081_v2  ;;  %v5173_v60 = vpop.f32.mrf.mxu2 }
 0x409   : > { %v5077_v49 = vadd.f32 %v10706_v34, %v11142_v14  ;;  %v6457_v35 = vsel %vm6409_vm3, %v6456_v16, %v6455_v7  ;;  %v6178_v54 = vmax.f32 %v6066_v22, %v6082_v26  ;;  %v6179_v52 = vmax.f32 %v6067_v39, %v6083_v50  ;;  %v5346_v17 = vpop.f32.mrf.mxu3 }
 0x40a   : > { %v6180_v8 = vmax.f32 %v6068_v11, %v6084_v32  ;;  %v4991_v43 = vadd.f32 %v10401_v4, %v11143_v53  ;;  %v6459_v10 = vsel %vm6412_vm4, %v6458_v0, %v6457_v35  ;;  %v6241_v56 = vpack.c.bf16 %v6177_v44, %v6177_v44  ;;  %v11146_v53 = vld [vmem:[#allocation31_spill] sm:$0xff] }
 0x40b   : > { %v5253_v19 = vadd.f32 %v10688_v29, %v5164_v59  ;;  %v6242_v31 = vpack.c.bf16 %v6178_v54, %v6178_v54  ;;  %v6243_v30 = vpack.c.bf16 %v6179_v52, %v6179_v52  ;;  %v5166_v34 = vadd.f32 %v10697_v28, %v5077_v49 }
 0x40c   : > { %v6244_v25 = vpack.c.bf16 %v6180_v8, %v6180_v8  ;;  %v6369_v42 = vunpack.c.l.b16 %v6241_v56  ;;  %v5080_v3 = vadd.f32 %v5079_v1, %v4991_v43  ;;  %v4996_v40 = vadd.f32 %v10401_v4, %v11144_v51  ;;  %v11148_v56 = vld [vmem:[#allocation33_spill] sm:$0xff] }
 0x40d   : > { %v6370_v47 = vunpack.c.l.b16 %v6242_v31  ;;  %v6371_v46 = vunpack.c.l.b16 %v6243_v30  ;;  %v5342_v22 = vadd.f32 %v10710_v9, %v5253_v19  ;;  %v5255_v13 = vadd.f32 %v10704_v18, %v5166_v34 }
 0x40e   : > { %v6372_v12 = vunpack.c.l.b16 %v6244_v25  ;;  %v6460_v6 = vrot.slane %v6369_v42, 4  ;;  %v5169_v28 = vadd.f32 %v10716_v21, %v5080_v3  ;;  %v4993_v15 = vadd.f32 %v10401_v4, %v11145_v61  ;;  %v5262_v16 = vpop.f32.mrf.mxu0 }
 0x40f   : > { %v6462_v39 = vrot.slane %v6370_v47, 3  ;;  %v6464_v29 = vrot.slane %v6371_v46, 2  ;;  %v5084_v1 = vpop.f32.mrf.mxu1  ;;  %v5397_v27 = vmax.f32 %v5342_v22, 0.0  ;;  %v5344_v59 = vadd.f32 %v5343_v37, %v5255_v13 }
 0x410   : > { %v6461_v41 = vsel %vm6415_vm5, %v6460_v6, %v6459_v10  ;;  %v6466_v33 = vrot.slane %v6372_v12, 1  ;;  %v5085_v9 = vadd.f32 %v5084_v1, %v4996_v40  ;;  %v5082_v58 = vadd.f32 %v5081_v38, %v4993_v15  ;;  %v5175_v52 = vpop.f32.mrf.mxu2 }
 0x411   : > { %v6463_v24 = vsel %vm6418_vm7, %v6462_v39, %v6461_v41  ;;  %v5258_v21 = vadd.f32 %v10736_v62, %v5169_v28  ;;  %v5348_v45 = vpop.f32.mrf.mxu3  ;;  %v5493_v63 = vrot.slane %v5397_v27, 2  ;;  %v5494_v5 = vrot.slane %v5397_v27, 4 }
 0x412   : > { %v6465_v57 = vsel %vm6421_vm8, %v6464_v29, %v6463_v24  ;;  %v5174_v36 = vadd.f32 %v5173_v60, %v5085_v9  ;;  %v5495_v48 = vrot.slane %v5397_v27, 6  ;;  %v5398_v2 = vmax.f32 %v5344_v59, 0.0 }
 0x413   : > { %v6467_v20 = vsel %vm6424_vm9, %v6466_v33, %v6465_v57  ;;  %v5171_v11 = vadd.f32 %v5170_v55, %v5082_v58  ;;  %v5347_v26 = vadd.f32 %v5346_v17, %v5258_v21  ;;  %v7417_v7 = vrot.slane %v5397_v27, 9  ;;  %v11147_v55 = vld [vmem:[#allocation32_spill] sm:$0xff] }
 0x414   : > { %v6527_v18 = vpack.c.b16 %v6467_v20, %v6467_v20  ;;  %v5263_v32 = vadd.f32 %v5262_v16, %v5174_v36  ;;  %v7418_v0 = vrot.slane %v5493_v63, 9  ;;  %v7419_v37 = vrot.slane %v5494_v5, 9 }
 0x415   : > { %v7420_v44 = vrot.slane %v5495_v48, 9  ;;  %v5496_v14 = vrot.slane %v5398_v2, 2  ;;  %v5260_v49 = vadd.f32 %v5259_v23, %v5171_v11  ;;  %v5497_v62 = vrot.slane %v5398_v2, 4 }
 0x416   : > { %6543 = vst.msk [vmem:[%s8619_s3 + $0xc] sm:$0xf] %vm1258_vm6, %v6527_v18  ;;  %v5498_v38 = vrot.slane %v5398_v2, 6  ;;  %v7421_v35 = vrot.slane %v5398_v2, 9  ;;  %v10766_v54 = vmax.f32 %v5347_v26, 0.0  ;;  %v4998_v43 = vadd.f32 %v10401_v4, %v11146_v53  ;;  %v5264_v51 = vpop.f32.mrf.mxu0 }
 0x417   : > { %v5086_v50 = vpop.f32.mrf.mxu1  ;;  %v5001_v10 = vadd.f32 %v10401_v4, %v11147_v55  ;;  %v10774_v19 = vadd.f32 %v10401_v4, %v11148_v56  ;;  %v6085_v30 = vmax.f32 %v5397_v27, %v7417_v7  ;;  %v6086_v25 = vmax.f32 %v5493_v63, %v7418_v0 }
 0x418   : > { %v6087_v42 = vmax.f32 %v5494_v5, %v7419_v37  ;;  %v6088_v34 = vmax.f32 %v5495_v48, %v7420_v44  ;;  %v7422_v3 = vrot.slane %v5496_v14, 9  ;;  %v5349_v23 = vadd.f32 %v5348_v45, %v5260_v49  ;;  %v5178_v48 = vpop.f32.mrf.mxu2 }
 0x419   : > { %v5087_v47 = vadd.f32 %v5086_v50, %v4998_v43  ;;  %v7423_v46 = vrot.slane %v5497_v62, 9  ;;  %v7424_v12 = vrot.slane %v5498_v38, 9  ;;  %v10776_v6 = vmax.f32 %v5398_v2, %v7421_v35 }
 0x41a   : > { %v5499_v22 = vrot.slane %v10766_v54, 2  ;;  %v5500_v13 = vrot.slane %v10766_v54, 4  ;;  %v5501_v28 = vrot.slane %v10766_v54, 6  ;;  %v6090_v57 = vmax.f32 %v5496_v14, %v7422_v3 }
 0x41b   : > { %v5351_v8 = vpop.f32.mrf.mxu3  ;;  %v5176_v1 = vadd.f32 %v5175_v52, %v5087_v47  ;;  %v6091_v27 = vmax.f32 %v5497_v62, %v7423_v46  ;;  %v7425_v60 = vrot.slane %v10766_v54, 9  ;;  %v6092_v36 = vmax.f32 %v5498_v38, %v7424_v12 }
 0x41c   : > { %v5352_v31 = vadd.f32 %v5351_v8, %v5263_v32  ;;  %v7426_v63 = vrot.slane %v5499_v22, 9  ;;  %v10784_v5 = vmax.f32 %v5349_v23, 0.0  ;;  %v7427_v32 = vrot.slane %v5500_v13, 9 }
 0x41d   : > { %v5265_v20 = vadd.f32 %v5264_v51, %v5176_v1  ;;  %v10790_v7 = vrot.slane %v5501_v28, 9  ;;  %v10793_v0 = vmax.f32 %v10766_v54, %v7425_v60 }
 0x41e   : > { %v5401_v17 = vmax.f32 %v5352_v31, 0.0  ;;  %v5267_v38 = vpop.f32.mrf.mxu0 }
 0x41f   : > { %v5089_v40 = vpop.f32.mrf.mxu1 }
 0x420   : > { %v5505_v39 = vrot.slane %v5401_v17, 2  ;;  %v5506_v4 = vrot.slane %v5401_v17, 4  ;;  %v5507_v29 = vrot.slane %v5401_v17, 6  ;;  %v7433_v41 = vrot.slane %v5401_v17, 9  ;;  %v5180_v60 = vpop.f32.mrf.mxu2 }
 0x421   : > { %v5090_v61 = vadd.f32 %v5089_v40, %v5001_v10 }
 0x422   : > { %v7434_v15 = vrot.slane %v5505_v39, 9  ;;  %v7435_v24 = vrot.slane %v5506_v4, 9  ;;  %v7436_v33 = vrot.slane %v5507_v29, 9  ;;  %v6101_v9 = vmax.f32 %v5401_v17, %v7433_v41 }
 0x423   : > { %v5353_v59 = vpop.f32.mrf.mxu3  ;;  %v5179_v50 = vadd.f32 %v5178_v48, %v5090_v61  ;;  %v7429_v48 = vrot.slane %v10784_v5, 9 }
 0x424   : > { %v6102_v58 = vmax.f32 %v5505_v39, %v7434_v15  ;;  %v6103_v18 = vmax.f32 %v5506_v4, %v7435_v24  ;;  %v6104_v21 = vmax.f32 %v5507_v29, %v7436_v33  ;;  %v6181_v45 = vmax.f32 %v6085_v30, %v6101_v9 }
 0x425   : > { %v5354_v16 = vadd.f32 %v5353_v59, %v5265_v20  ;;  %v5268_v31 = vadd.f32 %v5267_v38, %v5179_v50  ;;  %v5502_v39 = vrot.slane %v10784_v5, 2  ;;  %v5503_v4 = vrot.slane %v10784_v5, 4 }
 0x426   : > { %v6182_v2 = vmax.f32 %v6086_v25, %v6102_v58  ;;  %v6183_v11 = vmax.f32 %v6087_v42, %v6103_v18  ;;  %v6184_v26 = vmax.f32 %v6088_v34, %v6104_v21  ;;  %v6245_v44 = vpack.c.bf16 %v6181_v45, %v6181_v45  ;;  %v5269_v50 = vpop.f32.mrf.mxu0 }
 0x427   : > { %v5402_v37 = vmax.f32 %v5354_v16, 0.0  ;;  %v5091_v43 = vpop.f32.mrf.mxu1  ;;  %v6094_v45 = vmax.f32 %v5499_v22, %v7426_v63 }
 0x428   : > { %v6246_v14 = vpack.c.bf16 %v6182_v2, %v6182_v2  ;;  %v6247_v49 = vpack.c.bf16 %v6183_v11, %v6183_v11  ;;  %v6248_v62 = vpack.c.bf16 %v6184_v26, %v6184_v26  ;;  %v6373_v3 = vunpack.c.l.b16 %v6245_v44 }
 0x429   : > { %v5508_v35 = vrot.slane %v5402_v37, 2  ;;  %v5509_v52 = vrot.slane %v5402_v37, 4  ;;  %v5510_v8 = vrot.slane %v5402_v37, 6  ;;  %v7437_v53 = vrot.slane %v5402_v37, 9 }
 0x42a   : > { %v6374_v55 = vunpack.c.l.b16 %v6246_v14  ;;  %v6375_v10 = vunpack.c.l.b16 %v6247_v49  ;;  %v6376_v56 = vunpack.c.l.b16 %v6248_v62  ;;  %v5092_v47 = vadd.f32 %v5091_v43, %v10774_v19 }
 0x42b   : > { %v7438_v30 = vrot.slane %v5508_v35, 9  ;;  %v7439_v25 = vrot.slane %v5509_v52, 9  ;;  %v7440_v42 = vrot.slane %v5510_v8, 9  ;;  %v6105_v34 = vmax.f32 %v5402_v37, %v7437_v53 }
 0x42c   : > { %v6468_v23 = vrot.slane %v6374_v55, 7  ;;  %v6470_v17 = vrot.slane %v6375_v10, 6  ;;  %v6472_v41 = vrot.slane %v6376_v56, 5  ;;  %v5504_v19 = vrot.slane %v10784_v5, 6 }
 0x42d   : > { %v6106_v46 = vmax.f32 %v5508_v35, %v7438_v30  ;;  %v6107_v12 = vmax.f32 %v5509_v52, %v7439_v25  ;;  %v6108_v51 = vmax.f32 %v5510_v8, %v7440_v42  ;;  %v6185_v40 = vmax.f32 %v10776_v6, %v6105_v34 }
 0x42e   : > { %v6469_v29 = vsel %vm6406_vm2, %v6468_v23, %v6373_v3  ;;  %v5181_v21 = vadd.f32 %v5180_v60, %v5092_v47  ;;  %v7430_v25 = vrot.slane %v5502_v39, 9  ;;  %v7432_v47 = vrot.slane %v5504_v19, 9 }
 0x42f   : > { %v6471_v1 = vsel %vm6409_vm3, %v6470_v17, %v6469_v29  ;;  %v6186_v61 = vmax.f32 %v6090_v57, %v6106_v46  ;;  %v6187_v15 = vmax.f32 %v6091_v27, %v6107_v12  ;;  %v6188_v24 = vmax.f32 %v6092_v36, %v6108_v51 }
 0x430   : > { %v5356_v33 = vpop.f32.mrf.mxu3  ;;  %v6473_v9 = vsel %vm6412_vm4, %v6472_v41, %v6471_v1  ;;  %v6249_v20 = vpack.c.bf16 %v6185_v40, %v6185_v40  ;;  %v6095_v36 = vmax.f32 %v5500_v13, %v7427_v32  ;;  %v5270_v35 = vadd.f32 %v5269_v50, %v5181_v21 }
 0x431   : > { %v5357_v6 = vadd.f32 %v5356_v33, %v5268_v31  ;;  %v6250_v59 = vpack.c.bf16 %v6186_v61, %v6186_v61  ;;  %v6251_v58 = vpack.c.bf16 %v6187_v15, %v6187_v15  ;;  %v6252_v18 = vpack.c.bf16 %v6188_v24, %v6188_v24  ;;  %v10829_v61 = vpop.f32.mrf.mxu2 }
 0x432   : > { %v6377_v57 = vunpack.c.l.b16 %v6249_v20  ;;  %v6096_v13 = vmax.f32 %v5501_v28, %v10790_v7  ;;  %v7431_v17 = vrot.slane %v5503_v4, 9  ;;  %v6097_v46 = vmax.f32 %v10784_v5, %v7429_v48 }
 0x433   : > { %v5403_v27 = vmax.f32 %v5357_v6, 0.0  ;;  %v6378_v16 = vunpack.c.l.b16 %v6250_v59  ;;  %v6379_v2 = vunpack.c.l.b16 %v6251_v58  ;;  %v6380_v11 = vunpack.c.l.b16 %v6252_v18 }
 0x434   : > { %v6474_v26 = vrot.slane %v6377_v57, 4  ;;  %v6098_v1 = vmax.f32 %v5502_v39, %v7430_v25  ;;  %v6099_v59 = vmax.f32 %v5503_v4, %v7431_v17  ;;  %v7783_v17 = vld [vmem:[%s11119_s6] ss:$0 sm:$0xff] }
 0x435   : > { %v5511_v37 = vrot.slane %v5403_v27, 2  ;;  %v5512_v44 = vrot.slane %v5403_v27, 4  ;;  %v5513_v14 = vrot.slane %v5403_v27, 6  ;;  %v6476_v49 = vrot.slane %v6378_v16, 3 }
 0x436   : > { %v6478_v62 = vrot.slane %v6379_v2, 2  ;;  %v7441_v38 = vrot.slane %v5403_v27, 9  ;;  %v6475_v22 = vsel %vm6415_vm5, %v6474_v26, %v6473_v9  ;;  %v6480_v53 = vrot.slane %v6380_v11, 1 }
 0x437   : > { %v7442_v63 = vrot.slane %v5511_v37, 9  ;;  %v7443_v52 = vrot.slane %v5512_v44, 9  ;;  %v7444_v8 = vrot.slane %v5513_v14, 9  ;;  %v6477_v32 = vsel %vm6418_vm7, %v6476_v49, %v6475_v22 }
 0x438   : > { %v6109_v43 = vmax.f32 %v5403_v27, %v7441_v38  ;;  %v5358_v55 = vpop.f32.mrf.mxu3  ;;  %v6479_v10 = vsel %vm6421_vm8, %v6478_v62, %v6477_v32  ;;  %v5272_v27 = vpop.f32.mrf.mxu0 }
 0x439   : > { %v6110_v56 = vmax.f32 %v5511_v37, %v7442_v63  ;;  %v6111_v31 = vmax.f32 %v5512_v44, %v7443_v52  ;;  %v6112_v30 = vmax.f32 %v5513_v14, %v7444_v8  ;;  %v6481_v42 = vsel %vm6424_vm9, %v6480_v53, %v6479_v10  ;;  %v5185_v52 = vpop.f32.mrf.mxu2 }
 0x43a   : > { %v6189_v34 = vmax.f32 %v10793_v0, %v6109_v43  ;;  %v5359_v54 = vadd.f32 %v5358_v55, %v5270_v35  ;;  %v6528_v28 = vpack.c.b16 %v6481_v42, %v6481_v42  ;;  %v10823_v51 = vpop.f32.mrf.mxu1 }
 0x43b   : > { %v6190_v7 = vmax.f32 %v6094_v45, %v6110_v56  ;;  %v6191_v3 = vmax.f32 %v6095_v36, %v6111_v31  ;;  %v6192_v23 = vmax.f32 %v6096_v13, %v6112_v30  ;;  %v6100_v36 = vmax.f32 %v5504_v19, %v7432_v47  ;;  %v11149_v47 = vld [vmem:[#allocation34_spill] sm:$0xff] }
 0x43c   : > { %v5404_v12 = vmax.f32 %v5359_v54, 0.0  ;;  %6544 = vst.msk [vmem:[%s8619_s3 + $0x10] sm:$0xf] %vm1258_vm6, %v6528_v28  ;;  %v6253_v40 = vpack.c.bf16 %v6189_v34, %v6189_v34 }
 0x43d   : > { %v6254_v0 = vpack.c.bf16 %v6190_v7, %v6190_v7  ;;  %v6255_v29 = vpack.c.bf16 %v6191_v3, %v6191_v3  ;;  %v6256_v41 = vpack.c.bf16 %v6192_v23, %v6192_v23 }
 0x43e   : > { %v5514_v15 = vrot.slane %v5404_v12, 2  ;;  %v5515_v24 = vrot.slane %v5404_v12, 4  ;;  %v5516_v33 = vrot.slane %v5404_v12, 6  ;;  %v7445_v6 = vrot.slane %v5404_v12, 9 }
 0x43f   : > { %v6382_v9 = vunpack.c.l.b16 %v6254_v0  ;;  %v6383_v60 = vunpack.c.l.b16 %v6255_v29  ;;  %v6384_v20 = vunpack.c.l.b16 %v6256_v41  ;;  %v6381_v45 = vunpack.c.l.b16 %v6253_v40 }
 0x440   : > { %v7446_v58 = vrot.slane %v5514_v15, 9  ;;  %v7447_v18 = vrot.slane %v5515_v24, 9  ;;  %v7448_v21 = vrot.slane %v5516_v33, 9  ;;  %v6113_v39 = vmax.f32 %v5404_v12, %v7445_v6  ;;  %v5274_v56 = vpop.f32.mrf.mxu0  ;;  %v11150_v12 = vld [vmem:[#allocation35_spill] sm:$0xff] }
 0x441   : > { %v6482_v48 = vrot.slane %v6382_v9, 7  ;;  %v6484_v57 = vrot.slane %v6383_v60, 6  ;;  %v6486_v50 = vrot.slane %v6384_v20, 5  ;;  %v5008_v40 = vadd.f32 %v7783_v17, %v11150_v12 }
 0x442   : > { %v6114_v16 = vmax.f32 %v5514_v15, %v7446_v58  ;;  %v6115_v2 = vmax.f32 %v5515_v24, %v7447_v18  ;;  %v6116_v11 = vmax.f32 %v5516_v33, %v7448_v21  ;;  %v6193_v37 = vmax.f32 %v6097_v46, %v6113_v39  ;;  %v5096_v5 = vpop.f32.mrf.mxu1  ;;  %v11151_v15 = vld [vmem:[#allocation36_spill] sm:$0xff] }
 0x443   : > { %v6483_v26 = vsel %vm6406_vm2, %v6482_v48, %v6381_v45  ;;  %v5006_v46 = vadd.f32 %v7783_v17, %v11149_v47  ;;  %v5011_v24 = vadd.f32 %v7783_v17, %v11151_v15 }
 0x444   : > { %v6485_v4 = vsel %vm6409_vm3, %v6484_v57, %v6483_v26  ;;  %v6194_v44 = vmax.f32 %v6098_v1, %v6114_v16  ;;  %v6195_v14 = vmax.f32 %v6099_v59, %v6115_v2  ;;  %v6196_v49 = vmax.f32 %v6100_v36, %v6116_v11  ;;  %v11152_v57 = vld [vmem:[#allocation37_spill] sm:$0xff]  ;;  %v11153_v36 = vld [vmem:[#allocation38_spill] sm:$0xff] }
 0x445   : > { %v6487_v62 = vsel %vm6412_vm4, %v6486_v50, %v6485_v4  ;;  %v6257_v38 = vpack.c.bf16 %v6193_v37, %v6193_v37  ;;  %v5095_v0 = vadd.f32 %v10823_v51, %v5006_v46  ;;  %v5097_v1 = vadd.f32 %v5096_v5, %v5008_v40 }
 0x446   : > { %v6258_v35 = vpack.c.bf16 %v6194_v44, %v6194_v44  ;;  %v6259_v22 = vpack.c.bf16 %v6195_v14, %v6195_v14  ;;  %v6260_v63 = vpack.c.bf16 %v6196_v49, %v6196_v49  ;;  %v5013_v39 = vadd.f32 %v7783_v17, %v11152_v57 }
 0x447   : > { %v6385_v19 = vunpack.c.l.b16 %v6257_v38  ;;  %v5188_v28 = vpop.f32.mrf.mxu2  ;;  %v5184_v33 = vadd.f32 %v10829_v61, %v5095_v0  ;;  %v5186_v20 = vadd.f32 %v5185_v52, %v5097_v1  ;;  %v5016_v16 = vadd.f32 %v7783_v17, %v11153_v36  ;;  %v11154_v52 = vld [vmem:[#allocation39_spill] sm:$0xff] }
 0x448   : > { %v6386_v8 = vunpack.c.l.b16 %v6258_v35  ;;  %v6387_v13 = vunpack.c.l.b16 %v6259_v22  ;;  %v6388_v32 = vunpack.c.l.b16 %v6260_v63 }
 0x449   : > { %v6488_v53 = vrot.slane %v6385_v19, 4  ;;  %v5273_v59 = vadd.f32 %v5272_v27, %v5184_v33  ;;  %v5275_v18 = vadd.f32 %v5274_v56, %v5186_v20 }
 0x44a   : > { %v6490_v43 = vrot.slane %v6386_v8, 3  ;;  %v6492_v55 = vrot.slane %v6387_v13, 2  ;;  %v6494_v30 = vrot.slane %v6388_v32, 1  ;;  %v5018_v8 = vadd.f32 %v7783_v17, %v11154_v52 }
 0x44b   : > { %v6489_v10 = vsel %vm6415_vm5, %v6488_v53, %v6487_v62 }
 0x44c   : > { %v6491_v31 = vsel %vm6418_vm7, %v6490_v43, %v6489_v10 }
 0x44d   : > { %v6493_v25 = vsel %vm6421_vm8, %v6492_v55, %v6491_v31 }
 0x44e   : > { %v6495_v42 = vsel %vm6424_vm9, %v6494_v30, %v6493_v25  ;;  %v11155_v30 = vld [vmem:[#allocation40_spill] sm:$0xff] }
 0x44f   : > { %v6529_v34 = vpack.c.b16 %v6495_v42, %v6495_v42  ;;  %v5099_v54 = vpop.f32.mrf.mxu1  ;;  %v5361_v7 = vpop.f32.mrf.mxu3  ;;  %v5021_v25 = vadd.f32 %v7783_v17, %v11155_v30 }
 0x450   : > { %v5277_v3 = vpop.f32.mrf.mxu0  ;;  %v5190_v29 = vpop.f32.mrf.mxu2  ;;  %v5100_v60 = vadd.f32 %v5099_v54, %v5011_v24  ;;  %v5362_v48 = vadd.f32 %v5361_v7, %v5273_v59  ;;  %v11156_v54 = vld [vmem:[#allocation42_spill] sm:$0xff] }
 0x451   : > { %6545 = vst.msk [vmem:[%s8619_s3 + $0x14] sm:$0xf] %vm1258_vm6, %v6529_v34 }
 0x452   : > { %v5189_v58 = vadd.f32 %v5188_v28, %v5100_v60  ;;  %v5405_v50 = vmax.f32 %v5362_v48, 0.0  ;;  %v5023_v28 = vadd.f32 %v7783_v17, %v11156_v54 }
 0x454   : > { %v5278_v51 = vadd.f32 %v5277_v3, %v5189_v58  ;;  %v5517_v49 = vrot.slane %v5405_v50, 2  ;;  %v5518_v62 = vrot.slane %v5405_v50, 4  ;;  %v5519_v38 = vrot.slane %v5405_v50, 6 }
 0x455   : > { %v7449_v13 = vrot.slane %v5405_v50, 9 }
 0x456   : > { %v7450_v43 = vrot.slane %v5517_v49, 9  ;;  %v7451_v55 = vrot.slane %v5518_v62, 9  ;;  %v7452_v10 = vrot.slane %v5519_v38, 9 }
 0x457   : > { %v5101_v23 = vpop.f32.mrf.mxu1  ;;  %v5363_v41 = vpop.f32.mrf.mxu3  ;;  %v6117_v46 = vmax.f32 %v5405_v50, %v7449_v13 }
 0x458   : > { %v5279_v9 = vpop.f32.mrf.mxu0  ;;  %v5364_v2 = vadd.f32 %v5363_v41, %v5275_v18  ;;  %v5102_v26 = vadd.f32 %v5101_v23, %v5013_v39  ;;  %v6118_v41 = vmax.f32 %v5517_v49, %v7450_v43  ;;  %v6119_v1 = vmax.f32 %v5518_v62, %v7451_v55 }
 0x459   : > { %v6120_v15 = vmax.f32 %v5519_v38, %v7452_v10 }
 0x45a   : > { %v5406_v44 = vmax.f32 %v5364_v2, 0.0  ;;  %v5191_v14 = vadd.f32 %v5190_v29, %v5102_v26 }
 0x45c   : > { %v5520_v5 = vrot.slane %v5406_v44, 2  ;;  %v5521_v19 = vrot.slane %v5406_v44, 4  ;;  %v5522_v32 = vrot.slane %v5406_v44, 6  ;;  %v5280_v53 = vadd.f32 %v5279_v9, %v5191_v14 }
 0x45d   : > { %v7453_v7 = vrot.slane %v5406_v44, 9 }
 0x45e   : > { %v7454_v3 = vrot.slane %v5520_v5, 9  ;;  %v7455_v23 = vrot.slane %v5521_v19, 9  ;;  %v7456_v12 = vrot.slane %v5522_v32, 9 }
 0x45f   : > { %v5104_v6 = vpop.f32.mrf.mxu1  ;;  %v10863_v20 = vmax.f32 %v5406_v44, %v7453_v7 }
 0x460   : > { %v5193_v21 = vpop.f32.mrf.mxu2  ;;  %v5282_v11 = vpop.f32.mrf.mxu0  ;;  %v5105_v61 = vadd.f32 %v5104_v6, %v5016_v16  ;;  %v10865_v6 = vmax.f32 %v5520_v5, %v7454_v3  ;;  %v10867_v59 = vmax.f32 %v5521_v19, %v7455_v23  ;;  %v10869_v18 = vmax.f32 %v5522_v32, %v7456_v12 }
 0x462   : > { %v5194_v35 = vadd.f32 %v5193_v21, %v5105_v61 }
 0x464   : > { %v5283_v31 = vadd.f32 %v5282_v11, %v5194_v35 }
 0x466   : > { %v5366_v45 = vpop.f32.mrf.mxu3 }
 0x467   : > { %v5106_v37 = vpop.f32.mrf.mxu1  ;;  %v5367_v4 = vadd.f32 %v5366_v45, %v5278_v51 }
 0x468   : > { %v5195_v63 = vpop.f32.mrf.mxu2  ;;  %v5284_v56 = vpop.f32.mrf.mxu0  ;;  %v5107_v34 = vadd.f32 %v5106_v37, %v5018_v8 }
 0x469   : > { %v10854_v22 = vmax.f32 %v5367_v4, 0.0 }
 0x46a   : > { %v5196_v17 = vadd.f32 %v5195_v63, %v5107_v34 }
 0x46b   : > { %v5523_v42 = vrot.slane %v10854_v22, 2  ;;  %v5524_v40 = vrot.slane %v10854_v22, 4  ;;  %v5525_v33 = vrot.slane %v10854_v22, 6  ;;  %v7457_v9 = vrot.slane %v10854_v22, 9 }
 0x46c   : > { %v5285_v50 = vadd.f32 %v5284_v56, %v5196_v17 }
 0x46d   : > { %v7458_v60 = vrot.slane %v5523_v42, 9  ;;  %v7459_v21 = vrot.slane %v5524_v40, 9  ;;  %v7460_v2 = vrot.slane %v5525_v33, 9  ;;  %v10874_v11 = vmax.f32 %v10854_v22, %v7457_v9 }
 0x46e   : > { %v5368_v27 = vpop.f32.mrf.mxu3 }
 0x46f   : > { %v5369_v0 = vadd.f32 %v5368_v27, %v5280_v53  ;;  %v10876_v26 = vmax.f32 %v5523_v42, %v7458_v60  ;;  %v10878_v27 = vmax.f32 %v5524_v40, %v7459_v21  ;;  %v10882_v8 = vmax.f32 %v5525_v33, %v7460_v2 }
 0x470   : > { %v5198_v48 = vpop.f32.mrf.mxu2 }
 0x471   : > { %v10871_v45 = vmax.f32 %v5369_v0, 0.0 }
 0x472   : > { %v5287_v14 = vpop.f32.mrf.mxu0 }
 0x473   : > { %v5526_v49 = vrot.slane %v10871_v45, 2  ;;  %v5527_v62 = vrot.slane %v10871_v45, 4  ;;  %v5528_v13 = vrot.slane %v10871_v45, 6  ;;  %v7461_v32 = vrot.slane %v10871_v45, 9 }
 0x475   : > { %v10892_v30 = vrot.slane %v5527_v62, 9 }
 0x476   : > { %v5109_v47 = vpop.f32.mrf.mxu1  ;;  %v5371_v29 = vpop.f32.mrf.mxu3 }
 0x477   : > { %v5372_v24 = vadd.f32 %v5371_v29, %v5283_v31  ;;  %v5110_v57 = vadd.f32 %v5109_v47, %v5021_v25  ;;  %v10888_v31 = vrot.slane %v5526_v49, 9 }
 0x478   : > { %v5200_v23 = vpop.f32.mrf.mxu2 }
 0x479   : > { %v5409_v58 = vmax.f32 %v5372_v24, 0.0  ;;  %v5199_v35 = vadd.f32 %v5198_v48, %v5110_v57 }
 0x47b   : > { %v5529_v39 = vrot.slane %v5409_v58, 2  ;;  %v5530_v51 = vrot.slane %v5409_v58, 4  ;;  %v5531_v36 = vrot.slane %v5409_v58, 6  ;;  %v7465_v16 = vrot.slane %v5409_v58, 9 }
 0x47c   : > { %v5288_v42 = vadd.f32 %v5287_v14, %v5199_v35 }
 0x47d   : > { %v7466_v61 = vrot.slane %v5529_v39, 9  ;;  %v7467_v37 = vrot.slane %v5530_v51, 9  ;;  %v7468_v4 = vrot.slane %v5531_v36, 9  ;;  %v6133_v44 = vmax.f32 %v5409_v58, %v7465_v16 }
 0x47e   : > { %v5373_v38 = vpop.f32.mrf.mxu3  ;;  %v5111_v63 = vpop.f32.mrf.mxu1 }
 0x47f   : > { %v6134_v5 = vmax.f32 %v5529_v39, %v7466_v61  ;;  %v6135_v22 = vmax.f32 %v5530_v51, %v7467_v37  ;;  %v6136_v19 = vmax.f32 %v5531_v36, %v7468_v4  ;;  %v6197_v52 = vmax.f32 %v6117_v46, %v6133_v44  ;;  %v5289_v36 = vpop.f32.mrf.mxu0 }
 0x480   : > { %v5374_v53 = vadd.f32 %v5373_v38, %v5285_v50  ;;  %v5112_v56 = vadd.f32 %v5111_v63, %v5023_v28 }
 0x481   : > { %v6198_v43 = vmax.f32 %v6118_v41, %v6134_v5  ;;  %v6199_v55 = vmax.f32 %v6119_v1, %v6135_v22  ;;  %v6200_v10 = vmax.f32 %v6120_v15, %v6136_v19  ;;  %v6261_v34 = vpack.c.bf16 %v6197_v52, %v6197_v52 }
 0x482   : > { %v5410_v25 = vmax.f32 %v5374_v53, 0.0  ;;  %v5201_v41 = vadd.f32 %v5200_v23, %v5112_v56 }
 0x483   : > { %v6262_v54 = vpack.c.bf16 %v6198_v43, %v6198_v43  ;;  %v6263_v7 = vpack.c.bf16 %v6199_v55, %v6199_v55  ;;  %v6264_v3 = vpack.c.bf16 %v6200_v10, %v6200_v10  ;;  %v6389_v60 = vunpack.c.l.b16 %v6261_v34 }
 0x484   : > { %v5532_v47 = vrot.slane %v5410_v25, 2  ;;  %v5533_v46 = vrot.slane %v5410_v25, 4  ;;  %v5534_v12 = vrot.slane %v5410_v25, 6  ;;  %v7469_v40 = vrot.slane %v5410_v25, 9 }
 0x485   : > { %v6390_v28 = vunpack.c.l.b16 %v6262_v54  ;;  %v6391_v0 = vunpack.c.l.b16 %v6263_v7  ;;  %v6392_v29 = vunpack.c.l.b16 %v6264_v3  ;;  %v5290_v61 = vadd.f32 %v5289_v36, %v5201_v41 }
 0x486   : > { %v7470_v1 = vrot.slane %v5532_v47, 9  ;;  %v7471_v15 = vrot.slane %v5533_v46, 9  ;;  %v7472_v24 = vrot.slane %v5534_v12, 9  ;;  %v6137_v33 = vmax.f32 %v5410_v25, %v7469_v40  ;;  %v5376_v9 = vpop.f32.mrf.mxu3 }
 0x487   : > { %v6496_v17 = vrot.slane %v6390_v28, 7  ;;  %v6498_v58 = vrot.slane %v6391_v0, 6  ;;  %v5377_v21 = vadd.f32 %v5376_v9, %v5288_v42  ;;  %v6500_v2 = vrot.slane %v6392_v29, 5 }
 0x488   : > { %v6138_v48 = vmax.f32 %v5532_v47, %v7470_v1  ;;  %v6139_v57 = vmax.f32 %v5533_v46, %v7471_v15  ;;  %v6140_v39 = vmax.f32 %v5534_v12, %v7472_v24  ;;  %v6201_v51 = vmax.f32 %v10863_v20, %v6137_v33 }
 0x489   : > { %v6497_v16 = vsel %vm6406_vm2, %v6496_v17, %v6389_v60  ;;  %v5411_v50 = vmax.f32 %v5377_v21, 0.0  ;;  %v7464_v3 = vrot.slane %v5528_v13, 9 }
 0x48a   : > { %v6499_v37 = vsel %vm6409_vm3, %v6498_v58, %v6497_v16  ;;  %v6202_v4 = vmax.f32 %v10865_v6, %v6138_v48  ;;  %v6203_v44 = vmax.f32 %v10867_v59, %v6139_v57  ;;  %v6204_v14 = vmax.f32 %v10869_v18, %v6140_v39 }
 0x48b   : > { %v6501_v38 = vsel %vm6412_vm4, %v6500_v2, %v6499_v37  ;;  %v6265_v35 = vpack.c.bf16 %v6201_v51, %v6201_v51  ;;  %v5535_v63 = vrot.slane %v5411_v50, 2  ;;  %v5536_v5 = vrot.slane %v5411_v50, 4 }
 0x48c   : > { %v6266_v20 = vpack.c.bf16 %v6202_v4, %v6202_v4  ;;  %v6267_v22 = vpack.c.bf16 %v6203_v44, %v6203_v44  ;;  %v6268_v19 = vpack.c.bf16 %v6204_v14, %v6204_v14  ;;  %v5537_v52 = vrot.slane %v5411_v50, 6 }
 0x48d   : > { %v6393_v53 = vunpack.c.l.b16 %v6265_v35  ;;  %v7473_v43 = vrot.slane %v5411_v50, 9  ;;  %v7474_v55 = vrot.slane %v5535_v63, 9  ;;  %v7475_v10 = vrot.slane %v5536_v5, 9 }
 0x48e   : > { %v6394_v56 = vunpack.c.l.b16 %v6266_v20  ;;  %v6395_v25 = vunpack.c.l.b16 %v6267_v22  ;;  %v6396_v6 = vunpack.c.l.b16 %v6268_v19  ;;  %v7476_v42 = vrot.slane %v5537_v52, 9  ;;  %v5378_v7 = vpop.f32.mrf.mxu3 }
 0x48f   : > { %v6502_v59 = vrot.slane %v6393_v53, 4  ;;  %v6141_v34 = vmax.f32 %v5411_v50, %v7473_v43  ;;  %v6142_v18 = vmax.f32 %v5535_v63, %v7474_v55  ;;  %v6143_v54 = vmax.f32 %v5536_v5, %v7475_v10 }
 0x490   : > { %v6504_v23 = vrot.slane %v6394_v56, 3  ;;  %v6506_v47 = vrot.slane %v6395_v25, 2  ;;  %v6144_v46 = vmax.f32 %v5537_v52, %v7476_v42  ;;  %v6508_v41 = vrot.slane %v6396_v6, 1 }
 0x491   : > { %v6503_v12 = vsel %vm6415_vm5, %v6502_v59, %v6501_v38  ;;  %v6205_v40 = vmax.f32 %v10874_v11, %v6141_v34  ;;  %v6206_v28 = vmax.f32 %v10876_v26, %v6142_v18  ;;  %v6207_v0 = vmax.f32 %v10878_v27, %v6143_v54 }
 0x492   : > { %v6505_v29 = vsel %vm6418_vm7, %v6504_v23, %v6503_v12  ;;  %v6208_v1 = vmax.f32 %v10882_v8, %v6144_v46  ;;  %v5379_v15 = vadd.f32 %v5378_v7, %v5290_v61  ;;  %v6129_v11 = vmax.f32 %v10871_v45, %v7461_v32 }
 0x493   : > { %v6507_v24 = vsel %vm6421_vm8, %v6506_v47, %v6505_v29  ;;  %v6269_v33 = vpack.c.bf16 %v6205_v40, %v6205_v40  ;;  %v6270_v9 = vpack.c.bf16 %v6206_v28, %v6206_v28  ;;  %v6271_v60 = vpack.c.bf16 %v6207_v0, %v6207_v0 }
 0x494   : > { %v6509_v26 = vsel %vm6424_vm9, %v6508_v41, %v6507_v24  ;;  %v6272_v17 = vpack.c.bf16 %v6208_v1, %v6208_v1  ;;  %v5412_v27 = vmax.f32 %v5379_v15, 0.0  ;;  %v6130_v58 = vmax.f32 %v5526_v49, %v10888_v31 }
 0x495   : > { %v6530_v8 = vpack.c.b16 %v6509_v26, %v6509_v26  ;;  %v6398_v21 = vunpack.c.l.b16 %v6270_v9  ;;  %v6399_v48 = vunpack.c.l.b16 %v6271_v60  ;;  %v6397_v32 = vunpack.c.l.b16 %v6269_v33 }
 0x496   : > { %v6400_v57 = vunpack.c.l.b16 %v6272_v17  ;;  %v5538_v39 = vrot.slane %v5412_v27, 2  ;;  %v5539_v51 = vrot.slane %v5412_v27, 4  ;;  %v5540_v36 = vrot.slane %v5412_v27, 6 }
 0x497   : > { %6546 = vst.msk [vmem:[%s8619_s3 + $0x18] sm:$0xf] %vm1258_vm6, %v6530_v8  ;;  %v6510_v16 = vrot.slane %v6398_v21, 7  ;;  %v6512_v2 = vrot.slane %v6399_v48, 6  ;;  %v7477_v50 = vrot.slane %v5412_v27, 9  ;;  %v6131_v61 = vmax.f32 %v5527_v62, %v10892_v30 }
 0x498   : > { %v7478_v49 = vrot.slane %v5538_v39, 9  ;;  %v7479_v31 = vrot.slane %v5539_v51, 9  ;;  %v7480_v37 = vrot.slane %v5540_v36, 9  ;;  %v6132_v4 = vmax.f32 %v5528_v13, %v7464_v3 }
 0x499   : > { %v6511_v44 = vsel %vm6406_vm2, %v6510_v16, %v6397_v32  ;;  %v6514_v14 = vrot.slane %v6400_v57, 5  ;;  %v6145_v38 = vmax.f32 %v5412_v27, %v7477_v50 }
 0x49a   : > { %v6513_v35 = vsel %vm6409_vm3, %v6512_v2, %v6511_v44  ;;  %v6146_v63 = vmax.f32 %v5538_v39, %v7478_v49  ;;  %v6147_v5 = vmax.f32 %v5539_v51, %v7479_v31  ;;  %v6148_v20 = vmax.f32 %v5540_v36, %v7480_v37 }
 0x49b   : > { %v6515_v22 = vsel %vm6412_vm4, %v6514_v14, %v6513_v35  ;;  %v6209_v62 = vmax.f32 %v6129_v11, %v6145_v38 }
 0x49c   : > { %v6210_v30 = vmax.f32 %v6130_v58, %v6146_v63  ;;  %v6211_v19 = vmax.f32 %v6131_v61, %v6147_v5  ;;  %v6212_v52 = vmax.f32 %v6132_v4, %v6148_v20 }
 0x49d   : > { %v6273_v53 = vpack.c.bf16 %v6209_v62, %v6209_v62 }
 0x49e   : > { %v6274_v45 = vpack.c.bf16 %v6210_v30, %v6210_v30  ;;  %v6275_v13 = vpack.c.bf16 %v6211_v19, %v6211_v19  ;;  %v6276_v43 = vpack.c.bf16 %v6212_v52, %v6212_v52 }
 0x49f   : > { %v6401_v55 = vunpack.c.l.b16 %v6273_v53 }
 0x4a0   : > { %v6402_v10 = vunpack.c.l.b16 %v6274_v45  ;;  %v6403_v56 = vunpack.c.l.b16 %v6275_v13  ;;  %v6404_v25 = vunpack.c.l.b16 %v6276_v43 }
 0x4a1   : > { %v6516_v6 = vrot.slane %v6401_v55, 4 }
 0x4a2   : > { %v6518_v42 = vrot.slane %v6402_v10, 3  ;;  %v6520_v59 = vrot.slane %v6403_v56, 2  ;;  %v6522_v54 = vrot.slane %v6404_v25, 1 }
 0x4a3   : > { %v6517_v34 = vsel %vm6415_vm5, %v6516_v6, %v6515_v22 }
 0x4a4   : > { %v6519_v18 = vsel %vm6418_vm7, %v6518_v42, %v6517_v34 }
 0x4a5   : > { %v6521_v7 = vsel %vm6421_vm8, %v6520_v59, %v6519_v18 }
 0x4a6   : > { %v6523_v3 = vsel %vm6424_vm9, %v6522_v54, %v6521_v7 }
 0x4a7   : > { %v6531_v23 = vpack.c.b16 %v6523_v3, %v6523_v3 }
 0x4a9   : > { %6547 = vst.msk [vmem:[%s8619_s3 + $0x1c] sm:$0xf] %vm1258_vm6, %v6531_v23 }
 0x4aa   : > { %7901 = shalt.err (!%p7898_p1)
}
 0x4ab   : > { %s8035_s17 = smov 4  }
 0x4ac   : > { %7644 = dma.vmem_to_hbm [thread:$0]  (%p8247_p4), %s6565_s5, 512, %s6567_s13, %s6549_s29, %s8034_s30, %s8034_s30, %s8035_s17  }
 0x4ad PF: > { %s11160_s3 = sld [smem:[#allocation16_spill]]  ;;  %p7661_p2 = scmp.ge.s32.totalorder %s8028_s14, 2 }
 0x4af   : > { %p7657_p11 = pnand %p7661_p2, %p8251_p6 }
 0x4b1   : > { %p7658_p0 = pneg %p7657_p11 }
 0x4b3   : > { %s6581_s11 = sand.u32 1, %s11160_s3  }
 0x4b4   : > { %s6582_s16 = scalar_lea.sflag [#allocation6], %s6581_s11 }
 0x4b5   : > { %7971 = dma.done.wait (%p7658_p0), %s6582_s16, 512  }
 0x4b6   : > { %7973 = vsyncadd (%p7658_p0), %s6582_s16, 4294966784  ;;  %s26_s14 = sadd.s32 1, %s8028_s14   ;;  %s11163_s7 = sld [smem:[#allocation15_spill]] }
 0x4b7   : > { %p10957_p7 = scmp.ge.s32.totalorder %s26_s14, 10   ;;  %s11164_s29 = sld [smem:[#allocation25_spill]] }
 0x4b8   : > { %s11165_s18 = sld [smem:[#allocation17_spill]]  ;;  %s11171_s24 = smov %s7980_s25 }
 0x4b9   : > { %s11166_s9 = sld [smem:[#allocation26_spill]]  ;;  %s11172_s25 = smov %s7984_s26 }
 0x4ba   : > { %s11167_s10 = sld [smem:[#allocation20_spill]]  ;;  %s11173_s26 = smov %s8294_s21 }
 0x4bb   : > { %s11168_s11 = sld [smem:[#allocation21_spill]]  ;;  %s11174_s27 = smov %s7992_s28 }
 0x4bc   : > { %s11169_s12 = sld [smem:[#allocation22_spill]]  ;;  %s11175_s28 = smov %s11163_s7 }
 0x4bd   : > { %s11170_s13 = sld [smem:[#allocation23_spill]]  ;;  %s11176_s30 = smov %s8004_s8 }
 0x4be   : > { %s11177_s8 = smov %s11165_s18  ;;  %25 = sbr.rel (!%p10957_p7) target bundleno = 20 (0x14), region = 137 }
 0x4c3   :  { %6588 = vsyncpa [#allocation5], 1 }
 0x4c4   :  { %6590 = vsyncpa [#allocation5 + $0x1], 1 }
 0x4c5   :  { %6591 = vsyncpa [#allocation8], 1 }
 0x4c6   :  { %6593 = vsyncpa [#allocation8 + $0x1], 1 }
 0x4c7   :  { %6594 = vsyncpa [#allocation6], 1 }
 0x4c8   :  { %6596 = vsyncpa [#allocation6 + $0x1], 1 }

</bundles_post_ra>
